<compile_context>
chip_gen: v7x
topology: tpu7x:2x2x1
jax: 0.10.0
libtpu: 0.0.40
codegen_flags: <defaults>
</compile_context>

<pallas_src>
import functools

import numpy as np
import jax
import jax.numpy as jnp
from jax.experimental import pallas as pl
from jax.experimental.pallas import tpu as pltpu

K_SIZE = 4
STRIDE = 2
PAD = 1
BN_EPS = 1e-5
LRELU_SLOPE = 0.01          # torch.nn.LeakyReLU default
STD = 0.155
N_TAPS = K_SIZE * K_SIZE
DEC_OUT_PAD = ((0, 1), (0, 1), (0, 0), (0, 0))   # (out_pad_H, out_pad_W) per decoder layer


# ---------------------------------------------------------------------------
# Static layer geometry
# ---------------------------------------------------------------------------
def _layer_geometry(height, width):
    """List of (kind, Hi, Wi, Ho, Wo) for the 4 encoder + 4 decoder layers."""
    geo = []
    h, w = height, width
    for _ in range(4):
        ho = (h + 2 * PAD - K_SIZE) // STRIDE + 1
        wo = (w + 2 * PAD - K_SIZE) // STRIDE + 1
        geo.append(("conv", h, w, ho, wo))
        h, w = ho, wo
    for oph, opw in DEC_OUT_PAD:
        ho = (h - 1) * STRIDE - 2 * PAD + K_SIZE + oph
        wo = (w - 1) * STRIDE - 2 * PAD + K_SIZE + opw
        geo.append(("convT", h, w, ho, wo))
        h, w = ho, wo
    return geo


# ---------------------------------------------------------------------------
# Host-side precomputation of per-tap spatial gather operators
# ---------------------------------------------------------------------------
def _conv_gather(hi, wi, ho, wo):
    """0/1 gather operators for Conv2d(k=4, s=2, p=1).
    g[t, s_in, s_out] = 1 iff input pixel s_in feeds output pixel s_out under tap t."""
    g = np.zeros((N_TAPS, hi * wi, ho * wo), np.float32)
    for kh in range(K_SIZE):
        for kw in range(K_SIZE):
            t = kh * K_SIZE + kw
            for oy in range(ho):
                iy = STRIDE * oy + kh - PAD
                if iy < 0 or iy >= hi:
                    continue
                for ox in range(wo):
                    ix = STRIDE * ox + kw - PAD
                    if ix < 0 or ix >= wi:
                        continue
                    g[t, iy * wi + ix, oy * wo + ox] = 1.0
    return g


def _convT_gather(hi, wi, ho, wo):
    """Gather operators for ConvTranspose2d(k=4, s=2, p=1, output_padding), expressed
    as a stride-1 conv over the zero-dilated, zero-padded input (base pad = k-1-p)."""
    base = K_SIZE - 1 - PAD
    g = np.zeros((N_TAPS, hi * wi, ho * wo), np.float32)
    for kh in range(K_SIZE):
        for kw in range(K_SIZE):
            t = kh * K_SIZE + kw
            for oy in range(ho):
                py = oy + kh - base
                if py < 0 or py % STRIDE != 0 or py // STRIDE >= hi:
                    continue
                iy = py // STRIDE
                for ox in range(wo):
                    px = ox + kw - base
                    if px < 0 or px % STRIDE != 0 or px // STRIDE >= wi:
                        continue
                    ix = px // STRIDE
                    g[t, iy * wi + ix, oy * wo + ox] = 1.0
    return g


def pack_generator_params(params, batch, height, width):
    """Precompute (once, on host) every operand the fused kernel needs.
    Per layer:
      M     [Cin*S_in, Cout*S_out] bf16 : fused conv operator (weights x 0/1 gather).
            Each entry is a single weight value (taps never overlap), so bf16
            rounding of M == bf16 rounding of the weights (one rounding total).
      R     [Cout*S_out, Cout] f32      : 0/1 per-channel lane-reduction operator.
      E     [Cout, Cout*S_out] f32      : 0/1 per-channel lane-broadcast (= R^T).
      gamma [1, Cout] f32, beta [1, Cout] f32 : BN affine parameters."""
    geo = _layer_geometry(height, width)
    layers = [("conv",) + t for t in params["enc"]] + [("convT",) + t for t in params["dec"]]
    m_ops, bn_ops = [], []
    for (kind, w, gamma, beta), (_, hi, wi, ho, wo) in zip(layers, geo):
        w = np.asarray(w, np.float32)
        gamma = np.asarray(gamma, np.float32).reshape(-1)
        beta = np.asarray(beta, np.float32).reshape(-1)
        s_in, s_out = hi * wi, ho * wo
        if kind == "conv":                                   # w: [Cout, Cin, kh, kw]
            cout, cin = w.shape[0], w.shape[1]
            g = _conv_gather(hi, wi, ho, wo)
            taps = [w[:, :, kh, kw].T                         # [Cin, Cout]
                    for kh in range(K_SIZE) for kw in range(K_SIZE)]
        else:                                                # w: [Cin, Cout, kh, kw]
            cin, cout = w.shape[0], w.shape[1]
            g = _convT_gather(hi, wi, ho, wo)
            taps = [w[:, :, K_SIZE - 1 - kh, K_SIZE - 1 - kw]  # flipped kernel, [Cin, Cout]
                    for kh in range(K_SIZE) for kw in range(K_SIZE)]
        m = np.zeros((cin * s_in, cout * s_out), np.float32)
        for t in range(N_TAPS):
            m += np.kron(taps[t], g[t])                       # [(ci,si), (co,so)]
        r = np.kron(np.eye(cout, dtype=np.float32), np.ones((s_out, 1), np.float32))
        e = np.ascontiguousarray(r.T)
        m_ops.append(jnp.asarray(m, jnp.bfloat16))
        bn_ops.append((jnp.asarray(r, jnp.float32),
                       jnp.asarray(e, jnp.float32),
                       jnp.asarray(gamma.reshape(1, cout), jnp.float32),
                       jnp.asarray(beta.reshape(1, cout), jnp.float32)))
    return tuple(m_ops), tuple(bn_ops)


# ---------------------------------------------------------------------------
# Fused Pallas kernel
# ---------------------------------------------------------------------------
def _dot_f32(a, b):
    return jnp.dot(a, b, preferred_element_type=jnp.float32)


def _layer_body(x, m_ref, r_ref, e_ref, gamma_ref, beta_ref, batch):
    """[Conv2d | ConvTranspose2d](bias=False) + BatchNorm2d(train stats) + LeakyReLU.
    x: [N, Cin*S_in] f32 -> [N, Cout*S_out] f32."""
    # One MXU matmul per layer (was 32 tiny per-tap matmuls); single bf16
    # rounding of the activations per layer, f32 accumulation.
    y = _dot_f32(x.astype(jnp.bfloat16), m_ref[...])           # [N, Cout*S_out]

    cs_out, cout = r_ref.shape
    s_out = cs_out // cout
    inv_count = 1.0 / float(batch * s_out)

    # BN batch statistics over (N, H, W): per-channel lane reduction via the
    # 0/1 operator R (plain lane sum when Cout == 1), batch combine is a
    # sublane sum (XLU) — no A-matrix matmuls.
    if cout == 1:
        sums = jnp.sum(y, axis=1, keepdims=True)               # [N, 1]
        sqs = jnp.sum(y * y, axis=1, keepdims=True)
    else:
        r = r_ref[...]
        sums = _dot_f32(y, r)                                  # [N, Cout]
        sqs = _dot_f32(y * y, r)
    mean = jnp.sum(sums, axis=0, keepdims=True) * inv_count    # [1, Cout]
    ex2 = jnp.sum(sqs, axis=0, keepdims=True) * inv_count
    var = jnp.maximum(ex2 - mean * mean, 0.0)                  # biased (torch BN train)
    scale = gamma_ref[...] * jax.lax.rsqrt(var + BN_EPS)       # [1, Cout]
    shift = beta_ref[...] - mean * scale

    if cout == 1:                                              # direct broadcast
        yh = y * scale + shift
    else:                                                      # per-channel lane broadcast
        e = e_ref[...]
        yh = y * _dot_f32(scale, e) + _dot_f32(shift, e)

    # LeakyReLU(0.01)
    return jnp.where(yh > 0, yh, LRELU_SLOPE * yh)


def _generator_kernel(*refs, num_layers, add_noise):
    n_base = 2 if add_noise else 1
    n_in = n_base + 5 * num_layers            # x, [noise], (M_hbm, R, E, gamma, beta)*L
    in_refs = refs[:n_in]
    out_ref = refs[n_in]
    scratch = refs[n_in + 1:]
    m_bufs = scratch[:num_layers]
    sem = scratch[num_layers]

    # Kick off ALL fused-operator DMAs (HBM -> exact-size VMEM scratch) up front;
    # layer l's copy streams in while layers < l compute (manual P4-style overlap,
    # one semaphore per layer so the waits are independent).
    copies = []
    for l in range(num_layers):
        cp = pltpu.make_async_copy(in_refs[n_base + 5 * l], m_bufs[l], sem.at[l])
        cp.start()
        copies.append(cp)

    x = in_refs[0][...]                                        # [N, Cin*H*W] f32
    if add_noise:
        x = x + STD * in_refs[1][...]                          # x + std * randn_like(x)
    batch = x.shape[0]

    for l in range(num_layers):                                # static unroll: 8 layers
        base = n_base + 5 * l
        r_ref, e_ref, gamma_ref, beta_ref = in_refs[base + 1: base + 5]
        copies[l].wait()                                       # operator l now resident
        x = _layer_body(x, m_bufs[l], r_ref, e_ref, gamma_ref, beta_ref, batch)

    out_ref[...] = x                                           # lane-dense [N, Cout*Ho*Wo]


def _vmem_spec(arr):
    shape = tuple(arr.shape)
    zeros = (0,) * len(shape)
    return pl.BlockSpec(shape, lambda i: zeros)


def _nbytes(arr):
    return int(np.prod(arr.shape)) * jnp.dtype(arr.dtype).itemsize


# ---------------------------------------------------------------------------
# Forward pass: one pallas_call for the whole network
# ---------------------------------------------------------------------------
@functools.partial(jax.jit, static_argnames=("noise",))
def generator_forward(x, noise_sample, m_ops, bn_ops, noise=True):
    n, c, h, w = x.shape
    num_layers = len(m_ops)

    x2 = x.astype(jnp.float32).reshape(n, c * h * w)           # [N, C*H*W], pure reshape
    inputs, in_specs = [x2], [_vmem_spec(x2)]
    small_bytes = _nbytes(x2)
    if noise:
        n2 = noise_sample.astype(jnp.float32).reshape(n, c * h * w)
        inputs.append(n2)
        in_specs.append(_vmem_spec(n2))
        small_bytes += _nbytes(n2)

    m_bytes = 0
    for m, (r, e, gamma, beta) in zip(m_ops, bn_ops):
        inputs.append(m)
        in_specs.append(pl.BlockSpec(memory_space=pl.ANY))     # stays in HBM, manual DMA
        m_bytes += _nbytes(m)
        for a in (r, e, gamma, beta):
            inputs.append(a)
            in_specs.append(_vmem_spec(a))
            small_bytes += _nbytes(a)

    out_cs = m_ops[-1].shape[1]                                # Cout_last * Ho * Wo
    out_bytes = n * out_cs * 4

    scratch_shapes = [pltpu.VMEM(tuple(m.shape), jnp.bfloat16) for m in m_ops]
    scratch_shapes.append(pltpu.SemaphoreType.DMA((num_layers,)))

    # VMEM budget from actual operand bytes (+8 MiB headroom), not a blanket 32 MiB.
    # The bulk (M operators) sits in exact-size scratch, so it is never
    # double-buffered by the grid=(1,) pipeline.
    vmem_limit = int(2 * small_bytes + m_bytes + 2 * out_bytes + (8 << 20))

    out2 = pl.pallas_call(
        functools.partial(_generator_kernel, num_layers=num_layers, add_noise=noise),
        out_shape=jax.ShapeDtypeStruct((n, out_cs), jnp.float32),
        grid_spec=pltpu.PrefetchScalarGridSpec(
            num_scalar_prefetch=0,
            grid=(1,),
            in_specs=in_specs,
            out_specs=pl.BlockSpec((n, out_cs), lambda i: (0, 0)),
            scratch_shapes=scratch_shapes,
        ),
        compiler_params=pltpu.CompilerParams(
            dimension_semantics=("arbitrary",),
            vmem_limit_bytes=vmem_limit,
        ),
    )(*inputs)

    geo = _layer_geometry(h, w)
    out_h, out_w = geo[-1][3], geo[-1][4]
    cout_last = bn_ops[-1][2].shape[1]
    return out2.reshape(n, cout_last, out_h, out_w)            # back to NCHW, pure reshape


# ---------------------------------------------------------------------------
# Deterministic parameter construction (shapes follow Generator_Net.__init__)
# ---------------------------------------------------------------------------
def make_params(key, in_channels=1, n_channels=8):
    nc = n_channels
    enc_io = [(in_channels, nc), (nc, 2 * nc), (2 * nc, 4 * nc), (4 * nc, 8 * nc)]
    dec_io = [(8 * nc, 4 * nc), (4 * nc, 2 * nc), (2 * nc, nc), (nc, in_channels)]
    params = {"enc": [], "dec": []}
    keys = jax.random.split(key, 8)
    for i, (ci, co) in enumerate(enc_io):
        w = jax.random.normal(keys[i], (co, ci, K_SIZE, K_SIZE), jnp.float32) * 0.05
        params["enc"].append((w, jnp.ones((co,), jnp.float32), jnp.zeros((co,), jnp.float32)))
    for i, (ci, co) in enumerate(dec_io):
        w = jax.random.normal(keys[4 + i], (ci, co, K_SIZE, K_SIZE), jnp.float32) * 0.05
        params["dec"].append((w, jnp.ones((co,), jnp.float32), jnp.zeros((co,), jnp.float32)))
    return params


if __name__ == "__main__":
    key = jax.random.PRNGKey(0)
    k_x, k_n, k_p = jax.random.split(key, 3)

    batch, in_channels, height, width = 2, 1, 16, 16
    n_channels = 8      # hidden width kept small (module default is 32)

    x = jax.random.normal(k_x, (batch, in_channels, height, width), jnp.float32)
    noise_sample = jax.random.normal(k_n, x.shape, jnp.float32)  # stand-in for torch.randn_like
    params = make_params(k_p, in_channels=in_channels, n_channels=n_channels)
    m_ops, bn_ops = pack_generator_params(params, batch, height, width)  # host-side, once

    out = generator_forward(x, noise_sample, m_ops, bn_ops, noise=True)
    out = jax.block_until_ready(out)

    # Spatial chain: H 16->8->4->2->1->2->4->8->16 ; W 16->8->4->2->1->3->7->14->28
    assert out.shape == (batch, in_channels, 16, 28), out.shape
    assert bool(jnp.all(jnp.isfinite(out)))
    print("KERNEL_OK")
</pallas_src>

<mosaic_0001>
module attributes {stable_mosaic.version = 11 : i64} {
  func.func @_generator_kernel(%arg0: i32, %arg1: memref<2x256xf32, #tpu.memory_space<vmem>>, %arg2: memref<2x256xf32, #tpu.memory_space<vmem>>, %arg3: memref<256x512xbf16, #tpu.memory_space<any>>, %arg4: memref<512x8xf32, #tpu.memory_space<vmem>>, %arg5: memref<8x512xf32, #tpu.memory_space<vmem>>, %arg6: memref<1x8xf32, #tpu.memory_space<vmem>>, %arg7: memref<1x8xf32, #tpu.memory_space<vmem>>, %arg8: memref<512x256xbf16, #tpu.memory_space<any>>, %arg9: memref<256x16xf32, #tpu.memory_space<vmem>>, %arg10: memref<16x256xf32, #tpu.memory_space<vmem>>, %arg11: memref<1x16xf32, #tpu.memory_space<vmem>>, %arg12: memref<1x16xf32, #tpu.memory_space<vmem>>, %arg13: memref<256x128xbf16, #tpu.memory_space<any>>, %arg14: memref<128x32xf32, #tpu.memory_space<vmem>>, %arg15: memref<32x128xf32, #tpu.memory_space<vmem>>, %arg16: memref<1x32xf32, #tpu.memory_space<vmem>>, %arg17: memref<1x32xf32, #tpu.memory_space<vmem>>, %arg18: memref<128x64xbf16, #tpu.memory_space<any>>, %arg19: memref<64x64xf32, #tpu.memory_space<vmem>>, %arg20: memref<64x64xf32, #tpu.memory_space<vmem>>, %arg21: memref<1x64xf32, #tpu.memory_space<vmem>>, %arg22: memref<1x64xf32, #tpu.memory_space<vmem>>, %arg23: memref<64x192xbf16, #tpu.memory_space<any>>, %arg24: memref<192x32xf32, #tpu.memory_space<vmem>>, %arg25: memref<32x192xf32, #tpu.memory_space<vmem>>, %arg26: memref<1x32xf32, #tpu.memory_space<vmem>>, %arg27: memref<1x32xf32, #tpu.memory_space<vmem>>, %arg28: memref<192x448xbf16, #tpu.memory_space<any>>, %arg29: memref<448x16xf32, #tpu.memory_space<vmem>>, %arg30: memref<16x448xf32, #tpu.memory_space<vmem>>, %arg31: memref<1x16xf32, #tpu.memory_space<vmem>>, %arg32: memref<1x16xf32, #tpu.memory_space<vmem>>, %arg33: memref<448x896xbf16, #tpu.memory_space<any>>, %arg34: memref<896x8xf32, #tpu.memory_space<vmem>>, %arg35: memref<8x896xf32, #tpu.memory_space<vmem>>, %arg36: memref<1x8xf32, #tpu.memory_space<vmem>>, %arg37: memref<1x8xf32, #tpu.memory_space<vmem>>, %arg38: memref<896x448xbf16, #tpu.memory_space<any>>, %arg39: memref<448x1xf32, #tpu.memory_space<vmem>>, %arg40: memref<1x448xf32, #tpu.memory_space<vmem>>, %arg41: memref<1x1xf32, #tpu.memory_space<vmem>>, %arg42: memref<1x1xf32, #tpu.memory_space<vmem>>, %arg43: memref<2x448xf32, #tpu.memory_space<vmem>>, %arg44: memref<256x512xbf16, #tpu.memory_space<vmem>>, %arg45: memref<512x256xbf16, #tpu.memory_space<vmem>>, %arg46: memref<256x128xbf16, #tpu.memory_space<vmem>>, %arg47: memref<128x64xbf16, #tpu.memory_space<vmem>>, %arg48: memref<64x192xbf16, #tpu.memory_space<vmem>>, %arg49: memref<192x448xbf16, #tpu.memory_space<vmem>>, %arg50: memref<448x896xbf16, #tpu.memory_space<vmem>>, %arg51: memref<896x448xbf16, #tpu.memory_space<vmem>>, %arg52: memref<8x!tpu.dma_semaphore, #tpu.memory_space<semaphore_mem>>) attributes {dimension_semantics = [#tpu.dimension_semantics<arbitrary>], iteration_bounds = array<i64: 1>, scalar_prefetch = 0 : i64, scratch_operands = 9 : i64, tpu.core_type = #tpu.core_type<tc>, window_params = [{pipeline_mode = #tpu.pipeline_mode<synchronous>, transform_indices = @transform_0, window_bounds = array<i64: 2, 256>}, {pipeline_mode = #tpu.pipeline_mode<synchronous>, transform_indices = @transform_1, window_bounds = array<i64: 2, 256>}, {}, {pipeline_mode = #tpu.pipeline_mode<synchronous>, transform_indices = @transform_3, window_bounds = array<i64: 512, 8>}, {pipeline_mode = #tpu.pipeline_mode<synchronous>, transform_indices = @transform_4, window_bounds = array<i64: 8, 512>}, {pipeline_mode = #tpu.pipeline_mode<synchronous>, transform_indices = @transform_5, window_bounds = array<i64: 1, 8>}, {pipeline_mode = #tpu.pipeline_mode<synchronous>, transform_indices = @transform_6, window_bounds = array<i64: 1, 8>}, {}, {pipeline_mode = #tpu.pipeline_mode<synchronous>, transform_indices = @transform_8, window_bounds = array<i64: 256, 16>}, {pipeline_mode = #tpu.pipeline_mode<synchronous>, transform_indices = @transform_9, window_bounds = array<i64: 16, 256>}, {pipeline_mode = #tpu.pipeline_mode<synchronous>, transform_indices = @transform_10, window_bounds = array<i64: 1, 16>}, {pipeline_mode = #tpu.pipeline_mode<synchronous>, transform_indices = @transform_11, window_bounds = array<i64: 1, 16>}, {}, {pipeline_mode = #tpu.pipeline_mode<synchronous>, transform_indices = @transform_13, window_bounds = array<i64: 128, 32>}, {pipeline_mode = #tpu.pipeline_mode<synchronous>, transform_indices = @transform_14, window_bounds = array<i64: 32, 128>}, {pipeline_mode = #tpu.pipeline_mode<synchronous>, transform_indices = @transform_15, window_bounds = array<i64: 1, 32>}, {pipeline_mode = #tpu.pipeline_mode<synchronous>, transform_indices = @transform_16, window_bounds = array<i64: 1, 32>}, {}, {pipeline_mode = #tpu.pipeline_mode<synchronous>, transform_indices = @transform_18, window_bounds = array<i64: 64, 64>}, {pipeline_mode = #tpu.pipeline_mode<synchronous>, transform_indices = @transform_19, window_bounds = array<i64: 64, 64>}, {pipeline_mode = #tpu.pipeline_mode<synchronous>, transform_indices = @transform_20, window_bounds = array<i64: 1, 64>}, {pipeline_mode = #tpu.pipeline_mode<synchronous>, transform_indices = @transform_21, window_bounds = array<i64: 1, 64>}, {}, {pipeline_mode = #tpu.pipeline_mode<synchronous>, transform_indices = @transform_23, window_bounds = array<i64: 192, 32>}, {pipeline_mode = #tpu.pipeline_mode<synchronous>, transform_indices = @transform_24, window_bounds = array<i64: 32, 192>}, {pipeline_mode = #tpu.pipeline_mode<synchronous>, transform_indices = @transform_25, window_bounds = array<i64: 1, 32>}, {pipeline_mode = #tpu.pipeline_mode<synchronous>, transform_indices = @transform_26, window_bounds = array<i64: 1, 32>}, {}, {pipeline_mode = #tpu.pipeline_mode<synchronous>, transform_indices = @transform_28, window_bounds = array<i64: 448, 16>}, {pipeline_mode = #tpu.pipeline_mode<synchronous>, transform_indices = @transform_29, window_bounds = array<i64: 16, 448>}, {pipeline_mode = #tpu.pipeline_mode<synchronous>, transform_indices = @transform_30, window_bounds = array<i64: 1, 16>}, {pipeline_mode = #tpu.pipeline_mode<synchronous>, transform_indices = @transform_31, window_bounds = array<i64: 1, 16>}, {}, {pipeline_mode = #tpu.pipeline_mode<synchronous>, transform_indices = @transform_33, window_bounds = array<i64: 896, 8>}, {pipeline_mode = #tpu.pipeline_mode<synchronous>, transform_indices = @transform_34, window_bounds = array<i64: 8, 896>}, {pipeline_mode = #tpu.pipeline_mode<synchronous>, transform_indices = @transform_35, window_bounds = array<i64: 1, 8>}, {pipeline_mode = #tpu.pipeline_mode<synchronous>, transform_indices = @transform_36, window_bounds = array<i64: 1, 8>}, {}, {pipeline_mode = #tpu.pipeline_mode<synchronous>, transform_indices = @transform_38, window_bounds = array<i64: 448, 1>}, {pipeline_mode = #tpu.pipeline_mode<synchronous>, transform_indices = @transform_39, window_bounds = array<i64: 1, 448>}, {pipeline_mode = #tpu.pipeline_mode<synchronous>, transform_indices = @transform_40, window_bounds = array<i64: 1, 1>}, {pipeline_mode = #tpu.pipeline_mode<synchronous>, transform_indices = @transform_41, window_bounds = array<i64: 1, 1>}, {pipeline_mode = #tpu.pipeline_mode<synchronous>, transform_indices = @transform_42, window_bounds = array<i64: 2, 448>}]} {
    %c0_i32 = arith.constant 0 : i32
    %0 = tpu.memref_slice %arg52[%c0_i32] : memref<8x!tpu.dma_semaphore, #tpu.memory_space<semaphore_mem>> -> memref<1x!tpu.dma_semaphore, #tpu.memory_space<semaphore_mem>>
    %1 = tpu.memref_squeeze %0 : memref<1x!tpu.dma_semaphore, #tpu.memory_space<semaphore_mem>> -> memref<!tpu.dma_semaphore, #tpu.memory_space<semaphore_mem>>
    tpu.enqueue_dma source(%arg3 : memref<256x512xbf16, #tpu.memory_space<any>>) target(%arg44 : memref<256x512xbf16, #tpu.memory_space<vmem>>) target_semaphore(%1 : memref<!tpu.dma_semaphore, #tpu.memory_space<semaphore_mem>>)
    %c1_i32 = arith.constant 1 : i32
    %2 = tpu.memref_slice %arg52[%c1_i32] : memref<8x!tpu.dma_semaphore, #tpu.memory_space<semaphore_mem>> -> memref<1x!tpu.dma_semaphore, #tpu.memory_space<semaphore_mem>>
    %3 = tpu.memref_squeeze %2 : memref<1x!tpu.dma_semaphore, #tpu.memory_space<semaphore_mem>> -> memref<!tpu.dma_semaphore, #tpu.memory_space<semaphore_mem>>
    tpu.enqueue_dma source(%arg8 : memref<512x256xbf16, #tpu.memory_space<any>>) target(%arg45 : memref<512x256xbf16, #tpu.memory_space<vmem>>) target_semaphore(%3 : memref<!tpu.dma_semaphore, #tpu.memory_space<semaphore_mem>>)
    %c2_i32 = arith.constant 2 : i32
    %4 = tpu.memref_slice %arg52[%c2_i32] : memref<8x!tpu.dma_semaphore, #tpu.memory_space<semaphore_mem>> -> memref<1x!tpu.dma_semaphore, #tpu.memory_space<semaphore_mem>>
    %5 = tpu.memref_squeeze %4 : memref<1x!tpu.dma_semaphore, #tpu.memory_space<semaphore_mem>> -> memref<!tpu.dma_semaphore, #tpu.memory_space<semaphore_mem>>
    tpu.enqueue_dma source(%arg13 : memref<256x128xbf16, #tpu.memory_space<any>>) target(%arg46 : memref<256x128xbf16, #tpu.memory_space<vmem>>) target_semaphore(%5 : memref<!tpu.dma_semaphore, #tpu.memory_space<semaphore_mem>>)
    %c3_i32 = arith.constant 3 : i32
    %6 = tpu.memref_slice %arg52[%c3_i32] : memref<8x!tpu.dma_semaphore, #tpu.memory_space<semaphore_mem>> -> memref<1x!tpu.dma_semaphore, #tpu.memory_space<semaphore_mem>>
    %7 = tpu.memref_squeeze %6 : memref<1x!tpu.dma_semaphore, #tpu.memory_space<semaphore_mem>> -> memref<!tpu.dma_semaphore, #tpu.memory_space<semaphore_mem>>
    tpu.enqueue_dma source(%arg18 : memref<128x64xbf16, #tpu.memory_space<any>>) target(%arg47 : memref<128x64xbf16, #tpu.memory_space<vmem>>) target_semaphore(%7 : memref<!tpu.dma_semaphore, #tpu.memory_space<semaphore_mem>>)
    %c4_i32 = arith.constant 4 : i32
    %8 = tpu.memref_slice %arg52[%c4_i32] : memref<8x!tpu.dma_semaphore, #tpu.memory_space<semaphore_mem>> -> memref<1x!tpu.dma_semaphore, #tpu.memory_space<semaphore_mem>>
    %9 = tpu.memref_squeeze %8 : memref<1x!tpu.dma_semaphore, #tpu.memory_space<semaphore_mem>> -> memref<!tpu.dma_semaphore, #tpu.memory_space<semaphore_mem>>
    tpu.enqueue_dma source(%arg23 : memref<64x192xbf16, #tpu.memory_space<any>>) target(%arg48 : memref<64x192xbf16, #tpu.memory_space<vmem>>) target_semaphore(%9 : memref<!tpu.dma_semaphore, #tpu.memory_space<semaphore_mem>>)
    %c5_i32 = arith.constant 5 : i32
    %10 = tpu.memref_slice %arg52[%c5_i32] : memref<8x!tpu.dma_semaphore, #tpu.memory_space<semaphore_mem>> -> memref<1x!tpu.dma_semaphore, #tpu.memory_space<semaphore_mem>>
    %11 = tpu.memref_squeeze %10 : memref<1x!tpu.dma_semaphore, #tpu.memory_space<semaphore_mem>> -> memref<!tpu.dma_semaphore, #tpu.memory_space<semaphore_mem>>
    tpu.enqueue_dma source(%arg28 : memref<192x448xbf16, #tpu.memory_space<any>>) target(%arg49 : memref<192x448xbf16, #tpu.memory_space<vmem>>) target_semaphore(%11 : memref<!tpu.dma_semaphore, #tpu.memory_space<semaphore_mem>>)
    %c6_i32 = arith.constant 6 : i32
    %12 = tpu.memref_slice %arg52[%c6_i32] : memref<8x!tpu.dma_semaphore, #tpu.memory_space<semaphore_mem>> -> memref<1x!tpu.dma_semaphore, #tpu.memory_space<semaphore_mem>>
    %13 = tpu.memref_squeeze %12 : memref<1x!tpu.dma_semaphore, #tpu.memory_space<semaphore_mem>> -> memref<!tpu.dma_semaphore, #tpu.memory_space<semaphore_mem>>
    tpu.enqueue_dma source(%arg33 : memref<448x896xbf16, #tpu.memory_space<any>>) target(%arg50 : memref<448x896xbf16, #tpu.memory_space<vmem>>) target_semaphore(%13 : memref<!tpu.dma_semaphore, #tpu.memory_space<semaphore_mem>>)
    %c7_i32 = arith.constant 7 : i32
    %14 = tpu.memref_slice %arg52[%c7_i32] : memref<8x!tpu.dma_semaphore, #tpu.memory_space<semaphore_mem>> -> memref<1x!tpu.dma_semaphore, #tpu.memory_space<semaphore_mem>>
    %15 = tpu.memref_squeeze %14 : memref<1x!tpu.dma_semaphore, #tpu.memory_space<semaphore_mem>> -> memref<!tpu.dma_semaphore, #tpu.memory_space<semaphore_mem>>
    tpu.enqueue_dma source(%arg38 : memref<896x448xbf16, #tpu.memory_space<any>>) target(%arg51 : memref<896x448xbf16, #tpu.memory_space<vmem>>) target_semaphore(%15 : memref<!tpu.dma_semaphore, #tpu.memory_space<semaphore_mem>>)
    %c0 = arith.constant 0 : index
    %c0_0 = arith.constant 0 : index
    %16 = vector.load %arg1[%c0, %c0_0] : memref<2x256xf32, #tpu.memory_space<vmem>>, vector<2x256xf32>
    %c0_1 = arith.constant 0 : index
    %c0_2 = arith.constant 0 : index
    %17 = vector.load %arg2[%c0_1, %c0_2] : memref<2x256xf32, #tpu.memory_space<vmem>>, vector<2x256xf32>
    %cst = arith.constant 1.550000e-01 : f32
    %18 = vector.broadcast %cst : f32 to vector<2x256xf32>
    %19 = arith.mulf %18, %17 : vector<2x256xf32>
    %20 = arith.addf %16, %19 : vector<2x256xf32>
    %c0_i32_3 = arith.constant 0 : i32
    %21 = tpu.memref_slice %arg52[%c0_i32_3] : memref<8x!tpu.dma_semaphore, #tpu.memory_space<semaphore_mem>> -> memref<1x!tpu.dma_semaphore, #tpu.memory_space<semaphore_mem>>
    %22 = tpu.memref_squeeze %21 : memref<1x!tpu.dma_semaphore, #tpu.memory_space<semaphore_mem>> -> memref<!tpu.dma_semaphore, #tpu.memory_space<semaphore_mem>>
    tpu.wait_dma2 semaphore(%22 : memref<!tpu.dma_semaphore, #tpu.memory_space<semaphore_mem>>) src(%arg3 : memref<256x512xbf16, #tpu.memory_space<any>>) dst(%arg44 : memref<256x512xbf16, #tpu.memory_space<vmem>>)
    %23 = arith.truncf %20 : vector<2x256xf32> to vector<2x256xbf16>
    %c0_4 = arith.constant 0 : index
    %c0_5 = arith.constant 0 : index
    %24 = vector.load %arg44[%c0_4, %c0_5] : memref<256x512xbf16, #tpu.memory_space<vmem>>, vector<256x512xbf16>
    %cst_6 = arith.constant dense<0.000000e+00> : vector<2x512xf32>
    %25 = tpu.matmul %23, %24, %cst_6 {dimension_numbers = #tpu.dot_dimension_numbers<[1], [0], [0], [1], [0, 0, 1, 1], [], []>} : vector<2x256xbf16>, vector<256x512xbf16>, vector<2x512xf32> -> vector<2x512xf32>
    %c0_7 = arith.constant 0 : index
    %c0_8 = arith.constant 0 : index
    %26 = vector.load %arg4[%c0_7, %c0_8] : memref<512x8xf32, #tpu.memory_space<vmem>>, vector<512x8xf32>
    %cst_9 = arith.constant dense<0.000000e+00> : vector<2x8xf32>
    %27 = tpu.matmul %25, %26, %cst_9 {dimension_numbers = #tpu.dot_dimension_numbers<[1], [0], [0], [1], [0, 0, 1, 1], [], []>} : vector<2x512xf32>, vector<512x8xf32>, vector<2x8xf32> -> vector<2x8xf32>
    %28 = arith.mulf %25, %25 : vector<2x512xf32>
    %cst_10 = arith.constant dense<0.000000e+00> : vector<2x8xf32>
    %29 = tpu.matmul %28, %26, %cst_10 {dimension_numbers = #tpu.dot_dimension_numbers<[1], [0], [0], [1], [0, 0, 1, 1], [], []>} : vector<2x512xf32>, vector<512x8xf32>, vector<2x8xf32> -> vector<2x8xf32>
    %cst_11 = arith.constant dense<0.000000e+00> : vector<8xf32>
    %30 = vector.multi_reduction <add>, %27, %cst_11 [0] : vector<2x8xf32> to vector<8xf32>
    %31 = vector.shape_cast %30 : vector<8xf32> to vector<1x8xf32>
    %cst_12 = arith.constant 7.812500e-03 : f32
    %32 = vector.broadcast %cst_12 : f32 to vector<1x8xf32>
    %33 = arith.mulf %31, %32 : vector<1x8xf32>
    %cst_13 = arith.constant dense<0.000000e+00> : vector<8xf32>
    %34 = vector.multi_reduction <add>, %29, %cst_13 [0] : vector<2x8xf32> to vector<8xf32>
    %35 = vector.shape_cast %34 : vector<8xf32> to vector<1x8xf32>
    %cst_14 = arith.constant 7.812500e-03 : f32
    %36 = vector.broadcast %cst_14 : f32 to vector<1x8xf32>
    %37 = arith.mulf %35, %36 : vector<1x8xf32>
    %38 = arith.mulf %33, %33 : vector<1x8xf32>
    %39 = arith.subf %37, %38 : vector<1x8xf32>
    %cst_15 = arith.constant 0.000000e+00 : f32
    %40 = vector.broadcast %cst_15 : f32 to vector<1x8xf32>
    %41 = arith.maximumf %39, %40 : vector<1x8xf32>
    %c0_16 = arith.constant 0 : index
    %c0_17 = arith.constant 0 : index
    %42 = vector.load %arg6[%c0_16, %c0_17] : memref<1x8xf32, #tpu.memory_space<vmem>>, vector<1x8xf32>
    %cst_18 = arith.constant 9.99999974E-6 : f32
    %43 = vector.broadcast %cst_18 : f32 to vector<1x8xf32>
    %44 = arith.addf %41, %43 : vector<1x8xf32>
    %45 = math.rsqrt %44 : vector<1x8xf32>
    %46 = arith.mulf %42, %45 : vector<1x8xf32>
    %c0_19 = arith.constant 0 : index
    %c0_20 = arith.constant 0 : index
    %47 = vector.load %arg7[%c0_19, %c0_20] : memref<1x8xf32, #tpu.memory_space<vmem>>, vector<1x8xf32>
    %48 = arith.mulf %33, %46 : vector<1x8xf32>
    %49 = arith.subf %47, %48 : vector<1x8xf32>
    %c0_21 = arith.constant 0 : index
    %c0_22 = arith.constant 0 : index
    %50 = vector.load %arg5[%c0_21, %c0_22] : memref<8x512xf32, #tpu.memory_space<vmem>>, vector<8x512xf32>
    %cst_23 = arith.constant dense<0.000000e+00> : vector<1x512xf32>
    %51 = tpu.matmul %46, %50, %cst_23 {dimension_numbers = #tpu.dot_dimension_numbers<[1], [0], [0], [1], [0, 0, 1, 1], [], []>} : vector<1x8xf32>, vector<8x512xf32>, vector<1x512xf32> -> vector<1x512xf32>
    %52 = vector.broadcast %51 : vector<1x512xf32> to vector<2x512xf32>
    %53 = arith.mulf %25, %52 : vector<2x512xf32>
    %cst_24 = arith.constant dense<0.000000e+00> : vector<1x512xf32>
    %54 = tpu.matmul %49, %50, %cst_24 {dimension_numbers = #tpu.dot_dimension_numbers<[1], [0], [0], [1], [0, 0, 1, 1], [], []>} : vector<1x8xf32>, vector<8x512xf32>, vector<1x512xf32> -> vector<1x512xf32>
    %55 = vector.broadcast %54 : vector<1x512xf32> to vector<2x512xf32>
    %56 = arith.addf %53, %55 : vector<2x512xf32>
    %cst_25 = arith.constant 0.000000e+00 : f32
    %57 = vector.broadcast %cst_25 : f32 to vector<2x512xf32>
    %58 = arith.cmpf ogt, %56, %57 : vector<2x512xf32>
    %cst_26 = arith.constant 0.00999999977 : f32
    %59 = vector.broadcast %cst_26 : f32 to vector<2x512xf32>
    %60 = arith.mulf %59, %56 : vector<2x512xf32>
    %61 = arith.select %58, %56, %60 : vector<2x512xi1>, vector<2x512xf32>
    %c1_i32_27 = arith.constant 1 : i32
    %62 = tpu.memref_slice %arg52[%c1_i32_27] : memref<8x!tpu.dma_semaphore, #tpu.memory_space<semaphore_mem>> -> memref<1x!tpu.dma_semaphore, #tpu.memory_space<semaphore_mem>>
    %63 = tpu.memref_squeeze %62 : memref<1x!tpu.dma_semaphore, #tpu.memory_space<semaphore_mem>> -> memref<!tpu.dma_semaphore, #tpu.memory_space<semaphore_mem>>
    tpu.wait_dma2 semaphore(%63 : memref<!tpu.dma_semaphore, #tpu.memory_space<semaphore_mem>>) src(%arg8 : memref<512x256xbf16, #tpu.memory_space<any>>) dst(%arg45 : memref<512x256xbf16, #tpu.memory_space<vmem>>)
    %64 = arith.truncf %61 : vector<2x512xf32> to vector<2x512xbf16>
    %c0_28 = arith.constant 0 : index
    %c0_29 = arith.constant 0 : index
    %65 = vector.load %arg45[%c0_28, %c0_29] : memref<512x256xbf16, #tpu.memory_space<vmem>>, vector<512x256xbf16>
    %cst_30 = arith.constant dense<0.000000e+00> : vector<2x256xf32>
    %66 = tpu.matmul %64, %65, %cst_30 {dimension_numbers = #tpu.dot_dimension_numbers<[1], [0], [0], [1], [0, 0, 1, 1], [], []>} : vector<2x512xbf16>, vector<512x256xbf16>, vector<2x256xf32> -> vector<2x256xf32>
    %c0_31 = arith.constant 0 : index
    %c0_32 = arith.constant 0 : index
    %67 = vector.load %arg9[%c0_31, %c0_32] : memref<256x16xf32, #tpu.memory_space<vmem>>, vector<256x16xf32>
    %cst_33 = arith.constant dense<0.000000e+00> : vector<2x16xf32>
    %68 = tpu.matmul %66, %67, %cst_33 {dimension_numbers = #tpu.dot_dimension_numbers<[1], [0], [0], [1], [0, 0, 1, 1], [], []>} : vector<2x256xf32>, vector<256x16xf32>, vector<2x16xf32> -> vector<2x16xf32>
    %69 = arith.mulf %66, %66 : vector<2x256xf32>
    %cst_34 = arith.constant dense<0.000000e+00> : vector<2x16xf32>
    %70 = tpu.matmul %69, %67, %cst_34 {dimension_numbers = #tpu.dot_dimension_numbers<[1], [0], [0], [1], [0, 0, 1, 1], [], []>} : vector<2x256xf32>, vector<256x16xf32>, vector<2x16xf32> -> vector<2x16xf32>
    %cst_35 = arith.constant dense<0.000000e+00> : vector<16xf32>
    %71 = vector.multi_reduction <add>, %68, %cst_35 [0] : vector<2x16xf32> to vector<16xf32>
    %72 = vector.shape_cast %71 : vector<16xf32> to vector<1x16xf32>
    %cst_36 = arith.constant 3.125000e-02 : f32
    %73 = vector.broadcast %cst_36 : f32 to vector<1x16xf32>
    %74 = arith.mulf %72, %73 : vector<1x16xf32>
    %cst_37 = arith.constant dense<0.000000e+00> : vector<16xf32>
    %75 = vector.multi_reduction <add>, %70, %cst_37 [0] : vector<2x16xf32> to vector<16xf32>
    %76 = vector.shape_cast %75 : vector<16xf32> to vector<1x16xf32>
    %cst_38 = arith.constant 3.125000e-02 : f32
    %77 = vector.broadcast %cst_38 : f32 to vector<1x16xf32>
    %78 = arith.mulf %76, %77 : vector<1x16xf32>
    %79 = arith.mulf %74, %74 : vector<1x16xf32>
    %80 = arith.subf %78, %79 : vector<1x16xf32>
    %cst_39 = arith.constant 0.000000e+00 : f32
    %81 = vector.broadcast %cst_39 : f32 to vector<1x16xf32>
    %82 = arith.maximumf %80, %81 : vector<1x16xf32>
    %c0_40 = arith.constant 0 : index
    %c0_41 = arith.constant 0 : index
    %83 = vector.load %arg11[%c0_40, %c0_41] : memref<1x16xf32, #tpu.memory_space<vmem>>, vector<1x16xf32>
    %cst_42 = arith.constant 9.99999974E-6 : f32
    %84 = vector.broadcast %cst_42 : f32 to vector<1x16xf32>
    %85 = arith.addf %82, %84 : vector<1x16xf32>
    %86 = math.rsqrt %85 : vector<1x16xf32>
    %87 = arith.mulf %83, %86 : vector<1x16xf32>
    %c0_43 = arith.constant 0 : index
    %c0_44 = arith.constant 0 : index
    %88 = vector.load %arg12[%c0_43, %c0_44] : memref<1x16xf32, #tpu.memory_space<vmem>>, vector<1x16xf32>
    %89 = arith.mulf %74, %87 : vector<1x16xf32>
    %90 = arith.subf %88, %89 : vector<1x16xf32>
    %c0_45 = arith.constant 0 : index
    %c0_46 = arith.constant 0 : index
    %91 = vector.load %arg10[%c0_45, %c0_46] : memref<16x256xf32, #tpu.memory_space<vmem>>, vector<16x256xf32>
    %cst_47 = arith.constant dense<0.000000e+00> : vector<1x256xf32>
    %92 = tpu.matmul %87, %91, %cst_47 {dimension_numbers = #tpu.dot_dimension_numbers<[1], [0], [0], [1], [0, 0, 1, 1], [], []>} : vector<1x16xf32>, vector<16x256xf32>, vector<1x256xf32> -> vector<1x256xf32>
    %93 = vector.broadcast %92 : vector<1x256xf32> to vector<2x256xf32>
    %94 = arith.mulf %66, %93 : vector<2x256xf32>
    %cst_48 = arith.constant dense<0.000000e+00> : vector<1x256xf32>
    %95 = tpu.matmul %90, %91, %cst_48 {dimension_numbers = #tpu.dot_dimension_numbers<[1], [0], [0], [1], [0, 0, 1, 1], [], []>} : vector<1x16xf32>, vector<16x256xf32>, vector<1x256xf32> -> vector<1x256xf32>
    %96 = vector.broadcast %95 : vector<1x256xf32> to vector<2x256xf32>
    %97 = arith.addf %94, %96 : vector<2x256xf32>
    %cst_49 = arith.constant 0.000000e+00 : f32
    %98 = vector.broadcast %cst_49 : f32 to vector<2x256xf32>
    %99 = arith.cmpf ogt, %97, %98 : vector<2x256xf32>
    %cst_50 = arith.constant 0.00999999977 : f32
    %100 = vector.broadcast %cst_50 : f32 to vector<2x256xf32>
    %101 = arith.mulf %100, %97 : vector<2x256xf32>
    %102 = arith.select %99, %97, %101 : vector<2x256xi1>, vector<2x256xf32>
    %c2_i32_51 = arith.constant 2 : i32
    %103 = tpu.memref_slice %arg52[%c2_i32_51] : memref<8x!tpu.dma_semaphore, #tpu.memory_space<semaphore_mem>> -> memref<1x!tpu.dma_semaphore, #tpu.memory_space<semaphore_mem>>
    %104 = tpu.memref_squeeze %103 : memref<1x!tpu.dma_semaphore, #tpu.memory_space<semaphore_mem>> -> memref<!tpu.dma_semaphore, #tpu.memory_space<semaphore_mem>>
    tpu.wait_dma2 semaphore(%104 : memref<!tpu.dma_semaphore, #tpu.memory_space<semaphore_mem>>) src(%arg13 : memref<256x128xbf16, #tpu.memory_space<any>>) dst(%arg46 : memref<256x128xbf16, #tpu.memory_space<vmem>>)
    %105 = arith.truncf %102 : vector<2x256xf32> to vector<2x256xbf16>
    %c0_52 = arith.constant 0 : index
    %c0_53 = arith.constant 0 : index
    %106 = vector.load %arg46[%c0_52, %c0_53] : memref<256x128xbf16, #tpu.memory_space<vmem>>, vector<256x128xbf16>
    %cst_54 = arith.constant dense<0.000000e+00> : vector<2x128xf32>
    %107 = tpu.matmul %105, %106, %cst_54 {dimension_numbers = #tpu.dot_dimension_numbers<[1], [0], [0], [1], [0, 0, 1, 1], [], []>} : vector<2x256xbf16>, vector<256x128xbf16>, vector<2x128xf32> -> vector<2x128xf32>
    %c0_55 = arith.constant 0 : index
    %c0_56 = arith.constant 0 : index
    %108 = vector.load %arg14[%c0_55, %c0_56] : memref<128x32xf32, #tpu.memory_space<vmem>>, vector<128x32xf32>
    %cst_57 = arith.constant dense<0.000000e+00> : vector<2x32xf32>
    %109 = tpu.matmul %107, %108, %cst_57 {dimension_numbers = #tpu.dot_dimension_numbers<[1], [0], [0], [1], [0, 0, 1, 1], [], []>} : vector<2x128xf32>, vector<128x32xf32>, vector<2x32xf32> -> vector<2x32xf32>
    %110 = arith.mulf %107, %107 : vector<2x128xf32>
    %cst_58 = arith.constant dense<0.000000e+00> : vector<2x32xf32>
    %111 = tpu.matmul %110, %108, %cst_58 {dimension_numbers = #tpu.dot_dimension_numbers<[1], [0], [0], [1], [0, 0, 1, 1], [], []>} : vector<2x128xf32>, vector<128x32xf32>, vector<2x32xf32> -> vector<2x32xf32>
    %cst_59 = arith.constant dense<0.000000e+00> : vector<32xf32>
    %112 = vector.multi_reduction <add>, %109, %cst_59 [0] : vector<2x32xf32> to vector<32xf32>
    %113 = vector.shape_cast %112 : vector<32xf32> to vector<1x32xf32>
    %cst_60 = arith.constant 1.250000e-01 : f32
    %114 = vector.broadcast %cst_60 : f32 to vector<1x32xf32>
    %115 = arith.mulf %113, %114 : vector<1x32xf32>
    %cst_61 = arith.constant dense<0.000000e+00> : vector<32xf32>
    %116 = vector.multi_reduction <add>, %111, %cst_61 [0] : vector<2x32xf32> to vector<32xf32>
    %117 = vector.shape_cast %116 : vector<32xf32> to vector<1x32xf32>
    %cst_62 = arith.constant 1.250000e-01 : f32
    %118 = vector.broadcast %cst_62 : f32 to vector<1x32xf32>
    %119 = arith.mulf %117, %118 : vector<1x32xf32>
    %120 = arith.mulf %115, %115 : vector<1x32xf32>
    %121 = arith.subf %119, %120 : vector<1x32xf32>
    %cst_63 = arith.constant 0.000000e+00 : f32
    %122 = vector.broadcast %cst_63 : f32 to vector<1x32xf32>
    %123 = arith.maximumf %121, %122 : vector<1x32xf32>
    %c0_64 = arith.constant 0 : index
    %c0_65 = arith.constant 0 : index
    %124 = vector.load %arg16[%c0_64, %c0_65] : memref<1x32xf32, #tpu.memory_space<vmem>>, vector<1x32xf32>
    %cst_66 = arith.constant 9.99999974E-6 : f32
    %125 = vector.broadcast %cst_66 : f32 to vector<1x32xf32>
    %126 = arith.addf %123, %125 : vector<1x32xf32>
    %127 = math.rsqrt %126 : vector<1x32xf32>
    %128 = arith.mulf %124, %127 : vector<1x32xf32>
    %c0_67 = arith.constant 0 : index
    %c0_68 = arith.constant 0 : index
    %129 = vector.load %arg17[%c0_67, %c0_68] : memref<1x32xf32, #tpu.memory_space<vmem>>, vector<1x32xf32>
    %130 = arith.mulf %115, %128 : vector<1x32xf32>
    %131 = arith.subf %129, %130 : vector<1x32xf32>
    %c0_69 = arith.constant 0 : index
    %c0_70 = arith.constant 0 : index
    %132 = vector.load %arg15[%c0_69, %c0_70] : memref<32x128xf32, #tpu.memory_space<vmem>>, vector<32x128xf32>
    %cst_71 = arith.constant dense<0.000000e+00> : vector<1x128xf32>
    %133 = tpu.matmul %128, %132, %cst_71 {dimension_numbers = #tpu.dot_dimension_numbers<[1], [0], [0], [1], [0, 0, 1, 1], [], []>} : vector<1x32xf32>, vector<32x128xf32>, vector<1x128xf32> -> vector<1x128xf32>
    %134 = vector.broadcast %133 : vector<1x128xf32> to vector<2x128xf32>
    %135 = arith.mulf %107, %134 : vector<2x128xf32>
    %cst_72 = arith.constant dense<0.000000e+00> : vector<1x128xf32>
    %136 = tpu.matmul %131, %132, %cst_72 {dimension_numbers = #tpu.dot_dimension_numbers<[1], [0], [0], [1], [0, 0, 1, 1], [], []>} : vector<1x32xf32>, vector<32x128xf32>, vector<1x128xf32> -> vector<1x128xf32>
    %137 = vector.broadcast %136 : vector<1x128xf32> to vector<2x128xf32>
    %138 = arith.addf %135, %137 : vector<2x128xf32>
    %cst_73 = arith.constant 0.000000e+00 : f32
    %139 = vector.broadcast %cst_73 : f32 to vector<2x128xf32>
    %140 = arith.cmpf ogt, %138, %139 : vector<2x128xf32>
    %cst_74 = arith.constant 0.00999999977 : f32
    %141 = vector.broadcast %cst_74 : f32 to vector<2x128xf32>
    %142 = arith.mulf %141, %138 : vector<2x128xf32>
    %143 = arith.select %140, %138, %142 : vector<2x128xi1>, vector<2x128xf32>
    %c3_i32_75 = arith.constant 3 : i32
    %144 = tpu.memref_slice %arg52[%c3_i32_75] : memref<8x!tpu.dma_semaphore, #tpu.memory_space<semaphore_mem>> -> memref<1x!tpu.dma_semaphore, #tpu.memory_space<semaphore_mem>>
    %145 = tpu.memref_squeeze %144 : memref<1x!tpu.dma_semaphore, #tpu.memory_space<semaphore_mem>> -> memref<!tpu.dma_semaphore, #tpu.memory_space<semaphore_mem>>
    tpu.wait_dma2 semaphore(%145 : memref<!tpu.dma_semaphore, #tpu.memory_space<semaphore_mem>>) src(%arg18 : memref<128x64xbf16, #tpu.memory_space<any>>) dst(%arg47 : memref<128x64xbf16, #tpu.memory_space<vmem>>)
    %146 = arith.truncf %143 : vector<2x128xf32> to vector<2x128xbf16>
    %c0_76 = arith.constant 0 : index
    %c0_77 = arith.constant 0 : index
    %147 = vector.load %arg47[%c0_76, %c0_77] : memref<128x64xbf16, #tpu.memory_space<vmem>>, vector<128x64xbf16>
    %cst_78 = arith.constant dense<0.000000e+00> : vector<2x64xf32>
    %148 = tpu.matmul %146, %147, %cst_78 {dimension_numbers = #tpu.dot_dimension_numbers<[1], [0], [0], [1], [0, 0, 1, 1], [], []>} : vector<2x128xbf16>, vector<128x64xbf16>, vector<2x64xf32> -> vector<2x64xf32>
    %c0_79 = arith.constant 0 : index
    %c0_80 = arith.constant 0 : index
    %149 = vector.load %arg19[%c0_79, %c0_80] : memref<64x64xf32, #tpu.memory_space<vmem>>, vector<64x64xf32>
    %cst_81 = arith.constant dense<0.000000e+00> : vector<2x64xf32>
    %150 = tpu.matmul %148, %149, %cst_81 {dimension_numbers = #tpu.dot_dimension_numbers<[1], [0], [0], [1], [0, 0, 1, 1], [], []>} : vector<2x64xf32>, vector<64x64xf32>, vector<2x64xf32> -> vector<2x64xf32>
    %151 = arith.mulf %148, %148 : vector<2x64xf32>
    %cst_82 = arith.constant dense<0.000000e+00> : vector<2x64xf32>
    %152 = tpu.matmul %151, %149, %cst_82 {dimension_numbers = #tpu.dot_dimension_numbers<[1], [0], [0], [1], [0, 0, 1, 1], [], []>} : vector<2x64xf32>, vector<64x64xf32>, vector<2x64xf32> -> vector<2x64xf32>
    %cst_83 = arith.constant dense<0.000000e+00> : vector<64xf32>
    %153 = vector.multi_reduction <add>, %150, %cst_83 [0] : vector<2x64xf32> to vector<64xf32>
    %154 = vector.shape_cast %153 : vector<64xf32> to vector<1x64xf32>
    %cst_84 = arith.constant 5.000000e-01 : f32
    %155 = vector.broadcast %cst_84 : f32 to vector<1x64xf32>
    %156 = arith.mulf %154, %155 : vector<1x64xf32>
    %cst_85 = arith.constant dense<0.000000e+00> : vector<64xf32>
    %157 = vector.multi_reduction <add>, %152, %cst_85 [0] : vector<2x64xf32> to vector<64xf32>
    %158 = vector.shape_cast %157 : vector<64xf32> to vector<1x64xf32>
    %cst_86 = arith.constant 5.000000e-01 : f32
    %159 = vector.broadcast %cst_86 : f32 to vector<1x64xf32>
    %160 = arith.mulf %158, %159 : vector<1x64xf32>
    %161 = arith.mulf %156, %156 : vector<1x64xf32>
    %162 = arith.subf %160, %161 : vector<1x64xf32>
    %cst_87 = arith.constant 0.000000e+00 : f32
    %163 = vector.broadcast %cst_87 : f32 to vector<1x64xf32>
    %164 = arith.maximumf %162, %163 : vector<1x64xf32>
    %c0_88 = arith.constant 0 : index
    %c0_89 = arith.constant 0 : index
    %165 = vector.load %arg21[%c0_88, %c0_89] : memref<1x64xf32, #tpu.memory_space<vmem>>, vector<1x64xf32>
    %cst_90 = arith.constant 9.99999974E-6 : f32
    %166 = vector.broadcast %cst_90 : f32 to vector<1x64xf32>
    %167 = arith.addf %164, %166 : vector<1x64xf32>
    %168 = math.rsqrt %167 : vector<1x64xf32>
    %169 = arith.mulf %165, %168 : vector<1x64xf32>
    %c0_91 = arith.constant 0 : index
    %c0_92 = arith.constant 0 : index
    %170 = vector.load %arg22[%c0_91, %c0_92] : memref<1x64xf32, #tpu.memory_space<vmem>>, vector<1x64xf32>
    %171 = arith.mulf %156, %169 : vector<1x64xf32>
    %172 = arith.subf %170, %171 : vector<1x64xf32>
    %c0_93 = arith.constant 0 : index
    %c0_94 = arith.constant 0 : index
    %173 = vector.load %arg20[%c0_93, %c0_94] : memref<64x64xf32, #tpu.memory_space<vmem>>, vector<64x64xf32>
    %cst_95 = arith.constant dense<0.000000e+00> : vector<1x64xf32>
    %174 = tpu.matmul %169, %173, %cst_95 {dimension_numbers = #tpu.dot_dimension_numbers<[1], [0], [0], [1], [0, 0, 1, 1], [], []>} : vector<1x64xf32>, vector<64x64xf32>, vector<1x64xf32> -> vector<1x64xf32>
    %175 = vector.broadcast %174 : vector<1x64xf32> to vector<2x64xf32>
    %176 = arith.mulf %148, %175 : vector<2x64xf32>
    %cst_96 = arith.constant dense<0.000000e+00> : vector<1x64xf32>
    %177 = tpu.matmul %172, %173, %cst_96 {dimension_numbers = #tpu.dot_dimension_numbers<[1], [0], [0], [1], [0, 0, 1, 1], [], []>} : vector<1x64xf32>, vector<64x64xf32>, vector<1x64xf32> -> vector<1x64xf32>
    %178 = vector.broadcast %177 : vector<1x64xf32> to vector<2x64xf32>
    %179 = arith.addf %176, %178 : vector<2x64xf32>
    %cst_97 = arith.constant 0.000000e+00 : f32
    %180 = vector.broadcast %cst_97 : f32 to vector<2x64xf32>
    %181 = arith.cmpf ogt, %179, %180 : vector<2x64xf32>
    %cst_98 = arith.constant 0.00999999977 : f32
    %182 = vector.broadcast %cst_98 : f32 to vector<2x64xf32>
    %183 = arith.mulf %182, %179 : vector<2x64xf32>
    %184 = arith.select %181, %179, %183 : vector<2x64xi1>, vector<2x64xf32>
    %c4_i32_99 = arith.constant 4 : i32
    %185 = tpu.memref_slice %arg52[%c4_i32_99] : memref<8x!tpu.dma_semaphore, #tpu.memory_space<semaphore_mem>> -> memref<1x!tpu.dma_semaphore, #tpu.memory_space<semaphore_mem>>
    %186 = tpu.memref_squeeze %185 : memref<1x!tpu.dma_semaphore, #tpu.memory_space<semaphore_mem>> -> memref<!tpu.dma_semaphore, #tpu.memory_space<semaphore_mem>>
    tpu.wait_dma2 semaphore(%186 : memref<!tpu.dma_semaphore, #tpu.memory_space<semaphore_mem>>) src(%arg23 : memref<64x192xbf16, #tpu.memory_space<any>>) dst(%arg48 : memref<64x192xbf16, #tpu.memory_space<vmem>>)
    %187 = arith.truncf %184 : vector<2x64xf32> to vector<2x64xbf16>
    %c0_100 = arith.constant 0 : index
    %c0_101 = arith.constant 0 : index
    %188 = vector.load %arg48[%c0_100, %c0_101] : memref<64x192xbf16, #tpu.memory_space<vmem>>, vector<64x192xbf16>
    %cst_102 = arith.constant dense<0.000000e+00> : vector<2x192xf32>
    %189 = tpu.matmul %187, %188, %cst_102 {dimension_numbers = #tpu.dot_dimension_numbers<[1], [0], [0], [1], [0, 0, 1, 1], [], []>} : vector<2x64xbf16>, vector<64x192xbf16>, vector<2x192xf32> -> vector<2x192xf32>
    %c0_103 = arith.constant 0 : index
    %c0_104 = arith.constant 0 : index
    %190 = vector.load %arg24[%c0_103, %c0_104] : memref<192x32xf32, #tpu.memory_space<vmem>>, vector<192x32xf32>
    %cst_105 = arith.constant dense<0.000000e+00> : vector<2x32xf32>
    %191 = tpu.matmul %189, %190, %cst_105 {dimension_numbers = #tpu.dot_dimension_numbers<[1], [0], [0], [1], [0, 0, 1, 1], [], []>} : vector<2x192xf32>, vector<192x32xf32>, vector<2x32xf32> -> vector<2x32xf32>
    %192 = arith.mulf %189, %189 : vector<2x192xf32>
    %cst_106 = arith.constant dense<0.000000e+00> : vector<2x32xf32>
    %193 = tpu.matmul %192, %190, %cst_106 {dimension_numbers = #tpu.dot_dimension_numbers<[1], [0], [0], [1], [0, 0, 1, 1], [], []>} : vector<2x192xf32>, vector<192x32xf32>, vector<2x32xf32> -> vector<2x32xf32>
    %cst_107 = arith.constant dense<0.000000e+00> : vector<32xf32>
    %194 = vector.multi_reduction <add>, %191, %cst_107 [0] : vector<2x32xf32> to vector<32xf32>
    %195 = vector.shape_cast %194 : vector<32xf32> to vector<1x32xf32>
    %cst_108 = arith.constant 0.0833333358 : f32
    %196 = vector.broadcast %cst_108 : f32 to vector<1x32xf32>
    %197 = arith.mulf %195, %196 : vector<1x32xf32>
    %cst_109 = arith.constant dense<0.000000e+00> : vector<32xf32>
    %198 = vector.multi_reduction <add>, %193, %cst_109 [0] : vector<2x32xf32> to vector<32xf32>
    %199 = vector.shape_cast %198 : vector<32xf32> to vector<1x32xf32>
    %cst_110 = arith.constant 0.0833333358 : f32
    %200 = vector.broadcast %cst_110 : f32 to vector<1x32xf32>
    %201 = arith.mulf %199, %200 : vector<1x32xf32>
    %202 = arith.mulf %197, %197 : vector<1x32xf32>
    %203 = arith.subf %201, %202 : vector<1x32xf32>
    %cst_111 = arith.constant 0.000000e+00 : f32
    %204 = vector.broadcast %cst_111 : f32 to vector<1x32xf32>
    %205 = arith.maximumf %203, %204 : vector<1x32xf32>
    %c0_112 = arith.constant 0 : index
    %c0_113 = arith.constant 0 : index
    %206 = vector.load %arg26[%c0_112, %c0_113] : memref<1x32xf32, #tpu.memory_space<vmem>>, vector<1x32xf32>
    %cst_114 = arith.constant 9.99999974E-6 : f32
    %207 = vector.broadcast %cst_114 : f32 to vector<1x32xf32>
    %208 = arith.addf %205, %207 : vector<1x32xf32>
    %209 = math.rsqrt %208 : vector<1x32xf32>
    %210 = arith.mulf %206, %209 : vector<1x32xf32>
    %c0_115 = arith.constant 0 : index
    %c0_116 = arith.constant 0 : index
    %211 = vector.load %arg27[%c0_115, %c0_116] : memref<1x32xf32, #tpu.memory_space<vmem>>, vector<1x32xf32>
    %212 = arith.mulf %197, %210 : vector<1x32xf32>
    %213 = arith.subf %211, %212 : vector<1x32xf32>
    %c0_117 = arith.constant 0 : index
    %c0_118 = arith.constant 0 : index
    %214 = vector.load %arg25[%c0_117, %c0_118] : memref<32x192xf32, #tpu.memory_space<vmem>>, vector<32x192xf32>
    %cst_119 = arith.constant dense<0.000000e+00> : vector<1x192xf32>
    %215 = tpu.matmul %210, %214, %cst_119 {dimension_numbers = #tpu.dot_dimension_numbers<[1], [0], [0], [1], [0, 0, 1, 1], [], []>} : vector<1x32xf32>, vector<32x192xf32>, vector<1x192xf32> -> vector<1x192xf32>
    %216 = vector.broadcast %215 : vector<1x192xf32> to vector<2x192xf32>
    %217 = arith.mulf %189, %216 : vector<2x192xf32>
    %cst_120 = arith.constant dense<0.000000e+00> : vector<1x192xf32>
    %218 = tpu.matmul %213, %214, %cst_120 {dimension_numbers = #tpu.dot_dimension_numbers<[1], [0], [0], [1], [0, 0, 1, 1], [], []>} : vector<1x32xf32>, vector<32x192xf32>, vector<1x192xf32> -> vector<1x192xf32>
    %219 = vector.broadcast %218 : vector<1x192xf32> to vector<2x192xf32>
    %220 = arith.addf %217, %219 : vector<2x192xf32>
    %cst_121 = arith.constant 0.000000e+00 : f32
    %221 = vector.broadcast %cst_121 : f32 to vector<2x192xf32>
    %222 = arith.cmpf ogt, %220, %221 : vector<2x192xf32>
    %cst_122 = arith.constant 0.00999999977 : f32
    %223 = vector.broadcast %cst_122 : f32 to vector<2x192xf32>
    %224 = arith.mulf %223, %220 : vector<2x192xf32>
    %225 = arith.select %222, %220, %224 : vector<2x192xi1>, vector<2x192xf32>
    %c5_i32_123 = arith.constant 5 : i32
    %226 = tpu.memref_slice %arg52[%c5_i32_123] : memref<8x!tpu.dma_semaphore, #tpu.memory_space<semaphore_mem>> -> memref<1x!tpu.dma_semaphore, #tpu.memory_space<semaphore_mem>>
    %227 = tpu.memref_squeeze %226 : memref<1x!tpu.dma_semaphore, #tpu.memory_space<semaphore_mem>> -> memref<!tpu.dma_semaphore, #tpu.memory_space<semaphore_mem>>
    tpu.wait_dma2 semaphore(%227 : memref<!tpu.dma_semaphore, #tpu.memory_space<semaphore_mem>>) src(%arg28 : memref<192x448xbf16, #tpu.memory_space<any>>) dst(%arg49 : memref<192x448xbf16, #tpu.memory_space<vmem>>)
    %228 = arith.truncf %225 : vector<2x192xf32> to vector<2x192xbf16>
    %c0_124 = arith.constant 0 : index
    %c0_125 = arith.constant 0 : index
    %229 = vector.load %arg49[%c0_124, %c0_125] : memref<192x448xbf16, #tpu.memory_space<vmem>>, vector<192x448xbf16>
    %cst_126 = arith.constant dense<0.000000e+00> : vector<2x448xf32>
    %230 = tpu.matmul %228, %229, %cst_126 {dimension_numbers = #tpu.dot_dimension_numbers<[1], [0], [0], [1], [0, 0, 1, 1], [], []>} : vector<2x192xbf16>, vector<192x448xbf16>, vector<2x448xf32> -> vector<2x448xf32>
    %c0_127 = arith.constant 0 : index
    %c0_128 = arith.constant 0 : index
    %231 = vector.load %arg29[%c0_127, %c0_128] : memref<448x16xf32, #tpu.memory_space<vmem>>, vector<448x16xf32>
    %cst_129 = arith.constant dense<0.000000e+00> : vector<2x16xf32>
    %232 = tpu.matmul %230, %231, %cst_129 {dimension_numbers = #tpu.dot_dimension_numbers<[1], [0], [0], [1], [0, 0, 1, 1], [], []>} : vector<2x448xf32>, vector<448x16xf32>, vector<2x16xf32> -> vector<2x16xf32>
    %233 = arith.mulf %230, %230 : vector<2x448xf32>
    %cst_130 = arith.constant dense<0.000000e+00> : vector<2x16xf32>
    %234 = tpu.matmul %233, %231, %cst_130 {dimension_numbers = #tpu.dot_dimension_numbers<[1], [0], [0], [1], [0, 0, 1, 1], [], []>} : vector<2x448xf32>, vector<448x16xf32>, vector<2x16xf32> -> vector<2x16xf32>
    %cst_131 = arith.constant dense<0.000000e+00> : vector<16xf32>
    %235 = vector.multi_reduction <add>, %232, %cst_131 [0] : vector<2x16xf32> to vector<16xf32>
    %236 = vector.shape_cast %235 : vector<16xf32> to vector<1x16xf32>
    %cst_132 = arith.constant 0.0178571437 : f32
    %237 = vector.broadcast %cst_132 : f32 to vector<1x16xf32>
    %238 = arith.mulf %236, %237 : vector<1x16xf32>
    %cst_133 = arith.constant dense<0.000000e+00> : vector<16xf32>
    %239 = vector.multi_reduction <add>, %234, %cst_133 [0] : vector<2x16xf32> to vector<16xf32>
    %240 = vector.shape_cast %239 : vector<16xf32> to vector<1x16xf32>
    %cst_134 = arith.constant 0.0178571437 : f32
    %241 = vector.broadcast %cst_134 : f32 to vector<1x16xf32>
    %242 = arith.mulf %240, %241 : vector<1x16xf32>
    %243 = arith.mulf %238, %238 : vector<1x16xf32>
    %244 = arith.subf %242, %243 : vector<1x16xf32>
    %cst_135 = arith.constant 0.000000e+00 : f32
    %245 = vector.broadcast %cst_135 : f32 to vector<1x16xf32>
    %246 = arith.maximumf %244, %245 : vector<1x16xf32>
    %c0_136 = arith.constant 0 : index
    %c0_137 = arith.constant 0 : index
    %247 = vector.load %arg31[%c0_136, %c0_137] : memref<1x16xf32, #tpu.memory_space<vmem>>, vector<1x16xf32>
    %cst_138 = arith.constant 9.99999974E-6 : f32
    %248 = vector.broadcast %cst_138 : f32 to vector<1x16xf32>
    %249 = arith.addf %246, %248 : vector<1x16xf32>
    %250 = math.rsqrt %249 : vector<1x16xf32>
    %251 = arith.mulf %247, %250 : vector<1x16xf32>
    %c0_139 = arith.constant 0 : index
    %c0_140 = arith.constant 0 : index
    %252 = vector.load %arg32[%c0_139, %c0_140] : memref<1x16xf32, #tpu.memory_space<vmem>>, vector<1x16xf32>
    %253 = arith.mulf %238, %251 : vector<1x16xf32>
    %254 = arith.subf %252, %253 : vector<1x16xf32>
    %c0_141 = arith.constant 0 : index
    %c0_142 = arith.constant 0 : index
    %255 = vector.load %arg30[%c0_141, %c0_142] : memref<16x448xf32, #tpu.memory_space<vmem>>, vector<16x448xf32>
    %cst_143 = arith.constant dense<0.000000e+00> : vector<1x448xf32>
    %256 = tpu.matmul %251, %255, %cst_143 {dimension_numbers = #tpu.dot_dimension_numbers<[1], [0], [0], [1], [0, 0, 1, 1], [], []>} : vector<1x16xf32>, vector<16x448xf32>, vector<1x448xf32> -> vector<1x448xf32>
    %257 = vector.broadcast %256 : vector<1x448xf32> to vector<2x448xf32>
    %258 = arith.mulf %230, %257 : vector<2x448xf32>
    %cst_144 = arith.constant dense<0.000000e+00> : vector<1x448xf32>
    %259 = tpu.matmul %254, %255, %cst_144 {dimension_numbers = #tpu.dot_dimension_numbers<[1], [0], [0], [1], [0, 0, 1, 1], [], []>} : vector<1x16xf32>, vector<16x448xf32>, vector<1x448xf32> -> vector<1x448xf32>
    %260 = vector.broadcast %259 : vector<1x448xf32> to vector<2x448xf32>
    %261 = arith.addf %258, %260 : vector<2x448xf32>
    %cst_145 = arith.constant 0.000000e+00 : f32
    %262 = vector.broadcast %cst_145 : f32 to vector<2x448xf32>
    %263 = arith.cmpf ogt, %261, %262 : vector<2x448xf32>
    %cst_146 = arith.constant 0.00999999977 : f32
    %264 = vector.broadcast %cst_146 : f32 to vector<2x448xf32>
    %265 = arith.mulf %264, %261 : vector<2x448xf32>
    %266 = arith.select %263, %261, %265 : vector<2x448xi1>, vector<2x448xf32>
    %c6_i32_147 = arith.constant 6 : i32
    %267 = tpu.memref_slice %arg52[%c6_i32_147] : memref<8x!tpu.dma_semaphore, #tpu.memory_space<semaphore_mem>> -> memref<1x!tpu.dma_semaphore, #tpu.memory_space<semaphore_mem>>
    %268 = tpu.memref_squeeze %267 : memref<1x!tpu.dma_semaphore, #tpu.memory_space<semaphore_mem>> -> memref<!tpu.dma_semaphore, #tpu.memory_space<semaphore_mem>>
    tpu.wait_dma2 semaphore(%268 : memref<!tpu.dma_semaphore, #tpu.memory_space<semaphore_mem>>) src(%arg33 : memref<448x896xbf16, #tpu.memory_space<any>>) dst(%arg50 : memref<448x896xbf16, #tpu.memory_space<vmem>>)
    %269 = arith.truncf %266 : vector<2x448xf32> to vector<2x448xbf16>
    %c0_148 = arith.constant 0 : index
    %c0_149 = arith.constant 0 : index
    %270 = vector.load %arg50[%c0_148, %c0_149] : memref<448x896xbf16, #tpu.memory_space<vmem>>, vector<448x896xbf16>
    %cst_150 = arith.constant dense<0.000000e+00> : vector<2x896xf32>
    %271 = tpu.matmul %269, %270, %cst_150 {dimension_numbers = #tpu.dot_dimension_numbers<[1], [0], [0], [1], [0, 0, 1, 1], [], []>} : vector<2x448xbf16>, vector<448x896xbf16>, vector<2x896xf32> -> vector<2x896xf32>
    %c0_151 = arith.constant 0 : index
    %c0_152 = arith.constant 0 : index
    %272 = vector.load %arg34[%c0_151, %c0_152] : memref<896x8xf32, #tpu.memory_space<vmem>>, vector<896x8xf32>
    %cst_153 = arith.constant dense<0.000000e+00> : vector<2x8xf32>
    %273 = tpu.matmul %271, %272, %cst_153 {dimension_numbers = #tpu.dot_dimension_numbers<[1], [0], [0], [1], [0, 0, 1, 1], [], []>} : vector<2x896xf32>, vector<896x8xf32>, vector<2x8xf32> -> vector<2x8xf32>
    %274 = arith.mulf %271, %271 : vector<2x896xf32>
    %cst_154 = arith.constant dense<0.000000e+00> : vector<2x8xf32>
    %275 = tpu.matmul %274, %272, %cst_154 {dimension_numbers = #tpu.dot_dimension_numbers<[1], [0], [0], [1], [0, 0, 1, 1], [], []>} : vector<2x896xf32>, vector<896x8xf32>, vector<2x8xf32> -> vector<2x8xf32>
    %cst_155 = arith.constant dense<0.000000e+00> : vector<8xf32>
    %276 = vector.multi_reduction <add>, %273, %cst_155 [0] : vector<2x8xf32> to vector<8xf32>
    %277 = vector.shape_cast %276 : vector<8xf32> to vector<1x8xf32>
    %cst_156 = arith.constant 0.00446428591 : f32
    %278 = vector.broadcast %cst_156 : f32 to vector<1x8xf32>
    %279 = arith.mulf %277, %278 : vector<1x8xf32>
    %cst_157 = arith.constant dense<0.000000e+00> : vector<8xf32>
    %280 = vector.multi_reduction <add>, %275, %cst_157 [0] : vector<2x8xf32> to vector<8xf32>
    %281 = vector.shape_cast %280 : vector<8xf32> to vector<1x8xf32>
    %cst_158 = arith.constant 0.00446428591 : f32
    %282 = vector.broadcast %cst_158 : f32 to vector<1x8xf32>
    %283 = arith.mulf %281, %282 : vector<1x8xf32>
    %284 = arith.mulf %279, %279 : vector<1x8xf32>
    %285 = arith.subf %283, %284 : vector<1x8xf32>
    %cst_159 = arith.constant 0.000000e+00 : f32
    %286 = vector.broadcast %cst_159 : f32 to vector<1x8xf32>
    %287 = arith.maximumf %285, %286 : vector<1x8xf32>
    %c0_160 = arith.constant 0 : index
    %c0_161 = arith.constant 0 : index
    %288 = vector.load %arg36[%c0_160, %c0_161] : memref<1x8xf32, #tpu.memory_space<vmem>>, vector<1x8xf32>
    %cst_162 = arith.constant 9.99999974E-6 : f32
    %289 = vector.broadcast %cst_162 : f32 to vector<1x8xf32>
    %290 = arith.addf %287, %289 : vector<1x8xf32>
    %291 = math.rsqrt %290 : vector<1x8xf32>
    %292 = arith.mulf %288, %291 : vector<1x8xf32>
    %c0_163 = arith.constant 0 : index
    %c0_164 = arith.constant 0 : index
    %293 = vector.load %arg37[%c0_163, %c0_164] : memref<1x8xf32, #tpu.memory_space<vmem>>, vector<1x8xf32>
    %294 = arith.mulf %279, %292 : vector<1x8xf32>
    %295 = arith.subf %293, %294 : vector<1x8xf32>
    %c0_165 = arith.constant 0 : index
    %c0_166 = arith.constant 0 : index
    %296 = vector.load %arg35[%c0_165, %c0_166] : memref<8x896xf32, #tpu.memory_space<vmem>>, vector<8x896xf32>
    %cst_167 = arith.constant dense<0.000000e+00> : vector<1x896xf32>
    %297 = tpu.matmul %292, %296, %cst_167 {dimension_numbers = #tpu.dot_dimension_numbers<[1], [0], [0], [1], [0, 0, 1, 1], [], []>} : vector<1x8xf32>, vector<8x896xf32>, vector<1x896xf32> -> vector<1x896xf32>
    %298 = vector.broadcast %297 : vector<1x896xf32> to vector<2x896xf32>
    %299 = arith.mulf %271, %298 : vector<2x896xf32>
    %cst_168 = arith.constant dense<0.000000e+00> : vector<1x896xf32>
    %300 = tpu.matmul %295, %296, %cst_168 {dimension_numbers = #tpu.dot_dimension_numbers<[1], [0], [0], [1], [0, 0, 1, 1], [], []>} : vector<1x8xf32>, vector<8x896xf32>, vector<1x896xf32> -> vector<1x896xf32>
    %301 = vector.broadcast %300 : vector<1x896xf32> to vector<2x896xf32>
    %302 = arith.addf %299, %301 : vector<2x896xf32>
    %cst_169 = arith.constant 0.000000e+00 : f32
    %303 = vector.broadcast %cst_169 : f32 to vector<2x896xf32>
    %304 = arith.cmpf ogt, %302, %303 : vector<2x896xf32>
    %cst_170 = arith.constant 0.00999999977 : f32
    %305 = vector.broadcast %cst_170 : f32 to vector<2x896xf32>
    %306 = arith.mulf %305, %302 : vector<2x896xf32>
    %307 = arith.select %304, %302, %306 : vector<2x896xi1>, vector<2x896xf32>
    %c7_i32_171 = arith.constant 7 : i32
    %308 = tpu.memref_slice %arg52[%c7_i32_171] : memref<8x!tpu.dma_semaphore, #tpu.memory_space<semaphore_mem>> -> memref<1x!tpu.dma_semaphore, #tpu.memory_space<semaphore_mem>>
    %309 = tpu.memref_squeeze %308 : memref<1x!tpu.dma_semaphore, #tpu.memory_space<semaphore_mem>> -> memref<!tpu.dma_semaphore, #tpu.memory_space<semaphore_mem>>
    tpu.wait_dma2 semaphore(%309 : memref<!tpu.dma_semaphore, #tpu.memory_space<semaphore_mem>>) src(%arg38 : memref<896x448xbf16, #tpu.memory_space<any>>) dst(%arg51 : memref<896x448xbf16, #tpu.memory_space<vmem>>)
    %310 = arith.truncf %307 : vector<2x896xf32> to vector<2x896xbf16>
    %c0_172 = arith.constant 0 : index
    %c0_173 = arith.constant 0 : index
    %311 = vector.load %arg51[%c0_172, %c0_173] : memref<896x448xbf16, #tpu.memory_space<vmem>>, vector<896x448xbf16>
    %cst_174 = arith.constant dense<0.000000e+00> : vector<2x448xf32>
    %312 = tpu.matmul %310, %311, %cst_174 {dimension_numbers = #tpu.dot_dimension_numbers<[1], [0], [0], [1], [0, 0, 1, 1], [], []>} : vector<2x896xbf16>, vector<896x448xbf16>, vector<2x448xf32> -> vector<2x448xf32>
    %cst_175 = arith.constant dense<0.000000e+00> : vector<2xf32>
    %313 = vector.multi_reduction <add>, %312, %cst_175 [1] : vector<2x448xf32> to vector<2xf32>
    %314 = vector.shape_cast %313 : vector<2xf32> to vector<2x1xf32>
    %315 = arith.mulf %312, %312 : vector<2x448xf32>
    %cst_176 = arith.constant dense<0.000000e+00> : vector<2xf32>
    %316 = vector.multi_reduction <add>, %315, %cst_176 [1] : vector<2x448xf32> to vector<2xf32>
    %317 = vector.shape_cast %316 : vector<2xf32> to vector<2x1xf32>
    %cst_177 = arith.constant dense<0.000000e+00> : vector<1xf32>
    %318 = vector.multi_reduction <add>, %314, %cst_177 [0] : vector<2x1xf32> to vector<1xf32>
    %319 = vector.shape_cast %318 : vector<1xf32> to vector<1x1xf32>
    %cst_178 = arith.constant 0.00111607148 : f32
    %320 = vector.broadcast %cst_178 : f32 to vector<1x1xf32>
    %321 = arith.mulf %319, %320 : vector<1x1xf32>
    %cst_179 = arith.constant dense<0.000000e+00> : vector<1xf32>
    %322 = vector.multi_reduction <add>, %317, %cst_179 [0] : vector<2x1xf32> to vector<1xf32>
    %323 = vector.shape_cast %322 : vector<1xf32> to vector<1x1xf32>
    %cst_180 = arith.constant 0.00111607148 : f32
    %324 = vector.broadcast %cst_180 : f32 to vector<1x1xf32>
    %325 = arith.mulf %323, %324 : vector<1x1xf32>
    %326 = arith.mulf %321, %321 : vector<1x1xf32>
    %327 = arith.subf %325, %326 : vector<1x1xf32>
    %cst_181 = arith.constant 0.000000e+00 : f32
    %328 = vector.broadcast %cst_181 : f32 to vector<1x1xf32>
    %329 = arith.maximumf %327, %328 : vector<1x1xf32>
    %c0_182 = arith.constant 0 : index
    %c0_183 = arith.constant 0 : index
    %330 = vector.load %arg41[%c0_182, %c0_183] : memref<1x1xf32, #tpu.memory_space<vmem>>, vector<1x1xf32>
    %cst_184 = arith.constant 9.99999974E-6 : f32
    %331 = vector.broadcast %cst_184 : f32 to vector<1x1xf32>
    %332 = arith.addf %329, %331 : vector<1x1xf32>
    %333 = math.rsqrt %332 : vector<1x1xf32>
    %334 = arith.mulf %330, %333 : vector<1x1xf32>
    %c0_185 = arith.constant 0 : index
    %c0_186 = arith.constant 0 : index
    %335 = vector.load %arg42[%c0_185, %c0_186] : memref<1x1xf32, #tpu.memory_space<vmem>>, vector<1x1xf32>
    %336 = arith.mulf %321, %334 : vector<1x1xf32>
    %337 = arith.subf %335, %336 : vector<1x1xf32>
    %338 = vector.broadcast %334 : vector<1x1xf32> to vector<2x448xf32>
    %339 = arith.mulf %312, %338 : vector<2x448xf32>
    %340 = vector.broadcast %337 : vector<1x1xf32> to vector<2x448xf32>
    %341 = arith.addf %339, %340 : vector<2x448xf32>
    %cst_187 = arith.constant 0.000000e+00 : f32
    %342 = vector.broadcast %cst_187 : f32 to vector<2x448xf32>
    %343 = arith.cmpf ogt, %341, %342 : vector<2x448xf32>
    %cst_188 = arith.constant 0.00999999977 : f32
    %344 = vector.broadcast %cst_188 : f32 to vector<2x448xf32>
    %345 = arith.mulf %344, %341 : vector<2x448xf32>
    %346 = arith.select %343, %341, %345 : vector<2x448xi1>, vector<2x448xf32>
    %c0_189 = arith.constant 0 : index
    %c0_190 = arith.constant 0 : index
    %347 = vector.load %arg43[%c0_189, %c0_190] : memref<2x448xf32, #tpu.memory_space<vmem>>, vector<2x448xf32>
    tpu.vector_store %arg43[%c0_189, %c0_190], %346 {strides = array<i32>} : memref<2x448xf32, #tpu.memory_space<vmem>>, vector<2x448xf32>,
    return
  }
  func.func @transform_0(%arg0: i32) -> (i32, i32) {
    %c0_i32 = arith.constant 0 : i32
    %c0_i32_0 = arith.constant 0 : i32
    %c0_i32_1 = arith.constant 0 : i32
    return %c0_i32, %c0_i32_0 : i32, i32
  }
  func.func @transform_1(%arg0: i32) -> (i32, i32) {
    %c0_i32 = arith.constant 0 : i32
    %c0_i32_0 = arith.constant 0 : i32
    %c0_i32_1 = arith.constant 0 : i32
    return %c0_i32, %c0_i32_0 : i32, i32
  }
  func.func @transform_3(%arg0: i32) -> (i32, i32) {
    %c0_i32 = arith.constant 0 : i32
    %c0_i32_0 = arith.constant 0 : i32
    %c0_i32_1 = arith.constant 0 : i32
    return %c0_i32, %c0_i32_0 : i32, i32
  }
  func.func @transform_4(%arg0: i32) -> (i32, i32) {
    %c0_i32 = arith.constant 0 : i32
    %c0_i32_0 = arith.constant 0 : i32
    %c0_i32_1 = arith.constant 0 : i32
    return %c0_i32, %c0_i32_0 : i32, i32
  }
  func.func @transform_5(%arg0: i32) -> (i32, i32) {
    %c0_i32 = arith.constant 0 : i32
    %c0_i32_0 = arith.constant 0 : i32
    %c0_i32_1 = arith.constant 0 : i32
    return %c0_i32, %c0_i32_0 : i32, i32
  }
  func.func @transform_6(%arg0: i32) -> (i32, i32) {
    %c0_i32 = arith.constant 0 : i32
    %c0_i32_0 = arith.constant 0 : i32
    %c0_i32_1 = arith.constant 0 : i32
    return %c0_i32, %c0_i32_0 : i32, i32
  }
  func.func @transform_8(%arg0: i32) -> (i32, i32) {
    %c0_i32 = arith.constant 0 : i32
    %c0_i32_0 = arith.constant 0 : i32
    %c0_i32_1 = arith.constant 0 : i32
    return %c0_i32, %c0_i32_0 : i32, i32
  }
  func.func @transform_9(%arg0: i32) -> (i32, i32) {
    %c0_i32 = arith.constant 0 : i32
    %c0_i32_0 = arith.constant 0 : i32
    %c0_i32_1 = arith.constant 0 : i32
    return %c0_i32, %c0_i32_0 : i32, i32
  }
  func.func @transform_10(%arg0: i32) -> (i32, i32) {
    %c0_i32 = arith.constant 0 : i32
    %c0_i32_0 = arith.constant 0 : i32
    %c0_i32_1 = arith.constant 0 : i32
    return %c0_i32, %c0_i32_0 : i32, i32
  }
  func.func @transform_11(%arg0: i32) -> (i32, i32) {
    %c0_i32 = arith.constant 0 : i32
    %c0_i32_0 = arith.constant 0 : i32
    %c0_i32_1 = arith.constant 0 : i32
    return %c0_i32, %c0_i32_0 : i32, i32
  }
  func.func @transform_13(%arg0: i32) -> (i32, i32) {
    %c0_i32 = arith.constant 0 : i32
    %c0_i32_0 = arith.constant 0 : i32
    %c0_i32_1 = arith.constant 0 : i32
    return %c0_i32, %c0_i32_0 : i32, i32
  }
  func.func @transform_14(%arg0: i32) -> (i32, i32) {
    %c0_i32 = arith.constant 0 : i32
    %c0_i32_0 = arith.constant 0 : i32
    %c0_i32_1 = arith.constant 0 : i32
    return %c0_i32, %c0_i32_0 : i32, i32
  }
  func.func @transform_15(%arg0: i32) -> (i32, i32) {
    %c0_i32 = arith.constant 0 : i32
    %c0_i32_0 = arith.constant 0 : i32
    %c0_i32_1 = arith.constant 0 : i32
    return %c0_i32, %c0_i32_0 : i32, i32
  }
  func.func @transform_16(%arg0: i32) -> (i32, i32) {
    %c0_i32 = arith.constant 0 : i32
    %c0_i32_0 = arith.constant 0 : i32
    %c0_i32_1 = arith.constant 0 : i32
    return %c0_i32, %c0_i32_0 : i32, i32
  }
  func.func @transform_18(%arg0: i32) -> (i32, i32) {
    %c0_i32 = arith.constant 0 : i32
    %c0_i32_0 = arith.constant 0 : i32
    %c0_i32_1 = arith.constant 0 : i32
    return %c0_i32, %c0_i32_0 : i32, i32
  }
  func.func @transform_19(%arg0: i32) -> (i32, i32) {
    %c0_i32 = arith.constant 0 : i32
    %c0_i32_0 = arith.constant 0 : i32
    %c0_i32_1 = arith.constant 0 : i32
    return %c0_i32, %c0_i32_0 : i32, i32
  }
  func.func @transform_20(%arg0: i32) -> (i32, i32) {
    %c0_i32 = arith.constant 0 : i32
    %c0_i32_0 = arith.constant 0 : i32
    %c0_i32_1 = arith.constant 0 : i32
    return %c0_i32, %c0_i32_0 : i32, i32
  }
  func.func @transform_21(%arg0: i32) -> (i32, i32) {
    %c0_i32 = arith.constant 0 : i32
    %c0_i32_0 = arith.constant 0 : i32
    %c0_i32_1 = arith.constant 0 : i32
    return %c0_i32, %c0_i32_0 : i32, i32
  }
  func.func @transform_23(%arg0: i32) -> (i32, i32) {
    %c0_i32 = arith.constant 0 : i32
    %c0_i32_0 = arith.constant 0 : i32
    %c0_i32_1 = arith.constant 0 : i32
    return %c0_i32, %c0_i32_0 : i32, i32
  }
  func.func @transform_24(%arg0: i32) -> (i32, i32) {
    %c0_i32 = arith.constant 0 : i32
    %c0_i32_0 = arith.constant 0 : i32
    %c0_i32_1 = arith.constant 0 : i32
    return %c0_i32, %c0_i32_0 : i32, i32
  }
  func.func @transform_25(%arg0: i32) -> (i32, i32) {
    %c0_i32 = arith.constant 0 : i32
    %c0_i32_0 = arith.constant 0 : i32
    %c0_i32_1 = arith.constant 0 : i32
    return %c0_i32, %c0_i32_0 : i32, i32
  }
  func.func @transform_26(%arg0: i32) -> (i32, i32) {
    %c0_i32 = arith.constant 0 : i32
    %c0_i32_0 = arith.constant 0 : i32
    %c0_i32_1 = arith.constant 0 : i32
    return %c0_i32, %c0_i32_0 : i32, i32
  }
  func.func @transform_28(%arg0: i32) -> (i32, i32) {
    %c0_i32 = arith.constant 0 : i32
    %c0_i32_0 = arith.constant 0 : i32
    %c0_i32_1 = arith.constant 0 : i32
    return %c0_i32, %c0_i32_0 : i32, i32
  }
  func.func @transform_29(%arg0: i32) -> (i32, i32) {
    %c0_i32 = arith.constant 0 : i32
    %c0_i32_0 = arith.constant 0 : i32
    %c0_i32_1 = arith.constant 0 : i32
    return %c0_i32, %c0_i32_0 : i32, i32
  }
  func.func @transform_30(%arg0: i32) -> (i32, i32) {
    %c0_i32 = arith.constant 0 : i32
    %c0_i32_0 = arith.constant 0 : i32
    %c0_i32_1 = arith.constant 0 : i32
    return %c0_i32, %c0_i32_0 : i32, i32
  }
  func.func @transform_31(%arg0: i32) -> (i32, i32) {
    %c0_i32 = arith.constant 0 : i32
    %c0_i32_0 = arith.constant 0 : i32
    %c0_i32_1 = arith.constant 0 : i32
    return %c0_i32, %c0_i32_0 : i32, i32
  }
  func.func @transform_33(%arg0: i32) -> (i32, i32) {
    %c0_i32 = arith.constant 0 : i32
    %c0_i32_0 = arith.constant 0 : i32
    %c0_i32_1 = arith.constant 0 : i32
    return %c0_i32, %c0_i32_0 : i32, i32
  }
  func.func @transform_34(%arg0: i32) -> (i32, i32) {
    %c0_i32 = arith.constant 0 : i32
    %c0_i32_0 = arith.constant 0 : i32
    %c0_i32_1 = arith.constant 0 : i32
    return %c0_i32, %c0_i32_0 : i32, i32
  }
  func.func @transform_35(%arg0: i32) -> (i32, i32) {
    %c0_i32 = arith.constant 0 : i32
    %c0_i32_0 = arith.constant 0 : i32
    %c0_i32_1 = arith.constant 0 : i32
    return %c0_i32, %c0_i32_0 : i32, i32
  }
  func.func @transform_36(%arg0: i32) -> (i32, i32) {
    %c0_i32 = arith.constant 0 : i32
    %c0_i32_0 = arith.constant 0 : i32
    %c0_i32_1 = arith.constant 0 : i32
    return %c0_i32, %c0_i32_0 : i32, i32
  }
  func.func @transform_38(%arg0: i32) -> (i32, i32) {
    %c0_i32 = arith.constant 0 : i32
    %c0_i32_0 = arith.constant 0 : i32
    %c0_i32_1 = arith.constant 0 : i32
    return %c0_i32, %c0_i32_0 : i32, i32
  }
  func.func @transform_39(%arg0: i32) -> (i32, i32) {
    %c0_i32 = arith.constant 0 : i32
    %c0_i32_0 = arith.constant 0 : i32
    %c0_i32_1 = arith.constant 0 : i32
    return %c0_i32, %c0_i32_0 : i32, i32
  }
  func.func @transform_40(%arg0: i32) -> (i32, i32) {
    %c0_i32 = arith.constant 0 : i32
    %c0_i32_0 = arith.constant 0 : i32
    %c0_i32_1 = arith.constant 0 : i32
    return %c0_i32, %c0_i32_0 : i32, i32
  }
  func.func @transform_41(%arg0: i32) -> (i32, i32) {
    %c0_i32 = arith.constant 0 : i32
    %c0_i32_0 = arith.constant 0 : i32
    %c0_i32_1 = arith.constant 0 : i32
    return %c0_i32, %c0_i32_0 : i32, i32
  }
  func.func @transform_42(%arg0: i32) -> (i32, i32) {
    %c0_i32 = arith.constant 0 : i32
    %c0_i32_0 = arith.constant 0 : i32
    %c0_i32_1 = arith.constant 0 : i32
    return %c0_i32, %c0_i32_0 : i32, i32
  }
}

</mosaic_0001>

<bundles_post_ra>
// kernel: generator_forward.1
= control target key start
LH: loop header
LB: loop body
LE: loop exit
PB: predicated region body
PF: predicated region fallthrough
CT: control target
= control target key end

     0   :  { %s13618_s6 = smov 1   ;;  %s13619_s10 = smov 2   ;;  %s16555_s0 = inlined_call_operand.smem [shape: u32[43], index: -1, kind: input, shape index: {}] }
   0x1   :  { %s13671_s5 = sld [smem:[%s16555_s0]]   ;;  %s13620_s14 = smov 3  }
   0x2   :  { %s13676_s9 = sld [smem:[%s16555_s0 + %s13618_s6]]   ;;  %s13621_s18 = smov 4  }
   0x3   :  { %s13681_s13 = sld [smem:[%s16555_s0 + %s13619_s10]]   ;;  %s13622_s22 = smov 5  }
   0x4   :  { %s13686_s17 = sld [smem:[%s16555_s0 + %s13620_s14]]   ;;  %s13623_s26 = smov 6  }
   0x5   :  { %s13691_s21 = sld [smem:[%s16555_s0 + %s13621_s18]]   ;;  %s13624_s30 = smov 7  }
   0x6   :  { %s13696_s25 = sld [smem:[%s16555_s0 + %s13622_s22]]   ;;  %s13625_s4 = smov 8  }
   0x7   :  { %s13701_s29 = sld [smem:[%s16555_s0 + %s13623_s26]]   ;;  %s13626_s10 = smov 9  }
   0x8   :  { %s13706_s3 = sld [smem:[%s16555_s0 + %s13624_s30]]   ;;  %s13627_s15 = smov 10  }
   0x9   :  { %s13711_s8 = sld [smem:[%s16555_s0 + %s13625_s4]]   ;;  %v180_v0 = vld [vmem:[%s13681_s13] sm:$0xf]  ;;  %v182_v1 = vld [vmem:[%s13681_s13 + $0x10] sm:$0xf]  ;;  %v184_v2 = vld [vmem:[%s13681_s13 + $0x4] sm:$0xf] }
   0xa   :  { %s13718_s14 = sld [smem:[%s16555_s0 + %s13626_s10]]   ;;  %181 = vst [vmem:[#allocation2] sm:$0xf] %v180_v0  ;;  %183 = vst [vmem:[#allocation2 + $0x4] sm:$0xf] %v182_v1  ;;  %v186_v3 = vld [vmem:[%s13681_s13 + $0x14] sm:$0xf] }
   0xb   :  { %s13725_s19 = sld [smem:[%s16555_s0 + %s13627_s15]]   ;;  %185 = vst [vmem:[#allocation2 + $0x8] sm:$0xf] %v184_v2  ;;  %187 = vst [vmem:[#allocation2 + $0xc] sm:$0xf] %v186_v3  ;;  %v188_v4 = vld [vmem:[%s13681_s13 + $0x8] sm:$0xf] }
   0xc   :  { %v190_v5 = vld [vmem:[%s13681_s13 + $0x18] sm:$0xf]  ;;  %s13628_s20 = smov 11   ;;  %189 = vst [vmem:[#allocation2 + $0x10] sm:$0xf] %v188_v4  ;;  %s13629_s26 = smov 12  }
   0xd   :  { %s13732_s24 = sld [smem:[%s16555_s0 + %s13628_s20]]   ;;  %191 = vst [vmem:[#allocation2 + $0x14] sm:$0xf] %v190_v5  ;;  %v192_v6 = vld [vmem:[%s13681_s13 + $0xc] sm:$0xf]  ;;  %v194_v7 = vld [vmem:[%s13681_s13 + $0x1c] sm:$0xf] }
   0xe   :  { %s13739_s30 = sld [smem:[%s16555_s0 + %s13629_s26]]   ;;  %193 = vst [vmem:[#allocation2 + $0x18] sm:$0xf] %v192_v6  ;;  %195 = vst [vmem:[#allocation2 + $0x1c] sm:$0xf] %v194_v7  ;;  %v196_v8 = vld [vmem:[%s13681_s13 + $0x20] sm:$0xf] }
   0xf   :  { %v198_v9 = vld [vmem:[%s13681_s13 + $0x30] sm:$0xf]  ;;  %s13630_s1 = smov 13   ;;  %197 = vst [vmem:[#allocation2 + $0x20] sm:$0xf] %v196_v8  ;;  %s13631_s7 = smov 14  }
  0x10   :  { %s13746_s6 = sld [smem:[%s16555_s0 + %s13630_s1]]   ;;  %199 = vst [vmem:[#allocation2 + $0x24] sm:$0xf] %v198_v9  ;;  %v200_v10 = vld [vmem:[%s13681_s13 + $0x24] sm:$0xf]  ;;  %v202_v11 = vld [vmem:[%s13681_s13 + $0x34] sm:$0xf] }
  0x11   :  { %s13753_s12 = sld [smem:[%s16555_s0 + %s13631_s7]]   ;;  %201 = vst [vmem:[#allocation2 + $0x28] sm:$0xf] %v200_v10  ;;  %203 = vst [vmem:[#allocation2 + $0x2c] sm:$0xf] %v202_v11  ;;  %v204_v12 = vld [vmem:[%s13681_s13 + $0x28] sm:$0xf] }
  0x12   :  { %v206_v13 = vld [vmem:[%s13681_s13 + $0x38] sm:$0xf]  ;;  %s13632_s15 = smov 15   ;;  %205 = vst [vmem:[#allocation2 + $0x30] sm:$0xf] %v204_v12  ;;  %s13633_s22 = smov 16  }
  0x13   :  { %s13760_s20 = sld [smem:[%s16555_s0 + %s13632_s15]]   ;;  %207 = vst [vmem:[#allocation2 + $0x34] sm:$0xf] %v206_v13  ;;  %v208_v14 = vld [vmem:[%s13681_s13 + $0x2c] sm:$0xf]  ;;  %v210_v15 = vld [vmem:[%s13681_s13 + $0x3c] sm:$0xf] }
  0x14   :  { %s13767_s27 = sld [smem:[%s16555_s0 + %s13633_s22]]   ;;  %209 = vst [vmem:[#allocation2 + $0x38] sm:$0xf] %v208_v14  ;;  %211 = vst [vmem:[#allocation2 + $0x3c] sm:$0xf] %v210_v15  ;;  %v212_v16 = vld [vmem:[%s13681_s13 + $0x40] sm:$0xf] }
  0x15   :  { %v214_v17 = vld [vmem:[%s13681_s13 + $0x50] sm:$0xf]  ;;  %s13634_s28 = smov 17   ;;  %213 = vst [vmem:[#allocation2 + $0x40] sm:$0xf] %v212_v16  ;;  %s13635_s7 = smov 18  }
  0x16   :  { %s13774_s4 = sld [smem:[%s16555_s0 + %s13634_s28]]   ;;  %215 = vst [vmem:[#allocation2 + $0x44] sm:$0xf] %v214_v17  ;;  %v216_v18 = vld [vmem:[%s13681_s13 + $0x44] sm:$0xf]  ;;  %v218_v19 = vld [vmem:[%s13681_s13 + $0x54] sm:$0xf] }
  0x17   :  { %s13781_s15 = sld [smem:[%s16555_s0 + %s13635_s7]]   ;;  %217 = vst [vmem:[#allocation2 + $0x48] sm:$0xf] %v216_v18  ;;  %219 = vst [vmem:[#allocation2 + $0x4c] sm:$0xf] %v218_v19  ;;  %v220_v20 = vld [vmem:[%s13681_s13 + $0x48] sm:$0xf] }
  0x18   :  { %v222_v21 = vld [vmem:[%s13681_s13 + $0x58] sm:$0xf]  ;;  %s13636_s16 = smov 19   ;;  %221 = vst [vmem:[#allocation2 + $0x50] sm:$0xf] %v220_v20  ;;  %s13637_s26 = smov 20  }
  0x19   :  { %s13788_s23 = sld [smem:[%s16555_s0 + %s13636_s16]]   ;;  %223 = vst [vmem:[#allocation2 + $0x54] sm:$0xf] %v222_v21  ;;  %v224_v22 = vld [vmem:[%s13681_s13 + $0x4c] sm:$0xf]  ;;  %v226_v23 = vld [vmem:[%s13681_s13 + $0x5c] sm:$0xf] }
  0x1a   :  { %16582 = sst [smem:[#allocation29_spill]] %s13767_s27  ;;  %225 = vst [vmem:[#allocation2 + $0x58] sm:$0xf] %v224_v22  ;;  %227 = vst [vmem:[#allocation2 + $0x5c] sm:$0xf] %v226_v23  ;;  %s13638_s7 = smov 21  }
  0x1b   :  { %s13795_s2 = sld [smem:[%s16555_s0 + %s13637_s26]]   ;;  %v228_v24 = vld [vmem:[%s13681_s13 + $0x60] sm:$0xf]  ;;  %v230_v25 = vld [vmem:[%s13681_s13 + $0x70] sm:$0xf]  ;;  %v232_v26 = vld [vmem:[%s13681_s13 + $0x64] sm:$0xf] }
  0x1c   :  { %s13802_s16 = sld [smem:[%s16555_s0 + %s13638_s7]]   ;;  %229 = vst [vmem:[#allocation2 + $0x60] sm:$0xf] %v228_v24  ;;  %231 = vst [vmem:[#allocation2 + $0x64] sm:$0xf] %v230_v25  ;;  %v234_v27 = vld [vmem:[%s13681_s13 + $0x74] sm:$0xf] }
  0x1d   :  { %16583 = sst [smem:[#allocation30_spill]] %s13781_s15  ;;  %s13639_s18 = smov 22   ;;  %233 = vst [vmem:[#allocation2 + $0x68] sm:$0xf] %v232_v26  ;;  %235 = vst [vmem:[#allocation2 + $0x6c] sm:$0xf] %v234_v27 }
  0x1e   :  { %s13809_s28 = sld [smem:[%s16555_s0 + %s13639_s18]]   ;;  %v236_v28 = vld [vmem:[%s13681_s13 + $0x68] sm:$0xf]  ;;  %v238_v29 = vld [vmem:[%s13681_s13 + $0x78] sm:$0xf]  ;;  %s13640_s1 = smov 23  }
  0x1f   :  { %16584 = sst [smem:[#allocation31_spill]] %s13788_s23  ;;  %237 = vst [vmem:[#allocation2 + $0x70] sm:$0xf] %v236_v28  ;;  %239 = vst [vmem:[#allocation2 + $0x74] sm:$0xf] %v238_v29  ;;  %s13641_s22 = smov 24  }
  0x20   :  { %s13816_s11 = sld [smem:[%s16555_s0 + %s13640_s1]]   ;;  %v240_v30 = vld [vmem:[%s13681_s13 + $0x6c] sm:$0xf]  ;;  %v242_v31 = vld [vmem:[%s13681_s13 + $0x7c] sm:$0xf]  ;;  %v244_v32 = vld [vmem:[%s13681_s13 + $0x80] sm:$0xf] }
  0x21   :  { %16585 = sst [smem:[#allocation32_spill]] %s13795_s2  ;;  %241 = vst [vmem:[#allocation2 + $0x78] sm:$0xf] %v240_v30  ;;  %243 = vst [vmem:[#allocation2 + $0x7c] sm:$0xf] %v242_v31  ;;  %s13642_s7 = smov 25  }
  0x22   :  { %16586 = sst [smem:[#allocation33_spill]] %s13802_s16  ;;  %v246_v33 = vld [vmem:[%s13681_s13 + $0x90] sm:$0xf]  ;;  %245 = vst [vmem:[#allocation2 + $0x80] sm:$0xf] %v244_v32  ;;  %s13643_s18 = smov 26  }
  0x23   :  { %s13823_s16 = sld [smem:[%s16555_s0 + %s13641_s22]]   ;;  %247 = vst [vmem:[#allocation2 + $0x84] sm:$0xf] %v246_v33  ;;  %v248_v34 = vld [vmem:[%s13681_s13 + $0x84] sm:$0xf]  ;;  %v250_v35 = vld [vmem:[%s13681_s13 + $0x94] sm:$0xf] }
  0x24   :  { %249 = vst [vmem:[#allocation2 + $0x88] sm:$0xf] %v248_v34  ;;  %251 = vst [vmem:[#allocation2 + $0x8c] sm:$0xf] %v250_v35  ;;  %v252_v36 = vld [vmem:[%s13681_s13 + $0x88] sm:$0xf] }
  0x25   :  { %v254_v37 = vld [vmem:[%s13681_s13 + $0x98] sm:$0xf]  ;;  %s13644_s1 = smov 27   ;;  %253 = vst [vmem:[#allocation2 + $0x90] sm:$0xf] %v252_v36  ;;  %s13645_s22 = smov 28  }
  0x26   :  { %16587 = sst [smem:[#allocation34_spill]] %s13816_s11  ;;  %255 = vst [vmem:[#allocation2 + $0x94] sm:$0xf] %v254_v37  ;;  %v256_v38 = vld [vmem:[%s13681_s13 + $0x8c] sm:$0xf] }
  0x27   :  { %s13830_s11 = sld [smem:[%s16555_s0 + %s13642_s7]]   ;;  %v258_v39 = vld [vmem:[%s13681_s13 + $0x9c] sm:$0xf]  ;;  %257 = vst [vmem:[#allocation2 + $0x98] sm:$0xf] %v256_v38  ;;  %v260_v40 = vld [vmem:[%s13681_s13 + $0xa0] sm:$0xf] }
  0x28   :  { %259 = vst [vmem:[#allocation2 + $0x9c] sm:$0xf] %v258_v39  ;;  %v262_v41 = vld [vmem:[%s13681_s13 + $0xb0] sm:$0xf]  ;;  %s13646_s7 = smov 29  }
  0x29   :  { %16588 = sst [smem:[#allocation35_spill]] %s13823_s16  ;;  %261 = vst [vmem:[#allocation2 + $0xa0] sm:$0xf] %v260_v40  ;;  %263 = vst [vmem:[#allocation2 + $0xa4] sm:$0xf] %v262_v41 }
  0x2a   :  { %s13837_s16 = sld [smem:[%s16555_s0 + %s13643_s18]]   ;;  %v264_v42 = vld [vmem:[%s13681_s13 + $0xa4] sm:$0xf]  ;;  %v266_v43 = vld [vmem:[%s13681_s13 + $0xb4] sm:$0xf]  ;;  %s13647_s18 = smov 30  }
  0x2b   :  { %s13858_s2 = sld [smem:[%s16555_s0 + %s13646_s7]]   ;;  %265 = vst [vmem:[#allocation2 + $0xa8] sm:$0xf] %v264_v42  ;;  %267 = vst [vmem:[#allocation2 + $0xac] sm:$0xf] %v266_v43  ;;  %v268_v44 = vld [vmem:[%s13681_s13 + $0xa8] sm:$0xf] }
  0x2c   :  { %v270_v45 = vld [vmem:[%s13681_s13 + $0xb8] sm:$0xf]  ;;  %269 = vst [vmem:[#allocation2 + $0xb0] sm:$0xf] %v268_v44  ;;  %v272_v46 = vld [vmem:[%s13681_s13 + $0xac] sm:$0xf] }
  0x2d   :  { %16589 = sst [smem:[#allocation36_spill]] %s13830_s11  ;;  %271 = vst [vmem:[#allocation2 + $0xb4] sm:$0xf] %v270_v45  ;;  %v274_v47 = vld [vmem:[%s13681_s13 + $0xbc] sm:$0xf]  ;;  %s13650_s7 = smov 33  }
  0x2e   :  { %s13844_s11 = sld [smem:[%s16555_s0 + %s13644_s1]]   ;;  %s13648_s1 = smov 31   ;;  %273 = vst [vmem:[#allocation2 + $0xb8] sm:$0xf] %v272_v46  ;;  %275 = vst [vmem:[#allocation2 + $0xbc] sm:$0xf] %v274_v47 }
  0x2f   :  { %v276_v48 = vld [vmem:[%s13681_s13 + $0xc0] sm:$0xf]  ;;  %v278_v49 = vld [vmem:[%s13681_s13 + $0xd0] sm:$0xf]  ;;  %v280_v50 = vld [vmem:[%s13681_s13 + $0xc4] sm:$0xf] }
  0x30   :  { %16590 = sst [smem:[#allocation37_spill]] %s13837_s16  ;;  %277 = vst [vmem:[#allocation2 + $0xc0] sm:$0xf] %v276_v48  ;;  %279 = vst [vmem:[#allocation2 + $0xc4] sm:$0xf] %v278_v49 }
  0x31   :  { %s13851_s16 = sld [smem:[%s16555_s0 + %s13645_s22]]   ;;  %s13649_s22 = smov 32   ;;  %v282_v51 = vld [vmem:[%s13681_s13 + $0xd4] sm:$0xf]  ;;  %281 = vst [vmem:[#allocation2 + $0xc8] sm:$0xf] %v280_v50 }
  0x32   :  { %16592 = sst [smem:[#allocation39_spill]] %s13858_s2  ;;  %283 = vst [vmem:[#allocation2 + $0xcc] sm:$0xf] %v282_v51  ;;  %v284_v52 = vld [vmem:[%s13681_s13 + $0xc8] sm:$0xf] }
  0x33   :  { %s13872_s2 = sld [smem:[%s16555_s0 + %s13648_s1]]   ;;  %v286_v53 = vld [vmem:[%s13681_s13 + $0xd8] sm:$0xf]  ;;  %s13652_s1 = smov 35   ;;  %285 = vst [vmem:[#allocation2 + $0xd0] sm:$0xf] %v284_v52 }
  0x34   :  { %287 = vst [vmem:[#allocation2 + $0xd4] sm:$0xf] %v286_v53  ;;  %v288_v54 = vld [vmem:[%s13681_s13 + $0xcc] sm:$0xf]  ;;  %v290_v55 = vld [vmem:[%s13681_s13 + $0xdc] sm:$0xf] }
  0x35   :  { %289 = vst [vmem:[#allocation2 + $0xd8] sm:$0xf] %v288_v54  ;;  %291 = vst [vmem:[#allocation2 + $0xdc] sm:$0xf] %v290_v55  ;;  %v292_v56 = vld [vmem:[%s13681_s13 + $0xe0] sm:$0xf] }
  0x36   :  { %v294_v57 = vld [vmem:[%s13681_s13 + $0xf0] sm:$0xf]  ;;  %293 = vst [vmem:[#allocation2 + $0xe0] sm:$0xf] %v292_v56  ;;  %v296_v58 = vld [vmem:[%s13681_s13 + $0xe4] sm:$0xf] }
  0x37   :  { %16591 = sst [smem:[#allocation38_spill]] %s13851_s16  ;;  %295 = vst [vmem:[#allocation2 + $0xe4] sm:$0xf] %v294_v57  ;;  %v298_v59 = vld [vmem:[%s13681_s13 + $0xf4] sm:$0xf] }
  0x38   :  { %s13865_s16 = sld [smem:[%s16555_s0 + %s13647_s18]]   ;;  %s13651_s18 = smov 34   ;;  %297 = vst [vmem:[#allocation2 + $0xe8] sm:$0xf] %v296_v58  ;;  %299 = vst [vmem:[#allocation2 + $0xec] sm:$0xf] %v298_v59 }
  0x39   :  { %16594 = sst [smem:[#allocation41_spill]] %s13872_s2  ;;  %v300_v60 = vld [vmem:[%s13681_s13 + $0xe8] sm:$0xf]  ;;  %v302_v61 = vld [vmem:[%s13681_s13 + $0xf8] sm:$0xf] }
  0x3a   :  { %s13886_s2 = sld [smem:[%s16555_s0 + %s13650_s7]]   ;;  %s13654_s7 = smov 37   ;;  %301 = vst [vmem:[#allocation2 + $0xf0] sm:$0xf] %v300_v60  ;;  %303 = vst [vmem:[#allocation2 + $0xf4] sm:$0xf] %v302_v61 }
  0x3b   :  { %s13893_s23 = sld [smem:[%s16555_s0 + %s13651_s18]]   ;;  %s13655_s18 = smov 40   ;;  %v304_v62 = vld [vmem:[%s13681_s13 + $0xec] sm:$0xf]  ;;  %v306_v63 = vld [vmem:[%s13681_s13 + $0xfc] sm:$0xf] }
  0x3c   :  { %305 = vst [vmem:[#allocation2 + $0xf8] sm:$0xf] %v304_v62  ;;  %307 = vst [vmem:[#allocation2 + $0xfc] sm:$0xf] %v306_v63  ;;  %v308_v0 = vld [vmem:[%s13681_s13 + $0x100] sm:$0xf] }
  0x3d   :  { %v310_v1 = vld [vmem:[%s13681_s13 + $0x110] sm:$0xf]  ;;  %v312_v2 = vld [vmem:[%s13681_s13 + $0x104] sm:$0xf]  ;;  %309 = vst [vmem:[#allocation2 + $0x100] sm:$0xf] %v308_v0 }
  0x3e   :  { %16593 = sst [smem:[#allocation40_spill]] %s13865_s16  ;;  %311 = vst [vmem:[#allocation2 + $0x104] sm:$0xf] %v310_v1  ;;  %313 = vst [vmem:[#allocation2 + $0x108] sm:$0xf] %v312_v2 }
  0x3f   :  { %s13879_s16 = sld [smem:[%s16555_s0 + %s13649_s22]]   ;;  %s13653_s22 = smov 36   ;;  %v314_v3 = vld [vmem:[%s13681_s13 + $0x114] sm:$0xf]  ;;  %v316_v4 = vld [vmem:[%s13681_s13 + $0x108] sm:$0xf] }
  0x40   :  { %16595 = sst [smem:[#allocation42_spill]] %s13886_s2  ;;  %v318_v5 = vld [vmem:[%s13681_s13 + $0x118] sm:$0xf]  ;;  %315 = vst [vmem:[#allocation2 + $0x10c] sm:$0xf] %v314_v3 }
  0x41   :  { %16596 = sst [smem:[#allocation43_spill]] %s13893_s23  ;;  %317 = vst [vmem:[#allocation2 + $0x110] sm:$0xf] %v316_v4  ;;  %319 = vst [vmem:[#allocation2 + $0x114] sm:$0xf] %v318_v5 }
  0x42   :  { %s13900_s2 = sld [smem:[%s16555_s0 + %s13652_s1]]   ;;  %v320_v6 = vld [vmem:[%s13681_s13 + $0x10c] sm:$0xf]  ;;  %v322_v7 = vld [vmem:[%s13681_s13 + $0x11c] sm:$0xf]  ;;  %v324_v8 = vld [vmem:[%s13681_s13 + $0x120] sm:$0xf] }
  0x43   :  { %s13907_s23 = sld [smem:[%s16555_s0 + %s13653_s22]]   ;;  %321 = vst [vmem:[#allocation2 + $0x118] sm:$0xf] %v320_v6  ;;  %323 = vst [vmem:[#allocation2 + $0x11c] sm:$0xf] %v322_v7  ;;  %v326_v9 = vld [vmem:[%s13681_s13 + $0x130] sm:$0xf] }
  0x44   :  { %325 = vst [vmem:[#allocation2 + $0x120] sm:$0xf] %v324_v8  ;;  %v328_v10 = vld [vmem:[%s13681_s13 + $0x124] sm:$0xf]  ;;  %v330_v11 = vld [vmem:[%s13681_s13 + $0x134] sm:$0xf] }
  0x45   :  { %327 = vst [vmem:[#allocation2 + $0x124] sm:$0xf] %v326_v9  ;;  %329 = vst [vmem:[#allocation2 + $0x128] sm:$0xf] %v328_v10  ;;  %v332_v13 = vld [vmem:[%s13681_s13 + $0x128] sm:$0xf] }
  0x46   :  { %331 = vst [vmem:[#allocation2 + $0x12c] sm:$0xf] %v330_v11  ;;  %v334_v14 = vld [vmem:[%s13681_s13 + $0x138] sm:$0xf]  ;;  %v336_v15 = vld [vmem:[%s13681_s13 + $0x12c] sm:$0xf] }
  0x47   :  { %333 = vst [vmem:[#allocation2 + $0x130] sm:$0xf] %v332_v13  ;;  %335 = vst [vmem:[#allocation2 + $0x134] sm:$0xf] %v334_v14  ;;  %v338_v16 = vld [vmem:[%s13681_s13 + $0x13c] sm:$0xf] }
  0x48   :  { %16597 = sst [smem:[#allocation44_spill]] %s13900_s2  ;;  %337 = vst [vmem:[#allocation2 + $0x138] sm:$0xf] %v336_v15  ;;  %v340_v17 = vld [vmem:[%s13681_s13 + $0x140] sm:$0xf] }
  0x49   :  { %16598 = sst [smem:[#allocation45_spill]] %s13907_s23  ;;  %v342_v18 = vld [vmem:[%s13681_s13 + $0x150] sm:$0xf]  ;;  %339 = vst [vmem:[#allocation2 + $0x13c] sm:$0xf] %v338_v16 }
  0x4a   :  { %s13914_s2 = sld [smem:[%s16555_s0 + %s13654_s7]]   ;;  %s13656_s7 = smov 42   ;;  %341 = vst [vmem:[#allocation2 + $0x140] sm:$0xf] %v340_v17  ;;  %343 = vst [vmem:[#allocation2 + $0x144] sm:$0xf] %v342_v18 }
  0x4b   :  { %s13921_s23 = sld [smem:[%s16555_s0 + %s13655_s18]]   ;;  %s13657_s18 = smov 41   ;;  %v344_v20 = vld [vmem:[%s13681_s13 + $0x144] sm:$0xf]  ;;  %v346_v21 = vld [vmem:[%s13681_s13 + $0x154] sm:$0xf] }
  0x4c   :  { %s13928_s15 = sld [smem:[%s16555_s0 + %s13656_s7]]   ;;  %v348_v22 = vld [vmem:[%s13681_s13 + $0x148] sm:$0xf]  ;;  %345 = vst [vmem:[#allocation2 + $0x148] sm:$0xf] %v344_v20  ;;  %347 = vst [vmem:[#allocation2 + $0x14c] sm:$0xf] %v346_v21 }
  0x4d   :  { %s13935_s27 = sld [smem:[%s16555_s0 + %s13657_s18]]   ;;  %349 = vst [vmem:[#allocation2 + $0x150] sm:$0xf] %v348_v22  ;;  %v350_v23 = vld [vmem:[%s13681_s13 + $0x158] sm:$0xf]  ;;  %v352_v24 = vld [vmem:[%s13681_s13 + $0x14c] sm:$0xf] }
  0x4e   :  { %v354_v25 = vld [vmem:[%s13681_s13 + $0x15c] sm:$0xf]  ;;  %351 = vst [vmem:[#allocation2 + $0x154] sm:$0xf] %v350_v23  ;;  %353 = vst [vmem:[#allocation2 + $0x158] sm:$0xf] %v352_v24 }
  0x4f   :  { %355 = vst [vmem:[#allocation2 + $0x15c] sm:$0xf] %v354_v25  ;;  %v356_v26 = vld [vmem:[%s13681_s13 + $0x160] sm:$0xf]  ;;  %v358_v27 = vld [vmem:[%s13681_s13 + $0x170] sm:$0xf] }
  0x50   :  { %v360_v28 = vld [vmem:[%s13681_s13 + $0x164] sm:$0xf]  ;;  %357 = vst [vmem:[#allocation2 + $0x160] sm:$0xf] %v356_v26  ;;  %359 = vst [vmem:[#allocation2 + $0x164] sm:$0xf] %v358_v27 }
  0x51   :  { %v90_v12 = vstv %s13921_s23  ;;  %361 = vst [vmem:[#allocation2 + $0x168] sm:$0xf] %v360_v28  ;;  %v362_v29 = vld [vmem:[%s13681_s13 + $0x174] sm:$0xf]  ;;  %v364_v30 = vld [vmem:[%s13681_s13 + $0x168] sm:$0xf] }
  0x52   :  { %91 = vst [vmem:[#allocation11] sm:$0x1] %v90_v12  ;;  %v366_v31 = vld [vmem:[%s13681_s13 + $0x178] sm:$0xf]  ;;  %363 = vst [vmem:[#allocation2 + $0x16c] sm:$0xf] %v362_v29 }
  0x53   :  { %v92_v19 = vstv %s13935_s27  ;;  %365 = vst [vmem:[#allocation2 + $0x170] sm:$0xf] %v364_v30  ;;  %367 = vst [vmem:[#allocation2 + $0x174] sm:$0xf] %v366_v31  ;;  %v368_v32 = vld [vmem:[%s13681_s13 + $0x16c] sm:$0xf] }
  0x54   :  { %93 = vst [vmem:[#allocation12] sm:$0x1] %v92_v19  ;;  %v370_v33 = vld [vmem:[%s13681_s13 + $0x17c] sm:$0xf]  ;;  %v372_v34 = vld [vmem:[%s13681_s13 + $0x180] sm:$0xf] }
  0x55   :  { %369 = vst [vmem:[#allocation2 + $0x178] sm:$0xf] %v368_v32  ;;  %371 = vst [vmem:[#allocation2 + $0x17c] sm:$0xf] %v370_v33  ;;  %v374_v35 = vld [vmem:[%s13681_s13 + $0x190] sm:$0xf] }
  0x56   :  { %373 = vst [vmem:[#allocation2 + $0x180] sm:$0xf] %v372_v34  ;;  %v376_v36 = vld [vmem:[%s13681_s13 + $0x184] sm:$0xf]  ;;  %v378_v37 = vld [vmem:[%s13681_s13 + $0x194] sm:$0xf] }
  0x57   :  { %375 = vst [vmem:[#allocation2 + $0x184] sm:$0xf] %v374_v35  ;;  %377 = vst [vmem:[#allocation2 + $0x188] sm:$0xf] %v376_v36  ;;  %v380_v38 = vld [vmem:[%s13681_s13 + $0x188] sm:$0xf] }
  0x58   :  { %379 = vst [vmem:[#allocation2 + $0x18c] sm:$0xf] %v378_v37  ;;  %v382_v39 = vld [vmem:[%s13681_s13 + $0x198] sm:$0xf]  ;;  %v384_v40 = vld [vmem:[%s13681_s13 + $0x18c] sm:$0xf] }
  0x59   :  { %381 = vst [vmem:[#allocation2 + $0x190] sm:$0xf] %v380_v38  ;;  %383 = vst [vmem:[#allocation2 + $0x194] sm:$0xf] %v382_v39  ;;  %v386_v41 = vld [vmem:[%s13681_s13 + $0x19c] sm:$0xf] }
  0x5a   :  { %385 = vst [vmem:[#allocation2 + $0x198] sm:$0xf] %v384_v40  ;;  %v388_v42 = vld [vmem:[%s13681_s13 + $0x1a0] sm:$0xf]  ;;  %v390_v43 = vld [vmem:[%s13681_s13 + $0x1b0] sm:$0xf] }
  0x5b   :  { %387 = vst [vmem:[#allocation2 + $0x19c] sm:$0xf] %v386_v41  ;;  %389 = vst [vmem:[#allocation2 + $0x1a0] sm:$0xf] %v388_v42  ;;  %v392_v44 = vld [vmem:[%s13681_s13 + $0x1a4] sm:$0xf] }
  0x5c   :  { %391 = vst [vmem:[#allocation2 + $0x1a4] sm:$0xf] %v390_v43  ;;  %v394_v45 = vld [vmem:[%s13681_s13 + $0x1b4] sm:$0xf]  ;;  %v396_v46 = vld [vmem:[%s13681_s13 + $0x1a8] sm:$0xf] }
  0x5d   :  { %393 = vst [vmem:[#allocation2 + $0x1a8] sm:$0xf] %v392_v44  ;;  %395 = vst [vmem:[#allocation2 + $0x1ac] sm:$0xf] %v394_v45  ;;  %v398_v47 = vld [vmem:[%s13681_s13 + $0x1b8] sm:$0xf] }
  0x5e   :  { %397 = vst [vmem:[#allocation2 + $0x1b0] sm:$0xf] %v396_v46  ;;  %v400_v48 = vld [vmem:[%s13681_s13 + $0x1ac] sm:$0xf]  ;;  %v402_v49 = vld [vmem:[%s13681_s13 + $0x1bc] sm:$0xf] }
  0x5f   :  { %399 = vst [vmem:[#allocation2 + $0x1b4] sm:$0xf] %v398_v47  ;;  %401 = vst [vmem:[#allocation2 + $0x1b8] sm:$0xf] %v400_v48  ;;  %v404_v50 = vld [vmem:[%s13681_s13 + $0x1c0] sm:$0xf] }
  0x60   :  { %403 = vst [vmem:[#allocation2 + $0x1bc] sm:$0xf] %v402_v49  ;;  %v406_v51 = vld [vmem:[%s13681_s13 + $0x1d0] sm:$0xf]  ;;  %v408_v52 = vld [vmem:[%s13681_s13 + $0x1c4] sm:$0xf] }
  0x61   :  { %405 = vst [vmem:[#allocation2 + $0x1c0] sm:$0xf] %v404_v50  ;;  %407 = vst [vmem:[#allocation2 + $0x1c4] sm:$0xf] %v406_v51  ;;  %v410_v53 = vld [vmem:[%s13681_s13 + $0x1d4] sm:$0xf] }
  0x62   :  { %409 = vst [vmem:[#allocation2 + $0x1c8] sm:$0xf] %v408_v52  ;;  %v412_v54 = vld [vmem:[%s13681_s13 + $0x1c8] sm:$0xf]  ;;  %v414_v55 = vld [vmem:[%s13681_s13 + $0x1d8] sm:$0xf] }
  0x63   :  { %411 = vst [vmem:[#allocation2 + $0x1cc] sm:$0xf] %v410_v53  ;;  %413 = vst [vmem:[#allocation2 + $0x1d0] sm:$0xf] %v412_v54  ;;  %v416_v56 = vld [vmem:[%s13681_s13 + $0x1cc] sm:$0xf] }
  0x64   :  { %415 = vst [vmem:[#allocation2 + $0x1d4] sm:$0xf] %v414_v55  ;;  %v418_v57 = vld [vmem:[%s13681_s13 + $0x1dc] sm:$0xf]  ;;  %v420_v58 = vld [vmem:[%s13681_s13 + $0x1e0] sm:$0xf] }
  0x65   :  { %417 = vst [vmem:[#allocation2 + $0x1d8] sm:$0xf] %v416_v56  ;;  %419 = vst [vmem:[#allocation2 + $0x1dc] sm:$0xf] %v418_v57  ;;  %v422_v59 = vld [vmem:[%s13681_s13 + $0x1f0] sm:$0xf] }
  0x66   :  { %421 = vst [vmem:[#allocation2 + $0x1e0] sm:$0xf] %v420_v58  ;;  %v424_v60 = vld [vmem:[%s13681_s13 + $0x1e4] sm:$0xf]  ;;  %v426_v61 = vld [vmem:[%s13681_s13 + $0x1f4] sm:$0xf] }
  0x67   :  { %423 = vst [vmem:[#allocation2 + $0x1e4] sm:$0xf] %v422_v59  ;;  %425 = vst [vmem:[#allocation2 + $0x1e8] sm:$0xf] %v424_v60  ;;  %v428_v62 = vld [vmem:[%s13681_s13 + $0x1e8] sm:$0xf] }
  0x68   :  { %427 = vst [vmem:[#allocation2 + $0x1ec] sm:$0xf] %v426_v61  ;;  %v430_v63 = vld [vmem:[%s13681_s13 + $0x1f8] sm:$0xf]  ;;  %v432_v0 = vld [vmem:[%s13681_s13 + $0x1ec] sm:$0xf] }
  0x69   :  { %429 = vst [vmem:[#allocation2 + $0x1f0] sm:$0xf] %v428_v62  ;;  %431 = vst [vmem:[#allocation2 + $0x1f4] sm:$0xf] %v430_v63  ;;  %v434_v1 = vld [vmem:[%s13681_s13 + $0x1fc] sm:$0xf] }
  0x6a   :  { %433 = vst [vmem:[#allocation2 + $0x1f8] sm:$0xf] %v432_v0  ;;  %435 = vst [vmem:[#allocation2 + $0x1fc] sm:$0xf] %v434_v1 }
  0x6b   :  { %722 = vsyncadd [#allocation10], 8192  ;;  %v741_v2 = vld [vmem:[%s13706_s3] sm:$0xf]  ;;  %v743_v3 = vld [vmem:[%s13706_s3 + $0x8] sm:$0xf] }
  0x6c   :  { %742 = vst [vmem:[#allocation3] sm:$0xf] %v741_v2  ;;  %744 = vst [vmem:[#allocation3 + $0x4] sm:$0xf] %v743_v3  ;;  %v745_v4 = vld [vmem:[%s13706_s3 + $0x4] sm:$0xf] }
  0x6d   :  { %v747_v5 = vld [vmem:[%s13706_s3 + $0xc] sm:$0xf]  ;;  %v749_v6 = vld [vmem:[%s13706_s3 + $0x10] sm:$0xf]  ;;  %746 = vst [vmem:[#allocation3 + $0x8] sm:$0xf] %v745_v4 }
  0x6e   :  { %748 = vst [vmem:[#allocation3 + $0xc] sm:$0xf] %v747_v5  ;;  %750 = vst [vmem:[#allocation3 + $0x10] sm:$0xf] %v749_v6  ;;  %v751_v7 = vld [vmem:[%s13706_s3 + $0x18] sm:$0xf] }
  0x6f   :  { %v753_v8 = vld [vmem:[%s13706_s3 + $0x14] sm:$0xf]  ;;  %v755_v9 = vld [vmem:[%s13706_s3 + $0x1c] sm:$0xf]  ;;  %752 = vst [vmem:[#allocation3 + $0x14] sm:$0xf] %v751_v7 }
  0x70   :  { %754 = vst [vmem:[#allocation3 + $0x18] sm:$0xf] %v753_v8  ;;  %756 = vst [vmem:[#allocation3 + $0x1c] sm:$0xf] %v755_v9  ;;  %v757_v10 = vld [vmem:[%s13706_s3 + $0x20] sm:$0xf] }
  0x71   :  { %v759_v11 = vld [vmem:[%s13706_s3 + $0x28] sm:$0xf]  ;;  %v761_v12 = vld [vmem:[%s13706_s3 + $0x24] sm:$0xf]  ;;  %758 = vst [vmem:[#allocation3 + $0x20] sm:$0xf] %v757_v10 }
  0x72   :  { %760 = vst [vmem:[#allocation3 + $0x24] sm:$0xf] %v759_v11  ;;  %762 = vst [vmem:[#allocation3 + $0x28] sm:$0xf] %v761_v12  ;;  %v763_v13 = vld [vmem:[%s13706_s3 + $0x2c] sm:$0xf] }
  0x73   :  { %v765_v14 = vld [vmem:[%s13706_s3 + $0x30] sm:$0xf]  ;;  %v767_v15 = vld [vmem:[%s13706_s3 + $0x38] sm:$0xf]  ;;  %764 = vst [vmem:[#allocation3 + $0x2c] sm:$0xf] %v763_v13 }
  0x74   :  { %766 = vst [vmem:[#allocation3 + $0x30] sm:$0xf] %v765_v14  ;;  %768 = vst [vmem:[#allocation3 + $0x34] sm:$0xf] %v767_v15  ;;  %v769_v16 = vld [vmem:[%s13706_s3 + $0x34] sm:$0xf] }
  0x75   :  { %v771_v17 = vld [vmem:[%s13706_s3 + $0x3c] sm:$0xf]  ;;  %v773_v18 = vld [vmem:[%s13706_s3 + $0x40] sm:$0xf]  ;;  %770 = vst [vmem:[#allocation3 + $0x38] sm:$0xf] %v769_v16 }
  0x76   :  { %772 = vst [vmem:[#allocation3 + $0x3c] sm:$0xf] %v771_v17  ;;  %774 = vst [vmem:[#allocation3 + $0x40] sm:$0xf] %v773_v18  ;;  %v775_v19 = vld [vmem:[%s13706_s3 + $0x48] sm:$0xf] }
  0x77   :  { %v777_v20 = vld [vmem:[%s13706_s3 + $0x44] sm:$0xf]  ;;  %v779_v21 = vld [vmem:[%s13706_s3 + $0x4c] sm:$0xf]  ;;  %776 = vst [vmem:[#allocation3 + $0x44] sm:$0xf] %v775_v19 }
  0x78   :  { %778 = vst [vmem:[#allocation3 + $0x48] sm:$0xf] %v777_v20  ;;  %780 = vst [vmem:[#allocation3 + $0x4c] sm:$0xf] %v779_v21  ;;  %v781_v22 = vld [vmem:[%s13706_s3 + $0x50] sm:$0xf] }
  0x79   :  { %v783_v23 = vld [vmem:[%s13706_s3 + $0x58] sm:$0xf]  ;;  %v785_v24 = vld [vmem:[%s13706_s3 + $0x54] sm:$0xf]  ;;  %782 = vst [vmem:[#allocation3 + $0x50] sm:$0xf] %v781_v22 }
  0x7a   :  { %784 = vst [vmem:[#allocation3 + $0x54] sm:$0xf] %v783_v23  ;;  %786 = vst [vmem:[#allocation3 + $0x58] sm:$0xf] %v785_v24  ;;  %v787_v25 = vld [vmem:[%s13706_s3 + $0x5c] sm:$0xf] }
  0x7b   :  { %v789_v26 = vld [vmem:[%s13706_s3 + $0x60] sm:$0xf]  ;;  %v791_v27 = vld [vmem:[%s13706_s3 + $0x68] sm:$0xf]  ;;  %788 = vst [vmem:[#allocation3 + $0x5c] sm:$0xf] %v787_v25 }
  0x7c   :  { %790 = vst [vmem:[#allocation3 + $0x60] sm:$0xf] %v789_v26  ;;  %792 = vst [vmem:[#allocation3 + $0x64] sm:$0xf] %v791_v27  ;;  %v793_v28 = vld [vmem:[%s13706_s3 + $0x64] sm:$0xf] }
  0x7d   :  { %v795_v29 = vld [vmem:[%s13706_s3 + $0x6c] sm:$0xf]  ;;  %v797_v30 = vld [vmem:[%s13706_s3 + $0x70] sm:$0xf]  ;;  %794 = vst [vmem:[#allocation3 + $0x68] sm:$0xf] %v793_v28 }
  0x7e   :  { %796 = vst [vmem:[#allocation3 + $0x6c] sm:$0xf] %v795_v29  ;;  %798 = vst [vmem:[#allocation3 + $0x70] sm:$0xf] %v797_v30  ;;  %v799_v31 = vld [vmem:[%s13706_s3 + $0x78] sm:$0xf] }
  0x7f   :  { %v801_v32 = vld [vmem:[%s13706_s3 + $0x74] sm:$0xf]  ;;  %v803_v33 = vld [vmem:[%s13706_s3 + $0x7c] sm:$0xf]  ;;  %800 = vst [vmem:[#allocation3 + $0x74] sm:$0xf] %v799_v31 }
  0x80   :  { %802 = vst [vmem:[#allocation3 + $0x78] sm:$0xf] %v801_v32  ;;  %804 = vst [vmem:[#allocation3 + $0x7c] sm:$0xf] %v803_v33  ;;  %v805_v34 = vld [vmem:[%s13706_s3 + $0x80] sm:$0xf] }
  0x81   :  { %v807_v35 = vld [vmem:[%s13706_s3 + $0x88] sm:$0xf]  ;;  %v809_v36 = vld [vmem:[%s13706_s3 + $0x84] sm:$0xf]  ;;  %806 = vst [vmem:[#allocation3 + $0x80] sm:$0xf] %v805_v34 }
  0x82   :  { %808 = vst [vmem:[#allocation3 + $0x84] sm:$0xf] %v807_v35  ;;  %810 = vst [vmem:[#allocation3 + $0x88] sm:$0xf] %v809_v36  ;;  %v811_v37 = vld [vmem:[%s13706_s3 + $0x8c] sm:$0xf] }
  0x83   :  { %v813_v38 = vld [vmem:[%s13706_s3 + $0x90] sm:$0xf]  ;;  %v815_v39 = vld [vmem:[%s13706_s3 + $0x98] sm:$0xf]  ;;  %812 = vst [vmem:[#allocation3 + $0x8c] sm:$0xf] %v811_v37 }
  0x84   :  { %814 = vst [vmem:[#allocation3 + $0x90] sm:$0xf] %v813_v38  ;;  %816 = vst [vmem:[#allocation3 + $0x94] sm:$0xf] %v815_v39  ;;  %v817_v40 = vld [vmem:[%s13706_s3 + $0x94] sm:$0xf] }
  0x85   :  { %v819_v41 = vld [vmem:[%s13706_s3 + $0x9c] sm:$0xf]  ;;  %v821_v42 = vld [vmem:[%s13706_s3 + $0xa0] sm:$0xf]  ;;  %818 = vst [vmem:[#allocation3 + $0x98] sm:$0xf] %v817_v40 }
  0x86   :  { %820 = vst [vmem:[#allocation3 + $0x9c] sm:$0xf] %v819_v41  ;;  %822 = vst [vmem:[#allocation3 + $0xa0] sm:$0xf] %v821_v42  ;;  %v823_v43 = vld [vmem:[%s13706_s3 + $0xa8] sm:$0xf] }
  0x87   :  { %v825_v44 = vld [vmem:[%s13706_s3 + $0xa4] sm:$0xf]  ;;  %v827_v45 = vld [vmem:[%s13706_s3 + $0xac] sm:$0xf]  ;;  %824 = vst [vmem:[#allocation3 + $0xa4] sm:$0xf] %v823_v43 }
  0x88   :  { %826 = vst [vmem:[#allocation3 + $0xa8] sm:$0xf] %v825_v44  ;;  %828 = vst [vmem:[#allocation3 + $0xac] sm:$0xf] %v827_v45  ;;  %v829_v46 = vld [vmem:[%s13706_s3 + $0xb0] sm:$0xf] }
  0x89   :  { %v831_v47 = vld [vmem:[%s13706_s3 + $0xb8] sm:$0xf]  ;;  %v833_v48 = vld [vmem:[%s13706_s3 + $0xb4] sm:$0xf]  ;;  %830 = vst [vmem:[#allocation3 + $0xb0] sm:$0xf] %v829_v46 }
  0x8a   :  { %832 = vst [vmem:[#allocation3 + $0xb4] sm:$0xf] %v831_v47  ;;  %834 = vst [vmem:[#allocation3 + $0xb8] sm:$0xf] %v833_v48  ;;  %v835_v49 = vld [vmem:[%s13706_s3 + $0xbc] sm:$0xf] }
  0x8b   :  { %v837_v50 = vld [vmem:[%s13706_s3 + $0xc0] sm:$0xf]  ;;  %v839_v51 = vld [vmem:[%s13706_s3 + $0xc8] sm:$0xf]  ;;  %836 = vst [vmem:[#allocation3 + $0xbc] sm:$0xf] %v835_v49 }
  0x8c   :  { %838 = vst [vmem:[#allocation3 + $0xc0] sm:$0xf] %v837_v50  ;;  %840 = vst [vmem:[#allocation3 + $0xc4] sm:$0xf] %v839_v51  ;;  %v841_v52 = vld [vmem:[%s13706_s3 + $0xc4] sm:$0xf] }
  0x8d   :  { %v843_v53 = vld [vmem:[%s13706_s3 + $0xcc] sm:$0xf]  ;;  %v845_v54 = vld [vmem:[%s13706_s3 + $0xd0] sm:$0xf]  ;;  %842 = vst [vmem:[#allocation3 + $0xc8] sm:$0xf] %v841_v52 }
  0x8e   :  { %844 = vst [vmem:[#allocation3 + $0xcc] sm:$0xf] %v843_v53  ;;  %846 = vst [vmem:[#allocation3 + $0xd0] sm:$0xf] %v845_v54  ;;  %v847_v55 = vld [vmem:[%s13706_s3 + $0xd8] sm:$0xf] }
  0x8f   :  { %v849_v56 = vld [vmem:[%s13706_s3 + $0xd4] sm:$0xf]  ;;  %v851_v57 = vld [vmem:[%s13706_s3 + $0xdc] sm:$0xf]  ;;  %848 = vst [vmem:[#allocation3 + $0xd4] sm:$0xf] %v847_v55 }
  0x90   :  { %850 = vst [vmem:[#allocation3 + $0xd8] sm:$0xf] %v849_v56  ;;  %852 = vst [vmem:[#allocation3 + $0xdc] sm:$0xf] %v851_v57  ;;  %v853_v58 = vld [vmem:[%s13706_s3 + $0xe0] sm:$0xf] }
  0x91   :  { %v855_v59 = vld [vmem:[%s13706_s3 + $0xe8] sm:$0xf]  ;;  %v857_v60 = vld [vmem:[%s13706_s3 + $0xe4] sm:$0xf]  ;;  %854 = vst [vmem:[#allocation3 + $0xe0] sm:$0xf] %v853_v58 }
  0x92   :  { %856 = vst [vmem:[#allocation3 + $0xe4] sm:$0xf] %v855_v59  ;;  %858 = vst [vmem:[#allocation3 + $0xe8] sm:$0xf] %v857_v60  ;;  %v859_v61 = vld [vmem:[%s13706_s3 + $0xec] sm:$0xf] }
  0x93   :  { %v861_v62 = vld [vmem:[%s13706_s3 + $0xf0] sm:$0xf]  ;;  %v863_v63 = vld [vmem:[%s13706_s3 + $0xf8] sm:$0xf]  ;;  %860 = vst [vmem:[#allocation3 + $0xec] sm:$0xf] %v859_v61 }
  0x94   :  { %862 = vst [vmem:[#allocation3 + $0xf0] sm:$0xf] %v861_v62  ;;  %864 = vst [vmem:[#allocation3 + $0xf4] sm:$0xf] %v863_v63  ;;  %v865_v0 = vld [vmem:[%s13706_s3 + $0xf4] sm:$0xf] }
  0x95   :  { %v867_v1 = vld [vmem:[%s13706_s3 + $0xfc] sm:$0xf]  ;;  %v869_v2 = vld [vmem:[%s13706_s3 + $0x100] sm:$0xf]  ;;  %866 = vst [vmem:[#allocation3 + $0xf8] sm:$0xf] %v865_v0 }
  0x96   :  { %868 = vst [vmem:[#allocation3 + $0xfc] sm:$0xf] %v867_v1  ;;  %870 = vst [vmem:[#allocation3 + $0x100] sm:$0xf] %v869_v2  ;;  %v871_v3 = vld [vmem:[%s13706_s3 + $0x108] sm:$0xf] }
  0x97   :  { %v873_v4 = vld [vmem:[%s13706_s3 + $0x104] sm:$0xf]  ;;  %v875_v5 = vld [vmem:[%s13706_s3 + $0x10c] sm:$0xf]  ;;  %872 = vst [vmem:[#allocation3 + $0x104] sm:$0xf] %v871_v3 }
  0x98   :  { %874 = vst [vmem:[#allocation3 + $0x108] sm:$0xf] %v873_v4  ;;  %876 = vst [vmem:[#allocation3 + $0x10c] sm:$0xf] %v875_v5  ;;  %v877_v6 = vld [vmem:[%s13706_s3 + $0x110] sm:$0xf] }
  0x99   :  { %v879_v7 = vld [vmem:[%s13706_s3 + $0x118] sm:$0xf]  ;;  %v881_v8 = vld [vmem:[%s13706_s3 + $0x114] sm:$0xf]  ;;  %878 = vst [vmem:[#allocation3 + $0x110] sm:$0xf] %v877_v6 }
  0x9a   :  { %880 = vst [vmem:[#allocation3 + $0x114] sm:$0xf] %v879_v7  ;;  %882 = vst [vmem:[#allocation3 + $0x118] sm:$0xf] %v881_v8  ;;  %v883_v9 = vld [vmem:[%s13706_s3 + $0x11c] sm:$0xf] }
  0x9b   :  { %v885_v10 = vld [vmem:[%s13706_s3 + $0x120] sm:$0xf]  ;;  %v887_v11 = vld [vmem:[%s13706_s3 + $0x128] sm:$0xf]  ;;  %884 = vst [vmem:[#allocation3 + $0x11c] sm:$0xf] %v883_v9 }
  0x9c   :  { %886 = vst [vmem:[#allocation3 + $0x120] sm:$0xf] %v885_v10  ;;  %888 = vst [vmem:[#allocation3 + $0x124] sm:$0xf] %v887_v11  ;;  %v889_v12 = vld [vmem:[%s13706_s3 + $0x124] sm:$0xf] }
  0x9d   :  { %v891_v13 = vld [vmem:[%s13706_s3 + $0x12c] sm:$0xf]  ;;  %v893_v14 = vld [vmem:[%s13706_s3 + $0x130] sm:$0xf]  ;;  %890 = vst [vmem:[#allocation3 + $0x128] sm:$0xf] %v889_v12 }
  0x9e   :  { %892 = vst [vmem:[#allocation3 + $0x12c] sm:$0xf] %v891_v13  ;;  %894 = vst [vmem:[#allocation3 + $0x130] sm:$0xf] %v893_v14  ;;  %v895_v15 = vld [vmem:[%s13706_s3 + $0x138] sm:$0xf] }
  0x9f   :  { %v897_v16 = vld [vmem:[%s13706_s3 + $0x134] sm:$0xf]  ;;  %v899_v17 = vld [vmem:[%s13706_s3 + $0x13c] sm:$0xf]  ;;  %896 = vst [vmem:[#allocation3 + $0x134] sm:$0xf] %v895_v15 }
  0xa0   :  { %898 = vst [vmem:[#allocation3 + $0x138] sm:$0xf] %v897_v16  ;;  %900 = vst [vmem:[#allocation3 + $0x13c] sm:$0xf] %v899_v17  ;;  %v901_v18 = vld [vmem:[%s13706_s3 + $0x140] sm:$0xf] }
  0xa1   :  { %v903_v19 = vld [vmem:[%s13706_s3 + $0x148] sm:$0xf]  ;;  %v905_v20 = vld [vmem:[%s13706_s3 + $0x144] sm:$0xf]  ;;  %902 = vst [vmem:[#allocation3 + $0x140] sm:$0xf] %v901_v18 }
  0xa2   :  { %904 = vst [vmem:[#allocation3 + $0x144] sm:$0xf] %v903_v19  ;;  %906 = vst [vmem:[#allocation3 + $0x148] sm:$0xf] %v905_v20  ;;  %v907_v21 = vld [vmem:[%s13706_s3 + $0x14c] sm:$0xf] }
  0xa3   :  { %v909_v22 = vld [vmem:[%s13706_s3 + $0x150] sm:$0xf]  ;;  %v911_v23 = vld [vmem:[%s13706_s3 + $0x158] sm:$0xf]  ;;  %908 = vst [vmem:[#allocation3 + $0x14c] sm:$0xf] %v907_v21 }
  0xa4   :  { %910 = vst [vmem:[#allocation3 + $0x150] sm:$0xf] %v909_v22  ;;  %912 = vst [vmem:[#allocation3 + $0x154] sm:$0xf] %v911_v23  ;;  %v913_v24 = vld [vmem:[%s13706_s3 + $0x154] sm:$0xf] }
  0xa5   :  { %v915_v25 = vld [vmem:[%s13706_s3 + $0x15c] sm:$0xf]  ;;  %v917_v26 = vld [vmem:[%s13706_s3 + $0x160] sm:$0xf]  ;;  %914 = vst [vmem:[#allocation3 + $0x158] sm:$0xf] %v913_v24 }
  0xa6   :  { %916 = vst [vmem:[#allocation3 + $0x15c] sm:$0xf] %v915_v25  ;;  %918 = vst [vmem:[#allocation3 + $0x160] sm:$0xf] %v917_v26  ;;  %v919_v27 = vld [vmem:[%s13706_s3 + $0x168] sm:$0xf] }
  0xa7   :  { %v921_v28 = vld [vmem:[%s13706_s3 + $0x164] sm:$0xf]  ;;  %v923_v29 = vld [vmem:[%s13706_s3 + $0x16c] sm:$0xf]  ;;  %920 = vst [vmem:[#allocation3 + $0x164] sm:$0xf] %v919_v27 }
  0xa8   :  { %922 = vst [vmem:[#allocation3 + $0x168] sm:$0xf] %v921_v28  ;;  %924 = vst [vmem:[#allocation3 + $0x16c] sm:$0xf] %v923_v29  ;;  %v925_v30 = vld [vmem:[%s13706_s3 + $0x170] sm:$0xf] }
  0xa9   :  { %v927_v31 = vld [vmem:[%s13706_s3 + $0x178] sm:$0xf]  ;;  %v929_v32 = vld [vmem:[%s13706_s3 + $0x174] sm:$0xf]  ;;  %926 = vst [vmem:[#allocation3 + $0x170] sm:$0xf] %v925_v30 }
  0xaa   :  { %928 = vst [vmem:[#allocation3 + $0x174] sm:$0xf] %v927_v31  ;;  %930 = vst [vmem:[#allocation3 + $0x178] sm:$0xf] %v929_v32  ;;  %v931_v33 = vld [vmem:[%s13706_s3 + $0x17c] sm:$0xf] }
  0xab   :  { %v933_v34 = vld [vmem:[%s13706_s3 + $0x180] sm:$0xf]  ;;  %v935_v35 = vld [vmem:[%s13706_s3 + $0x188] sm:$0xf]  ;;  %932 = vst [vmem:[#allocation3 + $0x17c] sm:$0xf] %v931_v33 }
  0xac   :  { %934 = vst [vmem:[#allocation3 + $0x180] sm:$0xf] %v933_v34  ;;  %936 = vst [vmem:[#allocation3 + $0x184] sm:$0xf] %v935_v35  ;;  %v937_v36 = vld [vmem:[%s13706_s3 + $0x184] sm:$0xf] }
  0xad   :  { %v939_v37 = vld [vmem:[%s13706_s3 + $0x18c] sm:$0xf]  ;;  %v941_v38 = vld [vmem:[%s13706_s3 + $0x190] sm:$0xf]  ;;  %938 = vst [vmem:[#allocation3 + $0x188] sm:$0xf] %v937_v36 }
  0xae   :  { %940 = vst [vmem:[#allocation3 + $0x18c] sm:$0xf] %v939_v37  ;;  %942 = vst [vmem:[#allocation3 + $0x190] sm:$0xf] %v941_v38  ;;  %v943_v39 = vld [vmem:[%s13706_s3 + $0x198] sm:$0xf] }
  0xaf   :  { %v945_v40 = vld [vmem:[%s13706_s3 + $0x194] sm:$0xf]  ;;  %v947_v41 = vld [vmem:[%s13706_s3 + $0x19c] sm:$0xf]  ;;  %944 = vst [vmem:[#allocation3 + $0x194] sm:$0xf] %v943_v39 }
  0xb0   :  { %946 = vst [vmem:[#allocation3 + $0x198] sm:$0xf] %v945_v40  ;;  %948 = vst [vmem:[#allocation3 + $0x19c] sm:$0xf] %v947_v41  ;;  %v949_v42 = vld [vmem:[%s13706_s3 + $0x1a0] sm:$0xf] }
  0xb1   :  { %v951_v43 = vld [vmem:[%s13706_s3 + $0x1a8] sm:$0xf]  ;;  %v953_v44 = vld [vmem:[%s13706_s3 + $0x1a4] sm:$0xf]  ;;  %950 = vst [vmem:[#allocation3 + $0x1a0] sm:$0xf] %v949_v42 }
  0xb2   :  { %952 = vst [vmem:[#allocation3 + $0x1a4] sm:$0xf] %v951_v43  ;;  %954 = vst [vmem:[#allocation3 + $0x1a8] sm:$0xf] %v953_v44  ;;  %v955_v45 = vld [vmem:[%s13706_s3 + $0x1ac] sm:$0xf] }
  0xb3   :  { %v957_v46 = vld [vmem:[%s13706_s3 + $0x1b0] sm:$0xf]  ;;  %v959_v47 = vld [vmem:[%s13706_s3 + $0x1b8] sm:$0xf]  ;;  %956 = vst [vmem:[#allocation3 + $0x1ac] sm:$0xf] %v955_v45 }
  0xb4   :  { %958 = vst [vmem:[#allocation3 + $0x1b0] sm:$0xf] %v957_v46  ;;  %960 = vst [vmem:[#allocation3 + $0x1b4] sm:$0xf] %v959_v47  ;;  %v961_v48 = vld [vmem:[%s13706_s3 + $0x1b4] sm:$0xf] }
  0xb5   :  { %v963_v49 = vld [vmem:[%s13706_s3 + $0x1bc] sm:$0xf]  ;;  %v965_v50 = vld [vmem:[%s13706_s3 + $0x1c0] sm:$0xf]  ;;  %962 = vst [vmem:[#allocation3 + $0x1b8] sm:$0xf] %v961_v48 }
  0xb6   :  { %964 = vst [vmem:[#allocation3 + $0x1bc] sm:$0xf] %v963_v49  ;;  %966 = vst [vmem:[#allocation3 + $0x1c0] sm:$0xf] %v965_v50  ;;  %v967_v51 = vld [vmem:[%s13706_s3 + $0x1c8] sm:$0xf] }
  0xb7   :  { %v969_v52 = vld [vmem:[%s13706_s3 + $0x1c4] sm:$0xf]  ;;  %v971_v53 = vld [vmem:[%s13706_s3 + $0x1cc] sm:$0xf]  ;;  %968 = vst [vmem:[#allocation3 + $0x1c4] sm:$0xf] %v967_v51 }
  0xb8   :  { %970 = vst [vmem:[#allocation3 + $0x1c8] sm:$0xf] %v969_v52  ;;  %972 = vst [vmem:[#allocation3 + $0x1cc] sm:$0xf] %v971_v53  ;;  %v973_v54 = vld [vmem:[%s13706_s3 + $0x1d0] sm:$0xf] }
  0xb9   :  { %v975_v55 = vld [vmem:[%s13706_s3 + $0x1d8] sm:$0xf]  ;;  %v977_v56 = vld [vmem:[%s13706_s3 + $0x1d4] sm:$0xf]  ;;  %974 = vst [vmem:[#allocation3 + $0x1d0] sm:$0xf] %v973_v54 }
  0xba   :  { %976 = vst [vmem:[#allocation3 + $0x1d4] sm:$0xf] %v975_v55  ;;  %978 = vst [vmem:[#allocation3 + $0x1d8] sm:$0xf] %v977_v56  ;;  %v979_v57 = vld [vmem:[%s13706_s3 + $0x1dc] sm:$0xf] }
  0xbb   :  { %v981_v58 = vld [vmem:[%s13706_s3 + $0x1e0] sm:$0xf]  ;;  %v983_v59 = vld [vmem:[%s13706_s3 + $0x1e8] sm:$0xf]  ;;  %980 = vst [vmem:[#allocation3 + $0x1dc] sm:$0xf] %v979_v57 }
  0xbc   :  { %982 = vst [vmem:[#allocation3 + $0x1e0] sm:$0xf] %v981_v58  ;;  %984 = vst [vmem:[#allocation3 + $0x1e4] sm:$0xf] %v983_v59  ;;  %v985_v60 = vld [vmem:[%s13706_s3 + $0x1e4] sm:$0xf] }
  0xbd   :  { %v987_v61 = vld [vmem:[%s13706_s3 + $0x1ec] sm:$0xf]  ;;  %v989_v62 = vld [vmem:[%s13706_s3 + $0x1f0] sm:$0xf]  ;;  %986 = vst [vmem:[#allocation3 + $0x1e8] sm:$0xf] %v985_v60 }
  0xbe   :  { %988 = vst [vmem:[#allocation3 + $0x1ec] sm:$0xf] %v987_v61  ;;  %990 = vst [vmem:[#allocation3 + $0x1f0] sm:$0xf] %v989_v62  ;;  %v991_v63 = vld [vmem:[%s13706_s3 + $0x1f8] sm:$0xf] }
  0xbf   :  { %v993_v0 = vld [vmem:[%s13706_s3 + $0x1f4] sm:$0xf]  ;;  %v995_v1 = vld [vmem:[%s13706_s3 + $0x1fc] sm:$0xf]  ;;  %992 = vst [vmem:[#allocation3 + $0x1f4] sm:$0xf] %v991_v63 }
  0xc0   :  { %994 = vst [vmem:[#allocation3 + $0x1f8] sm:$0xf] %v993_v0  ;;  %996 = vst [vmem:[#allocation3 + $0x1fc] sm:$0xf] %v995_v1 }
  0xc1   :  { %1283 = vsyncadd [#allocation10 + $0x1], 8192  ;;  %v14132_v2 = vld [vmem:[%s13739_s30] sm:$0xff]  ;;  %v14135_v3 = vld [vmem:[%s13739_s30 + $0x8] sm:$0xff] }
  0xc2   :  { %v14138_v4 = vld [vmem:[%s13739_s30 + $0x10] sm:$0xff]  ;;  %v14141_v5 = vld [vmem:[%s13739_s30 + $0x18] sm:$0xff]  ;;  %v14144_v6 = vld [vmem:[%s13739_s30 + $0x20] sm:$0xff] }
  0xc3   :  { %v14147_v7 = vld [vmem:[%s13739_s30 + $0x28] sm:$0xff]  ;;  %v14150_v8 = vld [vmem:[%s13739_s30 + $0x30] sm:$0xff]  ;;  %v14153_v9 = vld [vmem:[%s13739_s30 + $0x38] sm:$0xff] }
  0xc4   :  { %v14156_v10 = vld [vmem:[%s13739_s30 + $0x40] sm:$0xff]  ;;  %v14159_v11 = vld [vmem:[%s13739_s30 + $0x48] sm:$0xff]  ;;  %v14162_v12 = vld [vmem:[%s13739_s30 + $0x50] sm:$0xff] }
  0xc5   :  { %v14165_v13 = vld [vmem:[%s13739_s30 + $0x58] sm:$0xff]  ;;  %v14168_v14 = vld [vmem:[%s13739_s30 + $0x60] sm:$0xff]  ;;  %v14171_v15 = vld [vmem:[%s13739_s30 + $0x68] sm:$0xff] }
  0xc6   :  { %v14174_v16 = vld [vmem:[%s13739_s30 + $0x70] sm:$0xff]  ;;  %v14177_v17 = vld [vmem:[%s13739_s30 + $0x78] sm:$0xff] }
  0xc7   :  { %1356 = vsyncadd [#allocation10 + $0x2], 2048  ;;  %v14180_v18 = vld [vmem:[%s13774_s4] sm:$0xff]  ;;  %v14183_v19 = vld [vmem:[%s13774_s4 + $0x8] sm:$0xff] }
  0xc8   :  { %v14186_v20 = vld [vmem:[%s13774_s4 + $0x10] sm:$0xff]  ;;  %v14189_v21 = vld [vmem:[%s13774_s4 + $0x18] sm:$0xff]  ;;  %v14192_v22 = vld [vmem:[%s13774_s4 + $0x20] sm:$0xff] }
  0xc9   :  { %16599 = vst [vmem:[#allocation46_spill] sm:$0xff] %v14189_v21  ;;  %16600 = vst [vmem:[#allocation47_spill] sm:$0xff] %v14192_v22  ;;  %v14195_v23 = vld [vmem:[%s13774_s4 + $0x28] sm:$0xff]  ;;  %v14198_v24 = vld [vmem:[%s13774_s4 + $0x30] sm:$0xff] }
  0xca   :  { %16601 = vst [vmem:[#allocation48_spill] sm:$0xff] %v14195_v23  ;;  %16602 = vst [vmem:[#allocation49_spill] sm:$0xff] %v14198_v24  ;;  %v14201_v25 = vld [vmem:[%s13774_s4 + $0x38] sm:$0xff] }
  0xcb   :  { %16603 = vst [vmem:[#allocation50_spill] sm:$0xff] %v14201_v25 }
  0xcc   :  { %1413 = vsyncadd [#allocation10 + $0x3], 1024  ;;  %v1432_v26 = vld [vmem:[%s13809_s28] sm:$0xf]  ;;  %v1434_v27 = vld [vmem:[%s13809_s28 + $0x8] sm:$0xf] }
  0xcd   :  { %1433 = vst [vmem:[#allocation6] sm:$0xf] %v1432_v26  ;;  %1435 = vst [vmem:[#allocation6 + $0x4] sm:$0xf] %v1434_v27  ;;  %v1436_v28 = vld [vmem:[%s13809_s28 + $0x4] sm:$0xf] }
  0xce   :  { %v1438_v29 = vld [vmem:[%s13809_s28 + $0xc] sm:$0xf]  ;;  %v1440_v30 = vld [vmem:[%s13809_s28 + $0x10] sm:$0xf]  ;;  %1437 = vst [vmem:[#allocation6 + $0x8] sm:$0xf] %v1436_v28 }
  0xcf   :  { %1439 = vst [vmem:[#allocation6 + $0xc] sm:$0xf] %v1438_v29  ;;  %1441 = vst [vmem:[#allocation6 + $0x10] sm:$0xf] %v1440_v30  ;;  %v1442_v31 = vld [vmem:[%s13809_s28 + $0x18] sm:$0xf] }
  0xd0   :  { %v1444_v32 = vld [vmem:[%s13809_s28 + $0x14] sm:$0xf]  ;;  %v1446_v33 = vld [vmem:[%s13809_s28 + $0x1c] sm:$0xf]  ;;  %1443 = vst [vmem:[#allocation6 + $0x14] sm:$0xf] %v1442_v31 }
  0xd1   :  { %1445 = vst [vmem:[#allocation6 + $0x18] sm:$0xf] %v1444_v32  ;;  %1447 = vst [vmem:[#allocation6 + $0x1c] sm:$0xf] %v1446_v33  ;;  %v1448_v34 = vld [vmem:[%s13809_s28 + $0x20] sm:$0xf] }
  0xd2   :  { %v1450_v35 = vld [vmem:[%s13809_s28 + $0x28] sm:$0xf]  ;;  %v1452_v36 = vld [vmem:[%s13809_s28 + $0x24] sm:$0xf]  ;;  %1449 = vst [vmem:[#allocation6 + $0x20] sm:$0xf] %v1448_v34 }
  0xd3   :  { %1451 = vst [vmem:[#allocation6 + $0x24] sm:$0xf] %v1450_v35  ;;  %1453 = vst [vmem:[#allocation6 + $0x28] sm:$0xf] %v1452_v36  ;;  %v1454_v37 = vld [vmem:[%s13809_s28 + $0x2c] sm:$0xf] }
  0xd4   :  { %v1456_v38 = vld [vmem:[%s13809_s28 + $0x30] sm:$0xf]  ;;  %v1458_v39 = vld [vmem:[%s13809_s28 + $0x38] sm:$0xf]  ;;  %1455 = vst [vmem:[#allocation6 + $0x2c] sm:$0xf] %v1454_v37 }
  0xd5   :  { %1457 = vst [vmem:[#allocation6 + $0x30] sm:$0xf] %v1456_v38  ;;  %1459 = vst [vmem:[#allocation6 + $0x34] sm:$0xf] %v1458_v39  ;;  %v1460_v40 = vld [vmem:[%s13809_s28 + $0x34] sm:$0xf] }
  0xd6   :  { %v1462_v41 = vld [vmem:[%s13809_s28 + $0x3c] sm:$0xf]  ;;  %1461 = vst [vmem:[#allocation6 + $0x38] sm:$0xf] %v1460_v40 }
  0xd7   :  { %1463 = vst [vmem:[#allocation6 + $0x3c] sm:$0xf] %v1462_v41 }
  0xd8   :  { %1526 = vsyncadd [#allocation10 + $0x4], 1024  ;;  %v1545_v42 = vld [vmem:[%s13844_s11] sm:$0xf]  ;;  %v1547_v43 = vld [vmem:[%s13844_s11 + $0x10] sm:$0xf] }
  0xd9   :  { %1546 = vst [vmem:[#allocation7] sm:$0xf] %v1545_v42  ;;  %1548 = vst [vmem:[#allocation7 + $0x4] sm:$0xf] %v1547_v43  ;;  %v1549_v44 = vld [vmem:[%s13844_s11 + $0x4] sm:$0xf] }
  0xda   :  { %v1551_v45 = vld [vmem:[%s13844_s11 + $0x14] sm:$0xf]  ;;  %v1553_v46 = vld [vmem:[%s13844_s11 + $0x8] sm:$0xf]  ;;  %1550 = vst [vmem:[#allocation7 + $0x8] sm:$0xf] %v1549_v44 }
  0xdb   :  { %1552 = vst [vmem:[#allocation7 + $0xc] sm:$0xf] %v1551_v45  ;;  %1554 = vst [vmem:[#allocation7 + $0x10] sm:$0xf] %v1553_v46  ;;  %v1555_v47 = vld [vmem:[%s13844_s11 + $0x18] sm:$0xf] }
  0xdc   :  { %v1557_v48 = vld [vmem:[%s13844_s11 + $0xc] sm:$0xf]  ;;  %v1559_v49 = vld [vmem:[%s13844_s11 + $0x1c] sm:$0xf]  ;;  %1556 = vst [vmem:[#allocation7 + $0x14] sm:$0xf] %v1555_v47 }
  0xdd   :  { %1558 = vst [vmem:[#allocation7 + $0x18] sm:$0xf] %v1557_v48  ;;  %1560 = vst [vmem:[#allocation7 + $0x1c] sm:$0xf] %v1559_v49  ;;  %v1561_v50 = vld [vmem:[%s13844_s11 + $0x20] sm:$0xf] }
  0xde   :  { %v1563_v51 = vld [vmem:[%s13844_s11 + $0x30] sm:$0xf]  ;;  %v1565_v52 = vld [vmem:[%s13844_s11 + $0x24] sm:$0xf]  ;;  %1562 = vst [vmem:[#allocation7 + $0x20] sm:$0xf] %v1561_v50 }
  0xdf   :  { %1564 = vst [vmem:[#allocation7 + $0x24] sm:$0xf] %v1563_v51  ;;  %1566 = vst [vmem:[#allocation7 + $0x28] sm:$0xf] %v1565_v52  ;;  %v1567_v53 = vld [vmem:[%s13844_s11 + $0x34] sm:$0xf] }
  0xe0   :  { %v1569_v54 = vld [vmem:[%s13844_s11 + $0x28] sm:$0xf]  ;;  %v1571_v55 = vld [vmem:[%s13844_s11 + $0x38] sm:$0xf]  ;;  %1568 = vst [vmem:[#allocation7 + $0x2c] sm:$0xf] %v1567_v53 }
  0xe1   :  { %1570 = vst [vmem:[#allocation7 + $0x30] sm:$0xf] %v1569_v54  ;;  %1572 = vst [vmem:[#allocation7 + $0x34] sm:$0xf] %v1571_v55  ;;  %v1573_v56 = vld [vmem:[%s13844_s11 + $0x2c] sm:$0xf] }
  0xe2   :  { %v1575_v57 = vld [vmem:[%s13844_s11 + $0x3c] sm:$0xf]  ;;  %v1577_v58 = vld [vmem:[%s13844_s11 + $0x40] sm:$0xf]  ;;  %1574 = vst [vmem:[#allocation7 + $0x38] sm:$0xf] %v1573_v56 }
  0xe3   :  { %1576 = vst [vmem:[#allocation7 + $0x3c] sm:$0xf] %v1575_v57  ;;  %1578 = vst [vmem:[#allocation7 + $0x40] sm:$0xf] %v1577_v58  ;;  %v1579_v59 = vld [vmem:[%s13844_s11 + $0x50] sm:$0xf] }
  0xe4   :  { %v1581_v60 = vld [vmem:[%s13844_s11 + $0x44] sm:$0xf]  ;;  %v1583_v61 = vld [vmem:[%s13844_s11 + $0x54] sm:$0xf]  ;;  %1580 = vst [vmem:[#allocation7 + $0x44] sm:$0xf] %v1579_v59 }
  0xe5   :  { %1582 = vst [vmem:[#allocation7 + $0x48] sm:$0xf] %v1581_v60  ;;  %1584 = vst [vmem:[#allocation7 + $0x4c] sm:$0xf] %v1583_v61  ;;  %v1585_v62 = vld [vmem:[%s13844_s11 + $0x48] sm:$0xf] }
  0xe6   :  { %v1587_v63 = vld [vmem:[%s13844_s11 + $0x58] sm:$0xf]  ;;  %v1589_v0 = vld [vmem:[%s13844_s11 + $0x4c] sm:$0xf]  ;;  %1586 = vst [vmem:[#allocation7 + $0x50] sm:$0xf] %v1585_v62 }
  0xe7   :  { %1588 = vst [vmem:[#allocation7 + $0x54] sm:$0xf] %v1587_v63  ;;  %1590 = vst [vmem:[#allocation7 + $0x58] sm:$0xf] %v1589_v0  ;;  %v1591_v1 = vld [vmem:[%s13844_s11 + $0x5c] sm:$0xf] }
  0xe8   :  { %v1593_v26 = vld [vmem:[%s13844_s11 + $0x60] sm:$0xf]  ;;  %v1595_v27 = vld [vmem:[%s13844_s11 + $0x70] sm:$0xf]  ;;  %1592 = vst [vmem:[#allocation7 + $0x5c] sm:$0xf] %v1591_v1 }
  0xe9   :  { %1594 = vst [vmem:[#allocation7 + $0x60] sm:$0xf] %v1593_v26  ;;  %1596 = vst [vmem:[#allocation7 + $0x64] sm:$0xf] %v1595_v27  ;;  %v1597_v28 = vld [vmem:[%s13844_s11 + $0x64] sm:$0xf] }
  0xea   :  { %v1599_v29 = vld [vmem:[%s13844_s11 + $0x74] sm:$0xf]  ;;  %v1601_v30 = vld [vmem:[%s13844_s11 + $0x68] sm:$0xf]  ;;  %1598 = vst [vmem:[#allocation7 + $0x68] sm:$0xf] %v1597_v28 }
  0xeb   :  { %1600 = vst [vmem:[#allocation7 + $0x6c] sm:$0xf] %v1599_v29  ;;  %1602 = vst [vmem:[#allocation7 + $0x70] sm:$0xf] %v1601_v30  ;;  %v1603_v31 = vld [vmem:[%s13844_s11 + $0x78] sm:$0xf] }
  0xec   :  { %v1605_v32 = vld [vmem:[%s13844_s11 + $0x6c] sm:$0xf]  ;;  %v1607_v33 = vld [vmem:[%s13844_s11 + $0x7c] sm:$0xf]  ;;  %1604 = vst [vmem:[#allocation7 + $0x74] sm:$0xf] %v1603_v31 }
  0xed   :  { %1606 = vst [vmem:[#allocation7 + $0x78] sm:$0xf] %v1605_v32  ;;  %1608 = vst [vmem:[#allocation7 + $0x7c] sm:$0xf] %v1607_v33  ;;  %v1609_v34 = vld [vmem:[%s13844_s11 + $0x80] sm:$0xf] }
  0xee   :  { %v1611_v35 = vld [vmem:[%s13844_s11 + $0x90] sm:$0xf]  ;;  %v1613_v36 = vld [vmem:[%s13844_s11 + $0x84] sm:$0xf]  ;;  %1610 = vst [vmem:[#allocation7 + $0x80] sm:$0xf] %v1609_v34 }
  0xef   :  { %1612 = vst [vmem:[#allocation7 + $0x84] sm:$0xf] %v1611_v35  ;;  %1614 = vst [vmem:[#allocation7 + $0x88] sm:$0xf] %v1613_v36  ;;  %v1615_v37 = vld [vmem:[%s13844_s11 + $0x94] sm:$0xf] }
  0xf0   :  { %v1617_v38 = vld [vmem:[%s13844_s11 + $0x88] sm:$0xf]  ;;  %v1619_v39 = vld [vmem:[%s13844_s11 + $0x98] sm:$0xf]  ;;  %1616 = vst [vmem:[#allocation7 + $0x8c] sm:$0xf] %v1615_v37 }
  0xf1   :  { %1618 = vst [vmem:[#allocation7 + $0x90] sm:$0xf] %v1617_v38  ;;  %1620 = vst [vmem:[#allocation7 + $0x94] sm:$0xf] %v1619_v39  ;;  %v1621_v40 = vld [vmem:[%s13844_s11 + $0x8c] sm:$0xf] }
  0xf2   :  { %v1623_v41 = vld [vmem:[%s13844_s11 + $0x9c] sm:$0xf]  ;;  %v1625_v42 = vld [vmem:[%s13844_s11 + $0xa0] sm:$0xf]  ;;  %1622 = vst [vmem:[#allocation7 + $0x98] sm:$0xf] %v1621_v40 }
  0xf3   :  { %1624 = vst [vmem:[#allocation7 + $0x9c] sm:$0xf] %v1623_v41  ;;  %1626 = vst [vmem:[#allocation7 + $0xa0] sm:$0xf] %v1625_v42  ;;  %v1627_v43 = vld [vmem:[%s13844_s11 + $0xb0] sm:$0xf] }
  0xf4   :  { %v1629_v44 = vld [vmem:[%s13844_s11 + $0xa4] sm:$0xf]  ;;  %v1631_v45 = vld [vmem:[%s13844_s11 + $0xb4] sm:$0xf]  ;;  %1628 = vst [vmem:[#allocation7 + $0xa4] sm:$0xf] %v1627_v43 }
  0xf5   :  { %1630 = vst [vmem:[#allocation7 + $0xa8] sm:$0xf] %v1629_v44  ;;  %1632 = vst [vmem:[#allocation7 + $0xac] sm:$0xf] %v1631_v45  ;;  %v1633_v46 = vld [vmem:[%s13844_s11 + $0xa8] sm:$0xf] }
  0xf6   :  { %v1635_v47 = vld [vmem:[%s13844_s11 + $0xb8] sm:$0xf]  ;;  %v1637_v48 = vld [vmem:[%s13844_s11 + $0xac] sm:$0xf]  ;;  %1634 = vst [vmem:[#allocation7 + $0xb0] sm:$0xf] %v1633_v46 }
  0xf7   :  { %1636 = vst [vmem:[#allocation7 + $0xb4] sm:$0xf] %v1635_v47  ;;  %1638 = vst [vmem:[#allocation7 + $0xb8] sm:$0xf] %v1637_v48  ;;  %v1639_v49 = vld [vmem:[%s13844_s11 + $0xbc] sm:$0xf] }
  0xf8   :  { %v1641_v50 = vld [vmem:[%s13844_s11 + $0xc0] sm:$0xf]  ;;  %v1643_v51 = vld [vmem:[%s13844_s11 + $0xd0] sm:$0xf]  ;;  %1640 = vst [vmem:[#allocation7 + $0xbc] sm:$0xf] %v1639_v49 }
  0xf9   :  { %1642 = vst [vmem:[#allocation7 + $0xc0] sm:$0xf] %v1641_v50  ;;  %1644 = vst [vmem:[#allocation7 + $0xc4] sm:$0xf] %v1643_v51  ;;  %v1645_v52 = vld [vmem:[%s13844_s11 + $0xc4] sm:$0xf] }
  0xfa   :  { %v1647_v53 = vld [vmem:[%s13844_s11 + $0xd4] sm:$0xf]  ;;  %v1649_v54 = vld [vmem:[%s13844_s11 + $0xc8] sm:$0xf]  ;;  %1646 = vst [vmem:[#allocation7 + $0xc8] sm:$0xf] %v1645_v52 }
  0xfb   :  { %1648 = vst [vmem:[#allocation7 + $0xcc] sm:$0xf] %v1647_v53  ;;  %1650 = vst [vmem:[#allocation7 + $0xd0] sm:$0xf] %v1649_v54  ;;  %v1651_v55 = vld [vmem:[%s13844_s11 + $0xd8] sm:$0xf] }
  0xfc   :  { %v1653_v56 = vld [vmem:[%s13844_s11 + $0xcc] sm:$0xf]  ;;  %v1655_v57 = vld [vmem:[%s13844_s11 + $0xdc] sm:$0xf]  ;;  %1652 = vst [vmem:[#allocation7 + $0xd4] sm:$0xf] %v1651_v55 }
  0xfd   :  { %1654 = vst [vmem:[#allocation7 + $0xd8] sm:$0xf] %v1653_v56  ;;  %1656 = vst [vmem:[#allocation7 + $0xdc] sm:$0xf] %v1655_v57  ;;  %v1657_v58 = vld [vmem:[%s13844_s11 + $0xe0] sm:$0xf] }
  0xfe   :  { %v1659_v59 = vld [vmem:[%s13844_s11 + $0xf0] sm:$0xf]  ;;  %v1661_v60 = vld [vmem:[%s13844_s11 + $0xe4] sm:$0xf]  ;;  %1658 = vst [vmem:[#allocation7 + $0xe0] sm:$0xf] %v1657_v58 }
  0xff   :  { %1660 = vst [vmem:[#allocation7 + $0xe4] sm:$0xf] %v1659_v59  ;;  %1662 = vst [vmem:[#allocation7 + $0xe8] sm:$0xf] %v1661_v60  ;;  %v1663_v61 = vld [vmem:[%s13844_s11 + $0xf4] sm:$0xf] }
 0x100   :  { %v1665_v62 = vld [vmem:[%s13844_s11 + $0xe8] sm:$0xf]  ;;  %v1667_v63 = vld [vmem:[%s13844_s11 + $0xf8] sm:$0xf]  ;;  %1664 = vst [vmem:[#allocation7 + $0xec] sm:$0xf] %v1663_v61 }
 0x101   :  { %1666 = vst [vmem:[#allocation7 + $0xf0] sm:$0xf] %v1665_v62  ;;  %1668 = vst [vmem:[#allocation7 + $0xf4] sm:$0xf] %v1667_v63  ;;  %v1669_v0 = vld [vmem:[%s13844_s11 + $0xec] sm:$0xf] }
 0x102   :  { %v1671_v1 = vld [vmem:[%s13844_s11 + $0xfc] sm:$0xf]  ;;  %v1673_v26 = vld [vmem:[%s13844_s11 + $0x100] sm:$0xf]  ;;  %1670 = vst [vmem:[#allocation7 + $0xf8] sm:$0xf] %v1669_v0 }
 0x103   :  { %1672 = vst [vmem:[#allocation7 + $0xfc] sm:$0xf] %v1671_v1  ;;  %1674 = vst [vmem:[#allocation7 + $0x100] sm:$0xf] %v1673_v26  ;;  %v1675_v27 = vld [vmem:[%s13844_s11 + $0x110] sm:$0xf] }
 0x104   :  { %v1677_v28 = vld [vmem:[%s13844_s11 + $0x104] sm:$0xf]  ;;  %v1679_v29 = vld [vmem:[%s13844_s11 + $0x114] sm:$0xf]  ;;  %1676 = vst [vmem:[#allocation7 + $0x104] sm:$0xf] %v1675_v27 }
 0x105   :  { %1678 = vst [vmem:[#allocation7 + $0x108] sm:$0xf] %v1677_v28  ;;  %1680 = vst [vmem:[#allocation7 + $0x10c] sm:$0xf] %v1679_v29  ;;  %v1681_v30 = vld [vmem:[%s13844_s11 + $0x108] sm:$0xf] }
 0x106   :  { %v1683_v31 = vld [vmem:[%s13844_s11 + $0x118] sm:$0xf]  ;;  %v1685_v32 = vld [vmem:[%s13844_s11 + $0x10c] sm:$0xf]  ;;  %1682 = vst [vmem:[#allocation7 + $0x110] sm:$0xf] %v1681_v30 }
 0x107   :  { %1684 = vst [vmem:[#allocation7 + $0x114] sm:$0xf] %v1683_v31  ;;  %1686 = vst [vmem:[#allocation7 + $0x118] sm:$0xf] %v1685_v32  ;;  %v1687_v33 = vld [vmem:[%s13844_s11 + $0x11c] sm:$0xf] }
 0x108   :  { %v1689_v34 = vld [vmem:[%s13844_s11 + $0x120] sm:$0xf]  ;;  %v1691_v35 = vld [vmem:[%s13844_s11 + $0x130] sm:$0xf]  ;;  %1688 = vst [vmem:[#allocation7 + $0x11c] sm:$0xf] %v1687_v33 }
 0x109   :  { %1690 = vst [vmem:[#allocation7 + $0x120] sm:$0xf] %v1689_v34  ;;  %1692 = vst [vmem:[#allocation7 + $0x124] sm:$0xf] %v1691_v35  ;;  %v1693_v36 = vld [vmem:[%s13844_s11 + $0x124] sm:$0xf] }
 0x10a   :  { %v1695_v37 = vld [vmem:[%s13844_s11 + $0x134] sm:$0xf]  ;;  %v1697_v38 = vld [vmem:[%s13844_s11 + $0x128] sm:$0xf]  ;;  %1694 = vst [vmem:[#allocation7 + $0x128] sm:$0xf] %v1693_v36 }
 0x10b   :  { %1696 = vst [vmem:[#allocation7 + $0x12c] sm:$0xf] %v1695_v37  ;;  %1698 = vst [vmem:[#allocation7 + $0x130] sm:$0xf] %v1697_v38  ;;  %v1699_v39 = vld [vmem:[%s13844_s11 + $0x138] sm:$0xf] }
 0x10c   :  { %v1701_v40 = vld [vmem:[%s13844_s11 + $0x12c] sm:$0xf]  ;;  %v1703_v41 = vld [vmem:[%s13844_s11 + $0x13c] sm:$0xf]  ;;  %1700 = vst [vmem:[#allocation7 + $0x134] sm:$0xf] %v1699_v39 }
 0x10d   :  { %1702 = vst [vmem:[#allocation7 + $0x138] sm:$0xf] %v1701_v40  ;;  %1704 = vst [vmem:[#allocation7 + $0x13c] sm:$0xf] %v1703_v41  ;;  %v1705_v42 = vld [vmem:[%s13844_s11 + $0x140] sm:$0xf] }
 0x10e   :  { %v1707_v43 = vld [vmem:[%s13844_s11 + $0x150] sm:$0xf]  ;;  %v1709_v44 = vld [vmem:[%s13844_s11 + $0x144] sm:$0xf]  ;;  %1706 = vst [vmem:[#allocation7 + $0x140] sm:$0xf] %v1705_v42 }
 0x10f   :  { %1708 = vst [vmem:[#allocation7 + $0x144] sm:$0xf] %v1707_v43  ;;  %1710 = vst [vmem:[#allocation7 + $0x148] sm:$0xf] %v1709_v44  ;;  %v1711_v45 = vld [vmem:[%s13844_s11 + $0x154] sm:$0xf] }
 0x110   :  { %v1713_v46 = vld [vmem:[%s13844_s11 + $0x148] sm:$0xf]  ;;  %v1715_v47 = vld [vmem:[%s13844_s11 + $0x158] sm:$0xf]  ;;  %1712 = vst [vmem:[#allocation7 + $0x14c] sm:$0xf] %v1711_v45 }
 0x111   :  { %1714 = vst [vmem:[#allocation7 + $0x150] sm:$0xf] %v1713_v46  ;;  %1716 = vst [vmem:[#allocation7 + $0x154] sm:$0xf] %v1715_v47  ;;  %v1717_v48 = vld [vmem:[%s13844_s11 + $0x14c] sm:$0xf] }
 0x112   :  { %v1719_v49 = vld [vmem:[%s13844_s11 + $0x15c] sm:$0xf]  ;;  %v1721_v50 = vld [vmem:[%s13844_s11 + $0x160] sm:$0xf]  ;;  %1718 = vst [vmem:[#allocation7 + $0x158] sm:$0xf] %v1717_v48 }
 0x113   :  { %1720 = vst [vmem:[#allocation7 + $0x15c] sm:$0xf] %v1719_v49  ;;  %1722 = vst [vmem:[#allocation7 + $0x160] sm:$0xf] %v1721_v50  ;;  %v1723_v51 = vld [vmem:[%s13844_s11 + $0x170] sm:$0xf] }
 0x114   :  { %v1725_v52 = vld [vmem:[%s13844_s11 + $0x164] sm:$0xf]  ;;  %v1727_v53 = vld [vmem:[%s13844_s11 + $0x174] sm:$0xf]  ;;  %1724 = vst [vmem:[#allocation7 + $0x164] sm:$0xf] %v1723_v51 }
 0x115   :  { %1726 = vst [vmem:[#allocation7 + $0x168] sm:$0xf] %v1725_v52  ;;  %1728 = vst [vmem:[#allocation7 + $0x16c] sm:$0xf] %v1727_v53  ;;  %v1729_v54 = vld [vmem:[%s13844_s11 + $0x168] sm:$0xf] }
 0x116   :  { %v1731_v55 = vld [vmem:[%s13844_s11 + $0x178] sm:$0xf]  ;;  %v1733_v56 = vld [vmem:[%s13844_s11 + $0x16c] sm:$0xf]  ;;  %1730 = vst [vmem:[#allocation7 + $0x170] sm:$0xf] %v1729_v54 }
 0x117   :  { %1732 = vst [vmem:[#allocation7 + $0x174] sm:$0xf] %v1731_v55  ;;  %1734 = vst [vmem:[#allocation7 + $0x178] sm:$0xf] %v1733_v56  ;;  %v1735_v57 = vld [vmem:[%s13844_s11 + $0x17c] sm:$0xf] }
 0x118   :  { %1736 = vst [vmem:[#allocation7 + $0x17c] sm:$0xf] %v1735_v57 }
 0x119   :  { %1959 = vsyncadd [#allocation10 + $0x5], 6144  ;;  %v1978_v58 = vld [vmem:[%s13879_s16] sm:$0xf]  ;;  %v1980_v59 = vld [vmem:[%s13879_s16 + $0x1c] sm:$0xf] }
 0x11a   :  { %1979 = vst [vmem:[#allocation8] sm:$0xf] %v1978_v58  ;;  %1981 = vst [vmem:[#allocation8 + $0x4] sm:$0xf] %v1980_v59  ;;  %v1982_v60 = vld [vmem:[%s13879_s16 + $0x4] sm:$0xf] }
 0x11b   :  { %v1984_v61 = vld [vmem:[%s13879_s16 + $0x20] sm:$0xf]  ;;  %v1986_v62 = vld [vmem:[%s13879_s16 + $0x8] sm:$0xf]  ;;  %1983 = vst [vmem:[#allocation8 + $0x8] sm:$0xf] %v1982_v60 }
 0x11c   :  { %1985 = vst [vmem:[#allocation8 + $0xc] sm:$0xf] %v1984_v61  ;;  %1987 = vst [vmem:[#allocation8 + $0x10] sm:$0xf] %v1986_v62  ;;  %v1988_v63 = vld [vmem:[%s13879_s16 + $0x24] sm:$0xf] }
 0x11d   :  { %v1990_v0 = vld [vmem:[%s13879_s16 + $0xc] sm:$0xf]  ;;  %v1992_v1 = vld [vmem:[%s13879_s16 + $0x28] sm:$0xf]  ;;  %1989 = vst [vmem:[#allocation8 + $0x14] sm:$0xf] %v1988_v63 }
 0x11e   :  { %1991 = vst [vmem:[#allocation8 + $0x18] sm:$0xf] %v1990_v0  ;;  %1993 = vst [vmem:[#allocation8 + $0x1c] sm:$0xf] %v1992_v1  ;;  %v1994_v26 = vld [vmem:[%s13879_s16 + $0x10] sm:$0xf] }
 0x11f   :  { %v1996_v27 = vld [vmem:[%s13879_s16 + $0x2c] sm:$0xf]  ;;  %v1998_v28 = vld [vmem:[%s13879_s16 + $0x14] sm:$0xf]  ;;  %1995 = vst [vmem:[#allocation8 + $0x20] sm:$0xf] %v1994_v26 }
 0x120   :  { %1997 = vst [vmem:[#allocation8 + $0x24] sm:$0xf] %v1996_v27  ;;  %1999 = vst [vmem:[#allocation8 + $0x28] sm:$0xf] %v1998_v28  ;;  %v2000_v29 = vld [vmem:[%s13879_s16 + $0x30] sm:$0xf] }
 0x121   :  { %v2002_v30 = vld [vmem:[%s13879_s16 + $0x18] sm:$0xf]  ;;  %v2004_v31 = vld [vmem:[%s13879_s16 + $0x34] sm:$0xf]  ;;  %2001 = vst [vmem:[#allocation8 + $0x2c] sm:$0xf] %v2000_v29 }
 0x122   :  { %2003 = vst [vmem:[#allocation8 + $0x30] sm:$0xf] %v2002_v30  ;;  %2005 = vst [vmem:[#allocation8 + $0x34] sm:$0xf] %v2004_v31  ;;  %v2006_v32 = vld [vmem:[%s13879_s16 + $0x38] sm:$0xf] }
 0x123   :  { %v2008_v33 = vld [vmem:[%s13879_s16 + $0x54] sm:$0xf]  ;;  %v2010_v34 = vld [vmem:[%s13879_s16 + $0x3c] sm:$0xf]  ;;  %2007 = vst [vmem:[#allocation8 + $0x38] sm:$0xf] %v2006_v32 }
 0x124   :  { %2009 = vst [vmem:[#allocation8 + $0x3c] sm:$0xf] %v2008_v33  ;;  %2011 = vst [vmem:[#allocation8 + $0x40] sm:$0xf] %v2010_v34  ;;  %v2012_v35 = vld [vmem:[%s13879_s16 + $0x58] sm:$0xf] }
 0x125   :  { %v2014_v36 = vld [vmem:[%s13879_s16 + $0x40] sm:$0xf]  ;;  %v2016_v37 = vld [vmem:[%s13879_s16 + $0x5c] sm:$0xf]  ;;  %2013 = vst [vmem:[#allocation8 + $0x44] sm:$0xf] %v2012_v35 }
 0x126   :  { %2015 = vst [vmem:[#allocation8 + $0x48] sm:$0xf] %v2014_v36  ;;  %2017 = vst [vmem:[#allocation8 + $0x4c] sm:$0xf] %v2016_v37  ;;  %v2018_v38 = vld [vmem:[%s13879_s16 + $0x44] sm:$0xf] }
 0x127   :  { %v2020_v39 = vld [vmem:[%s13879_s16 + $0x60] sm:$0xf]  ;;  %v2022_v40 = vld [vmem:[%s13879_s16 + $0x48] sm:$0xf]  ;;  %2019 = vst [vmem:[#allocation8 + $0x50] sm:$0xf] %v2018_v38 }
 0x128   :  { %2021 = vst [vmem:[#allocation8 + $0x54] sm:$0xf] %v2020_v39  ;;  %2023 = vst [vmem:[#allocation8 + $0x58] sm:$0xf] %v2022_v40  ;;  %v2024_v41 = vld [vmem:[%s13879_s16 + $0x64] sm:$0xf] }
 0x129   :  { %v2026_v42 = vld [vmem:[%s13879_s16 + $0x4c] sm:$0xf]  ;;  %v2028_v43 = vld [vmem:[%s13879_s16 + $0x68] sm:$0xf]  ;;  %2025 = vst [vmem:[#allocation8 + $0x5c] sm:$0xf] %v2024_v41 }
 0x12a   :  { %2027 = vst [vmem:[#allocation8 + $0x60] sm:$0xf] %v2026_v42  ;;  %2029 = vst [vmem:[#allocation8 + $0x64] sm:$0xf] %v2028_v43  ;;  %v2030_v44 = vld [vmem:[%s13879_s16 + $0x50] sm:$0xf] }
 0x12b   :  { %v2032_v45 = vld [vmem:[%s13879_s16 + $0x6c] sm:$0xf]  ;;  %v2034_v46 = vld [vmem:[%s13879_s16 + $0x70] sm:$0xf]  ;;  %2031 = vst [vmem:[#allocation8 + $0x68] sm:$0xf] %v2030_v44 }
 0x12c   :  { %2033 = vst [vmem:[#allocation8 + $0x6c] sm:$0xf] %v2032_v45  ;;  %2035 = vst [vmem:[#allocation8 + $0x70] sm:$0xf] %v2034_v46  ;;  %v2036_v47 = vld [vmem:[%s13879_s16 + $0x8c] sm:$0xf] }
 0x12d   :  { %v2038_v48 = vld [vmem:[%s13879_s16 + $0x74] sm:$0xf]  ;;  %v2040_v49 = vld [vmem:[%s13879_s16 + $0x90] sm:$0xf]  ;;  %2037 = vst [vmem:[#allocation8 + $0x74] sm:$0xf] %v2036_v47 }
 0x12e   :  { %2039 = vst [vmem:[#allocation8 + $0x78] sm:$0xf] %v2038_v48  ;;  %2041 = vst [vmem:[#allocation8 + $0x7c] sm:$0xf] %v2040_v49  ;;  %v2042_v50 = vld [vmem:[%s13879_s16 + $0x78] sm:$0xf] }
 0x12f   :  { %v2044_v51 = vld [vmem:[%s13879_s16 + $0x94] sm:$0xf]  ;;  %v2046_v52 = vld [vmem:[%s13879_s16 + $0x7c] sm:$0xf]  ;;  %2043 = vst [vmem:[#allocation8 + $0x80] sm:$0xf] %v2042_v50 }
 0x130   :  { %2045 = vst [vmem:[#allocation8 + $0x84] sm:$0xf] %v2044_v51  ;;  %2047 = vst [vmem:[#allocation8 + $0x88] sm:$0xf] %v2046_v52  ;;  %v2048_v53 = vld [vmem:[%s13879_s16 + $0x98] sm:$0xf] }
 0x131   :  { %v2050_v54 = vld [vmem:[%s13879_s16 + $0x80] sm:$0xf]  ;;  %v2052_v55 = vld [vmem:[%s13879_s16 + $0x9c] sm:$0xf]  ;;  %2049 = vst [vmem:[#allocation8 + $0x8c] sm:$0xf] %v2048_v53 }
 0x132   :  { %2051 = vst [vmem:[#allocation8 + $0x90] sm:$0xf] %v2050_v54  ;;  %2053 = vst [vmem:[#allocation8 + $0x94] sm:$0xf] %v2052_v55  ;;  %v2054_v56 = vld [vmem:[%s13879_s16 + $0x84] sm:$0xf] }
 0x133   :  { %v2056_v57 = vld [vmem:[%s13879_s16 + $0xa0] sm:$0xf]  ;;  %v2058_v58 = vld [vmem:[%s13879_s16 + $0x88] sm:$0xf]  ;;  %2055 = vst [vmem:[#allocation8 + $0x98] sm:$0xf] %v2054_v56 }
 0x134   :  { %2057 = vst [vmem:[#allocation8 + $0x9c] sm:$0xf] %v2056_v57  ;;  %2059 = vst [vmem:[#allocation8 + $0xa0] sm:$0xf] %v2058_v58  ;;  %v2060_v59 = vld [vmem:[%s13879_s16 + $0xa4] sm:$0xf] }
 0x135   :  { %v2062_v60 = vld [vmem:[%s13879_s16 + $0xa8] sm:$0xf]  ;;  %v2064_v61 = vld [vmem:[%s13879_s16 + $0xc4] sm:$0xf]  ;;  %2061 = vst [vmem:[#allocation8 + $0xa4] sm:$0xf] %v2060_v59 }
 0x136   :  { %2063 = vst [vmem:[#allocation8 + $0xa8] sm:$0xf] %v2062_v60  ;;  %2065 = vst [vmem:[#allocation8 + $0xac] sm:$0xf] %v2064_v61  ;;  %v2066_v62 = vld [vmem:[%s13879_s16 + $0xac] sm:$0xf] }
 0x137   :  { %v2068_v63 = vld [vmem:[%s13879_s16 + $0xc8] sm:$0xf]  ;;  %v2070_v0 = vld [vmem:[%s13879_s16 + $0xb0] sm:$0xf]  ;;  %2067 = vst [vmem:[#allocation8 + $0xb0] sm:$0xf] %v2066_v62 }
 0x138   :  { %2069 = vst [vmem:[#allocation8 + $0xb4] sm:$0xf] %v2068_v63  ;;  %2071 = vst [vmem:[#allocation8 + $0xb8] sm:$0xf] %v2070_v0  ;;  %v2072_v1 = vld [vmem:[%s13879_s16 + $0xcc] sm:$0xf] }
 0x139   :  { %v2074_v26 = vld [vmem:[%s13879_s16 + $0xb4] sm:$0xf]  ;;  %v2076_v27 = vld [vmem:[%s13879_s16 + $0xd0] sm:$0xf]  ;;  %2073 = vst [vmem:[#allocation8 + $0xbc] sm:$0xf] %v2072_v1 }
 0x13a   :  { %2075 = vst [vmem:[#allocation8 + $0xc0] sm:$0xf] %v2074_v26  ;;  %2077 = vst [vmem:[#allocation8 + $0xc4] sm:$0xf] %v2076_v27  ;;  %v2078_v28 = vld [vmem:[%s13879_s16 + $0xb8] sm:$0xf] }
 0x13b   :  { %v2080_v29 = vld [vmem:[%s13879_s16 + $0xd4] sm:$0xf]  ;;  %v2082_v30 = vld [vmem:[%s13879_s16 + $0xbc] sm:$0xf]  ;;  %2079 = vst [vmem:[#allocation8 + $0xc8] sm:$0xf] %v2078_v28 }
 0x13c   :  { %2081 = vst [vmem:[#allocation8 + $0xcc] sm:$0xf] %v2080_v29  ;;  %2083 = vst [vmem:[#allocation8 + $0xd0] sm:$0xf] %v2082_v30  ;;  %v2084_v31 = vld [vmem:[%s13879_s16 + $0xd8] sm:$0xf] }
 0x13d   :  { %v2086_v32 = vld [vmem:[%s13879_s16 + $0xc0] sm:$0xf]  ;;  %v2088_v33 = vld [vmem:[%s13879_s16 + $0xdc] sm:$0xf]  ;;  %2085 = vst [vmem:[#allocation8 + $0xd4] sm:$0xf] %v2084_v31 }
 0x13e   :  { %2087 = vst [vmem:[#allocation8 + $0xd8] sm:$0xf] %v2086_v32  ;;  %2089 = vst [vmem:[#allocation8 + $0xdc] sm:$0xf] %v2088_v33  ;;  %v2090_v34 = vld [vmem:[%s13879_s16 + $0xe0] sm:$0xf] }
 0x13f   :  { %v2092_v35 = vld [vmem:[%s13879_s16 + $0xfc] sm:$0xf]  ;;  %v2094_v36 = vld [vmem:[%s13879_s16 + $0xe4] sm:$0xf]  ;;  %2091 = vst [vmem:[#allocation8 + $0xe0] sm:$0xf] %v2090_v34 }
 0x140   :  { %2093 = vst [vmem:[#allocation8 + $0xe4] sm:$0xf] %v2092_v35  ;;  %2095 = vst [vmem:[#allocation8 + $0xe8] sm:$0xf] %v2094_v36  ;;  %v2096_v37 = vld [vmem:[%s13879_s16 + $0x100] sm:$0xf] }
 0x141   :  { %v2098_v38 = vld [vmem:[%s13879_s16 + $0xe8] sm:$0xf]  ;;  %v2100_v39 = vld [vmem:[%s13879_s16 + $0x104] sm:$0xf]  ;;  %2097 = vst [vmem:[#allocation8 + $0xec] sm:$0xf] %v2096_v37 }
 0x142   :  { %2099 = vst [vmem:[#allocation8 + $0xf0] sm:$0xf] %v2098_v38  ;;  %2101 = vst [vmem:[#allocation8 + $0xf4] sm:$0xf] %v2100_v39  ;;  %v2102_v40 = vld [vmem:[%s13879_s16 + $0xec] sm:$0xf] }
 0x143   :  { %v2104_v41 = vld [vmem:[%s13879_s16 + $0x108] sm:$0xf]  ;;  %v2106_v42 = vld [vmem:[%s13879_s16 + $0xf0] sm:$0xf]  ;;  %2103 = vst [vmem:[#allocation8 + $0xf8] sm:$0xf] %v2102_v40 }
 0x144   :  { %2105 = vst [vmem:[#allocation8 + $0xfc] sm:$0xf] %v2104_v41  ;;  %2107 = vst [vmem:[#allocation8 + $0x100] sm:$0xf] %v2106_v42  ;;  %v2108_v43 = vld [vmem:[%s13879_s16 + $0x10c] sm:$0xf] }
 0x145   :  { %v2110_v44 = vld [vmem:[%s13879_s16 + $0xf4] sm:$0xf]  ;;  %v2112_v45 = vld [vmem:[%s13879_s16 + $0x110] sm:$0xf]  ;;  %2109 = vst [vmem:[#allocation8 + $0x104] sm:$0xf] %v2108_v43 }
 0x146   :  { %2111 = vst [vmem:[#allocation8 + $0x108] sm:$0xf] %v2110_v44  ;;  %2113 = vst [vmem:[#allocation8 + $0x10c] sm:$0xf] %v2112_v45  ;;  %v2114_v46 = vld [vmem:[%s13879_s16 + $0xf8] sm:$0xf] }
 0x147   :  { %v2116_v47 = vld [vmem:[%s13879_s16 + $0x114] sm:$0xf]  ;;  %v2118_v48 = vld [vmem:[%s13879_s16 + $0x118] sm:$0xf]  ;;  %2115 = vst [vmem:[#allocation8 + $0x110] sm:$0xf] %v2114_v46 }
 0x148   :  { %2117 = vst [vmem:[#allocation8 + $0x114] sm:$0xf] %v2116_v47  ;;  %2119 = vst [vmem:[#allocation8 + $0x118] sm:$0xf] %v2118_v48  ;;  %v2120_v49 = vld [vmem:[%s13879_s16 + $0x134] sm:$0xf] }
 0x149   :  { %v2122_v50 = vld [vmem:[%s13879_s16 + $0x11c] sm:$0xf]  ;;  %v2124_v51 = vld [vmem:[%s13879_s16 + $0x138] sm:$0xf]  ;;  %2121 = vst [vmem:[#allocation8 + $0x11c] sm:$0xf] %v2120_v49 }
 0x14a   :  { %2123 = vst [vmem:[#allocation8 + $0x120] sm:$0xf] %v2122_v50  ;;  %2125 = vst [vmem:[#allocation8 + $0x124] sm:$0xf] %v2124_v51  ;;  %v2126_v52 = vld [vmem:[%s13879_s16 + $0x120] sm:$0xf] }
 0x14b   :  { %v2128_v53 = vld [vmem:[%s13879_s16 + $0x13c] sm:$0xf]  ;;  %v2130_v54 = vld [vmem:[%s13879_s16 + $0x124] sm:$0xf]  ;;  %2127 = vst [vmem:[#allocation8 + $0x128] sm:$0xf] %v2126_v52 }
 0x14c   :  { %2129 = vst [vmem:[#allocation8 + $0x12c] sm:$0xf] %v2128_v53  ;;  %2131 = vst [vmem:[#allocation8 + $0x130] sm:$0xf] %v2130_v54  ;;  %v2132_v55 = vld [vmem:[%s13879_s16 + $0x140] sm:$0xf] }
 0x14d   :  { %v2134_v56 = vld [vmem:[%s13879_s16 + $0x128] sm:$0xf]  ;;  %v2136_v57 = vld [vmem:[%s13879_s16 + $0x144] sm:$0xf]  ;;  %2133 = vst [vmem:[#allocation8 + $0x134] sm:$0xf] %v2132_v55 }
 0x14e   :  { %2135 = vst [vmem:[#allocation8 + $0x138] sm:$0xf] %v2134_v56  ;;  %2137 = vst [vmem:[#allocation8 + $0x13c] sm:$0xf] %v2136_v57  ;;  %v2138_v58 = vld [vmem:[%s13879_s16 + $0x12c] sm:$0xf] }
 0x14f   :  { %v2140_v59 = vld [vmem:[%s13879_s16 + $0x148] sm:$0xf]  ;;  %v2142_v60 = vld [vmem:[%s13879_s16 + $0x130] sm:$0xf]  ;;  %2139 = vst [vmem:[#allocation8 + $0x140] sm:$0xf] %v2138_v58 }
 0x150   :  { %2141 = vst [vmem:[#allocation8 + $0x144] sm:$0xf] %v2140_v59  ;;  %2143 = vst [vmem:[#allocation8 + $0x148] sm:$0xf] %v2142_v60  ;;  %v2144_v61 = vld [vmem:[%s13879_s16 + $0x14c] sm:$0xf] }
 0x151   :  { %v2146_v62 = vld [vmem:[%s13879_s16 + $0x150] sm:$0xf]  ;;  %v2148_v63 = vld [vmem:[%s13879_s16 + $0x16c] sm:$0xf]  ;;  %2145 = vst [vmem:[#allocation8 + $0x14c] sm:$0xf] %v2144_v61 }
 0x152   :  { %2147 = vst [vmem:[#allocation8 + $0x150] sm:$0xf] %v2146_v62  ;;  %2149 = vst [vmem:[#allocation8 + $0x154] sm:$0xf] %v2148_v63  ;;  %v2150_v0 = vld [vmem:[%s13879_s16 + $0x154] sm:$0xf] }
 0x153   :  { %v2152_v1 = vld [vmem:[%s13879_s16 + $0x170] sm:$0xf]  ;;  %v2154_v26 = vld [vmem:[%s13879_s16 + $0x158] sm:$0xf]  ;;  %2151 = vst [vmem:[#allocation8 + $0x158] sm:$0xf] %v2150_v0 }
 0x154   :  { %2153 = vst [vmem:[#allocation8 + $0x15c] sm:$0xf] %v2152_v1  ;;  %2155 = vst [vmem:[#allocation8 + $0x160] sm:$0xf] %v2154_v26  ;;  %v2156_v27 = vld [vmem:[%s13879_s16 + $0x174] sm:$0xf] }
 0x155   :  { %v2158_v28 = vld [vmem:[%s13879_s16 + $0x15c] sm:$0xf]  ;;  %v2160_v29 = vld [vmem:[%s13879_s16 + $0x178] sm:$0xf]  ;;  %2157 = vst [vmem:[#allocation8 + $0x164] sm:$0xf] %v2156_v27 }
 0x156   :  { %2159 = vst [vmem:[#allocation8 + $0x168] sm:$0xf] %v2158_v28  ;;  %2161 = vst [vmem:[#allocation8 + $0x16c] sm:$0xf] %v2160_v29  ;;  %v2162_v30 = vld [vmem:[%s13879_s16 + $0x160] sm:$0xf] }
 0x157   :  { %v2164_v31 = vld [vmem:[%s13879_s16 + $0x17c] sm:$0xf]  ;;  %v2166_v32 = vld [vmem:[%s13879_s16 + $0x164] sm:$0xf]  ;;  %2163 = vst [vmem:[#allocation8 + $0x170] sm:$0xf] %v2162_v30 }
 0x158   :  { %2165 = vst [vmem:[#allocation8 + $0x174] sm:$0xf] %v2164_v31  ;;  %2167 = vst [vmem:[#allocation8 + $0x178] sm:$0xf] %v2166_v32  ;;  %v2168_v33 = vld [vmem:[%s13879_s16 + $0x180] sm:$0xf] }
 0x159   :  { %v2170_v34 = vld [vmem:[%s13879_s16 + $0x168] sm:$0xf]  ;;  %v2172_v35 = vld [vmem:[%s13879_s16 + $0x184] sm:$0xf]  ;;  %2169 = vst [vmem:[#allocation8 + $0x17c] sm:$0xf] %v2168_v33 }
 0x15a   :  { %2171 = vst [vmem:[#allocation8 + $0x180] sm:$0xf] %v2170_v34  ;;  %2173 = vst [vmem:[#allocation8 + $0x184] sm:$0xf] %v2172_v35  ;;  %v2174_v36 = vld [vmem:[%s13879_s16 + $0x188] sm:$0xf] }
 0x15b   :  { %v2176_v37 = vld [vmem:[%s13879_s16 + $0x1a4] sm:$0xf]  ;;  %v2178_v38 = vld [vmem:[%s13879_s16 + $0x18c] sm:$0xf]  ;;  %2175 = vst [vmem:[#allocation8 + $0x188] sm:$0xf] %v2174_v36 }
 0x15c   :  { %2177 = vst [vmem:[#allocation8 + $0x18c] sm:$0xf] %v2176_v37  ;;  %2179 = vst [vmem:[#allocation8 + $0x190] sm:$0xf] %v2178_v38  ;;  %v2180_v39 = vld [vmem:[%s13879_s16 + $0x1a8] sm:$0xf] }
 0x15d   :  { %v2182_v40 = vld [vmem:[%s13879_s16 + $0x190] sm:$0xf]  ;;  %v2184_v41 = vld [vmem:[%s13879_s16 + $0x1ac] sm:$0xf]  ;;  %2181 = vst [vmem:[#allocation8 + $0x194] sm:$0xf] %v2180_v39 }
 0x15e   :  { %2183 = vst [vmem:[#allocation8 + $0x198] sm:$0xf] %v2182_v40  ;;  %2185 = vst [vmem:[#allocation8 + $0x19c] sm:$0xf] %v2184_v41  ;;  %v2186_v42 = vld [vmem:[%s13879_s16 + $0x194] sm:$0xf] }
 0x15f   :  { %v2188_v43 = vld [vmem:[%s13879_s16 + $0x1b0] sm:$0xf]  ;;  %v2190_v44 = vld [vmem:[%s13879_s16 + $0x198] sm:$0xf]  ;;  %2187 = vst [vmem:[#allocation8 + $0x1a0] sm:$0xf] %v2186_v42 }
 0x160   :  { %2189 = vst [vmem:[#allocation8 + $0x1a4] sm:$0xf] %v2188_v43  ;;  %2191 = vst [vmem:[#allocation8 + $0x1a8] sm:$0xf] %v2190_v44  ;;  %v2192_v45 = vld [vmem:[%s13879_s16 + $0x1b4] sm:$0xf] }
 0x161   :  { %v2194_v46 = vld [vmem:[%s13879_s16 + $0x19c] sm:$0xf]  ;;  %v2196_v47 = vld [vmem:[%s13879_s16 + $0x1b8] sm:$0xf]  ;;  %2193 = vst [vmem:[#allocation8 + $0x1ac] sm:$0xf] %v2192_v45 }
 0x162   :  { %2195 = vst [vmem:[#allocation8 + $0x1b0] sm:$0xf] %v2194_v46  ;;  %2197 = vst [vmem:[#allocation8 + $0x1b4] sm:$0xf] %v2196_v47  ;;  %v2198_v48 = vld [vmem:[%s13879_s16 + $0x1a0] sm:$0xf] }
 0x163   :  { %v2200_v49 = vld [vmem:[%s13879_s16 + $0x1bc] sm:$0xf]  ;;  %v2202_v50 = vld [vmem:[%s13879_s16 + $0x1c0] sm:$0xf]  ;;  %2199 = vst [vmem:[#allocation8 + $0x1b8] sm:$0xf] %v2198_v48 }
 0x164   :  { %2201 = vst [vmem:[#allocation8 + $0x1bc] sm:$0xf] %v2200_v49  ;;  %2203 = vst [vmem:[#allocation8 + $0x1c0] sm:$0xf] %v2202_v50  ;;  %v2204_v51 = vld [vmem:[%s13879_s16 + $0x1dc] sm:$0xf] }
 0x165   :  { %v2206_v52 = vld [vmem:[%s13879_s16 + $0x1c4] sm:$0xf]  ;;  %v2208_v53 = vld [vmem:[%s13879_s16 + $0x1e0] sm:$0xf]  ;;  %2205 = vst [vmem:[#allocation8 + $0x1c4] sm:$0xf] %v2204_v51 }
 0x166   :  { %2207 = vst [vmem:[#allocation8 + $0x1c8] sm:$0xf] %v2206_v52  ;;  %2209 = vst [vmem:[#allocation8 + $0x1cc] sm:$0xf] %v2208_v53  ;;  %v2210_v54 = vld [vmem:[%s13879_s16 + $0x1c8] sm:$0xf] }
 0x167   :  { %v2212_v55 = vld [vmem:[%s13879_s16 + $0x1e4] sm:$0xf]  ;;  %v2214_v56 = vld [vmem:[%s13879_s16 + $0x1cc] sm:$0xf]  ;;  %2211 = vst [vmem:[#allocation8 + $0x1d0] sm:$0xf] %v2210_v54 }
 0x168   :  { %2213 = vst [vmem:[#allocation8 + $0x1d4] sm:$0xf] %v2212_v55  ;;  %2215 = vst [vmem:[#allocation8 + $0x1d8] sm:$0xf] %v2214_v56  ;;  %v2216_v57 = vld [vmem:[%s13879_s16 + $0x1e8] sm:$0xf] }
 0x169   :  { %v2218_v58 = vld [vmem:[%s13879_s16 + $0x1d0] sm:$0xf]  ;;  %v2220_v59 = vld [vmem:[%s13879_s16 + $0x1ec] sm:$0xf]  ;;  %2217 = vst [vmem:[#allocation8 + $0x1dc] sm:$0xf] %v2216_v57 }
 0x16a   :  { %2219 = vst [vmem:[#allocation8 + $0x1e0] sm:$0xf] %v2218_v58  ;;  %2221 = vst [vmem:[#allocation8 + $0x1e4] sm:$0xf] %v2220_v59  ;;  %v2222_v60 = vld [vmem:[%s13879_s16 + $0x1d4] sm:$0xf] }
 0x16b   :  { %v2224_v61 = vld [vmem:[%s13879_s16 + $0x1f0] sm:$0xf]  ;;  %v2226_v62 = vld [vmem:[%s13879_s16 + $0x1d8] sm:$0xf]  ;;  %2223 = vst [vmem:[#allocation8 + $0x1e8] sm:$0xf] %v2222_v60 }
 0x16c   :  { %2225 = vst [vmem:[#allocation8 + $0x1ec] sm:$0xf] %v2224_v61  ;;  %2227 = vst [vmem:[#allocation8 + $0x1f0] sm:$0xf] %v2226_v62  ;;  %v2228_v63 = vld [vmem:[%s13879_s16 + $0x1f4] sm:$0xf] }
 0x16d   :  { %v2230_v0 = vld [vmem:[%s13879_s16 + $0x1f8] sm:$0xf]  ;;  %v2232_v1 = vld [vmem:[%s13879_s16 + $0x214] sm:$0xf]  ;;  %2229 = vst [vmem:[#allocation8 + $0x1f4] sm:$0xf] %v2228_v63 }
 0x16e   :  { %2231 = vst [vmem:[#allocation8 + $0x1f8] sm:$0xf] %v2230_v0  ;;  %2233 = vst [vmem:[#allocation8 + $0x1fc] sm:$0xf] %v2232_v1  ;;  %v2234_v26 = vld [vmem:[%s13879_s16 + $0x1fc] sm:$0xf] }
 0x16f   :  { %v2236_v27 = vld [vmem:[%s13879_s16 + $0x218] sm:$0xf]  ;;  %v2238_v28 = vld [vmem:[%s13879_s16 + $0x200] sm:$0xf]  ;;  %2235 = vst [vmem:[#allocation8 + $0x200] sm:$0xf] %v2234_v26 }
 0x170   :  { %2237 = vst [vmem:[#allocation8 + $0x204] sm:$0xf] %v2236_v27  ;;  %2239 = vst [vmem:[#allocation8 + $0x208] sm:$0xf] %v2238_v28  ;;  %v2240_v29 = vld [vmem:[%s13879_s16 + $0x21c] sm:$0xf] }
 0x171   :  { %v2242_v30 = vld [vmem:[%s13879_s16 + $0x204] sm:$0xf]  ;;  %v2244_v31 = vld [vmem:[%s13879_s16 + $0x220] sm:$0xf]  ;;  %2241 = vst [vmem:[#allocation8 + $0x20c] sm:$0xf] %v2240_v29 }
 0x172   :  { %2243 = vst [vmem:[#allocation8 + $0x210] sm:$0xf] %v2242_v30  ;;  %2245 = vst [vmem:[#allocation8 + $0x214] sm:$0xf] %v2244_v31  ;;  %v2246_v32 = vld [vmem:[%s13879_s16 + $0x208] sm:$0xf] }
 0x173   :  { %v2248_v33 = vld [vmem:[%s13879_s16 + $0x224] sm:$0xf]  ;;  %v2250_v34 = vld [vmem:[%s13879_s16 + $0x20c] sm:$0xf]  ;;  %2247 = vst [vmem:[#allocation8 + $0x218] sm:$0xf] %v2246_v32 }
 0x174   :  { %2249 = vst [vmem:[#allocation8 + $0x21c] sm:$0xf] %v2248_v33  ;;  %2251 = vst [vmem:[#allocation8 + $0x220] sm:$0xf] %v2250_v34  ;;  %v2252_v35 = vld [vmem:[%s13879_s16 + $0x228] sm:$0xf] }
 0x175   :  { %v2254_v36 = vld [vmem:[%s13879_s16 + $0x210] sm:$0xf]  ;;  %v2256_v37 = vld [vmem:[%s13879_s16 + $0x22c] sm:$0xf]  ;;  %2253 = vst [vmem:[#allocation8 + $0x224] sm:$0xf] %v2252_v35 }
 0x176   :  { %2255 = vst [vmem:[#allocation8 + $0x228] sm:$0xf] %v2254_v36  ;;  %2257 = vst [vmem:[#allocation8 + $0x22c] sm:$0xf] %v2256_v37  ;;  %v2258_v38 = vld [vmem:[%s13879_s16 + $0x230] sm:$0xf] }
 0x177   :  { %v2260_v39 = vld [vmem:[%s13879_s16 + $0x24c] sm:$0xf]  ;;  %v2262_v40 = vld [vmem:[%s13879_s16 + $0x234] sm:$0xf]  ;;  %2259 = vst [vmem:[#allocation8 + $0x230] sm:$0xf] %v2258_v38 }
 0x178   :  { %2261 = vst [vmem:[#allocation8 + $0x234] sm:$0xf] %v2260_v39  ;;  %2263 = vst [vmem:[#allocation8 + $0x238] sm:$0xf] %v2262_v40  ;;  %v2264_v41 = vld [vmem:[%s13879_s16 + $0x250] sm:$0xf] }
 0x179   :  { %v2266_v42 = vld [vmem:[%s13879_s16 + $0x238] sm:$0xf]  ;;  %v2268_v43 = vld [vmem:[%s13879_s16 + $0x254] sm:$0xf]  ;;  %2265 = vst [vmem:[#allocation8 + $0x23c] sm:$0xf] %v2264_v41 }
 0x17a   :  { %2267 = vst [vmem:[#allocation8 + $0x240] sm:$0xf] %v2266_v42  ;;  %2269 = vst [vmem:[#allocation8 + $0x244] sm:$0xf] %v2268_v43  ;;  %v2270_v44 = vld [vmem:[%s13879_s16 + $0x23c] sm:$0xf] }
 0x17b   :  { %v2272_v45 = vld [vmem:[%s13879_s16 + $0x258] sm:$0xf]  ;;  %v2274_v46 = vld [vmem:[%s13879_s16 + $0x240] sm:$0xf]  ;;  %2271 = vst [vmem:[#allocation8 + $0x248] sm:$0xf] %v2270_v44 }
 0x17c   :  { %2273 = vst [vmem:[#allocation8 + $0x24c] sm:$0xf] %v2272_v45  ;;  %2275 = vst [vmem:[#allocation8 + $0x250] sm:$0xf] %v2274_v46  ;;  %v2276_v47 = vld [vmem:[%s13879_s16 + $0x25c] sm:$0xf] }
 0x17d   :  { %v2278_v48 = vld [vmem:[%s13879_s16 + $0x244] sm:$0xf]  ;;  %v2280_v49 = vld [vmem:[%s13879_s16 + $0x260] sm:$0xf]  ;;  %2277 = vst [vmem:[#allocation8 + $0x254] sm:$0xf] %v2276_v47 }
 0x17e   :  { %2279 = vst [vmem:[#allocation8 + $0x258] sm:$0xf] %v2278_v48  ;;  %2281 = vst [vmem:[#allocation8 + $0x25c] sm:$0xf] %v2280_v49  ;;  %v2282_v50 = vld [vmem:[%s13879_s16 + $0x248] sm:$0xf] }
 0x17f   :  { %v2284_v51 = vld [vmem:[%s13879_s16 + $0x264] sm:$0xf]  ;;  %v2286_v52 = vld [vmem:[%s13879_s16 + $0x268] sm:$0xf]  ;;  %2283 = vst [vmem:[#allocation8 + $0x260] sm:$0xf] %v2282_v50 }
 0x180   :  { %2285 = vst [vmem:[#allocation8 + $0x264] sm:$0xf] %v2284_v51  ;;  %2287 = vst [vmem:[#allocation8 + $0x268] sm:$0xf] %v2286_v52  ;;  %v2288_v53 = vld [vmem:[%s13879_s16 + $0x284] sm:$0xf] }
 0x181   :  { %v2290_v54 = vld [vmem:[%s13879_s16 + $0x26c] sm:$0xf]  ;;  %v2292_v55 = vld [vmem:[%s13879_s16 + $0x288] sm:$0xf]  ;;  %2289 = vst [vmem:[#allocation8 + $0x26c] sm:$0xf] %v2288_v53 }
 0x182   :  { %2291 = vst [vmem:[#allocation8 + $0x270] sm:$0xf] %v2290_v54  ;;  %2293 = vst [vmem:[#allocation8 + $0x274] sm:$0xf] %v2292_v55  ;;  %v2294_v56 = vld [vmem:[%s13879_s16 + $0x270] sm:$0xf] }
 0x183   :  { %v2296_v57 = vld [vmem:[%s13879_s16 + $0x28c] sm:$0xf]  ;;  %v2298_v58 = vld [vmem:[%s13879_s16 + $0x274] sm:$0xf]  ;;  %2295 = vst [vmem:[#allocation8 + $0x278] sm:$0xf] %v2294_v56 }
 0x184   :  { %2297 = vst [vmem:[#allocation8 + $0x27c] sm:$0xf] %v2296_v57  ;;  %2299 = vst [vmem:[#allocation8 + $0x280] sm:$0xf] %v2298_v58  ;;  %v2300_v59 = vld [vmem:[%s13879_s16 + $0x290] sm:$0xf] }
 0x185   :  { %v2302_v60 = vld [vmem:[%s13879_s16 + $0x278] sm:$0xf]  ;;  %v2304_v61 = vld [vmem:[%s13879_s16 + $0x294] sm:$0xf]  ;;  %2301 = vst [vmem:[#allocation8 + $0x284] sm:$0xf] %v2300_v59 }
 0x186   :  { %2303 = vst [vmem:[#allocation8 + $0x288] sm:$0xf] %v2302_v60  ;;  %2305 = vst [vmem:[#allocation8 + $0x28c] sm:$0xf] %v2304_v61  ;;  %v2306_v62 = vld [vmem:[%s13879_s16 + $0x27c] sm:$0xf] }
 0x187   :  { %v2308_v63 = vld [vmem:[%s13879_s16 + $0x298] sm:$0xf]  ;;  %v2310_v0 = vld [vmem:[%s13879_s16 + $0x280] sm:$0xf]  ;;  %2307 = vst [vmem:[#allocation8 + $0x290] sm:$0xf] %v2306_v62 }
 0x188   :  { %2309 = vst [vmem:[#allocation8 + $0x294] sm:$0xf] %v2308_v63  ;;  %2311 = vst [vmem:[#allocation8 + $0x298] sm:$0xf] %v2310_v0  ;;  %v2312_v1 = vld [vmem:[%s13879_s16 + $0x29c] sm:$0xf] }
 0x189   :  { %v2314_v26 = vld [vmem:[%s13879_s16 + $0x2a0] sm:$0xf]  ;;  %v2316_v27 = vld [vmem:[%s13879_s16 + $0x2bc] sm:$0xf]  ;;  %2313 = vst [vmem:[#allocation8 + $0x29c] sm:$0xf] %v2312_v1 }
 0x18a   :  { %2315 = vst [vmem:[#allocation8 + $0x2a0] sm:$0xf] %v2314_v26  ;;  %2317 = vst [vmem:[#allocation8 + $0x2a4] sm:$0xf] %v2316_v27  ;;  %v2318_v28 = vld [vmem:[%s13879_s16 + $0x2a4] sm:$0xf] }
 0x18b   :  { %v2320_v29 = vld [vmem:[%s13879_s16 + $0x2c0] sm:$0xf]  ;;  %v2322_v30 = vld [vmem:[%s13879_s16 + $0x2a8] sm:$0xf]  ;;  %2319 = vst [vmem:[#allocation8 + $0x2a8] sm:$0xf] %v2318_v28 }
 0x18c   :  { %2321 = vst [vmem:[#allocation8 + $0x2ac] sm:$0xf] %v2320_v29  ;;  %2323 = vst [vmem:[#allocation8 + $0x2b0] sm:$0xf] %v2322_v30  ;;  %v2324_v31 = vld [vmem:[%s13879_s16 + $0x2c4] sm:$0xf] }
 0x18d   :  { %v2326_v32 = vld [vmem:[%s13879_s16 + $0x2ac] sm:$0xf]  ;;  %v2328_v33 = vld [vmem:[%s13879_s16 + $0x2c8] sm:$0xf]  ;;  %2325 = vst [vmem:[#allocation8 + $0x2b4] sm:$0xf] %v2324_v31 }
 0x18e   :  { %2327 = vst [vmem:[#allocation8 + $0x2b8] sm:$0xf] %v2326_v32  ;;  %2329 = vst [vmem:[#allocation8 + $0x2bc] sm:$0xf] %v2328_v33  ;;  %v2330_v34 = vld [vmem:[%s13879_s16 + $0x2b0] sm:$0xf] }
 0x18f   :  { %v2332_v35 = vld [vmem:[%s13879_s16 + $0x2cc] sm:$0xf]  ;;  %v2334_v36 = vld [vmem:[%s13879_s16 + $0x2b4] sm:$0xf]  ;;  %2331 = vst [vmem:[#allocation8 + $0x2c0] sm:$0xf] %v2330_v34 }
 0x190   :  { %2333 = vst [vmem:[#allocation8 + $0x2c4] sm:$0xf] %v2332_v35  ;;  %2335 = vst [vmem:[#allocation8 + $0x2c8] sm:$0xf] %v2334_v36  ;;  %v2336_v37 = vld [vmem:[%s13879_s16 + $0x2d0] sm:$0xf] }
 0x191   :  { %v2338_v38 = vld [vmem:[%s13879_s16 + $0x2b8] sm:$0xf]  ;;  %v2340_v39 = vld [vmem:[%s13879_s16 + $0x2d4] sm:$0xf]  ;;  %2337 = vst [vmem:[#allocation8 + $0x2cc] sm:$0xf] %v2336_v37 }
 0x192   :  { %2339 = vst [vmem:[#allocation8 + $0x2d0] sm:$0xf] %v2338_v38  ;;  %2341 = vst [vmem:[#allocation8 + $0x2d4] sm:$0xf] %v2340_v39  ;;  %v2342_v40 = vld [vmem:[%s13879_s16 + $0x2d8] sm:$0xf] }
 0x193   :  { %v2344_v41 = vld [vmem:[%s13879_s16 + $0x2f4] sm:$0xf]  ;;  %v2346_v42 = vld [vmem:[%s13879_s16 + $0x2dc] sm:$0xf]  ;;  %2343 = vst [vmem:[#allocation8 + $0x2d8] sm:$0xf] %v2342_v40 }
 0x194   :  { %2345 = vst [vmem:[#allocation8 + $0x2dc] sm:$0xf] %v2344_v41  ;;  %2347 = vst [vmem:[#allocation8 + $0x2e0] sm:$0xf] %v2346_v42  ;;  %v2348_v43 = vld [vmem:[%s13879_s16 + $0x2f8] sm:$0xf] }
 0x195   :  { %v2350_v44 = vld [vmem:[%s13879_s16 + $0x2e0] sm:$0xf]  ;;  %v2352_v45 = vld [vmem:[%s13879_s16 + $0x2fc] sm:$0xf]  ;;  %2349 = vst [vmem:[#allocation8 + $0x2e4] sm:$0xf] %v2348_v43 }
 0x196   :  { %2351 = vst [vmem:[#allocation8 + $0x2e8] sm:$0xf] %v2350_v44  ;;  %2353 = vst [vmem:[#allocation8 + $0x2ec] sm:$0xf] %v2352_v45  ;;  %v2354_v46 = vld [vmem:[%s13879_s16 + $0x2e4] sm:$0xf] }
 0x197   :  { %v2356_v47 = vld [vmem:[%s13879_s16 + $0x300] sm:$0xf]  ;;  %v2358_v48 = vld [vmem:[%s13879_s16 + $0x2e8] sm:$0xf]  ;;  %2355 = vst [vmem:[#allocation8 + $0x2f0] sm:$0xf] %v2354_v46 }
 0x198   :  { %2357 = vst [vmem:[#allocation8 + $0x2f4] sm:$0xf] %v2356_v47  ;;  %2359 = vst [vmem:[#allocation8 + $0x2f8] sm:$0xf] %v2358_v48  ;;  %v2360_v49 = vld [vmem:[%s13879_s16 + $0x304] sm:$0xf] }
 0x199   :  { %v2362_v50 = vld [vmem:[%s13879_s16 + $0x2ec] sm:$0xf]  ;;  %v2364_v51 = vld [vmem:[%s13879_s16 + $0x308] sm:$0xf]  ;;  %2361 = vst [vmem:[#allocation8 + $0x2fc] sm:$0xf] %v2360_v49 }
 0x19a   :  { %2363 = vst [vmem:[#allocation8 + $0x300] sm:$0xf] %v2362_v50  ;;  %2365 = vst [vmem:[#allocation8 + $0x304] sm:$0xf] %v2364_v51  ;;  %v2366_v52 = vld [vmem:[%s13879_s16 + $0x2f0] sm:$0xf] }
 0x19b   :  { %v2368_v53 = vld [vmem:[%s13879_s16 + $0x30c] sm:$0xf]  ;;  %v2370_v54 = vld [vmem:[%s13879_s16 + $0x310] sm:$0xf]  ;;  %2367 = vst [vmem:[#allocation8 + $0x308] sm:$0xf] %v2366_v52 }
 0x19c   :  { %2369 = vst [vmem:[#allocation8 + $0x30c] sm:$0xf] %v2368_v53  ;;  %2371 = vst [vmem:[#allocation8 + $0x310] sm:$0xf] %v2370_v54  ;;  %v2372_v55 = vld [vmem:[%s13879_s16 + $0x32c] sm:$0xf] }
 0x19d   :  { %v2374_v56 = vld [vmem:[%s13879_s16 + $0x314] sm:$0xf]  ;;  %v2376_v57 = vld [vmem:[%s13879_s16 + $0x330] sm:$0xf]  ;;  %2373 = vst [vmem:[#allocation8 + $0x314] sm:$0xf] %v2372_v55 }
 0x19e   :  { %2375 = vst [vmem:[#allocation8 + $0x318] sm:$0xf] %v2374_v56  ;;  %2377 = vst [vmem:[#allocation8 + $0x31c] sm:$0xf] %v2376_v57  ;;  %v2378_v58 = vld [vmem:[%s13879_s16 + $0x318] sm:$0xf] }
 0x19f   :  { %v2380_v59 = vld [vmem:[%s13879_s16 + $0x334] sm:$0xf]  ;;  %v2382_v60 = vld [vmem:[%s13879_s16 + $0x31c] sm:$0xf]  ;;  %2379 = vst [vmem:[#allocation8 + $0x320] sm:$0xf] %v2378_v58 }
 0x1a0   :  { %2381 = vst [vmem:[#allocation8 + $0x324] sm:$0xf] %v2380_v59  ;;  %2383 = vst [vmem:[#allocation8 + $0x328] sm:$0xf] %v2382_v60  ;;  %v2384_v61 = vld [vmem:[%s13879_s16 + $0x338] sm:$0xf] }
 0x1a1   :  { %v2386_v62 = vld [vmem:[%s13879_s16 + $0x320] sm:$0xf]  ;;  %v2388_v63 = vld [vmem:[%s13879_s16 + $0x33c] sm:$0xf]  ;;  %2385 = vst [vmem:[#allocation8 + $0x32c] sm:$0xf] %v2384_v61 }
 0x1a2   :  { %2387 = vst [vmem:[#allocation8 + $0x330] sm:$0xf] %v2386_v62  ;;  %2389 = vst [vmem:[#allocation8 + $0x334] sm:$0xf] %v2388_v63  ;;  %v2390_v0 = vld [vmem:[%s13879_s16 + $0x324] sm:$0xf] }
 0x1a3   :  { %v2392_v1 = vld [vmem:[%s13879_s16 + $0x340] sm:$0xf]  ;;  %v2394_v26 = vld [vmem:[%s13879_s16 + $0x328] sm:$0xf]  ;;  %2391 = vst [vmem:[#allocation8 + $0x338] sm:$0xf] %v2390_v0 }
 0x1a4   :  { %2393 = vst [vmem:[#allocation8 + $0x33c] sm:$0xf] %v2392_v1  ;;  %2395 = vst [vmem:[#allocation8 + $0x340] sm:$0xf] %v2394_v26  ;;  %v2396_v27 = vld [vmem:[%s13879_s16 + $0x344] sm:$0xf] }
 0x1a5   :  { %v2398_v28 = vld [vmem:[%s13879_s16 + $0x348] sm:$0xf]  ;;  %v2400_v29 = vld [vmem:[%s13879_s16 + $0x364] sm:$0xf]  ;;  %2397 = vst [vmem:[#allocation8 + $0x344] sm:$0xf] %v2396_v27 }
 0x1a6   :  { %2399 = vst [vmem:[#allocation8 + $0x348] sm:$0xf] %v2398_v28  ;;  %2401 = vst [vmem:[#allocation8 + $0x34c] sm:$0xf] %v2400_v29  ;;  %v2402_v30 = vld [vmem:[%s13879_s16 + $0x34c] sm:$0xf] }
 0x1a7   :  { %v2404_v31 = vld [vmem:[%s13879_s16 + $0x368] sm:$0xf]  ;;  %v2406_v32 = vld [vmem:[%s13879_s16 + $0x350] sm:$0xf]  ;;  %2403 = vst [vmem:[#allocation8 + $0x350] sm:$0xf] %v2402_v30 }
 0x1a8   :  { %2405 = vst [vmem:[#allocation8 + $0x354] sm:$0xf] %v2404_v31  ;;  %2407 = vst [vmem:[#allocation8 + $0x358] sm:$0xf] %v2406_v32  ;;  %v2408_v33 = vld [vmem:[%s13879_s16 + $0x36c] sm:$0xf] }
 0x1a9   :  { %v2410_v34 = vld [vmem:[%s13879_s16 + $0x354] sm:$0xf]  ;;  %v2412_v35 = vld [vmem:[%s13879_s16 + $0x370] sm:$0xf]  ;;  %2409 = vst [vmem:[#allocation8 + $0x35c] sm:$0xf] %v2408_v33 }
 0x1aa   :  { %2411 = vst [vmem:[#allocation8 + $0x360] sm:$0xf] %v2410_v34  ;;  %2413 = vst [vmem:[#allocation8 + $0x364] sm:$0xf] %v2412_v35  ;;  %v2414_v36 = vld [vmem:[%s13879_s16 + $0x358] sm:$0xf] }
 0x1ab   :  { %v2416_v37 = vld [vmem:[%s13879_s16 + $0x374] sm:$0xf]  ;;  %v2418_v38 = vld [vmem:[%s13879_s16 + $0x35c] sm:$0xf]  ;;  %2415 = vst [vmem:[#allocation8 + $0x368] sm:$0xf] %v2414_v36 }
 0x1ac   :  { %2417 = vst [vmem:[#allocation8 + $0x36c] sm:$0xf] %v2416_v37  ;;  %2419 = vst [vmem:[#allocation8 + $0x370] sm:$0xf] %v2418_v38  ;;  %v2420_v39 = vld [vmem:[%s13879_s16 + $0x378] sm:$0xf] }
 0x1ad   :  { %v2422_v40 = vld [vmem:[%s13879_s16 + $0x360] sm:$0xf]  ;;  %v2424_v41 = vld [vmem:[%s13879_s16 + $0x37c] sm:$0xf]  ;;  %2421 = vst [vmem:[#allocation8 + $0x374] sm:$0xf] %v2420_v39 }
 0x1ae   :  { %2423 = vst [vmem:[#allocation8 + $0x378] sm:$0xf] %v2422_v40  ;;  %2425 = vst [vmem:[#allocation8 + $0x37c] sm:$0xf] %v2424_v41  ;;  %v2426_v42 = vld [vmem:[%s13879_s16 + $0x380] sm:$0xf] }
 0x1af   :  { %v2428_v43 = vld [vmem:[%s13879_s16 + $0x39c] sm:$0xf]  ;;  %v2430_v44 = vld [vmem:[%s13879_s16 + $0x384] sm:$0xf]  ;;  %2427 = vst [vmem:[#allocation8 + $0x380] sm:$0xf] %v2426_v42 }
 0x1b0   :  { %2429 = vst [vmem:[#allocation8 + $0x384] sm:$0xf] %v2428_v43  ;;  %2431 = vst [vmem:[#allocation8 + $0x388] sm:$0xf] %v2430_v44  ;;  %v2432_v45 = vld [vmem:[%s13879_s16 + $0x3a0] sm:$0xf] }
 0x1b1   :  { %v2434_v46 = vld [vmem:[%s13879_s16 + $0x388] sm:$0xf]  ;;  %v2436_v47 = vld [vmem:[%s13879_s16 + $0x3a4] sm:$0xf]  ;;  %2433 = vst [vmem:[#allocation8 + $0x38c] sm:$0xf] %v2432_v45 }
 0x1b2   :  { %2435 = vst [vmem:[#allocation8 + $0x390] sm:$0xf] %v2434_v46  ;;  %2437 = vst [vmem:[#allocation8 + $0x394] sm:$0xf] %v2436_v47  ;;  %v2438_v48 = vld [vmem:[%s13879_s16 + $0x38c] sm:$0xf] }
 0x1b3   :  { %v2440_v49 = vld [vmem:[%s13879_s16 + $0x3a8] sm:$0xf]  ;;  %v2442_v50 = vld [vmem:[%s13879_s16 + $0x390] sm:$0xf]  ;;  %2439 = vst [vmem:[#allocation8 + $0x398] sm:$0xf] %v2438_v48 }
 0x1b4   :  { %2441 = vst [vmem:[#allocation8 + $0x39c] sm:$0xf] %v2440_v49  ;;  %2443 = vst [vmem:[#allocation8 + $0x3a0] sm:$0xf] %v2442_v50  ;;  %v2444_v51 = vld [vmem:[%s13879_s16 + $0x3ac] sm:$0xf] }
 0x1b5   :  { %v2446_v52 = vld [vmem:[%s13879_s16 + $0x394] sm:$0xf]  ;;  %v2448_v53 = vld [vmem:[%s13879_s16 + $0x3b0] sm:$0xf]  ;;  %2445 = vst [vmem:[#allocation8 + $0x3a4] sm:$0xf] %v2444_v51 }
 0x1b6   :  { %2447 = vst [vmem:[#allocation8 + $0x3a8] sm:$0xf] %v2446_v52  ;;  %2449 = vst [vmem:[#allocation8 + $0x3ac] sm:$0xf] %v2448_v53  ;;  %v2450_v54 = vld [vmem:[%s13879_s16 + $0x398] sm:$0xf] }
 0x1b7   :  { %v2452_v55 = vld [vmem:[%s13879_s16 + $0x3b4] sm:$0xf]  ;;  %v2454_v56 = vld [vmem:[%s13879_s16 + $0x3b8] sm:$0xf]  ;;  %2451 = vst [vmem:[#allocation8 + $0x3b0] sm:$0xf] %v2450_v54 }
 0x1b8   :  { %2453 = vst [vmem:[#allocation8 + $0x3b4] sm:$0xf] %v2452_v55  ;;  %2455 = vst [vmem:[#allocation8 + $0x3b8] sm:$0xf] %v2454_v56  ;;  %v2456_v57 = vld [vmem:[%s13879_s16 + $0x3d4] sm:$0xf] }
 0x1b9   :  { %v2458_v58 = vld [vmem:[%s13879_s16 + $0x3bc] sm:$0xf]  ;;  %v2460_v59 = vld [vmem:[%s13879_s16 + $0x3d8] sm:$0xf]  ;;  %2457 = vst [vmem:[#allocation8 + $0x3bc] sm:$0xf] %v2456_v57 }
 0x1ba   :  { %2459 = vst [vmem:[#allocation8 + $0x3c0] sm:$0xf] %v2458_v58  ;;  %2461 = vst [vmem:[#allocation8 + $0x3c4] sm:$0xf] %v2460_v59  ;;  %v2462_v60 = vld [vmem:[%s13879_s16 + $0x3c0] sm:$0xf] }
 0x1bb   :  { %v2464_v61 = vld [vmem:[%s13879_s16 + $0x3dc] sm:$0xf]  ;;  %v2466_v62 = vld [vmem:[%s13879_s16 + $0x3c4] sm:$0xf]  ;;  %2463 = vst [vmem:[#allocation8 + $0x3c8] sm:$0xf] %v2462_v60 }
 0x1bc   :  { %2465 = vst [vmem:[#allocation8 + $0x3cc] sm:$0xf] %v2464_v61  ;;  %2467 = vst [vmem:[#allocation8 + $0x3d0] sm:$0xf] %v2466_v62  ;;  %v2468_v63 = vld [vmem:[%s13879_s16 + $0x3e0] sm:$0xf] }
 0x1bd   :  { %v2470_v0 = vld [vmem:[%s13879_s16 + $0x3c8] sm:$0xf]  ;;  %v2472_v1 = vld [vmem:[%s13879_s16 + $0x3e4] sm:$0xf]  ;;  %2469 = vst [vmem:[#allocation8 + $0x3d4] sm:$0xf] %v2468_v63 }
 0x1be   :  { %2471 = vst [vmem:[#allocation8 + $0x3d8] sm:$0xf] %v2470_v0  ;;  %2473 = vst [vmem:[#allocation8 + $0x3dc] sm:$0xf] %v2472_v1  ;;  %v2474_v26 = vld [vmem:[%s13879_s16 + $0x3cc] sm:$0xf] }
 0x1bf   :  { %v2476_v27 = vld [vmem:[%s13879_s16 + $0x3e8] sm:$0xf]  ;;  %v2478_v28 = vld [vmem:[%s13879_s16 + $0x3d0] sm:$0xf]  ;;  %2475 = vst [vmem:[#allocation8 + $0x3e0] sm:$0xf] %v2474_v26 }
 0x1c0   :  { %2477 = vst [vmem:[#allocation8 + $0x3e4] sm:$0xf] %v2476_v27  ;;  %2479 = vst [vmem:[#allocation8 + $0x3e8] sm:$0xf] %v2478_v28  ;;  %v2480_v29 = vld [vmem:[%s13879_s16 + $0x3ec] sm:$0xf] }
 0x1c1   :  { %v2482_v30 = vld [vmem:[%s13879_s16 + $0x3f0] sm:$0xf]  ;;  %v2484_v31 = vld [vmem:[%s13879_s16 + $0x40c] sm:$0xf]  ;;  %2481 = vst [vmem:[#allocation8 + $0x3ec] sm:$0xf] %v2480_v29 }
 0x1c2   :  { %2483 = vst [vmem:[#allocation8 + $0x3f0] sm:$0xf] %v2482_v30  ;;  %2485 = vst [vmem:[#allocation8 + $0x3f4] sm:$0xf] %v2484_v31  ;;  %v2486_v32 = vld [vmem:[%s13879_s16 + $0x3f4] sm:$0xf] }
 0x1c3   :  { %v2488_v33 = vld [vmem:[%s13879_s16 + $0x410] sm:$0xf]  ;;  %v2490_v34 = vld [vmem:[%s13879_s16 + $0x3f8] sm:$0xf]  ;;  %2487 = vst [vmem:[#allocation8 + $0x3f8] sm:$0xf] %v2486_v32 }
 0x1c4   :  { %2489 = vst [vmem:[#allocation8 + $0x3fc] sm:$0xf] %v2488_v33  ;;  %2491 = vst [vmem:[#allocation8 + $0x400] sm:$0xf] %v2490_v34  ;;  %v2492_v35 = vld [vmem:[%s13879_s16 + $0x414] sm:$0xf] }
 0x1c5   :  { %v2494_v36 = vld [vmem:[%s13879_s16 + $0x3fc] sm:$0xf]  ;;  %v2496_v37 = vld [vmem:[%s13879_s16 + $0x418] sm:$0xf]  ;;  %2493 = vst [vmem:[#allocation8 + $0x404] sm:$0xf] %v2492_v35 }
 0x1c6   :  { %2495 = vst [vmem:[#allocation8 + $0x408] sm:$0xf] %v2494_v36  ;;  %2497 = vst [vmem:[#allocation8 + $0x40c] sm:$0xf] %v2496_v37  ;;  %v2498_v38 = vld [vmem:[%s13879_s16 + $0x400] sm:$0xf] }
 0x1c7   :  { %v2500_v39 = vld [vmem:[%s13879_s16 + $0x41c] sm:$0xf]  ;;  %v2502_v40 = vld [vmem:[%s13879_s16 + $0x404] sm:$0xf]  ;;  %2499 = vst [vmem:[#allocation8 + $0x410] sm:$0xf] %v2498_v38 }
 0x1c8   :  { %2501 = vst [vmem:[#allocation8 + $0x414] sm:$0xf] %v2500_v39  ;;  %2503 = vst [vmem:[#allocation8 + $0x418] sm:$0xf] %v2502_v40  ;;  %v2504_v41 = vld [vmem:[%s13879_s16 + $0x420] sm:$0xf] }
 0x1c9   :  { %v2506_v42 = vld [vmem:[%s13879_s16 + $0x408] sm:$0xf]  ;;  %v2508_v43 = vld [vmem:[%s13879_s16 + $0x424] sm:$0xf]  ;;  %2505 = vst [vmem:[#allocation8 + $0x41c] sm:$0xf] %v2504_v41 }
 0x1ca   :  { %2507 = vst [vmem:[#allocation8 + $0x420] sm:$0xf] %v2506_v42  ;;  %2509 = vst [vmem:[#allocation8 + $0x424] sm:$0xf] %v2508_v43  ;;  %v2510_v44 = vld [vmem:[%s13879_s16 + $0x428] sm:$0xf] }
 0x1cb   :  { %v2512_v45 = vld [vmem:[%s13879_s16 + $0x444] sm:$0xf]  ;;  %v2514_v46 = vld [vmem:[%s13879_s16 + $0x42c] sm:$0xf]  ;;  %2511 = vst [vmem:[#allocation8 + $0x428] sm:$0xf] %v2510_v44 }
 0x1cc   :  { %2513 = vst [vmem:[#allocation8 + $0x42c] sm:$0xf] %v2512_v45  ;;  %2515 = vst [vmem:[#allocation8 + $0x430] sm:$0xf] %v2514_v46  ;;  %v2516_v47 = vld [vmem:[%s13879_s16 + $0x448] sm:$0xf] }
 0x1cd   :  { %v2518_v48 = vld [vmem:[%s13879_s16 + $0x430] sm:$0xf]  ;;  %v2520_v49 = vld [vmem:[%s13879_s16 + $0x44c] sm:$0xf]  ;;  %2517 = vst [vmem:[#allocation8 + $0x434] sm:$0xf] %v2516_v47 }
 0x1ce   :  { %2519 = vst [vmem:[#allocation8 + $0x438] sm:$0xf] %v2518_v48  ;;  %2521 = vst [vmem:[#allocation8 + $0x43c] sm:$0xf] %v2520_v49  ;;  %v2522_v50 = vld [vmem:[%s13879_s16 + $0x434] sm:$0xf] }
 0x1cf   :  { %v2524_v51 = vld [vmem:[%s13879_s16 + $0x450] sm:$0xf]  ;;  %v2526_v52 = vld [vmem:[%s13879_s16 + $0x438] sm:$0xf]  ;;  %2523 = vst [vmem:[#allocation8 + $0x440] sm:$0xf] %v2522_v50 }
 0x1d0   :  { %2525 = vst [vmem:[#allocation8 + $0x444] sm:$0xf] %v2524_v51  ;;  %2527 = vst [vmem:[#allocation8 + $0x448] sm:$0xf] %v2526_v52  ;;  %v2528_v53 = vld [vmem:[%s13879_s16 + $0x454] sm:$0xf] }
 0x1d1   :  { %v2530_v54 = vld [vmem:[%s13879_s16 + $0x43c] sm:$0xf]  ;;  %v2532_v55 = vld [vmem:[%s13879_s16 + $0x458] sm:$0xf]  ;;  %2529 = vst [vmem:[#allocation8 + $0x44c] sm:$0xf] %v2528_v53 }
 0x1d2   :  { %2531 = vst [vmem:[#allocation8 + $0x450] sm:$0xf] %v2530_v54  ;;  %2533 = vst [vmem:[#allocation8 + $0x454] sm:$0xf] %v2532_v55  ;;  %v2534_v56 = vld [vmem:[%s13879_s16 + $0x440] sm:$0xf] }
 0x1d3   :  { %v2536_v57 = vld [vmem:[%s13879_s16 + $0x45c] sm:$0xf]  ;;  %v2538_v58 = vld [vmem:[%s13879_s16 + $0x460] sm:$0xf]  ;;  %2535 = vst [vmem:[#allocation8 + $0x458] sm:$0xf] %v2534_v56 }
 0x1d4   :  { %2537 = vst [vmem:[#allocation8 + $0x45c] sm:$0xf] %v2536_v57  ;;  %2539 = vst [vmem:[#allocation8 + $0x460] sm:$0xf] %v2538_v58  ;;  %v2540_v59 = vld [vmem:[%s13879_s16 + $0x47c] sm:$0xf] }
 0x1d5   :  { %v2542_v60 = vld [vmem:[%s13879_s16 + $0x464] sm:$0xf]  ;;  %v2544_v61 = vld [vmem:[%s13879_s16 + $0x480] sm:$0xf]  ;;  %2541 = vst [vmem:[#allocation8 + $0x464] sm:$0xf] %v2540_v59 }
 0x1d6   :  { %2543 = vst [vmem:[#allocation8 + $0x468] sm:$0xf] %v2542_v60  ;;  %2545 = vst [vmem:[#allocation8 + $0x46c] sm:$0xf] %v2544_v61  ;;  %v2546_v62 = vld [vmem:[%s13879_s16 + $0x468] sm:$0xf] }
 0x1d7   :  { %v2548_v63 = vld [vmem:[%s13879_s16 + $0x484] sm:$0xf]  ;;  %v2550_v0 = vld [vmem:[%s13879_s16 + $0x46c] sm:$0xf]  ;;  %2547 = vst [vmem:[#allocation8 + $0x470] sm:$0xf] %v2546_v62 }
 0x1d8   :  { %2549 = vst [vmem:[#allocation8 + $0x474] sm:$0xf] %v2548_v63  ;;  %2551 = vst [vmem:[#allocation8 + $0x478] sm:$0xf] %v2550_v0  ;;  %v2552_v1 = vld [vmem:[%s13879_s16 + $0x488] sm:$0xf] }
 0x1d9   :  { %v2554_v26 = vld [vmem:[%s13879_s16 + $0x470] sm:$0xf]  ;;  %v2556_v27 = vld [vmem:[%s13879_s16 + $0x48c] sm:$0xf]  ;;  %2553 = vst [vmem:[#allocation8 + $0x47c] sm:$0xf] %v2552_v1 }
 0x1da   :  { %2555 = vst [vmem:[#allocation8 + $0x480] sm:$0xf] %v2554_v26  ;;  %2557 = vst [vmem:[#allocation8 + $0x484] sm:$0xf] %v2556_v27  ;;  %v2558_v28 = vld [vmem:[%s13879_s16 + $0x474] sm:$0xf] }
 0x1db   :  { %v2560_v29 = vld [vmem:[%s13879_s16 + $0x490] sm:$0xf]  ;;  %v2562_v30 = vld [vmem:[%s13879_s16 + $0x478] sm:$0xf]  ;;  %2559 = vst [vmem:[#allocation8 + $0x488] sm:$0xf] %v2558_v28 }
 0x1dc   :  { %2561 = vst [vmem:[#allocation8 + $0x48c] sm:$0xf] %v2560_v29  ;;  %2563 = vst [vmem:[#allocation8 + $0x490] sm:$0xf] %v2562_v30  ;;  %v2564_v31 = vld [vmem:[%s13879_s16 + $0x494] sm:$0xf] }
 0x1dd   :  { %v2566_v32 = vld [vmem:[%s13879_s16 + $0x498] sm:$0xf]  ;;  %v2568_v33 = vld [vmem:[%s13879_s16 + $0x4b4] sm:$0xf]  ;;  %2565 = vst [vmem:[#allocation8 + $0x494] sm:$0xf] %v2564_v31 }
 0x1de   :  { %2567 = vst [vmem:[#allocation8 + $0x498] sm:$0xf] %v2566_v32  ;;  %2569 = vst [vmem:[#allocation8 + $0x49c] sm:$0xf] %v2568_v33  ;;  %v2570_v34 = vld [vmem:[%s13879_s16 + $0x49c] sm:$0xf] }
 0x1df   :  { %v2572_v35 = vld [vmem:[%s13879_s16 + $0x4b8] sm:$0xf]  ;;  %v2574_v36 = vld [vmem:[%s13879_s16 + $0x4a0] sm:$0xf]  ;;  %2571 = vst [vmem:[#allocation8 + $0x4a0] sm:$0xf] %v2570_v34 }
 0x1e0   :  { %2573 = vst [vmem:[#allocation8 + $0x4a4] sm:$0xf] %v2572_v35  ;;  %2575 = vst [vmem:[#allocation8 + $0x4a8] sm:$0xf] %v2574_v36  ;;  %v2576_v37 = vld [vmem:[%s13879_s16 + $0x4bc] sm:$0xf] }
 0x1e1   :  { %v2578_v38 = vld [vmem:[%s13879_s16 + $0x4a4] sm:$0xf]  ;;  %v2580_v39 = vld [vmem:[%s13879_s16 + $0x4c0] sm:$0xf]  ;;  %2577 = vst [vmem:[#allocation8 + $0x4ac] sm:$0xf] %v2576_v37 }
 0x1e2   :  { %2579 = vst [vmem:[#allocation8 + $0x4b0] sm:$0xf] %v2578_v38  ;;  %2581 = vst [vmem:[#allocation8 + $0x4b4] sm:$0xf] %v2580_v39  ;;  %v2582_v40 = vld [vmem:[%s13879_s16 + $0x4a8] sm:$0xf] }
 0x1e3   :  { %v2584_v41 = vld [vmem:[%s13879_s16 + $0x4c4] sm:$0xf]  ;;  %v2586_v42 = vld [vmem:[%s13879_s16 + $0x4ac] sm:$0xf]  ;;  %2583 = vst [vmem:[#allocation8 + $0x4b8] sm:$0xf] %v2582_v40 }
 0x1e4   :  { %2585 = vst [vmem:[#allocation8 + $0x4bc] sm:$0xf] %v2584_v41  ;;  %2587 = vst [vmem:[#allocation8 + $0x4c0] sm:$0xf] %v2586_v42  ;;  %v2588_v43 = vld [vmem:[%s13879_s16 + $0x4c8] sm:$0xf] }
 0x1e5   :  { %v2590_v44 = vld [vmem:[%s13879_s16 + $0x4b0] sm:$0xf]  ;;  %v2592_v45 = vld [vmem:[%s13879_s16 + $0x4cc] sm:$0xf]  ;;  %2589 = vst [vmem:[#allocation8 + $0x4c4] sm:$0xf] %v2588_v43 }
 0x1e6   :  { %2591 = vst [vmem:[#allocation8 + $0x4c8] sm:$0xf] %v2590_v44  ;;  %2593 = vst [vmem:[#allocation8 + $0x4cc] sm:$0xf] %v2592_v45  ;;  %v2594_v46 = vld [vmem:[%s13879_s16 + $0x4d0] sm:$0xf] }
 0x1e7   :  { %v2596_v47 = vld [vmem:[%s13879_s16 + $0x4ec] sm:$0xf]  ;;  %v2598_v48 = vld [vmem:[%s13879_s16 + $0x4d4] sm:$0xf]  ;;  %2595 = vst [vmem:[#allocation8 + $0x4d0] sm:$0xf] %v2594_v46 }
 0x1e8   :  { %2597 = vst [vmem:[#allocation8 + $0x4d4] sm:$0xf] %v2596_v47  ;;  %2599 = vst [vmem:[#allocation8 + $0x4d8] sm:$0xf] %v2598_v48  ;;  %v2600_v49 = vld [vmem:[%s13879_s16 + $0x4f0] sm:$0xf] }
 0x1e9   :  { %v2602_v50 = vld [vmem:[%s13879_s16 + $0x4d8] sm:$0xf]  ;;  %v2604_v51 = vld [vmem:[%s13879_s16 + $0x4f4] sm:$0xf]  ;;  %2601 = vst [vmem:[#allocation8 + $0x4dc] sm:$0xf] %v2600_v49 }
 0x1ea   :  { %2603 = vst [vmem:[#allocation8 + $0x4e0] sm:$0xf] %v2602_v50  ;;  %2605 = vst [vmem:[#allocation8 + $0x4e4] sm:$0xf] %v2604_v51  ;;  %v2606_v52 = vld [vmem:[%s13879_s16 + $0x4dc] sm:$0xf] }
 0x1eb   :  { %v2608_v53 = vld [vmem:[%s13879_s16 + $0x4f8] sm:$0xf]  ;;  %v2610_v54 = vld [vmem:[%s13879_s16 + $0x4e0] sm:$0xf]  ;;  %2607 = vst [vmem:[#allocation8 + $0x4e8] sm:$0xf] %v2606_v52 }
 0x1ec   :  { %2609 = vst [vmem:[#allocation8 + $0x4ec] sm:$0xf] %v2608_v53  ;;  %2611 = vst [vmem:[#allocation8 + $0x4f0] sm:$0xf] %v2610_v54  ;;  %v2612_v55 = vld [vmem:[%s13879_s16 + $0x4fc] sm:$0xf] }
 0x1ed   :  { %v2614_v56 = vld [vmem:[%s13879_s16 + $0x4e4] sm:$0xf]  ;;  %v2616_v57 = vld [vmem:[%s13879_s16 + $0x500] sm:$0xf]  ;;  %2613 = vst [vmem:[#allocation8 + $0x4f4] sm:$0xf] %v2612_v55 }
 0x1ee   :  { %2615 = vst [vmem:[#allocation8 + $0x4f8] sm:$0xf] %v2614_v56  ;;  %2617 = vst [vmem:[#allocation8 + $0x4fc] sm:$0xf] %v2616_v57  ;;  %v2618_v58 = vld [vmem:[%s13879_s16 + $0x4e8] sm:$0xf] }
 0x1ef   :  { %v2620_v59 = vld [vmem:[%s13879_s16 + $0x504] sm:$0xf]  ;;  %v2622_v60 = vld [vmem:[%s13879_s16 + $0x508] sm:$0xf]  ;;  %2619 = vst [vmem:[#allocation8 + $0x500] sm:$0xf] %v2618_v58 }
 0x1f0   :  { %2621 = vst [vmem:[#allocation8 + $0x504] sm:$0xf] %v2620_v59  ;;  %2623 = vst [vmem:[#allocation8 + $0x508] sm:$0xf] %v2622_v60  ;;  %v2624_v61 = vld [vmem:[%s13879_s16 + $0x524] sm:$0xf] }
 0x1f1   :  { %v2626_v62 = vld [vmem:[%s13879_s16 + $0x50c] sm:$0xf]  ;;  %v2628_v63 = vld [vmem:[%s13879_s16 + $0x528] sm:$0xf]  ;;  %2625 = vst [vmem:[#allocation8 + $0x50c] sm:$0xf] %v2624_v61 }
 0x1f2   :  { %2627 = vst [vmem:[#allocation8 + $0x510] sm:$0xf] %v2626_v62  ;;  %2629 = vst [vmem:[#allocation8 + $0x514] sm:$0xf] %v2628_v63  ;;  %v2630_v0 = vld [vmem:[%s13879_s16 + $0x510] sm:$0xf] }
 0x1f3   :  { %v2632_v1 = vld [vmem:[%s13879_s16 + $0x52c] sm:$0xf]  ;;  %v2634_v26 = vld [vmem:[%s13879_s16 + $0x514] sm:$0xf]  ;;  %2631 = vst [vmem:[#allocation8 + $0x518] sm:$0xf] %v2630_v0 }
 0x1f4   :  { %2633 = vst [vmem:[#allocation8 + $0x51c] sm:$0xf] %v2632_v1  ;;  %2635 = vst [vmem:[#allocation8 + $0x520] sm:$0xf] %v2634_v26  ;;  %v2636_v27 = vld [vmem:[%s13879_s16 + $0x530] sm:$0xf] }
 0x1f5   :  { %v2638_v28 = vld [vmem:[%s13879_s16 + $0x518] sm:$0xf]  ;;  %v2640_v29 = vld [vmem:[%s13879_s16 + $0x534] sm:$0xf]  ;;  %2637 = vst [vmem:[#allocation8 + $0x524] sm:$0xf] %v2636_v27 }
 0x1f6   :  { %2639 = vst [vmem:[#allocation8 + $0x528] sm:$0xf] %v2638_v28  ;;  %2641 = vst [vmem:[#allocation8 + $0x52c] sm:$0xf] %v2640_v29  ;;  %v2642_v30 = vld [vmem:[%s13879_s16 + $0x51c] sm:$0xf] }
 0x1f7   :  { %v2644_v31 = vld [vmem:[%s13879_s16 + $0x538] sm:$0xf]  ;;  %v2646_v32 = vld [vmem:[%s13879_s16 + $0x520] sm:$0xf]  ;;  %2643 = vst [vmem:[#allocation8 + $0x530] sm:$0xf] %v2642_v30 }
 0x1f8   :  { %2645 = vst [vmem:[#allocation8 + $0x534] sm:$0xf] %v2644_v31  ;;  %2647 = vst [vmem:[#allocation8 + $0x538] sm:$0xf] %v2646_v32  ;;  %v2648_v33 = vld [vmem:[%s13879_s16 + $0x53c] sm:$0xf] }
 0x1f9   :  { %v2650_v34 = vld [vmem:[%s13879_s16 + $0x540] sm:$0xf]  ;;  %v2652_v35 = vld [vmem:[%s13879_s16 + $0x55c] sm:$0xf]  ;;  %2649 = vst [vmem:[#allocation8 + $0x53c] sm:$0xf] %v2648_v33 }
 0x1fa   :  { %2651 = vst [vmem:[#allocation8 + $0x540] sm:$0xf] %v2650_v34  ;;  %2653 = vst [vmem:[#allocation8 + $0x544] sm:$0xf] %v2652_v35  ;;  %v2654_v36 = vld [vmem:[%s13879_s16 + $0x544] sm:$0xf] }
 0x1fb   :  { %v2656_v37 = vld [vmem:[%s13879_s16 + $0x560] sm:$0xf]  ;;  %v2658_v38 = vld [vmem:[%s13879_s16 + $0x548] sm:$0xf]  ;;  %2655 = vst [vmem:[#allocation8 + $0x548] sm:$0xf] %v2654_v36 }
 0x1fc   :  { %2657 = vst [vmem:[#allocation8 + $0x54c] sm:$0xf] %v2656_v37  ;;  %2659 = vst [vmem:[#allocation8 + $0x550] sm:$0xf] %v2658_v38  ;;  %v2660_v39 = vld [vmem:[%s13879_s16 + $0x564] sm:$0xf] }
 0x1fd   :  { %v2662_v40 = vld [vmem:[%s13879_s16 + $0x54c] sm:$0xf]  ;;  %v2664_v41 = vld [vmem:[%s13879_s16 + $0x568] sm:$0xf]  ;;  %2661 = vst [vmem:[#allocation8 + $0x554] sm:$0xf] %v2660_v39 }
 0x1fe   :  { %2663 = vst [vmem:[#allocation8 + $0x558] sm:$0xf] %v2662_v40  ;;  %2665 = vst [vmem:[#allocation8 + $0x55c] sm:$0xf] %v2664_v41  ;;  %v2666_v42 = vld [vmem:[%s13879_s16 + $0x550] sm:$0xf] }
 0x1ff   :  { %v2668_v43 = vld [vmem:[%s13879_s16 + $0x56c] sm:$0xf]  ;;  %v2670_v44 = vld [vmem:[%s13879_s16 + $0x554] sm:$0xf]  ;;  %2667 = vst [vmem:[#allocation8 + $0x560] sm:$0xf] %v2666_v42 }
 0x200   :  { %2669 = vst [vmem:[#allocation8 + $0x564] sm:$0xf] %v2668_v43  ;;  %2671 = vst [vmem:[#allocation8 + $0x568] sm:$0xf] %v2670_v44  ;;  %v2672_v45 = vld [vmem:[%s13879_s16 + $0x570] sm:$0xf] }
 0x201   :  { %v2674_v46 = vld [vmem:[%s13879_s16 + $0x558] sm:$0xf]  ;;  %v2676_v47 = vld [vmem:[%s13879_s16 + $0x574] sm:$0xf]  ;;  %2673 = vst [vmem:[#allocation8 + $0x56c] sm:$0xf] %v2672_v45 }
 0x202   :  { %2675 = vst [vmem:[#allocation8 + $0x570] sm:$0xf] %v2674_v46  ;;  %2677 = vst [vmem:[#allocation8 + $0x574] sm:$0xf] %v2676_v47  ;;  %v2678_v48 = vld [vmem:[%s13879_s16 + $0x578] sm:$0xf] }
 0x203   :  { %v2680_v49 = vld [vmem:[%s13879_s16 + $0x594] sm:$0xf]  ;;  %v2682_v50 = vld [vmem:[%s13879_s16 + $0x57c] sm:$0xf]  ;;  %2679 = vst [vmem:[#allocation8 + $0x578] sm:$0xf] %v2678_v48 }
 0x204   :  { %2681 = vst [vmem:[#allocation8 + $0x57c] sm:$0xf] %v2680_v49  ;;  %2683 = vst [vmem:[#allocation8 + $0x580] sm:$0xf] %v2682_v50  ;;  %v2684_v51 = vld [vmem:[%s13879_s16 + $0x598] sm:$0xf] }
 0x205   :  { %v2686_v52 = vld [vmem:[%s13879_s16 + $0x580] sm:$0xf]  ;;  %v2688_v53 = vld [vmem:[%s13879_s16 + $0x59c] sm:$0xf]  ;;  %2685 = vst [vmem:[#allocation8 + $0x584] sm:$0xf] %v2684_v51 }
 0x206   :  { %2687 = vst [vmem:[#allocation8 + $0x588] sm:$0xf] %v2686_v52  ;;  %2689 = vst [vmem:[#allocation8 + $0x58c] sm:$0xf] %v2688_v53  ;;  %v2690_v54 = vld [vmem:[%s13879_s16 + $0x584] sm:$0xf] }
 0x207   :  { %v2692_v55 = vld [vmem:[%s13879_s16 + $0x5a0] sm:$0xf]  ;;  %v2694_v56 = vld [vmem:[%s13879_s16 + $0x588] sm:$0xf]  ;;  %2691 = vst [vmem:[#allocation8 + $0x590] sm:$0xf] %v2690_v54 }
 0x208   :  { %2693 = vst [vmem:[#allocation8 + $0x594] sm:$0xf] %v2692_v55  ;;  %2695 = vst [vmem:[#allocation8 + $0x598] sm:$0xf] %v2694_v56  ;;  %v2696_v57 = vld [vmem:[%s13879_s16 + $0x5a4] sm:$0xf] }
 0x209   :  { %v2698_v58 = vld [vmem:[%s13879_s16 + $0x58c] sm:$0xf]  ;;  %v2700_v59 = vld [vmem:[%s13879_s16 + $0x5a8] sm:$0xf]  ;;  %2697 = vst [vmem:[#allocation8 + $0x59c] sm:$0xf] %v2696_v57 }
 0x20a   :  { %2699 = vst [vmem:[#allocation8 + $0x5a0] sm:$0xf] %v2698_v58  ;;  %2701 = vst [vmem:[#allocation8 + $0x5a4] sm:$0xf] %v2700_v59  ;;  %v2702_v60 = vld [vmem:[%s13879_s16 + $0x590] sm:$0xf] }
 0x20b   :  { %v2704_v61 = vld [vmem:[%s13879_s16 + $0x5ac] sm:$0xf]  ;;  %v2706_v62 = vld [vmem:[%s13879_s16 + $0x5b0] sm:$0xf]  ;;  %2703 = vst [vmem:[#allocation8 + $0x5a8] sm:$0xf] %v2702_v60 }
 0x20c   :  { %2705 = vst [vmem:[#allocation8 + $0x5ac] sm:$0xf] %v2704_v61  ;;  %2707 = vst [vmem:[#allocation8 + $0x5b0] sm:$0xf] %v2706_v62  ;;  %v2708_v63 = vld [vmem:[%s13879_s16 + $0x5cc] sm:$0xf] }
 0x20d   :  { %v2710_v0 = vld [vmem:[%s13879_s16 + $0x5b4] sm:$0xf]  ;;  %v2712_v1 = vld [vmem:[%s13879_s16 + $0x5d0] sm:$0xf]  ;;  %2709 = vst [vmem:[#allocation8 + $0x5b4] sm:$0xf] %v2708_v63 }
 0x20e   :  { %2711 = vst [vmem:[#allocation8 + $0x5b8] sm:$0xf] %v2710_v0  ;;  %2713 = vst [vmem:[#allocation8 + $0x5bc] sm:$0xf] %v2712_v1  ;;  %v2714_v26 = vld [vmem:[%s13879_s16 + $0x5b8] sm:$0xf] }
 0x20f   :  { %v2716_v27 = vld [vmem:[%s13879_s16 + $0x5d4] sm:$0xf]  ;;  %v2718_v28 = vld [vmem:[%s13879_s16 + $0x5bc] sm:$0xf]  ;;  %2715 = vst [vmem:[#allocation8 + $0x5c0] sm:$0xf] %v2714_v26 }
 0x210   :  { %2717 = vst [vmem:[#allocation8 + $0x5c4] sm:$0xf] %v2716_v27  ;;  %2719 = vst [vmem:[#allocation8 + $0x5c8] sm:$0xf] %v2718_v28  ;;  %v2720_v29 = vld [vmem:[%s13879_s16 + $0x5d8] sm:$0xf] }
 0x211   :  { %v2722_v30 = vld [vmem:[%s13879_s16 + $0x5c0] sm:$0xf]  ;;  %v2724_v31 = vld [vmem:[%s13879_s16 + $0x5dc] sm:$0xf]  ;;  %2721 = vst [vmem:[#allocation8 + $0x5cc] sm:$0xf] %v2720_v29 }
 0x212   :  { %2723 = vst [vmem:[#allocation8 + $0x5d0] sm:$0xf] %v2722_v30  ;;  %2725 = vst [vmem:[#allocation8 + $0x5d4] sm:$0xf] %v2724_v31  ;;  %v2726_v32 = vld [vmem:[%s13879_s16 + $0x5c4] sm:$0xf] }
 0x213   :  { %v2728_v33 = vld [vmem:[%s13879_s16 + $0x5e0] sm:$0xf]  ;;  %v2730_v34 = vld [vmem:[%s13879_s16 + $0x5c8] sm:$0xf]  ;;  %2727 = vst [vmem:[#allocation8 + $0x5d8] sm:$0xf] %v2726_v32 }
 0x214   :  { %2729 = vst [vmem:[#allocation8 + $0x5dc] sm:$0xf] %v2728_v33  ;;  %2731 = vst [vmem:[#allocation8 + $0x5e0] sm:$0xf] %v2730_v34  ;;  %v2732_v35 = vld [vmem:[%s13879_s16 + $0x5e4] sm:$0xf] }
 0x215   :  { %v2734_v36 = vld [vmem:[%s13879_s16 + $0x5e8] sm:$0xf]  ;;  %v2736_v37 = vld [vmem:[%s13879_s16 + $0x604] sm:$0xf]  ;;  %2733 = vst [vmem:[#allocation8 + $0x5e4] sm:$0xf] %v2732_v35 }
 0x216   :  { %2735 = vst [vmem:[#allocation8 + $0x5e8] sm:$0xf] %v2734_v36  ;;  %2737 = vst [vmem:[#allocation8 + $0x5ec] sm:$0xf] %v2736_v37  ;;  %v2738_v38 = vld [vmem:[%s13879_s16 + $0x5ec] sm:$0xf] }
 0x217   :  { %v2740_v39 = vld [vmem:[%s13879_s16 + $0x608] sm:$0xf]  ;;  %v2742_v40 = vld [vmem:[%s13879_s16 + $0x5f0] sm:$0xf]  ;;  %2739 = vst [vmem:[#allocation8 + $0x5f0] sm:$0xf] %v2738_v38 }
 0x218   :  { %2741 = vst [vmem:[#allocation8 + $0x5f4] sm:$0xf] %v2740_v39  ;;  %2743 = vst [vmem:[#allocation8 + $0x5f8] sm:$0xf] %v2742_v40  ;;  %v2744_v41 = vld [vmem:[%s13879_s16 + $0x60c] sm:$0xf] }
 0x219   :  { %v2746_v42 = vld [vmem:[%s13879_s16 + $0x5f4] sm:$0xf]  ;;  %v2748_v43 = vld [vmem:[%s13879_s16 + $0x610] sm:$0xf]  ;;  %2745 = vst [vmem:[#allocation8 + $0x5fc] sm:$0xf] %v2744_v41 }
 0x21a   :  { %2747 = vst [vmem:[#allocation8 + $0x600] sm:$0xf] %v2746_v42  ;;  %2749 = vst [vmem:[#allocation8 + $0x604] sm:$0xf] %v2748_v43  ;;  %v2750_v44 = vld [vmem:[%s13879_s16 + $0x5f8] sm:$0xf] }
 0x21b   :  { %v2752_v45 = vld [vmem:[%s13879_s16 + $0x614] sm:$0xf]  ;;  %v2754_v46 = vld [vmem:[%s13879_s16 + $0x5fc] sm:$0xf]  ;;  %2751 = vst [vmem:[#allocation8 + $0x608] sm:$0xf] %v2750_v44 }
 0x21c   :  { %2753 = vst [vmem:[#allocation8 + $0x60c] sm:$0xf] %v2752_v45  ;;  %2755 = vst [vmem:[#allocation8 + $0x610] sm:$0xf] %v2754_v46  ;;  %v2756_v47 = vld [vmem:[%s13879_s16 + $0x618] sm:$0xf] }
 0x21d   :  { %v2758_v48 = vld [vmem:[%s13879_s16 + $0x600] sm:$0xf]  ;;  %v2760_v49 = vld [vmem:[%s13879_s16 + $0x61c] sm:$0xf]  ;;  %2757 = vst [vmem:[#allocation8 + $0x614] sm:$0xf] %v2756_v47 }
 0x21e   :  { %2759 = vst [vmem:[#allocation8 + $0x618] sm:$0xf] %v2758_v48  ;;  %2761 = vst [vmem:[#allocation8 + $0x61c] sm:$0xf] %v2760_v49 }
 0x21f   :  { %3576 = vsyncadd [#allocation10 + $0x6], 25088  ;;  %v3595_v50 = vld [vmem:[%s13914_s2] sm:$0xf]  ;;  %v3597_v51 = vld [vmem:[%s13914_s2 + $0x10] sm:$0xf] }
 0x220   :  { %3596 = vst [vmem:[#allocation9] sm:$0xf] %v3595_v50  ;;  %3598 = vst [vmem:[#allocation9 + $0x4] sm:$0xf] %v3597_v51  ;;  %v3599_v52 = vld [vmem:[%s13914_s2 + $0x4] sm:$0xf] }
 0x221   :  { %v3601_v53 = vld [vmem:[%s13914_s2 + $0x14] sm:$0xf]  ;;  %v3603_v54 = vld [vmem:[%s13914_s2 + $0x8] sm:$0xf]  ;;  %3600 = vst [vmem:[#allocation9 + $0x8] sm:$0xf] %v3599_v52 }
 0x222   :  { %3602 = vst [vmem:[#allocation9 + $0xc] sm:$0xf] %v3601_v53  ;;  %3604 = vst [vmem:[#allocation9 + $0x10] sm:$0xf] %v3603_v54  ;;  %v3605_v55 = vld [vmem:[%s13914_s2 + $0x18] sm:$0xf] }
 0x223   :  { %v3607_v56 = vld [vmem:[%s13914_s2 + $0xc] sm:$0xf]  ;;  %v3609_v57 = vld [vmem:[%s13914_s2 + $0x1c] sm:$0xf]  ;;  %3606 = vst [vmem:[#allocation9 + $0x14] sm:$0xf] %v3605_v55 }
 0x224   :  { %3608 = vst [vmem:[#allocation9 + $0x18] sm:$0xf] %v3607_v56  ;;  %3610 = vst [vmem:[#allocation9 + $0x1c] sm:$0xf] %v3609_v57  ;;  %v3611_v58 = vld [vmem:[%s13914_s2 + $0x20] sm:$0xf] }
 0x225   :  { %v3613_v59 = vld [vmem:[%s13914_s2 + $0x30] sm:$0xf]  ;;  %v3615_v60 = vld [vmem:[%s13914_s2 + $0x24] sm:$0xf]  ;;  %3612 = vst [vmem:[#allocation9 + $0x20] sm:$0xf] %v3611_v58 }
 0x226   :  { %3614 = vst [vmem:[#allocation9 + $0x24] sm:$0xf] %v3613_v59  ;;  %3616 = vst [vmem:[#allocation9 + $0x28] sm:$0xf] %v3615_v60  ;;  %v3617_v61 = vld [vmem:[%s13914_s2 + $0x34] sm:$0xf] }
 0x227   :  { %v3619_v62 = vld [vmem:[%s13914_s2 + $0x28] sm:$0xf]  ;;  %v3621_v63 = vld [vmem:[%s13914_s2 + $0x38] sm:$0xf]  ;;  %3618 = vst [vmem:[#allocation9 + $0x2c] sm:$0xf] %v3617_v61 }
 0x228   :  { %3620 = vst [vmem:[#allocation9 + $0x30] sm:$0xf] %v3619_v62  ;;  %3622 = vst [vmem:[#allocation9 + $0x34] sm:$0xf] %v3621_v63  ;;  %v3623_v0 = vld [vmem:[%s13914_s2 + $0x2c] sm:$0xf] }
 0x229   :  { %v3625_v1 = vld [vmem:[%s13914_s2 + $0x3c] sm:$0xf]  ;;  %v3627_v26 = vld [vmem:[%s13914_s2 + $0x40] sm:$0xf]  ;;  %3624 = vst [vmem:[#allocation9 + $0x38] sm:$0xf] %v3623_v0 }
 0x22a   :  { %3626 = vst [vmem:[#allocation9 + $0x3c] sm:$0xf] %v3625_v1  ;;  %3628 = vst [vmem:[#allocation9 + $0x40] sm:$0xf] %v3627_v26  ;;  %v3629_v27 = vld [vmem:[%s13914_s2 + $0x50] sm:$0xf] }
 0x22b   :  { %v3631_v28 = vld [vmem:[%s13914_s2 + $0x44] sm:$0xf]  ;;  %v3633_v29 = vld [vmem:[%s13914_s2 + $0x54] sm:$0xf]  ;;  %3630 = vst [vmem:[#allocation9 + $0x44] sm:$0xf] %v3629_v27 }
 0x22c   :  { %3632 = vst [vmem:[#allocation9 + $0x48] sm:$0xf] %v3631_v28  ;;  %3634 = vst [vmem:[#allocation9 + $0x4c] sm:$0xf] %v3633_v29  ;;  %v3635_v30 = vld [vmem:[%s13914_s2 + $0x48] sm:$0xf] }
 0x22d   :  { %v3637_v31 = vld [vmem:[%s13914_s2 + $0x58] sm:$0xf]  ;;  %v3639_v32 = vld [vmem:[%s13914_s2 + $0x4c] sm:$0xf]  ;;  %3636 = vst [vmem:[#allocation9 + $0x50] sm:$0xf] %v3635_v30 }
 0x22e   :  { %3638 = vst [vmem:[#allocation9 + $0x54] sm:$0xf] %v3637_v31  ;;  %3640 = vst [vmem:[#allocation9 + $0x58] sm:$0xf] %v3639_v32  ;;  %v3641_v33 = vld [vmem:[%s13914_s2 + $0x5c] sm:$0xf] }
 0x22f   :  { %v3643_v34 = vld [vmem:[%s13914_s2 + $0x60] sm:$0xf]  ;;  %v3645_v35 = vld [vmem:[%s13914_s2 + $0x70] sm:$0xf]  ;;  %3642 = vst [vmem:[#allocation9 + $0x5c] sm:$0xf] %v3641_v33 }
 0x230   :  { %3644 = vst [vmem:[#allocation9 + $0x60] sm:$0xf] %v3643_v34  ;;  %3646 = vst [vmem:[#allocation9 + $0x64] sm:$0xf] %v3645_v35  ;;  %v3647_v36 = vld [vmem:[%s13914_s2 + $0x64] sm:$0xf] }
 0x231   :  { %v3649_v37 = vld [vmem:[%s13914_s2 + $0x74] sm:$0xf]  ;;  %v3651_v38 = vld [vmem:[%s13914_s2 + $0x68] sm:$0xf]  ;;  %3648 = vst [vmem:[#allocation9 + $0x68] sm:$0xf] %v3647_v36 }
 0x232   :  { %3650 = vst [vmem:[#allocation9 + $0x6c] sm:$0xf] %v3649_v37  ;;  %3652 = vst [vmem:[#allocation9 + $0x70] sm:$0xf] %v3651_v38  ;;  %v3653_v39 = vld [vmem:[%s13914_s2 + $0x78] sm:$0xf] }
 0x233   :  { %v3655_v40 = vld [vmem:[%s13914_s2 + $0x6c] sm:$0xf]  ;;  %v3657_v41 = vld [vmem:[%s13914_s2 + $0x7c] sm:$0xf]  ;;  %3654 = vst [vmem:[#allocation9 + $0x74] sm:$0xf] %v3653_v39 }
 0x234   :  { %3656 = vst [vmem:[#allocation9 + $0x78] sm:$0xf] %v3655_v40  ;;  %3658 = vst [vmem:[#allocation9 + $0x7c] sm:$0xf] %v3657_v41  ;;  %v3659_v42 = vld [vmem:[%s13914_s2 + $0x80] sm:$0xf] }
 0x235   :  { %v3661_v43 = vld [vmem:[%s13914_s2 + $0x90] sm:$0xf]  ;;  %v3663_v44 = vld [vmem:[%s13914_s2 + $0x84] sm:$0xf]  ;;  %3660 = vst [vmem:[#allocation9 + $0x80] sm:$0xf] %v3659_v42 }
 0x236   :  { %3662 = vst [vmem:[#allocation9 + $0x84] sm:$0xf] %v3661_v43  ;;  %3664 = vst [vmem:[#allocation9 + $0x88] sm:$0xf] %v3663_v44  ;;  %v3665_v45 = vld [vmem:[%s13914_s2 + $0x94] sm:$0xf] }
 0x237   :  { %v3667_v46 = vld [vmem:[%s13914_s2 + $0x88] sm:$0xf]  ;;  %v3669_v47 = vld [vmem:[%s13914_s2 + $0x98] sm:$0xf]  ;;  %3666 = vst [vmem:[#allocation9 + $0x8c] sm:$0xf] %v3665_v45 }
 0x238   :  { %3668 = vst [vmem:[#allocation9 + $0x90] sm:$0xf] %v3667_v46  ;;  %3670 = vst [vmem:[#allocation9 + $0x94] sm:$0xf] %v3669_v47  ;;  %v3671_v48 = vld [vmem:[%s13914_s2 + $0x8c] sm:$0xf] }
 0x239   :  { %v3673_v49 = vld [vmem:[%s13914_s2 + $0x9c] sm:$0xf]  ;;  %v3675_v50 = vld [vmem:[%s13914_s2 + $0xa0] sm:$0xf]  ;;  %3672 = vst [vmem:[#allocation9 + $0x98] sm:$0xf] %v3671_v48 }
 0x23a   :  { %3674 = vst [vmem:[#allocation9 + $0x9c] sm:$0xf] %v3673_v49  ;;  %3676 = vst [vmem:[#allocation9 + $0xa0] sm:$0xf] %v3675_v50  ;;  %v3677_v51 = vld [vmem:[%s13914_s2 + $0xb0] sm:$0xf] }
 0x23b   :  { %v3679_v52 = vld [vmem:[%s13914_s2 + $0xa4] sm:$0xf]  ;;  %v3681_v53 = vld [vmem:[%s13914_s2 + $0xb4] sm:$0xf]  ;;  %3678 = vst [vmem:[#allocation9 + $0xa4] sm:$0xf] %v3677_v51 }
 0x23c   :  { %3680 = vst [vmem:[#allocation9 + $0xa8] sm:$0xf] %v3679_v52  ;;  %3682 = vst [vmem:[#allocation9 + $0xac] sm:$0xf] %v3681_v53  ;;  %v3683_v54 = vld [vmem:[%s13914_s2 + $0xa8] sm:$0xf] }
 0x23d   :  { %v3685_v55 = vld [vmem:[%s13914_s2 + $0xb8] sm:$0xf]  ;;  %v3687_v56 = vld [vmem:[%s13914_s2 + $0xac] sm:$0xf]  ;;  %3684 = vst [vmem:[#allocation9 + $0xb0] sm:$0xf] %v3683_v54 }
 0x23e   :  { %3686 = vst [vmem:[#allocation9 + $0xb4] sm:$0xf] %v3685_v55  ;;  %3688 = vst [vmem:[#allocation9 + $0xb8] sm:$0xf] %v3687_v56  ;;  %v3689_v57 = vld [vmem:[%s13914_s2 + $0xbc] sm:$0xf] }
 0x23f   :  { %v3691_v58 = vld [vmem:[%s13914_s2 + $0xc0] sm:$0xf]  ;;  %v3693_v59 = vld [vmem:[%s13914_s2 + $0xd0] sm:$0xf]  ;;  %3690 = vst [vmem:[#allocation9 + $0xbc] sm:$0xf] %v3689_v57 }
 0x240   :  { %3692 = vst [vmem:[#allocation9 + $0xc0] sm:$0xf] %v3691_v58  ;;  %3694 = vst [vmem:[#allocation9 + $0xc4] sm:$0xf] %v3693_v59  ;;  %v3695_v60 = vld [vmem:[%s13914_s2 + $0xc4] sm:$0xf] }
 0x241   :  { %v3697_v61 = vld [vmem:[%s13914_s2 + $0xd4] sm:$0xf]  ;;  %v3699_v62 = vld [vmem:[%s13914_s2 + $0xc8] sm:$0xf]  ;;  %3696 = vst [vmem:[#allocation9 + $0xc8] sm:$0xf] %v3695_v60 }
 0x242   :  { %3698 = vst [vmem:[#allocation9 + $0xcc] sm:$0xf] %v3697_v61  ;;  %3700 = vst [vmem:[#allocation9 + $0xd0] sm:$0xf] %v3699_v62  ;;  %v3701_v63 = vld [vmem:[%s13914_s2 + $0xd8] sm:$0xf] }
 0x243   :  { %v3703_v0 = vld [vmem:[%s13914_s2 + $0xcc] sm:$0xf]  ;;  %v3705_v1 = vld [vmem:[%s13914_s2 + $0xdc] sm:$0xf]  ;;  %3702 = vst [vmem:[#allocation9 + $0xd4] sm:$0xf] %v3701_v63 }
 0x244   :  { %3704 = vst [vmem:[#allocation9 + $0xd8] sm:$0xf] %v3703_v0  ;;  %3706 = vst [vmem:[#allocation9 + $0xdc] sm:$0xf] %v3705_v1  ;;  %v3707_v26 = vld [vmem:[%s13914_s2 + $0xe0] sm:$0xf] }
 0x245   :  { %v3709_v27 = vld [vmem:[%s13914_s2 + $0xf0] sm:$0xf]  ;;  %v3711_v28 = vld [vmem:[%s13914_s2 + $0xe4] sm:$0xf]  ;;  %3708 = vst [vmem:[#allocation9 + $0xe0] sm:$0xf] %v3707_v26 }
 0x246   :  { %3710 = vst [vmem:[#allocation9 + $0xe4] sm:$0xf] %v3709_v27  ;;  %3712 = vst [vmem:[#allocation9 + $0xe8] sm:$0xf] %v3711_v28  ;;  %v3713_v29 = vld [vmem:[%s13914_s2 + $0xf4] sm:$0xf] }
 0x247   :  { %v3715_v30 = vld [vmem:[%s13914_s2 + $0xe8] sm:$0xf]  ;;  %v3717_v31 = vld [vmem:[%s13914_s2 + $0xf8] sm:$0xf]  ;;  %3714 = vst [vmem:[#allocation9 + $0xec] sm:$0xf] %v3713_v29 }
 0x248   :  { %3716 = vst [vmem:[#allocation9 + $0xf0] sm:$0xf] %v3715_v30  ;;  %3718 = vst [vmem:[#allocation9 + $0xf4] sm:$0xf] %v3717_v31  ;;  %v3719_v32 = vld [vmem:[%s13914_s2 + $0xec] sm:$0xf] }
 0x249   :  { %v3721_v33 = vld [vmem:[%s13914_s2 + $0xfc] sm:$0xf]  ;;  %v3723_v34 = vld [vmem:[%s13914_s2 + $0x100] sm:$0xf]  ;;  %3720 = vst [vmem:[#allocation9 + $0xf8] sm:$0xf] %v3719_v32 }
 0x24a   :  { %3722 = vst [vmem:[#allocation9 + $0xfc] sm:$0xf] %v3721_v33  ;;  %3724 = vst [vmem:[#allocation9 + $0x100] sm:$0xf] %v3723_v34  ;;  %v3725_v35 = vld [vmem:[%s13914_s2 + $0x110] sm:$0xf] }
 0x24b   :  { %v3727_v36 = vld [vmem:[%s13914_s2 + $0x104] sm:$0xf]  ;;  %v3729_v37 = vld [vmem:[%s13914_s2 + $0x114] sm:$0xf]  ;;  %3726 = vst [vmem:[#allocation9 + $0x104] sm:$0xf] %v3725_v35 }
 0x24c   :  { %3728 = vst [vmem:[#allocation9 + $0x108] sm:$0xf] %v3727_v36  ;;  %3730 = vst [vmem:[#allocation9 + $0x10c] sm:$0xf] %v3729_v37  ;;  %v3731_v38 = vld [vmem:[%s13914_s2 + $0x108] sm:$0xf] }
 0x24d   :  { %v3733_v39 = vld [vmem:[%s13914_s2 + $0x118] sm:$0xf]  ;;  %v3735_v40 = vld [vmem:[%s13914_s2 + $0x10c] sm:$0xf]  ;;  %3732 = vst [vmem:[#allocation9 + $0x110] sm:$0xf] %v3731_v38 }
 0x24e   :  { %3734 = vst [vmem:[#allocation9 + $0x114] sm:$0xf] %v3733_v39  ;;  %3736 = vst [vmem:[#allocation9 + $0x118] sm:$0xf] %v3735_v40  ;;  %v3737_v41 = vld [vmem:[%s13914_s2 + $0x11c] sm:$0xf] }
 0x24f   :  { %v3739_v42 = vld [vmem:[%s13914_s2 + $0x120] sm:$0xf]  ;;  %v3741_v43 = vld [vmem:[%s13914_s2 + $0x130] sm:$0xf]  ;;  %3738 = vst [vmem:[#allocation9 + $0x11c] sm:$0xf] %v3737_v41 }
 0x250   :  { %3740 = vst [vmem:[#allocation9 + $0x120] sm:$0xf] %v3739_v42  ;;  %3742 = vst [vmem:[#allocation9 + $0x124] sm:$0xf] %v3741_v43  ;;  %v3743_v44 = vld [vmem:[%s13914_s2 + $0x124] sm:$0xf] }
 0x251   :  { %v3745_v45 = vld [vmem:[%s13914_s2 + $0x134] sm:$0xf]  ;;  %v3747_v46 = vld [vmem:[%s13914_s2 + $0x128] sm:$0xf]  ;;  %3744 = vst [vmem:[#allocation9 + $0x128] sm:$0xf] %v3743_v44 }
 0x252   :  { %3746 = vst [vmem:[#allocation9 + $0x12c] sm:$0xf] %v3745_v45  ;;  %3748 = vst [vmem:[#allocation9 + $0x130] sm:$0xf] %v3747_v46  ;;  %v3749_v47 = vld [vmem:[%s13914_s2 + $0x138] sm:$0xf] }
 0x253   :  { %v3751_v48 = vld [vmem:[%s13914_s2 + $0x12c] sm:$0xf]  ;;  %v3753_v49 = vld [vmem:[%s13914_s2 + $0x13c] sm:$0xf]  ;;  %3750 = vst [vmem:[#allocation9 + $0x134] sm:$0xf] %v3749_v47 }
 0x254   :  { %3752 = vst [vmem:[#allocation9 + $0x138] sm:$0xf] %v3751_v48  ;;  %3754 = vst [vmem:[#allocation9 + $0x13c] sm:$0xf] %v3753_v49  ;;  %v3755_v50 = vld [vmem:[%s13914_s2 + $0x140] sm:$0xf] }
 0x255   :  { %v3757_v51 = vld [vmem:[%s13914_s2 + $0x150] sm:$0xf]  ;;  %v3759_v52 = vld [vmem:[%s13914_s2 + $0x144] sm:$0xf]  ;;  %3756 = vst [vmem:[#allocation9 + $0x140] sm:$0xf] %v3755_v50 }
 0x256   :  { %3758 = vst [vmem:[#allocation9 + $0x144] sm:$0xf] %v3757_v51  ;;  %3760 = vst [vmem:[#allocation9 + $0x148] sm:$0xf] %v3759_v52  ;;  %v3761_v53 = vld [vmem:[%s13914_s2 + $0x154] sm:$0xf] }
 0x257   :  { %v3763_v54 = vld [vmem:[%s13914_s2 + $0x148] sm:$0xf]  ;;  %v3765_v55 = vld [vmem:[%s13914_s2 + $0x158] sm:$0xf]  ;;  %3762 = vst [vmem:[#allocation9 + $0x14c] sm:$0xf] %v3761_v53 }
 0x258   :  { %3764 = vst [vmem:[#allocation9 + $0x150] sm:$0xf] %v3763_v54  ;;  %3766 = vst [vmem:[#allocation9 + $0x154] sm:$0xf] %v3765_v55  ;;  %v3767_v56 = vld [vmem:[%s13914_s2 + $0x14c] sm:$0xf] }
 0x259   :  { %v3769_v57 = vld [vmem:[%s13914_s2 + $0x15c] sm:$0xf]  ;;  %v3771_v58 = vld [vmem:[%s13914_s2 + $0x160] sm:$0xf]  ;;  %3768 = vst [vmem:[#allocation9 + $0x158] sm:$0xf] %v3767_v56 }
 0x25a   :  { %3770 = vst [vmem:[#allocation9 + $0x15c] sm:$0xf] %v3769_v57  ;;  %3772 = vst [vmem:[#allocation9 + $0x160] sm:$0xf] %v3771_v58  ;;  %v3773_v59 = vld [vmem:[%s13914_s2 + $0x170] sm:$0xf] }
 0x25b   :  { %v3775_v60 = vld [vmem:[%s13914_s2 + $0x164] sm:$0xf]  ;;  %v3777_v61 = vld [vmem:[%s13914_s2 + $0x174] sm:$0xf]  ;;  %3774 = vst [vmem:[#allocation9 + $0x164] sm:$0xf] %v3773_v59 }
 0x25c   :  { %3776 = vst [vmem:[#allocation9 + $0x168] sm:$0xf] %v3775_v60  ;;  %3778 = vst [vmem:[#allocation9 + $0x16c] sm:$0xf] %v3777_v61  ;;  %v3779_v62 = vld [vmem:[%s13914_s2 + $0x168] sm:$0xf] }
 0x25d   :  { %v3781_v63 = vld [vmem:[%s13914_s2 + $0x178] sm:$0xf]  ;;  %v3783_v0 = vld [vmem:[%s13914_s2 + $0x16c] sm:$0xf]  ;;  %3780 = vst [vmem:[#allocation9 + $0x170] sm:$0xf] %v3779_v62 }
 0x25e   :  { %3782 = vst [vmem:[#allocation9 + $0x174] sm:$0xf] %v3781_v63  ;;  %3784 = vst [vmem:[#allocation9 + $0x178] sm:$0xf] %v3783_v0  ;;  %v3785_v1 = vld [vmem:[%s13914_s2 + $0x17c] sm:$0xf] }
 0x25f   :  { %v3787_v26 = vld [vmem:[%s13914_s2 + $0x180] sm:$0xf]  ;;  %v3789_v27 = vld [vmem:[%s13914_s2 + $0x190] sm:$0xf]  ;;  %3786 = vst [vmem:[#allocation9 + $0x17c] sm:$0xf] %v3785_v1 }
 0x260   :  { %3788 = vst [vmem:[#allocation9 + $0x180] sm:$0xf] %v3787_v26  ;;  %3790 = vst [vmem:[#allocation9 + $0x184] sm:$0xf] %v3789_v27  ;;  %v3791_v28 = vld [vmem:[%s13914_s2 + $0x184] sm:$0xf] }
 0x261   :  { %v3793_v29 = vld [vmem:[%s13914_s2 + $0x194] sm:$0xf]  ;;  %v3795_v30 = vld [vmem:[%s13914_s2 + $0x188] sm:$0xf]  ;;  %3792 = vst [vmem:[#allocation9 + $0x188] sm:$0xf] %v3791_v28 }
 0x262   :  { %3794 = vst [vmem:[#allocation9 + $0x18c] sm:$0xf] %v3793_v29  ;;  %3796 = vst [vmem:[#allocation9 + $0x190] sm:$0xf] %v3795_v30  ;;  %v3797_v31 = vld [vmem:[%s13914_s2 + $0x198] sm:$0xf] }
 0x263   :  { %v3799_v32 = vld [vmem:[%s13914_s2 + $0x18c] sm:$0xf]  ;;  %v3801_v33 = vld [vmem:[%s13914_s2 + $0x19c] sm:$0xf]  ;;  %3798 = vst [vmem:[#allocation9 + $0x194] sm:$0xf] %v3797_v31 }
 0x264   :  { %3800 = vst [vmem:[#allocation9 + $0x198] sm:$0xf] %v3799_v32  ;;  %3802 = vst [vmem:[#allocation9 + $0x19c] sm:$0xf] %v3801_v33  ;;  %v3803_v34 = vld [vmem:[%s13914_s2 + $0x1a0] sm:$0xf] }
 0x265   :  { %v3805_v35 = vld [vmem:[%s13914_s2 + $0x1b0] sm:$0xf]  ;;  %v3807_v36 = vld [vmem:[%s13914_s2 + $0x1a4] sm:$0xf]  ;;  %3804 = vst [vmem:[#allocation9 + $0x1a0] sm:$0xf] %v3803_v34 }
 0x266   :  { %3806 = vst [vmem:[#allocation9 + $0x1a4] sm:$0xf] %v3805_v35  ;;  %3808 = vst [vmem:[#allocation9 + $0x1a8] sm:$0xf] %v3807_v36  ;;  %v3809_v37 = vld [vmem:[%s13914_s2 + $0x1b4] sm:$0xf] }
 0x267   :  { %v3811_v38 = vld [vmem:[%s13914_s2 + $0x1a8] sm:$0xf]  ;;  %v3813_v39 = vld [vmem:[%s13914_s2 + $0x1b8] sm:$0xf]  ;;  %3810 = vst [vmem:[#allocation9 + $0x1ac] sm:$0xf] %v3809_v37 }
 0x268   :  { %3812 = vst [vmem:[#allocation9 + $0x1b0] sm:$0xf] %v3811_v38  ;;  %3814 = vst [vmem:[#allocation9 + $0x1b4] sm:$0xf] %v3813_v39  ;;  %v3815_v40 = vld [vmem:[%s13914_s2 + $0x1ac] sm:$0xf] }
 0x269   :  { %v3817_v41 = vld [vmem:[%s13914_s2 + $0x1bc] sm:$0xf]  ;;  %v3819_v42 = vld [vmem:[%s13914_s2 + $0x1c0] sm:$0xf]  ;;  %3816 = vst [vmem:[#allocation9 + $0x1b8] sm:$0xf] %v3815_v40 }
 0x26a   :  { %3818 = vst [vmem:[#allocation9 + $0x1bc] sm:$0xf] %v3817_v41  ;;  %3820 = vst [vmem:[#allocation9 + $0x1c0] sm:$0xf] %v3819_v42  ;;  %v3821_v43 = vld [vmem:[%s13914_s2 + $0x1d0] sm:$0xf] }
 0x26b   :  { %v3823_v44 = vld [vmem:[%s13914_s2 + $0x1c4] sm:$0xf]  ;;  %v3825_v45 = vld [vmem:[%s13914_s2 + $0x1d4] sm:$0xf]  ;;  %3822 = vst [vmem:[#allocation9 + $0x1c4] sm:$0xf] %v3821_v43 }
 0x26c   :  { %3824 = vst [vmem:[#allocation9 + $0x1c8] sm:$0xf] %v3823_v44  ;;  %3826 = vst [vmem:[#allocation9 + $0x1cc] sm:$0xf] %v3825_v45  ;;  %v3827_v46 = vld [vmem:[%s13914_s2 + $0x1c8] sm:$0xf] }
 0x26d   :  { %v3829_v47 = vld [vmem:[%s13914_s2 + $0x1d8] sm:$0xf]  ;;  %v3831_v48 = vld [vmem:[%s13914_s2 + $0x1cc] sm:$0xf]  ;;  %3828 = vst [vmem:[#allocation9 + $0x1d0] sm:$0xf] %v3827_v46 }
 0x26e   :  { %3830 = vst [vmem:[#allocation9 + $0x1d4] sm:$0xf] %v3829_v47  ;;  %3832 = vst [vmem:[#allocation9 + $0x1d8] sm:$0xf] %v3831_v48  ;;  %v3833_v49 = vld [vmem:[%s13914_s2 + $0x1dc] sm:$0xf] }
 0x26f   :  { %v3835_v50 = vld [vmem:[%s13914_s2 + $0x1e0] sm:$0xf]  ;;  %v3837_v51 = vld [vmem:[%s13914_s2 + $0x1f0] sm:$0xf]  ;;  %3834 = vst [vmem:[#allocation9 + $0x1dc] sm:$0xf] %v3833_v49 }
 0x270   :  { %3836 = vst [vmem:[#allocation9 + $0x1e0] sm:$0xf] %v3835_v50  ;;  %3838 = vst [vmem:[#allocation9 + $0x1e4] sm:$0xf] %v3837_v51  ;;  %v3839_v52 = vld [vmem:[%s13914_s2 + $0x1e4] sm:$0xf] }
 0x271   :  { %v3841_v53 = vld [vmem:[%s13914_s2 + $0x1f4] sm:$0xf]  ;;  %v3843_v54 = vld [vmem:[%s13914_s2 + $0x1e8] sm:$0xf]  ;;  %3840 = vst [vmem:[#allocation9 + $0x1e8] sm:$0xf] %v3839_v52 }
 0x272   :  { %3842 = vst [vmem:[#allocation9 + $0x1ec] sm:$0xf] %v3841_v53  ;;  %3844 = vst [vmem:[#allocation9 + $0x1f0] sm:$0xf] %v3843_v54  ;;  %v3845_v55 = vld [vmem:[%s13914_s2 + $0x1f8] sm:$0xf] }
 0x273   :  { %v3847_v56 = vld [vmem:[%s13914_s2 + $0x1ec] sm:$0xf]  ;;  %v3849_v57 = vld [vmem:[%s13914_s2 + $0x1fc] sm:$0xf]  ;;  %3846 = vst [vmem:[#allocation9 + $0x1f4] sm:$0xf] %v3845_v55 }
 0x274   :  { %3848 = vst [vmem:[#allocation9 + $0x1f8] sm:$0xf] %v3847_v56  ;;  %3850 = vst [vmem:[#allocation9 + $0x1fc] sm:$0xf] %v3849_v57  ;;  %v3851_v58 = vld [vmem:[%s13914_s2 + $0x200] sm:$0xf] }
 0x275   :  { %v3853_v59 = vld [vmem:[%s13914_s2 + $0x210] sm:$0xf]  ;;  %v3855_v60 = vld [vmem:[%s13914_s2 + $0x204] sm:$0xf]  ;;  %3852 = vst [vmem:[#allocation9 + $0x200] sm:$0xf] %v3851_v58 }
 0x276   :  { %3854 = vst [vmem:[#allocation9 + $0x204] sm:$0xf] %v3853_v59  ;;  %3856 = vst [vmem:[#allocation9 + $0x208] sm:$0xf] %v3855_v60  ;;  %v3857_v61 = vld [vmem:[%s13914_s2 + $0x214] sm:$0xf] }
 0x277   :  { %v3859_v62 = vld [vmem:[%s13914_s2 + $0x208] sm:$0xf]  ;;  %v3861_v63 = vld [vmem:[%s13914_s2 + $0x218] sm:$0xf]  ;;  %3858 = vst [vmem:[#allocation9 + $0x20c] sm:$0xf] %v3857_v61 }
 0x278   :  { %3860 = vst [vmem:[#allocation9 + $0x210] sm:$0xf] %v3859_v62  ;;  %3862 = vst [vmem:[#allocation9 + $0x214] sm:$0xf] %v3861_v63  ;;  %v3863_v0 = vld [vmem:[%s13914_s2 + $0x20c] sm:$0xf] }
 0x279   :  { %v3865_v1 = vld [vmem:[%s13914_s2 + $0x21c] sm:$0xf]  ;;  %v3867_v26 = vld [vmem:[%s13914_s2 + $0x220] sm:$0xf]  ;;  %3864 = vst [vmem:[#allocation9 + $0x218] sm:$0xf] %v3863_v0 }
 0x27a   :  { %3866 = vst [vmem:[#allocation9 + $0x21c] sm:$0xf] %v3865_v1  ;;  %3868 = vst [vmem:[#allocation9 + $0x220] sm:$0xf] %v3867_v26  ;;  %v3869_v27 = vld [vmem:[%s13914_s2 + $0x230] sm:$0xf] }
 0x27b   :  { %v3871_v28 = vld [vmem:[%s13914_s2 + $0x224] sm:$0xf]  ;;  %v3873_v29 = vld [vmem:[%s13914_s2 + $0x234] sm:$0xf]  ;;  %3870 = vst [vmem:[#allocation9 + $0x224] sm:$0xf] %v3869_v27 }
 0x27c   :  { %3872 = vst [vmem:[#allocation9 + $0x228] sm:$0xf] %v3871_v28  ;;  %3874 = vst [vmem:[#allocation9 + $0x22c] sm:$0xf] %v3873_v29  ;;  %v3875_v30 = vld [vmem:[%s13914_s2 + $0x228] sm:$0xf] }
 0x27d   :  { %v3877_v31 = vld [vmem:[%s13914_s2 + $0x238] sm:$0xf]  ;;  %v3879_v32 = vld [vmem:[%s13914_s2 + $0x22c] sm:$0xf]  ;;  %3876 = vst [vmem:[#allocation9 + $0x230] sm:$0xf] %v3875_v30 }
 0x27e   :  { %3878 = vst [vmem:[#allocation9 + $0x234] sm:$0xf] %v3877_v31  ;;  %3880 = vst [vmem:[#allocation9 + $0x238] sm:$0xf] %v3879_v32  ;;  %v3881_v33 = vld [vmem:[%s13914_s2 + $0x23c] sm:$0xf] }
 0x27f   :  { %v3883_v34 = vld [vmem:[%s13914_s2 + $0x240] sm:$0xf]  ;;  %v3885_v35 = vld [vmem:[%s13914_s2 + $0x250] sm:$0xf]  ;;  %3882 = vst [vmem:[#allocation9 + $0x23c] sm:$0xf] %v3881_v33 }
 0x280   :  { %3884 = vst [vmem:[#allocation9 + $0x240] sm:$0xf] %v3883_v34  ;;  %3886 = vst [vmem:[#allocation9 + $0x244] sm:$0xf] %v3885_v35  ;;  %v3887_v36 = vld [vmem:[%s13914_s2 + $0x244] sm:$0xf] }
 0x281   :  { %v3889_v37 = vld [vmem:[%s13914_s2 + $0x254] sm:$0xf]  ;;  %v3891_v38 = vld [vmem:[%s13914_s2 + $0x248] sm:$0xf]  ;;  %3888 = vst [vmem:[#allocation9 + $0x248] sm:$0xf] %v3887_v36 }
 0x282   :  { %3890 = vst [vmem:[#allocation9 + $0x24c] sm:$0xf] %v3889_v37  ;;  %3892 = vst [vmem:[#allocation9 + $0x250] sm:$0xf] %v3891_v38  ;;  %v3893_v39 = vld [vmem:[%s13914_s2 + $0x258] sm:$0xf] }
 0x283   :  { %v3895_v40 = vld [vmem:[%s13914_s2 + $0x24c] sm:$0xf]  ;;  %v3897_v41 = vld [vmem:[%s13914_s2 + $0x25c] sm:$0xf]  ;;  %3894 = vst [vmem:[#allocation9 + $0x254] sm:$0xf] %v3893_v39 }
 0x284   :  { %3896 = vst [vmem:[#allocation9 + $0x258] sm:$0xf] %v3895_v40  ;;  %3898 = vst [vmem:[#allocation9 + $0x25c] sm:$0xf] %v3897_v41  ;;  %v3899_v42 = vld [vmem:[%s13914_s2 + $0x260] sm:$0xf] }
 0x285   :  { %v3901_v43 = vld [vmem:[%s13914_s2 + $0x270] sm:$0xf]  ;;  %v3903_v44 = vld [vmem:[%s13914_s2 + $0x264] sm:$0xf]  ;;  %3900 = vst [vmem:[#allocation9 + $0x260] sm:$0xf] %v3899_v42 }
 0x286   :  { %3902 = vst [vmem:[#allocation9 + $0x264] sm:$0xf] %v3901_v43  ;;  %3904 = vst [vmem:[#allocation9 + $0x268] sm:$0xf] %v3903_v44  ;;  %v3905_v45 = vld [vmem:[%s13914_s2 + $0x274] sm:$0xf] }
 0x287   :  { %v3907_v46 = vld [vmem:[%s13914_s2 + $0x268] sm:$0xf]  ;;  %v3909_v47 = vld [vmem:[%s13914_s2 + $0x278] sm:$0xf]  ;;  %3906 = vst [vmem:[#allocation9 + $0x26c] sm:$0xf] %v3905_v45 }
 0x288   :  { %3908 = vst [vmem:[#allocation9 + $0x270] sm:$0xf] %v3907_v46  ;;  %3910 = vst [vmem:[#allocation9 + $0x274] sm:$0xf] %v3909_v47  ;;  %v3911_v48 = vld [vmem:[%s13914_s2 + $0x26c] sm:$0xf] }
 0x289   :  { %v3913_v49 = vld [vmem:[%s13914_s2 + $0x27c] sm:$0xf]  ;;  %v3915_v50 = vld [vmem:[%s13914_s2 + $0x280] sm:$0xf]  ;;  %3912 = vst [vmem:[#allocation9 + $0x278] sm:$0xf] %v3911_v48 }
 0x28a   :  { %3914 = vst [vmem:[#allocation9 + $0x27c] sm:$0xf] %v3913_v49  ;;  %3916 = vst [vmem:[#allocation9 + $0x280] sm:$0xf] %v3915_v50  ;;  %v3917_v51 = vld [vmem:[%s13914_s2 + $0x290] sm:$0xf] }
 0x28b   :  { %v3919_v52 = vld [vmem:[%s13914_s2 + $0x284] sm:$0xf]  ;;  %v3921_v53 = vld [vmem:[%s13914_s2 + $0x294] sm:$0xf]  ;;  %3918 = vst [vmem:[#allocation9 + $0x284] sm:$0xf] %v3917_v51 }
 0x28c   :  { %3920 = vst [vmem:[#allocation9 + $0x288] sm:$0xf] %v3919_v52  ;;  %3922 = vst [vmem:[#allocation9 + $0x28c] sm:$0xf] %v3921_v53  ;;  %v3923_v54 = vld [vmem:[%s13914_s2 + $0x288] sm:$0xf] }
 0x28d   :  { %v3925_v55 = vld [vmem:[%s13914_s2 + $0x298] sm:$0xf]  ;;  %v3927_v56 = vld [vmem:[%s13914_s2 + $0x28c] sm:$0xf]  ;;  %3924 = vst [vmem:[#allocation9 + $0x290] sm:$0xf] %v3923_v54 }
 0x28e   :  { %3926 = vst [vmem:[#allocation9 + $0x294] sm:$0xf] %v3925_v55  ;;  %3928 = vst [vmem:[#allocation9 + $0x298] sm:$0xf] %v3927_v56  ;;  %v3929_v57 = vld [vmem:[%s13914_s2 + $0x29c] sm:$0xf] }
 0x28f   :  { %v3931_v58 = vld [vmem:[%s13914_s2 + $0x2a0] sm:$0xf]  ;;  %v3933_v59 = vld [vmem:[%s13914_s2 + $0x2b0] sm:$0xf]  ;;  %3930 = vst [vmem:[#allocation9 + $0x29c] sm:$0xf] %v3929_v57 }
 0x290   :  { %3932 = vst [vmem:[#allocation9 + $0x2a0] sm:$0xf] %v3931_v58  ;;  %3934 = vst [vmem:[#allocation9 + $0x2a4] sm:$0xf] %v3933_v59  ;;  %v3935_v60 = vld [vmem:[%s13914_s2 + $0x2a4] sm:$0xf] }
 0x291   :  { %v3937_v61 = vld [vmem:[%s13914_s2 + $0x2b4] sm:$0xf]  ;;  %v3939_v62 = vld [vmem:[%s13914_s2 + $0x2a8] sm:$0xf]  ;;  %3936 = vst [vmem:[#allocation9 + $0x2a8] sm:$0xf] %v3935_v60 }
 0x292   :  { %3938 = vst [vmem:[#allocation9 + $0x2ac] sm:$0xf] %v3937_v61  ;;  %3940 = vst [vmem:[#allocation9 + $0x2b0] sm:$0xf] %v3939_v62  ;;  %v3941_v63 = vld [vmem:[%s13914_s2 + $0x2b8] sm:$0xf] }
 0x293   :  { %v3943_v0 = vld [vmem:[%s13914_s2 + $0x2ac] sm:$0xf]  ;;  %v3945_v1 = vld [vmem:[%s13914_s2 + $0x2bc] sm:$0xf]  ;;  %3942 = vst [vmem:[#allocation9 + $0x2b4] sm:$0xf] %v3941_v63 }
 0x294   :  { %3944 = vst [vmem:[#allocation9 + $0x2b8] sm:$0xf] %v3943_v0  ;;  %3946 = vst [vmem:[#allocation9 + $0x2bc] sm:$0xf] %v3945_v1  ;;  %v3947_v26 = vld [vmem:[%s13914_s2 + $0x2c0] sm:$0xf] }
 0x295   :  { %v3949_v27 = vld [vmem:[%s13914_s2 + $0x2d0] sm:$0xf]  ;;  %v3951_v28 = vld [vmem:[%s13914_s2 + $0x2c4] sm:$0xf]  ;;  %3948 = vst [vmem:[#allocation9 + $0x2c0] sm:$0xf] %v3947_v26 }
 0x296   :  { %3950 = vst [vmem:[#allocation9 + $0x2c4] sm:$0xf] %v3949_v27  ;;  %3952 = vst [vmem:[#allocation9 + $0x2c8] sm:$0xf] %v3951_v28  ;;  %v3953_v29 = vld [vmem:[%s13914_s2 + $0x2d4] sm:$0xf] }
 0x297   :  { %v3955_v30 = vld [vmem:[%s13914_s2 + $0x2c8] sm:$0xf]  ;;  %v3957_v31 = vld [vmem:[%s13914_s2 + $0x2d8] sm:$0xf]  ;;  %3954 = vst [vmem:[#allocation9 + $0x2cc] sm:$0xf] %v3953_v29 }
 0x298   :  { %3956 = vst [vmem:[#allocation9 + $0x2d0] sm:$0xf] %v3955_v30  ;;  %3958 = vst [vmem:[#allocation9 + $0x2d4] sm:$0xf] %v3957_v31  ;;  %v3959_v32 = vld [vmem:[%s13914_s2 + $0x2cc] sm:$0xf] }
 0x299   :  { %v3961_v33 = vld [vmem:[%s13914_s2 + $0x2dc] sm:$0xf]  ;;  %v3963_v34 = vld [vmem:[%s13914_s2 + $0x2e0] sm:$0xf]  ;;  %3960 = vst [vmem:[#allocation9 + $0x2d8] sm:$0xf] %v3959_v32 }
 0x29a   :  { %3962 = vst [vmem:[#allocation9 + $0x2dc] sm:$0xf] %v3961_v33  ;;  %3964 = vst [vmem:[#allocation9 + $0x2e0] sm:$0xf] %v3963_v34  ;;  %v3965_v35 = vld [vmem:[%s13914_s2 + $0x2f0] sm:$0xf] }
 0x29b   :  { %v3967_v36 = vld [vmem:[%s13914_s2 + $0x2e4] sm:$0xf]  ;;  %v3969_v37 = vld [vmem:[%s13914_s2 + $0x2f4] sm:$0xf]  ;;  %3966 = vst [vmem:[#allocation9 + $0x2e4] sm:$0xf] %v3965_v35 }
 0x29c   :  { %3968 = vst [vmem:[#allocation9 + $0x2e8] sm:$0xf] %v3967_v36  ;;  %3970 = vst [vmem:[#allocation9 + $0x2ec] sm:$0xf] %v3969_v37  ;;  %v3971_v38 = vld [vmem:[%s13914_s2 + $0x2e8] sm:$0xf] }
 0x29d   :  { %v3973_v39 = vld [vmem:[%s13914_s2 + $0x2f8] sm:$0xf]  ;;  %v3975_v40 = vld [vmem:[%s13914_s2 + $0x2ec] sm:$0xf]  ;;  %3972 = vst [vmem:[#allocation9 + $0x2f0] sm:$0xf] %v3971_v38 }
 0x29e   :  { %3974 = vst [vmem:[#allocation9 + $0x2f4] sm:$0xf] %v3973_v39  ;;  %3976 = vst [vmem:[#allocation9 + $0x2f8] sm:$0xf] %v3975_v40  ;;  %v3977_v41 = vld [vmem:[%s13914_s2 + $0x2fc] sm:$0xf] }
 0x29f   :  { %v3979_v42 = vld [vmem:[%s13914_s2 + $0x300] sm:$0xf]  ;;  %v3981_v43 = vld [vmem:[%s13914_s2 + $0x310] sm:$0xf]  ;;  %3978 = vst [vmem:[#allocation9 + $0x2fc] sm:$0xf] %v3977_v41 }
 0x2a0   :  { %3980 = vst [vmem:[#allocation9 + $0x300] sm:$0xf] %v3979_v42  ;;  %3982 = vst [vmem:[#allocation9 + $0x304] sm:$0xf] %v3981_v43  ;;  %v3983_v44 = vld [vmem:[%s13914_s2 + $0x304] sm:$0xf] }
 0x2a1   :  { %v3985_v45 = vld [vmem:[%s13914_s2 + $0x314] sm:$0xf]  ;;  %v3987_v46 = vld [vmem:[%s13914_s2 + $0x308] sm:$0xf]  ;;  %3984 = vst [vmem:[#allocation9 + $0x308] sm:$0xf] %v3983_v44 }
 0x2a2   :  { %3986 = vst [vmem:[#allocation9 + $0x30c] sm:$0xf] %v3985_v45  ;;  %3988 = vst [vmem:[#allocation9 + $0x310] sm:$0xf] %v3987_v46  ;;  %v3989_v47 = vld [vmem:[%s13914_s2 + $0x318] sm:$0xf] }
 0x2a3   :  { %v3991_v48 = vld [vmem:[%s13914_s2 + $0x30c] sm:$0xf]  ;;  %v3993_v49 = vld [vmem:[%s13914_s2 + $0x31c] sm:$0xf]  ;;  %3990 = vst [vmem:[#allocation9 + $0x314] sm:$0xf] %v3989_v47 }
 0x2a4   :  { %3992 = vst [vmem:[#allocation9 + $0x318] sm:$0xf] %v3991_v48  ;;  %3994 = vst [vmem:[#allocation9 + $0x31c] sm:$0xf] %v3993_v49  ;;  %v3995_v50 = vld [vmem:[%s13914_s2 + $0x320] sm:$0xf] }
 0x2a5   :  { %v3997_v51 = vld [vmem:[%s13914_s2 + $0x330] sm:$0xf]  ;;  %v3999_v52 = vld [vmem:[%s13914_s2 + $0x324] sm:$0xf]  ;;  %3996 = vst [vmem:[#allocation9 + $0x320] sm:$0xf] %v3995_v50 }
 0x2a6   :  { %3998 = vst [vmem:[#allocation9 + $0x324] sm:$0xf] %v3997_v51  ;;  %4000 = vst [vmem:[#allocation9 + $0x328] sm:$0xf] %v3999_v52  ;;  %v4001_v53 = vld [vmem:[%s13914_s2 + $0x334] sm:$0xf] }
 0x2a7   :  { %v4003_v54 = vld [vmem:[%s13914_s2 + $0x328] sm:$0xf]  ;;  %v4005_v55 = vld [vmem:[%s13914_s2 + $0x338] sm:$0xf]  ;;  %4002 = vst [vmem:[#allocation9 + $0x32c] sm:$0xf] %v4001_v53 }
 0x2a8   :  { %4004 = vst [vmem:[#allocation9 + $0x330] sm:$0xf] %v4003_v54  ;;  %4006 = vst [vmem:[#allocation9 + $0x334] sm:$0xf] %v4005_v55  ;;  %v4007_v56 = vld [vmem:[%s13914_s2 + $0x32c] sm:$0xf] }
 0x2a9   :  { %v4009_v57 = vld [vmem:[%s13914_s2 + $0x33c] sm:$0xf]  ;;  %v4011_v58 = vld [vmem:[%s13914_s2 + $0x340] sm:$0xf]  ;;  %4008 = vst [vmem:[#allocation9 + $0x338] sm:$0xf] %v4007_v56 }
 0x2aa   :  { %4010 = vst [vmem:[#allocation9 + $0x33c] sm:$0xf] %v4009_v57  ;;  %4012 = vst [vmem:[#allocation9 + $0x340] sm:$0xf] %v4011_v58  ;;  %v4013_v59 = vld [vmem:[%s13914_s2 + $0x350] sm:$0xf] }
 0x2ab   :  { %v4015_v60 = vld [vmem:[%s13914_s2 + $0x344] sm:$0xf]  ;;  %v4017_v61 = vld [vmem:[%s13914_s2 + $0x354] sm:$0xf]  ;;  %4014 = vst [vmem:[#allocation9 + $0x344] sm:$0xf] %v4013_v59 }
 0x2ac   :  { %4016 = vst [vmem:[#allocation9 + $0x348] sm:$0xf] %v4015_v60  ;;  %4018 = vst [vmem:[#allocation9 + $0x34c] sm:$0xf] %v4017_v61  ;;  %v4019_v62 = vld [vmem:[%s13914_s2 + $0x348] sm:$0xf] }
 0x2ad   :  { %v4021_v63 = vld [vmem:[%s13914_s2 + $0x358] sm:$0xf]  ;;  %v4023_v0 = vld [vmem:[%s13914_s2 + $0x34c] sm:$0xf]  ;;  %4020 = vst [vmem:[#allocation9 + $0x350] sm:$0xf] %v4019_v62 }
 0x2ae   :  { %4022 = vst [vmem:[#allocation9 + $0x354] sm:$0xf] %v4021_v63  ;;  %4024 = vst [vmem:[#allocation9 + $0x358] sm:$0xf] %v4023_v0  ;;  %v4025_v1 = vld [vmem:[%s13914_s2 + $0x35c] sm:$0xf] }
 0x2af   :  { %v4027_v26 = vld [vmem:[%s13914_s2 + $0x360] sm:$0xf]  ;;  %v4029_v27 = vld [vmem:[%s13914_s2 + $0x370] sm:$0xf]  ;;  %4026 = vst [vmem:[#allocation9 + $0x35c] sm:$0xf] %v4025_v1 }
 0x2b0   :  { %4028 = vst [vmem:[#allocation9 + $0x360] sm:$0xf] %v4027_v26  ;;  %4030 = vst [vmem:[#allocation9 + $0x364] sm:$0xf] %v4029_v27  ;;  %v4031_v28 = vld [vmem:[%s13914_s2 + $0x364] sm:$0xf] }
 0x2b1   :  { %v4033_v29 = vld [vmem:[%s13914_s2 + $0x374] sm:$0xf]  ;;  %v4035_v30 = vld [vmem:[%s13914_s2 + $0x368] sm:$0xf]  ;;  %4032 = vst [vmem:[#allocation9 + $0x368] sm:$0xf] %v4031_v28 }
 0x2b2   :  { %4034 = vst [vmem:[#allocation9 + $0x36c] sm:$0xf] %v4033_v29  ;;  %4036 = vst [vmem:[#allocation9 + $0x370] sm:$0xf] %v4035_v30  ;;  %v4037_v31 = vld [vmem:[%s13914_s2 + $0x378] sm:$0xf] }
 0x2b3   :  { %v4039_v32 = vld [vmem:[%s13914_s2 + $0x36c] sm:$0xf]  ;;  %v4041_v33 = vld [vmem:[%s13914_s2 + $0x37c] sm:$0xf]  ;;  %4038 = vst [vmem:[#allocation9 + $0x374] sm:$0xf] %v4037_v31 }
 0x2b4   :  { %4040 = vst [vmem:[#allocation9 + $0x378] sm:$0xf] %v4039_v32  ;;  %4042 = vst [vmem:[#allocation9 + $0x37c] sm:$0xf] %v4041_v33  ;;  %v4043_v34 = vld [vmem:[%s13914_s2 + $0x380] sm:$0xf] }
 0x2b5   :  { %v4045_v35 = vld [vmem:[%s13914_s2 + $0x390] sm:$0xf]  ;;  %v4047_v36 = vld [vmem:[%s13914_s2 + $0x384] sm:$0xf]  ;;  %4044 = vst [vmem:[#allocation9 + $0x380] sm:$0xf] %v4043_v34 }
 0x2b6   :  { %4046 = vst [vmem:[#allocation9 + $0x384] sm:$0xf] %v4045_v35  ;;  %4048 = vst [vmem:[#allocation9 + $0x388] sm:$0xf] %v4047_v36  ;;  %v4049_v37 = vld [vmem:[%s13914_s2 + $0x394] sm:$0xf] }
 0x2b7   :  { %v4051_v38 = vld [vmem:[%s13914_s2 + $0x388] sm:$0xf]  ;;  %v4053_v39 = vld [vmem:[%s13914_s2 + $0x398] sm:$0xf]  ;;  %4050 = vst [vmem:[#allocation9 + $0x38c] sm:$0xf] %v4049_v37 }
 0x2b8   :  { %4052 = vst [vmem:[#allocation9 + $0x390] sm:$0xf] %v4051_v38  ;;  %4054 = vst [vmem:[#allocation9 + $0x394] sm:$0xf] %v4053_v39  ;;  %v4055_v40 = vld [vmem:[%s13914_s2 + $0x38c] sm:$0xf] }
 0x2b9   :  { %v4057_v41 = vld [vmem:[%s13914_s2 + $0x39c] sm:$0xf]  ;;  %v4059_v42 = vld [vmem:[%s13914_s2 + $0x3a0] sm:$0xf]  ;;  %4056 = vst [vmem:[#allocation9 + $0x398] sm:$0xf] %v4055_v40 }
 0x2ba   :  { %4058 = vst [vmem:[#allocation9 + $0x39c] sm:$0xf] %v4057_v41  ;;  %4060 = vst [vmem:[#allocation9 + $0x3a0] sm:$0xf] %v4059_v42  ;;  %v4061_v43 = vld [vmem:[%s13914_s2 + $0x3b0] sm:$0xf] }
 0x2bb   :  { %v4063_v44 = vld [vmem:[%s13914_s2 + $0x3a4] sm:$0xf]  ;;  %v4065_v45 = vld [vmem:[%s13914_s2 + $0x3b4] sm:$0xf]  ;;  %4062 = vst [vmem:[#allocation9 + $0x3a4] sm:$0xf] %v4061_v43 }
 0x2bc   :  { %4064 = vst [vmem:[#allocation9 + $0x3a8] sm:$0xf] %v4063_v44  ;;  %4066 = vst [vmem:[#allocation9 + $0x3ac] sm:$0xf] %v4065_v45  ;;  %v4067_v46 = vld [vmem:[%s13914_s2 + $0x3a8] sm:$0xf] }
 0x2bd   :  { %v4069_v47 = vld [vmem:[%s13914_s2 + $0x3b8] sm:$0xf]  ;;  %v4071_v48 = vld [vmem:[%s13914_s2 + $0x3ac] sm:$0xf]  ;;  %4068 = vst [vmem:[#allocation9 + $0x3b0] sm:$0xf] %v4067_v46 }
 0x2be   :  { %4070 = vst [vmem:[#allocation9 + $0x3b4] sm:$0xf] %v4069_v47  ;;  %4072 = vst [vmem:[#allocation9 + $0x3b8] sm:$0xf] %v4071_v48  ;;  %v4073_v49 = vld [vmem:[%s13914_s2 + $0x3bc] sm:$0xf] }
 0x2bf   :  { %v4075_v50 = vld [vmem:[%s13914_s2 + $0x3c0] sm:$0xf]  ;;  %v4077_v51 = vld [vmem:[%s13914_s2 + $0x3d0] sm:$0xf]  ;;  %4074 = vst [vmem:[#allocation9 + $0x3bc] sm:$0xf] %v4073_v49 }
 0x2c0   :  { %4076 = vst [vmem:[#allocation9 + $0x3c0] sm:$0xf] %v4075_v50  ;;  %4078 = vst [vmem:[#allocation9 + $0x3c4] sm:$0xf] %v4077_v51  ;;  %v4079_v52 = vld [vmem:[%s13914_s2 + $0x3c4] sm:$0xf] }
 0x2c1   :  { %v4081_v53 = vld [vmem:[%s13914_s2 + $0x3d4] sm:$0xf]  ;;  %v4083_v54 = vld [vmem:[%s13914_s2 + $0x3c8] sm:$0xf]  ;;  %4080 = vst [vmem:[#allocation9 + $0x3c8] sm:$0xf] %v4079_v52 }
 0x2c2   :  { %4082 = vst [vmem:[#allocation9 + $0x3cc] sm:$0xf] %v4081_v53  ;;  %4084 = vst [vmem:[#allocation9 + $0x3d0] sm:$0xf] %v4083_v54  ;;  %v4085_v55 = vld [vmem:[%s13914_s2 + $0x3d8] sm:$0xf] }
 0x2c3   :  { %v4087_v56 = vld [vmem:[%s13914_s2 + $0x3cc] sm:$0xf]  ;;  %v4089_v57 = vld [vmem:[%s13914_s2 + $0x3dc] sm:$0xf]  ;;  %4086 = vst [vmem:[#allocation9 + $0x3d4] sm:$0xf] %v4085_v55 }
 0x2c4   :  { %4088 = vst [vmem:[#allocation9 + $0x3d8] sm:$0xf] %v4087_v56  ;;  %4090 = vst [vmem:[#allocation9 + $0x3dc] sm:$0xf] %v4089_v57  ;;  %v4091_v58 = vld [vmem:[%s13914_s2 + $0x3e0] sm:$0xf] }
 0x2c5   :  { %v4093_v59 = vld [vmem:[%s13914_s2 + $0x3f0] sm:$0xf]  ;;  %v4095_v60 = vld [vmem:[%s13914_s2 + $0x3e4] sm:$0xf]  ;;  %4092 = vst [vmem:[#allocation9 + $0x3e0] sm:$0xf] %v4091_v58 }
 0x2c6   :  { %4094 = vst [vmem:[#allocation9 + $0x3e4] sm:$0xf] %v4093_v59  ;;  %4096 = vst [vmem:[#allocation9 + $0x3e8] sm:$0xf] %v4095_v60  ;;  %v4097_v61 = vld [vmem:[%s13914_s2 + $0x3f4] sm:$0xf] }
 0x2c7   :  { %v4099_v62 = vld [vmem:[%s13914_s2 + $0x3e8] sm:$0xf]  ;;  %v4101_v63 = vld [vmem:[%s13914_s2 + $0x3f8] sm:$0xf]  ;;  %4098 = vst [vmem:[#allocation9 + $0x3ec] sm:$0xf] %v4097_v61 }
 0x2c8   :  { %4100 = vst [vmem:[#allocation9 + $0x3f0] sm:$0xf] %v4099_v62  ;;  %4102 = vst [vmem:[#allocation9 + $0x3f4] sm:$0xf] %v4101_v63  ;;  %v4103_v0 = vld [vmem:[%s13914_s2 + $0x3ec] sm:$0xf] }
 0x2c9   :  { %v4105_v1 = vld [vmem:[%s13914_s2 + $0x3fc] sm:$0xf]  ;;  %v4107_v26 = vld [vmem:[%s13914_s2 + $0x400] sm:$0xf]  ;;  %4104 = vst [vmem:[#allocation9 + $0x3f8] sm:$0xf] %v4103_v0 }
 0x2ca   :  { %4106 = vst [vmem:[#allocation9 + $0x3fc] sm:$0xf] %v4105_v1  ;;  %4108 = vst [vmem:[#allocation9 + $0x400] sm:$0xf] %v4107_v26  ;;  %v4109_v27 = vld [vmem:[%s13914_s2 + $0x410] sm:$0xf] }
 0x2cb   :  { %v4111_v28 = vld [vmem:[%s13914_s2 + $0x404] sm:$0xf]  ;;  %v4113_v29 = vld [vmem:[%s13914_s2 + $0x414] sm:$0xf]  ;;  %4110 = vst [vmem:[#allocation9 + $0x404] sm:$0xf] %v4109_v27 }
 0x2cc   :  { %4112 = vst [vmem:[#allocation9 + $0x408] sm:$0xf] %v4111_v28  ;;  %4114 = vst [vmem:[#allocation9 + $0x40c] sm:$0xf] %v4113_v29  ;;  %v4115_v30 = vld [vmem:[%s13914_s2 + $0x408] sm:$0xf] }
 0x2cd   :  { %v4117_v31 = vld [vmem:[%s13914_s2 + $0x418] sm:$0xf]  ;;  %v4119_v32 = vld [vmem:[%s13914_s2 + $0x40c] sm:$0xf]  ;;  %4116 = vst [vmem:[#allocation9 + $0x410] sm:$0xf] %v4115_v30 }
 0x2ce   :  { %4118 = vst [vmem:[#allocation9 + $0x414] sm:$0xf] %v4117_v31  ;;  %4120 = vst [vmem:[#allocation9 + $0x418] sm:$0xf] %v4119_v32  ;;  %v4121_v33 = vld [vmem:[%s13914_s2 + $0x41c] sm:$0xf] }
 0x2cf   :  { %v4123_v34 = vld [vmem:[%s13914_s2 + $0x420] sm:$0xf]  ;;  %v4125_v35 = vld [vmem:[%s13914_s2 + $0x430] sm:$0xf]  ;;  %4122 = vst [vmem:[#allocation9 + $0x41c] sm:$0xf] %v4121_v33 }
 0x2d0   :  { %4124 = vst [vmem:[#allocation9 + $0x420] sm:$0xf] %v4123_v34  ;;  %4126 = vst [vmem:[#allocation9 + $0x424] sm:$0xf] %v4125_v35  ;;  %v4127_v36 = vld [vmem:[%s13914_s2 + $0x424] sm:$0xf] }
 0x2d1   :  { %v4129_v37 = vld [vmem:[%s13914_s2 + $0x434] sm:$0xf]  ;;  %v4131_v38 = vld [vmem:[%s13914_s2 + $0x428] sm:$0xf]  ;;  %4128 = vst [vmem:[#allocation9 + $0x428] sm:$0xf] %v4127_v36 }
 0x2d2   :  { %4130 = vst [vmem:[#allocation9 + $0x42c] sm:$0xf] %v4129_v37  ;;  %4132 = vst [vmem:[#allocation9 + $0x430] sm:$0xf] %v4131_v38  ;;  %v4133_v39 = vld [vmem:[%s13914_s2 + $0x438] sm:$0xf] }
 0x2d3   :  { %v4135_v40 = vld [vmem:[%s13914_s2 + $0x42c] sm:$0xf]  ;;  %v4137_v41 = vld [vmem:[%s13914_s2 + $0x43c] sm:$0xf]  ;;  %4134 = vst [vmem:[#allocation9 + $0x434] sm:$0xf] %v4133_v39 }
 0x2d4   :  { %4136 = vst [vmem:[#allocation9 + $0x438] sm:$0xf] %v4135_v40  ;;  %4138 = vst [vmem:[#allocation9 + $0x43c] sm:$0xf] %v4137_v41  ;;  %v4139_v42 = vld [vmem:[%s13914_s2 + $0x440] sm:$0xf] }
 0x2d5   :  { %v4141_v43 = vld [vmem:[%s13914_s2 + $0x450] sm:$0xf]  ;;  %v4143_v44 = vld [vmem:[%s13914_s2 + $0x444] sm:$0xf]  ;;  %4140 = vst [vmem:[#allocation9 + $0x440] sm:$0xf] %v4139_v42 }
 0x2d6   :  { %4142 = vst [vmem:[#allocation9 + $0x444] sm:$0xf] %v4141_v43  ;;  %4144 = vst [vmem:[#allocation9 + $0x448] sm:$0xf] %v4143_v44  ;;  %v4145_v45 = vld [vmem:[%s13914_s2 + $0x454] sm:$0xf] }
 0x2d7   :  { %v4147_v46 = vld [vmem:[%s13914_s2 + $0x448] sm:$0xf]  ;;  %v4149_v47 = vld [vmem:[%s13914_s2 + $0x458] sm:$0xf]  ;;  %4146 = vst [vmem:[#allocation9 + $0x44c] sm:$0xf] %v4145_v45 }
 0x2d8   :  { %4148 = vst [vmem:[#allocation9 + $0x450] sm:$0xf] %v4147_v46  ;;  %4150 = vst [vmem:[#allocation9 + $0x454] sm:$0xf] %v4149_v47  ;;  %v4151_v48 = vld [vmem:[%s13914_s2 + $0x44c] sm:$0xf] }
 0x2d9   :  { %v4153_v49 = vld [vmem:[%s13914_s2 + $0x45c] sm:$0xf]  ;;  %v4155_v50 = vld [vmem:[%s13914_s2 + $0x460] sm:$0xf]  ;;  %4152 = vst [vmem:[#allocation9 + $0x458] sm:$0xf] %v4151_v48 }
 0x2da   :  { %4154 = vst [vmem:[#allocation9 + $0x45c] sm:$0xf] %v4153_v49  ;;  %4156 = vst [vmem:[#allocation9 + $0x460] sm:$0xf] %v4155_v50  ;;  %v4157_v51 = vld [vmem:[%s13914_s2 + $0x470] sm:$0xf] }
 0x2db   :  { %v4159_v52 = vld [vmem:[%s13914_s2 + $0x464] sm:$0xf]  ;;  %v4161_v53 = vld [vmem:[%s13914_s2 + $0x474] sm:$0xf]  ;;  %4158 = vst [vmem:[#allocation9 + $0x464] sm:$0xf] %v4157_v51 }
 0x2dc   :  { %4160 = vst [vmem:[#allocation9 + $0x468] sm:$0xf] %v4159_v52  ;;  %4162 = vst [vmem:[#allocation9 + $0x46c] sm:$0xf] %v4161_v53  ;;  %v4163_v54 = vld [vmem:[%s13914_s2 + $0x468] sm:$0xf] }
 0x2dd   :  { %v4165_v55 = vld [vmem:[%s13914_s2 + $0x478] sm:$0xf]  ;;  %v4167_v56 = vld [vmem:[%s13914_s2 + $0x46c] sm:$0xf]  ;;  %4164 = vst [vmem:[#allocation9 + $0x470] sm:$0xf] %v4163_v54 }
 0x2de   :  { %4166 = vst [vmem:[#allocation9 + $0x474] sm:$0xf] %v4165_v55  ;;  %4168 = vst [vmem:[#allocation9 + $0x478] sm:$0xf] %v4167_v56  ;;  %v4169_v57 = vld [vmem:[%s13914_s2 + $0x47c] sm:$0xf] }
 0x2df   :  { %v4171_v58 = vld [vmem:[%s13914_s2 + $0x480] sm:$0xf]  ;;  %v4173_v59 = vld [vmem:[%s13914_s2 + $0x490] sm:$0xf]  ;;  %4170 = vst [vmem:[#allocation9 + $0x47c] sm:$0xf] %v4169_v57 }
 0x2e0   :  { %4172 = vst [vmem:[#allocation9 + $0x480] sm:$0xf] %v4171_v58  ;;  %4174 = vst [vmem:[#allocation9 + $0x484] sm:$0xf] %v4173_v59  ;;  %v4175_v60 = vld [vmem:[%s13914_s2 + $0x484] sm:$0xf] }
 0x2e1   :  { %v4177_v61 = vld [vmem:[%s13914_s2 + $0x494] sm:$0xf]  ;;  %v4179_v62 = vld [vmem:[%s13914_s2 + $0x488] sm:$0xf]  ;;  %4176 = vst [vmem:[#allocation9 + $0x488] sm:$0xf] %v4175_v60 }
 0x2e2   :  { %4178 = vst [vmem:[#allocation9 + $0x48c] sm:$0xf] %v4177_v61  ;;  %4180 = vst [vmem:[#allocation9 + $0x490] sm:$0xf] %v4179_v62  ;;  %v4181_v63 = vld [vmem:[%s13914_s2 + $0x498] sm:$0xf] }
 0x2e3   :  { %v4183_v0 = vld [vmem:[%s13914_s2 + $0x48c] sm:$0xf]  ;;  %v4185_v1 = vld [vmem:[%s13914_s2 + $0x49c] sm:$0xf]  ;;  %4182 = vst [vmem:[#allocation9 + $0x494] sm:$0xf] %v4181_v63 }
 0x2e4   :  { %4184 = vst [vmem:[#allocation9 + $0x498] sm:$0xf] %v4183_v0  ;;  %4186 = vst [vmem:[#allocation9 + $0x49c] sm:$0xf] %v4185_v1  ;;  %v4187_v26 = vld [vmem:[%s13914_s2 + $0x4a0] sm:$0xf] }
 0x2e5   :  { %v4189_v27 = vld [vmem:[%s13914_s2 + $0x4b0] sm:$0xf]  ;;  %v4191_v28 = vld [vmem:[%s13914_s2 + $0x4a4] sm:$0xf]  ;;  %4188 = vst [vmem:[#allocation9 + $0x4a0] sm:$0xf] %v4187_v26 }
 0x2e6   :  { %4190 = vst [vmem:[#allocation9 + $0x4a4] sm:$0xf] %v4189_v27  ;;  %4192 = vst [vmem:[#allocation9 + $0x4a8] sm:$0xf] %v4191_v28  ;;  %v4193_v29 = vld [vmem:[%s13914_s2 + $0x4b4] sm:$0xf] }
 0x2e7   :  { %v4195_v30 = vld [vmem:[%s13914_s2 + $0x4a8] sm:$0xf]  ;;  %v4197_v31 = vld [vmem:[%s13914_s2 + $0x4b8] sm:$0xf]  ;;  %4194 = vst [vmem:[#allocation9 + $0x4ac] sm:$0xf] %v4193_v29 }
 0x2e8   :  { %4196 = vst [vmem:[#allocation9 + $0x4b0] sm:$0xf] %v4195_v30  ;;  %4198 = vst [vmem:[#allocation9 + $0x4b4] sm:$0xf] %v4197_v31  ;;  %v4199_v32 = vld [vmem:[%s13914_s2 + $0x4ac] sm:$0xf] }
 0x2e9   :  { %v4201_v33 = vld [vmem:[%s13914_s2 + $0x4bc] sm:$0xf]  ;;  %v4203_v34 = vld [vmem:[%s13914_s2 + $0x4c0] sm:$0xf]  ;;  %4200 = vst [vmem:[#allocation9 + $0x4b8] sm:$0xf] %v4199_v32 }
 0x2ea   :  { %4202 = vst [vmem:[#allocation9 + $0x4bc] sm:$0xf] %v4201_v33  ;;  %4204 = vst [vmem:[#allocation9 + $0x4c0] sm:$0xf] %v4203_v34  ;;  %v4205_v35 = vld [vmem:[%s13914_s2 + $0x4d0] sm:$0xf] }
 0x2eb   :  { %v4207_v36 = vld [vmem:[%s13914_s2 + $0x4c4] sm:$0xf]  ;;  %v4209_v37 = vld [vmem:[%s13914_s2 + $0x4d4] sm:$0xf]  ;;  %4206 = vst [vmem:[#allocation9 + $0x4c4] sm:$0xf] %v4205_v35 }
 0x2ec   :  { %4208 = vst [vmem:[#allocation9 + $0x4c8] sm:$0xf] %v4207_v36  ;;  %4210 = vst [vmem:[#allocation9 + $0x4cc] sm:$0xf] %v4209_v37  ;;  %v4211_v38 = vld [vmem:[%s13914_s2 + $0x4c8] sm:$0xf] }
 0x2ed   :  { %v4213_v39 = vld [vmem:[%s13914_s2 + $0x4d8] sm:$0xf]  ;;  %v4215_v40 = vld [vmem:[%s13914_s2 + $0x4cc] sm:$0xf]  ;;  %4212 = vst [vmem:[#allocation9 + $0x4d0] sm:$0xf] %v4211_v38 }
 0x2ee   :  { %4214 = vst [vmem:[#allocation9 + $0x4d4] sm:$0xf] %v4213_v39  ;;  %4216 = vst [vmem:[#allocation9 + $0x4d8] sm:$0xf] %v4215_v40  ;;  %v4217_v41 = vld [vmem:[%s13914_s2 + $0x4dc] sm:$0xf] }
 0x2ef   :  { %v4219_v42 = vld [vmem:[%s13914_s2 + $0x4e0] sm:$0xf]  ;;  %v4221_v43 = vld [vmem:[%s13914_s2 + $0x4f0] sm:$0xf]  ;;  %4218 = vst [vmem:[#allocation9 + $0x4dc] sm:$0xf] %v4217_v41 }
 0x2f0   :  { %4220 = vst [vmem:[#allocation9 + $0x4e0] sm:$0xf] %v4219_v42  ;;  %4222 = vst [vmem:[#allocation9 + $0x4e4] sm:$0xf] %v4221_v43  ;;  %v4223_v44 = vld [vmem:[%s13914_s2 + $0x4e4] sm:$0xf] }
 0x2f1   :  { %v4225_v45 = vld [vmem:[%s13914_s2 + $0x4f4] sm:$0xf]  ;;  %v4227_v46 = vld [vmem:[%s13914_s2 + $0x4e8] sm:$0xf]  ;;  %4224 = vst [vmem:[#allocation9 + $0x4e8] sm:$0xf] %v4223_v44 }
 0x2f2   :  { %4226 = vst [vmem:[#allocation9 + $0x4ec] sm:$0xf] %v4225_v45  ;;  %4228 = vst [vmem:[#allocation9 + $0x4f0] sm:$0xf] %v4227_v46  ;;  %v4229_v47 = vld [vmem:[%s13914_s2 + $0x4f8] sm:$0xf] }
 0x2f3   :  { %v4231_v48 = vld [vmem:[%s13914_s2 + $0x4ec] sm:$0xf]  ;;  %v4233_v49 = vld [vmem:[%s13914_s2 + $0x4fc] sm:$0xf]  ;;  %4230 = vst [vmem:[#allocation9 + $0x4f4] sm:$0xf] %v4229_v47 }
 0x2f4   :  { %4232 = vst [vmem:[#allocation9 + $0x4f8] sm:$0xf] %v4231_v48  ;;  %4234 = vst [vmem:[#allocation9 + $0x4fc] sm:$0xf] %v4233_v49  ;;  %v4235_v50 = vld [vmem:[%s13914_s2 + $0x500] sm:$0xf] }
 0x2f5   :  { %v4237_v51 = vld [vmem:[%s13914_s2 + $0x510] sm:$0xf]  ;;  %v4239_v52 = vld [vmem:[%s13914_s2 + $0x504] sm:$0xf]  ;;  %4236 = vst [vmem:[#allocation9 + $0x500] sm:$0xf] %v4235_v50 }
 0x2f6   :  { %4238 = vst [vmem:[#allocation9 + $0x504] sm:$0xf] %v4237_v51  ;;  %4240 = vst [vmem:[#allocation9 + $0x508] sm:$0xf] %v4239_v52  ;;  %v4241_v53 = vld [vmem:[%s13914_s2 + $0x514] sm:$0xf] }
 0x2f7   :  { %v4243_v54 = vld [vmem:[%s13914_s2 + $0x508] sm:$0xf]  ;;  %v4245_v55 = vld [vmem:[%s13914_s2 + $0x518] sm:$0xf]  ;;  %4242 = vst [vmem:[#allocation9 + $0x50c] sm:$0xf] %v4241_v53 }
 0x2f8   :  { %4244 = vst [vmem:[#allocation9 + $0x510] sm:$0xf] %v4243_v54  ;;  %4246 = vst [vmem:[#allocation9 + $0x514] sm:$0xf] %v4245_v55  ;;  %v4247_v56 = vld [vmem:[%s13914_s2 + $0x50c] sm:$0xf] }
 0x2f9   :  { %v4249_v57 = vld [vmem:[%s13914_s2 + $0x51c] sm:$0xf]  ;;  %v4251_v58 = vld [vmem:[%s13914_s2 + $0x520] sm:$0xf]  ;;  %4248 = vst [vmem:[#allocation9 + $0x518] sm:$0xf] %v4247_v56 }
 0x2fa   :  { %4250 = vst [vmem:[#allocation9 + $0x51c] sm:$0xf] %v4249_v57  ;;  %4252 = vst [vmem:[#allocation9 + $0x520] sm:$0xf] %v4251_v58  ;;  %v4253_v59 = vld [vmem:[%s13914_s2 + $0x530] sm:$0xf] }
 0x2fb   :  { %v4255_v60 = vld [vmem:[%s13914_s2 + $0x524] sm:$0xf]  ;;  %v4257_v61 = vld [vmem:[%s13914_s2 + $0x534] sm:$0xf]  ;;  %4254 = vst [vmem:[#allocation9 + $0x524] sm:$0xf] %v4253_v59 }
 0x2fc   :  { %4256 = vst [vmem:[#allocation9 + $0x528] sm:$0xf] %v4255_v60  ;;  %4258 = vst [vmem:[#allocation9 + $0x52c] sm:$0xf] %v4257_v61  ;;  %v4259_v62 = vld [vmem:[%s13914_s2 + $0x528] sm:$0xf] }
 0x2fd   :  { %v4261_v63 = vld [vmem:[%s13914_s2 + $0x538] sm:$0xf]  ;;  %v4263_v0 = vld [vmem:[%s13914_s2 + $0x52c] sm:$0xf]  ;;  %4260 = vst [vmem:[#allocation9 + $0x530] sm:$0xf] %v4259_v62 }
 0x2fe   :  { %4262 = vst [vmem:[#allocation9 + $0x534] sm:$0xf] %v4261_v63  ;;  %4264 = vst [vmem:[#allocation9 + $0x538] sm:$0xf] %v4263_v0  ;;  %v4265_v1 = vld [vmem:[%s13914_s2 + $0x53c] sm:$0xf] }
 0x2ff   :  { %v4267_v26 = vld [vmem:[%s13914_s2 + $0x540] sm:$0xf]  ;;  %v4269_v27 = vld [vmem:[%s13914_s2 + $0x550] sm:$0xf]  ;;  %4266 = vst [vmem:[#allocation9 + $0x53c] sm:$0xf] %v4265_v1 }
 0x300   :  { %4268 = vst [vmem:[#allocation9 + $0x540] sm:$0xf] %v4267_v26  ;;  %4270 = vst [vmem:[#allocation9 + $0x544] sm:$0xf] %v4269_v27  ;;  %v4271_v28 = vld [vmem:[%s13914_s2 + $0x544] sm:$0xf] }
 0x301   :  { %v4273_v29 = vld [vmem:[%s13914_s2 + $0x554] sm:$0xf]  ;;  %v4275_v30 = vld [vmem:[%s13914_s2 + $0x548] sm:$0xf]  ;;  %4272 = vst [vmem:[#allocation9 + $0x548] sm:$0xf] %v4271_v28 }
 0x302   :  { %4274 = vst [vmem:[#allocation9 + $0x54c] sm:$0xf] %v4273_v29  ;;  %4276 = vst [vmem:[#allocation9 + $0x550] sm:$0xf] %v4275_v30  ;;  %v4277_v31 = vld [vmem:[%s13914_s2 + $0x558] sm:$0xf] }
 0x303   :  { %v4279_v32 = vld [vmem:[%s13914_s2 + $0x54c] sm:$0xf]  ;;  %v4281_v33 = vld [vmem:[%s13914_s2 + $0x55c] sm:$0xf]  ;;  %4278 = vst [vmem:[#allocation9 + $0x554] sm:$0xf] %v4277_v31 }
 0x304   :  { %4280 = vst [vmem:[#allocation9 + $0x558] sm:$0xf] %v4279_v32  ;;  %4282 = vst [vmem:[#allocation9 + $0x55c] sm:$0xf] %v4281_v33  ;;  %v4283_v34 = vld [vmem:[%s13914_s2 + $0x560] sm:$0xf] }
 0x305   :  { %v4285_v35 = vld [vmem:[%s13914_s2 + $0x570] sm:$0xf]  ;;  %v4287_v36 = vld [vmem:[%s13914_s2 + $0x564] sm:$0xf]  ;;  %4284 = vst [vmem:[#allocation9 + $0x560] sm:$0xf] %v4283_v34 }
 0x306   :  { %4286 = vst [vmem:[#allocation9 + $0x564] sm:$0xf] %v4285_v35  ;;  %4288 = vst [vmem:[#allocation9 + $0x568] sm:$0xf] %v4287_v36  ;;  %v4289_v37 = vld [vmem:[%s13914_s2 + $0x574] sm:$0xf] }
 0x307   :  { %v4291_v38 = vld [vmem:[%s13914_s2 + $0x568] sm:$0xf]  ;;  %v4293_v39 = vld [vmem:[%s13914_s2 + $0x578] sm:$0xf]  ;;  %4290 = vst [vmem:[#allocation9 + $0x56c] sm:$0xf] %v4289_v37 }
 0x308   :  { %4292 = vst [vmem:[#allocation9 + $0x570] sm:$0xf] %v4291_v38  ;;  %4294 = vst [vmem:[#allocation9 + $0x574] sm:$0xf] %v4293_v39  ;;  %v4295_v40 = vld [vmem:[%s13914_s2 + $0x56c] sm:$0xf] }
 0x309   :  { %v4297_v41 = vld [vmem:[%s13914_s2 + $0x57c] sm:$0xf]  ;;  %v4299_v42 = vld [vmem:[%s13914_s2 + $0x580] sm:$0xf]  ;;  %4296 = vst [vmem:[#allocation9 + $0x578] sm:$0xf] %v4295_v40 }
 0x30a   :  { %4298 = vst [vmem:[#allocation9 + $0x57c] sm:$0xf] %v4297_v41  ;;  %4300 = vst [vmem:[#allocation9 + $0x580] sm:$0xf] %v4299_v42  ;;  %v4301_v43 = vld [vmem:[%s13914_s2 + $0x590] sm:$0xf] }
 0x30b   :  { %v4303_v44 = vld [vmem:[%s13914_s2 + $0x584] sm:$0xf]  ;;  %v4305_v45 = vld [vmem:[%s13914_s2 + $0x594] sm:$0xf]  ;;  %4302 = vst [vmem:[#allocation9 + $0x584] sm:$0xf] %v4301_v43 }
 0x30c   :  { %4304 = vst [vmem:[#allocation9 + $0x588] sm:$0xf] %v4303_v44  ;;  %4306 = vst [vmem:[#allocation9 + $0x58c] sm:$0xf] %v4305_v45  ;;  %v4307_v46 = vld [vmem:[%s13914_s2 + $0x588] sm:$0xf] }
 0x30d   :  { %v4309_v47 = vld [vmem:[%s13914_s2 + $0x598] sm:$0xf]  ;;  %v4311_v48 = vld [vmem:[%s13914_s2 + $0x58c] sm:$0xf]  ;;  %4308 = vst [vmem:[#allocation9 + $0x590] sm:$0xf] %v4307_v46 }
 0x30e   :  { %4310 = vst [vmem:[#allocation9 + $0x594] sm:$0xf] %v4309_v47  ;;  %4312 = vst [vmem:[#allocation9 + $0x598] sm:$0xf] %v4311_v48  ;;  %v4313_v49 = vld [vmem:[%s13914_s2 + $0x59c] sm:$0xf] }
 0x30f   :  { %v4315_v50 = vld [vmem:[%s13914_s2 + $0x5a0] sm:$0xf]  ;;  %v4317_v51 = vld [vmem:[%s13914_s2 + $0x5b0] sm:$0xf]  ;;  %4314 = vst [vmem:[#allocation9 + $0x59c] sm:$0xf] %v4313_v49 }
 0x310   :  { %4316 = vst [vmem:[#allocation9 + $0x5a0] sm:$0xf] %v4315_v50  ;;  %4318 = vst [vmem:[#allocation9 + $0x5a4] sm:$0xf] %v4317_v51  ;;  %v4319_v52 = vld [vmem:[%s13914_s2 + $0x5a4] sm:$0xf] }
 0x311   :  { %v4321_v53 = vld [vmem:[%s13914_s2 + $0x5b4] sm:$0xf]  ;;  %v4323_v54 = vld [vmem:[%s13914_s2 + $0x5a8] sm:$0xf]  ;;  %4320 = vst [vmem:[#allocation9 + $0x5a8] sm:$0xf] %v4319_v52 }
 0x312   :  { %4322 = vst [vmem:[#allocation9 + $0x5ac] sm:$0xf] %v4321_v53  ;;  %4324 = vst [vmem:[#allocation9 + $0x5b0] sm:$0xf] %v4323_v54  ;;  %v4325_v55 = vld [vmem:[%s13914_s2 + $0x5b8] sm:$0xf] }
 0x313   :  { %v4327_v56 = vld [vmem:[%s13914_s2 + $0x5ac] sm:$0xf]  ;;  %v4329_v57 = vld [vmem:[%s13914_s2 + $0x5bc] sm:$0xf]  ;;  %4326 = vst [vmem:[#allocation9 + $0x5b4] sm:$0xf] %v4325_v55 }
 0x314   :  { %4328 = vst [vmem:[#allocation9 + $0x5b8] sm:$0xf] %v4327_v56  ;;  %4330 = vst [vmem:[#allocation9 + $0x5bc] sm:$0xf] %v4329_v57  ;;  %v4331_v58 = vld [vmem:[%s13914_s2 + $0x5c0] sm:$0xf] }
 0x315   :  { %v4333_v59 = vld [vmem:[%s13914_s2 + $0x5d0] sm:$0xf]  ;;  %v4335_v60 = vld [vmem:[%s13914_s2 + $0x5c4] sm:$0xf]  ;;  %4332 = vst [vmem:[#allocation9 + $0x5c0] sm:$0xf] %v4331_v58 }
 0x316   :  { %4334 = vst [vmem:[#allocation9 + $0x5c4] sm:$0xf] %v4333_v59  ;;  %4336 = vst [vmem:[#allocation9 + $0x5c8] sm:$0xf] %v4335_v60  ;;  %v4337_v61 = vld [vmem:[%s13914_s2 + $0x5d4] sm:$0xf] }
 0x317   :  { %v4339_v62 = vld [vmem:[%s13914_s2 + $0x5c8] sm:$0xf]  ;;  %v4341_v63 = vld [vmem:[%s13914_s2 + $0x5d8] sm:$0xf]  ;;  %4338 = vst [vmem:[#allocation9 + $0x5cc] sm:$0xf] %v4337_v61 }
 0x318   :  { %4340 = vst [vmem:[#allocation9 + $0x5d0] sm:$0xf] %v4339_v62  ;;  %4342 = vst [vmem:[#allocation9 + $0x5d4] sm:$0xf] %v4341_v63  ;;  %v4343_v0 = vld [vmem:[%s13914_s2 + $0x5cc] sm:$0xf] }
 0x319   :  { %v4345_v1 = vld [vmem:[%s13914_s2 + $0x5dc] sm:$0xf]  ;;  %v4347_v26 = vld [vmem:[%s13914_s2 + $0x5e0] sm:$0xf]  ;;  %4344 = vst [vmem:[#allocation9 + $0x5d8] sm:$0xf] %v4343_v0 }
 0x31a   :  { %4346 = vst [vmem:[#allocation9 + $0x5dc] sm:$0xf] %v4345_v1  ;;  %4348 = vst [vmem:[#allocation9 + $0x5e0] sm:$0xf] %v4347_v26  ;;  %v4349_v27 = vld [vmem:[%s13914_s2 + $0x5f0] sm:$0xf] }
 0x31b   :  { %v4351_v28 = vld [vmem:[%s13914_s2 + $0x5e4] sm:$0xf]  ;;  %v4353_v29 = vld [vmem:[%s13914_s2 + $0x5f4] sm:$0xf]  ;;  %4350 = vst [vmem:[#allocation9 + $0x5e4] sm:$0xf] %v4349_v27 }
 0x31c   :  { %4352 = vst [vmem:[#allocation9 + $0x5e8] sm:$0xf] %v4351_v28  ;;  %4354 = vst [vmem:[#allocation9 + $0x5ec] sm:$0xf] %v4353_v29  ;;  %v4355_v30 = vld [vmem:[%s13914_s2 + $0x5e8] sm:$0xf] }
 0x31d   :  { %v4357_v31 = vld [vmem:[%s13914_s2 + $0x5f8] sm:$0xf]  ;;  %v4359_v32 = vld [vmem:[%s13914_s2 + $0x5ec] sm:$0xf]  ;;  %4356 = vst [vmem:[#allocation9 + $0x5f0] sm:$0xf] %v4355_v30 }
 0x31e   :  { %4358 = vst [vmem:[#allocation9 + $0x5f4] sm:$0xf] %v4357_v31  ;;  %4360 = vst [vmem:[#allocation9 + $0x5f8] sm:$0xf] %v4359_v32  ;;  %v4361_v33 = vld [vmem:[%s13914_s2 + $0x5fc] sm:$0xf] }
 0x31f   :  { %v4363_v34 = vld [vmem:[%s13914_s2 + $0x600] sm:$0xf]  ;;  %v4365_v35 = vld [vmem:[%s13914_s2 + $0x610] sm:$0xf]  ;;  %4362 = vst [vmem:[#allocation9 + $0x5fc] sm:$0xf] %v4361_v33 }
 0x320   :  { %4364 = vst [vmem:[#allocation9 + $0x600] sm:$0xf] %v4363_v34  ;;  %4366 = vst [vmem:[#allocation9 + $0x604] sm:$0xf] %v4365_v35  ;;  %v4367_v36 = vld [vmem:[%s13914_s2 + $0x604] sm:$0xf] }
 0x321   :  { %v4369_v37 = vld [vmem:[%s13914_s2 + $0x614] sm:$0xf]  ;;  %v4371_v38 = vld [vmem:[%s13914_s2 + $0x608] sm:$0xf]  ;;  %4368 = vst [vmem:[#allocation9 + $0x608] sm:$0xf] %v4367_v36 }
 0x322   :  { %4370 = vst [vmem:[#allocation9 + $0x60c] sm:$0xf] %v4369_v37  ;;  %4372 = vst [vmem:[#allocation9 + $0x610] sm:$0xf] %v4371_v38  ;;  %v4373_v39 = vld [vmem:[%s13914_s2 + $0x618] sm:$0xf] }
 0x323   :  { %v4375_v40 = vld [vmem:[%s13914_s2 + $0x60c] sm:$0xf]  ;;  %v4377_v41 = vld [vmem:[%s13914_s2 + $0x61c] sm:$0xf]  ;;  %4374 = vst [vmem:[#allocation9 + $0x614] sm:$0xf] %v4373_v39 }
 0x324   :  { %4376 = vst [vmem:[#allocation9 + $0x618] sm:$0xf] %v4375_v40  ;;  %4378 = vst [vmem:[#allocation9 + $0x61c] sm:$0xf] %v4377_v41  ;;  %v4379_v42 = vld [vmem:[%s13914_s2 + $0x620] sm:$0xf] }
 0x325   :  { %v4381_v43 = vld [vmem:[%s13914_s2 + $0x630] sm:$0xf]  ;;  %v4383_v44 = vld [vmem:[%s13914_s2 + $0x624] sm:$0xf]  ;;  %4380 = vst [vmem:[#allocation9 + $0x620] sm:$0xf] %v4379_v42 }
 0x326   :  { %4382 = vst [vmem:[#allocation9 + $0x624] sm:$0xf] %v4381_v43  ;;  %4384 = vst [vmem:[#allocation9 + $0x628] sm:$0xf] %v4383_v44  ;;  %v4385_v45 = vld [vmem:[%s13914_s2 + $0x634] sm:$0xf] }
 0x327   :  { %v4387_v46 = vld [vmem:[%s13914_s2 + $0x628] sm:$0xf]  ;;  %v4389_v47 = vld [vmem:[%s13914_s2 + $0x638] sm:$0xf]  ;;  %4386 = vst [vmem:[#allocation9 + $0x62c] sm:$0xf] %v4385_v45 }
 0x328   :  { %4388 = vst [vmem:[#allocation9 + $0x630] sm:$0xf] %v4387_v46  ;;  %4390 = vst [vmem:[#allocation9 + $0x634] sm:$0xf] %v4389_v47  ;;  %v4391_v48 = vld [vmem:[%s13914_s2 + $0x62c] sm:$0xf] }
 0x329   :  { %v4393_v49 = vld [vmem:[%s13914_s2 + $0x63c] sm:$0xf]  ;;  %v4395_v50 = vld [vmem:[%s13914_s2 + $0x640] sm:$0xf]  ;;  %4392 = vst [vmem:[#allocation9 + $0x638] sm:$0xf] %v4391_v48 }
 0x32a   :  { %4394 = vst [vmem:[#allocation9 + $0x63c] sm:$0xf] %v4393_v49  ;;  %4396 = vst [vmem:[#allocation9 + $0x640] sm:$0xf] %v4395_v50  ;;  %v4397_v51 = vld [vmem:[%s13914_s2 + $0x650] sm:$0xf] }
 0x32b   :  { %v4399_v52 = vld [vmem:[%s13914_s2 + $0x644] sm:$0xf]  ;;  %v4401_v53 = vld [vmem:[%s13914_s2 + $0x654] sm:$0xf]  ;;  %4398 = vst [vmem:[#allocation9 + $0x644] sm:$0xf] %v4397_v51 }
 0x32c   :  { %4400 = vst [vmem:[#allocation9 + $0x648] sm:$0xf] %v4399_v52  ;;  %4402 = vst [vmem:[#allocation9 + $0x64c] sm:$0xf] %v4401_v53  ;;  %v4403_v54 = vld [vmem:[%s13914_s2 + $0x648] sm:$0xf] }
 0x32d   :  { %v4405_v55 = vld [vmem:[%s13914_s2 + $0x658] sm:$0xf]  ;;  %v4407_v56 = vld [vmem:[%s13914_s2 + $0x64c] sm:$0xf]  ;;  %4404 = vst [vmem:[#allocation9 + $0x650] sm:$0xf] %v4403_v54 }
 0x32e   :  { %4406 = vst [vmem:[#allocation9 + $0x654] sm:$0xf] %v4405_v55  ;;  %4408 = vst [vmem:[#allocation9 + $0x658] sm:$0xf] %v4407_v56  ;;  %v4409_v57 = vld [vmem:[%s13914_s2 + $0x65c] sm:$0xf] }
 0x32f   :  { %v4411_v58 = vld [vmem:[%s13914_s2 + $0x660] sm:$0xf]  ;;  %v4413_v59 = vld [vmem:[%s13914_s2 + $0x670] sm:$0xf]  ;;  %4410 = vst [vmem:[#allocation9 + $0x65c] sm:$0xf] %v4409_v57 }
 0x330   :  { %4412 = vst [vmem:[#allocation9 + $0x660] sm:$0xf] %v4411_v58  ;;  %4414 = vst [vmem:[#allocation9 + $0x664] sm:$0xf] %v4413_v59  ;;  %v4415_v60 = vld [vmem:[%s13914_s2 + $0x664] sm:$0xf] }
 0x331   :  { %v4417_v61 = vld [vmem:[%s13914_s2 + $0x674] sm:$0xf]  ;;  %v4419_v62 = vld [vmem:[%s13914_s2 + $0x668] sm:$0xf]  ;;  %4416 = vst [vmem:[#allocation9 + $0x668] sm:$0xf] %v4415_v60 }
 0x332   :  { %4418 = vst [vmem:[#allocation9 + $0x66c] sm:$0xf] %v4417_v61  ;;  %4420 = vst [vmem:[#allocation9 + $0x670] sm:$0xf] %v4419_v62  ;;  %v4421_v63 = vld [vmem:[%s13914_s2 + $0x678] sm:$0xf] }
 0x333   :  { %v4423_v0 = vld [vmem:[%s13914_s2 + $0x66c] sm:$0xf]  ;;  %v4425_v1 = vld [vmem:[%s13914_s2 + $0x67c] sm:$0xf]  ;;  %4422 = vst [vmem:[#allocation9 + $0x674] sm:$0xf] %v4421_v63 }
 0x334   :  { %4424 = vst [vmem:[#allocation9 + $0x678] sm:$0xf] %v4423_v0  ;;  %4426 = vst [vmem:[#allocation9 + $0x67c] sm:$0xf] %v4425_v1  ;;  %v4427_v26 = vld [vmem:[%s13914_s2 + $0x680] sm:$0xf] }
 0x335   :  { %v4429_v27 = vld [vmem:[%s13914_s2 + $0x690] sm:$0xf]  ;;  %v4431_v28 = vld [vmem:[%s13914_s2 + $0x684] sm:$0xf]  ;;  %4428 = vst [vmem:[#allocation9 + $0x680] sm:$0xf] %v4427_v26 }
 0x336   :  { %4430 = vst [vmem:[#allocation9 + $0x684] sm:$0xf] %v4429_v27  ;;  %4432 = vst [vmem:[#allocation9 + $0x688] sm:$0xf] %v4431_v28  ;;  %v4433_v29 = vld [vmem:[%s13914_s2 + $0x694] sm:$0xf] }
 0x337   :  { %v4435_v30 = vld [vmem:[%s13914_s2 + $0x688] sm:$0xf]  ;;  %v4437_v31 = vld [vmem:[%s13914_s2 + $0x698] sm:$0xf]  ;;  %4434 = vst [vmem:[#allocation9 + $0x68c] sm:$0xf] %v4433_v29 }
 0x338   :  { %4436 = vst [vmem:[#allocation9 + $0x690] sm:$0xf] %v4435_v30  ;;  %4438 = vst [vmem:[#allocation9 + $0x694] sm:$0xf] %v4437_v31  ;;  %v4439_v32 = vld [vmem:[%s13914_s2 + $0x68c] sm:$0xf] }
 0x339   :  { %v4441_v33 = vld [vmem:[%s13914_s2 + $0x69c] sm:$0xf]  ;;  %v4443_v34 = vld [vmem:[%s13914_s2 + $0x6a0] sm:$0xf]  ;;  %4440 = vst [vmem:[#allocation9 + $0x698] sm:$0xf] %v4439_v32 }
 0x33a   :  { %4442 = vst [vmem:[#allocation9 + $0x69c] sm:$0xf] %v4441_v33  ;;  %4444 = vst [vmem:[#allocation9 + $0x6a0] sm:$0xf] %v4443_v34  ;;  %v4445_v35 = vld [vmem:[%s13914_s2 + $0x6b0] sm:$0xf] }
 0x33b   :  { %v4447_v36 = vld [vmem:[%s13914_s2 + $0x6a4] sm:$0xf]  ;;  %v4449_v37 = vld [vmem:[%s13914_s2 + $0x6b4] sm:$0xf]  ;;  %4446 = vst [vmem:[#allocation9 + $0x6a4] sm:$0xf] %v4445_v35 }
 0x33c   :  { %4448 = vst [vmem:[#allocation9 + $0x6a8] sm:$0xf] %v4447_v36  ;;  %4450 = vst [vmem:[#allocation9 + $0x6ac] sm:$0xf] %v4449_v37  ;;  %v4451_v38 = vld [vmem:[%s13914_s2 + $0x6a8] sm:$0xf] }
 0x33d   :  { %v4453_v39 = vld [vmem:[%s13914_s2 + $0x6b8] sm:$0xf]  ;;  %v4455_v40 = vld [vmem:[%s13914_s2 + $0x6ac] sm:$0xf]  ;;  %4452 = vst [vmem:[#allocation9 + $0x6b0] sm:$0xf] %v4451_v38 }
 0x33e   :  { %4454 = vst [vmem:[#allocation9 + $0x6b4] sm:$0xf] %v4453_v39  ;;  %4456 = vst [vmem:[#allocation9 + $0x6b8] sm:$0xf] %v4455_v40  ;;  %v4457_v41 = vld [vmem:[%s13914_s2 + $0x6bc] sm:$0xf] }
 0x33f   :  { %v4459_v42 = vld [vmem:[%s13914_s2 + $0x6c0] sm:$0xf]  ;;  %v4461_v43 = vld [vmem:[%s13914_s2 + $0x6d0] sm:$0xf]  ;;  %4458 = vst [vmem:[#allocation9 + $0x6bc] sm:$0xf] %v4457_v41 }
 0x340   :  { %4460 = vst [vmem:[#allocation9 + $0x6c0] sm:$0xf] %v4459_v42  ;;  %4462 = vst [vmem:[#allocation9 + $0x6c4] sm:$0xf] %v4461_v43  ;;  %v4463_v44 = vld [vmem:[%s13914_s2 + $0x6c4] sm:$0xf] }
 0x341   :  { %v4465_v45 = vld [vmem:[%s13914_s2 + $0x6d4] sm:$0xf]  ;;  %v4467_v46 = vld [vmem:[%s13914_s2 + $0x6c8] sm:$0xf]  ;;  %4464 = vst [vmem:[#allocation9 + $0x6c8] sm:$0xf] %v4463_v44 }
 0x342   :  { %4466 = vst [vmem:[#allocation9 + $0x6cc] sm:$0xf] %v4465_v45  ;;  %4468 = vst [vmem:[#allocation9 + $0x6d0] sm:$0xf] %v4467_v46  ;;  %v4469_v47 = vld [vmem:[%s13914_s2 + $0x6d8] sm:$0xf] }
 0x343   :  { %v4471_v48 = vld [vmem:[%s13914_s2 + $0x6cc] sm:$0xf]  ;;  %v4473_v49 = vld [vmem:[%s13914_s2 + $0x6dc] sm:$0xf]  ;;  %4470 = vst [vmem:[#allocation9 + $0x6d4] sm:$0xf] %v4469_v47 }
 0x344   :  { %4472 = vst [vmem:[#allocation9 + $0x6d8] sm:$0xf] %v4471_v48  ;;  %4474 = vst [vmem:[#allocation9 + $0x6dc] sm:$0xf] %v4473_v49  ;;  %v4475_v50 = vld [vmem:[%s13914_s2 + $0x6e0] sm:$0xf] }
 0x345   :  { %v4477_v51 = vld [vmem:[%s13914_s2 + $0x6f0] sm:$0xf]  ;;  %v4479_v52 = vld [vmem:[%s13914_s2 + $0x6e4] sm:$0xf]  ;;  %4476 = vst [vmem:[#allocation9 + $0x6e0] sm:$0xf] %v4475_v50 }
 0x346   :  { %4478 = vst [vmem:[#allocation9 + $0x6e4] sm:$0xf] %v4477_v51  ;;  %4480 = vst [vmem:[#allocation9 + $0x6e8] sm:$0xf] %v4479_v52  ;;  %v4481_v53 = vld [vmem:[%s13914_s2 + $0x6f4] sm:$0xf] }
 0x347   :  { %v4483_v54 = vld [vmem:[%s13914_s2 + $0x6e8] sm:$0xf]  ;;  %v4485_v55 = vld [vmem:[%s13914_s2 + $0x6f8] sm:$0xf]  ;;  %4482 = vst [vmem:[#allocation9 + $0x6ec] sm:$0xf] %v4481_v53 }
 0x348   :  { %4484 = vst [vmem:[#allocation9 + $0x6f0] sm:$0xf] %v4483_v54  ;;  %4486 = vst [vmem:[#allocation9 + $0x6f4] sm:$0xf] %v4485_v55  ;;  %v4487_v56 = vld [vmem:[%s13914_s2 + $0x6ec] sm:$0xf] }
 0x349   :  { %v4489_v57 = vld [vmem:[%s13914_s2 + $0x6fc] sm:$0xf]  ;;  %4488 = vst [vmem:[#allocation9 + $0x6f8] sm:$0xf] %v4487_v56 }
 0x34a   :  { %4490 = vst [vmem:[#allocation9 + $0x6fc] sm:$0xf] %v4489_v57 }
 0x34b   :  { %5417 = vsyncadd [#allocation10 + $0x7], 28672  ;;  %v5418_v58 = vld [vmem:[%s13671_s5] sm:$0xf] }
 0x34c   :  { %v5419_v59 = vld [vmem:[%s13676_s9] sm:$0xf] }
 0x34d   :  { %v5420_v60 = vmul.f32 0.155, %v5419_v59 }
 0x34f   :  { %v5421_v61 = vadd.f32 %v5420_v60, %v5418_v58 }
 0x350   :  { %13602 = dma.done.wait [#allocation10], 8192 }
 0x351   :  { %13603 = vsyncadd [#allocation10], 4294959104  ;;  %v5430_v62 = vlaneseq  ;;  %v13658_v63 = vmov 1983009808   ;;  %v5440_v28 = vld [vmem:[#allocation2 + $0x8] sm:$0xff]  ;;  %v5442_v29 = vld [vmem:[#allocation2 + $0x18] sm:$0xff] }
 0x352   :  { %v5428_v0 = vunpack.c.l.s4 %v13658_v63  ;;  %v5439_v30 = vld [vmem:[#allocation2] sm:$0xff]  ;;  %5503 = vmatprep.subr.bf16.mxu0 %v5440_v28  ;;  %5544 = vmatprep.subr.bf16.mxu1 %v5442_v29  ;;  %v5441_v32 = vld [vmem:[#allocation2 + $0x10] sm:$0xff]  ;;  %v5444_v33 = vld [vmem:[#allocation2 + $0x28] sm:$0xff]  ;;  %vm5933_vm0 = vcmask 58368   ;;  %vm5964_vm1 = vcmask 64512  }
 0x353   :  { %v15157_v1 = vshrl.u32 %v5430_v62, 7  ;;  %v5446_v34 = vld [vmem:[#allocation2 + $0x38] sm:$0xff]  ;;  %5504 = vmatpush1.bf16.msra.mxu0 %v5439_v30  ;;  %5545 = vmatpush1.bf16.msra.mxu1 %v5441_v32  ;;  %v5443_v36 = vld [vmem:[#allocation2 + $0x20] sm:$0xff]  ;;  %v5445_v37 = vld [vmem:[#allocation2 + $0x30] sm:$0xff] }
 0x354   :  { %v5429_v26 = vunpack.c.0.s8 %v5428_v0  ;;  %5505 = vmatprep.subr.bf16.mxu0 %v5444_v33  ;;  %5546 = vmatprep.subr.bf16.mxu1 %v5446_v34  ;;  %v5448_v38 = vld [vmem:[#allocation2 + $0x48] sm:$0xff]  ;;  %v5450_v39 = vld [vmem:[#allocation2 + $0x58] sm:$0xff]  ;;  %v5447_v41 = vld [vmem:[#allocation2 + $0x40] sm:$0xff] }
 0x355   :  { %v5449_v42 = vld [vmem:[#allocation2 + $0x50] sm:$0xff]  ;;  %v5452_v43 = vld [vmem:[#allocation2 + $0x68] sm:$0xff]  ;;  %v5454_v44 = vld [vmem:[#allocation2 + $0x78] sm:$0xff] }
 0x356   :  { %v15160_v27 = vsub.s32 %v5429_v26, %v15157_v1  ;;  %v5451_v45 = vld [vmem:[#allocation2 + $0x60] sm:$0xff]  ;;  %v5453_v46 = vld [vmem:[#allocation2 + $0x70] sm:$0xff]  ;;  %v5456_v47 = vld [vmem:[#allocation2 + $0x88] sm:$0xff] }
 0x357   :  { %5506 = vmatpush1.bf16.msra.mxu0 %v5443_v36  ;;  %5547 = vmatpush1.bf16.msra.mxu1 %v5445_v37  ;;  %v5458_v48 = vld [vmem:[#allocation2 + $0x98] sm:$0xff]  ;;  %v5455_v49 = vld [vmem:[#allocation2 + $0x80] sm:$0xff]  ;;  %v5457_v50 = vld [vmem:[#allocation2 + $0x90] sm:$0xff] }
 0x358   :  { %16604 = vst [vmem:[#allocation51_spill] sm:$0xff] %v15160_v27  ;;  %v15163_v31 = vrot.slane %v5421_v61, %v15160_v27  ;;  %5507 = vmatprep.subr.bf16.mxu0 %v5448_v38  ;;  %5548 = vmatprep.subr.bf16.mxu1 %v5450_v39  ;;  %v5460_v51 = vld [vmem:[#allocation2 + $0xa8] sm:$0xff]  ;;  %v5462_v52 = vld [vmem:[#allocation2 + $0xb8] sm:$0xff]  ;;  %v5459_v53 = vld [vmem:[#allocation2 + $0xa0] sm:$0xff] }
 0x359   :  { %v5461_v54 = vld [vmem:[#allocation2 + $0xb0] sm:$0xff]  ;;  %v5464_v55 = vld [vmem:[#allocation2 + $0xc8] sm:$0xff]  ;;  %v5466_v56 = vld [vmem:[#allocation2 + $0xd8] sm:$0xff] }
 0x35a   :  { %v5434_v35 = vcombine.high %v15163_v31, %v15163_v31  ;;  %v5463_v57 = vld [vmem:[#allocation2 + $0xc0] sm:$0xff]  ;;  %v5465_v58 = vld [vmem:[#allocation2 + $0xd0] sm:$0xff]  ;;  %v5468_v59 = vld [vmem:[#allocation2 + $0xe8] sm:$0xff] }
 0x35b   :  { %5508 = vmatpush1.bf16.msra.mxu0 %v5447_v41  ;;  %5549 = vmatpush1.bf16.msra.mxu1 %v5449_v42  ;;  %v5470_v60 = vld [vmem:[#allocation2 + $0xf8] sm:$0xff]  ;;  %v5467_v61 = vld [vmem:[#allocation2 + $0xe0] sm:$0xff]  ;;  %v5469_v62 = vld [vmem:[#allocation2 + $0xf0] sm:$0xff] }
 0x35c   :  { %v5438_v40 = vpack.c.bf16 %v5434_v35, %v5434_v35  ;;  %5509 = vmatprep.subr.bf16.mxu0 %v5452_v43  ;;  %5550 = vmatprep.subr.bf16.mxu1 %v5454_v44  ;;  %v5472_v63 = vld [vmem:[#allocation2 + $0x108] sm:$0xff]  ;;  %v5474_v0 = vld [vmem:[#allocation2 + $0x118] sm:$0xff]  ;;  %v5471_v26 = vld [vmem:[#allocation2 + $0x100] sm:$0xff] }
 0x35d   :  { %v5473_v28 = vld [vmem:[#allocation2 + $0x110] sm:$0xff]  ;;  %v5476_v29 = vld [vmem:[#allocation2 + $0x128] sm:$0xff]  ;;  %v5478_v30 = vld [vmem:[#allocation2 + $0x138] sm:$0xff] }
 0x35e   :  { %5535 = vmatprep.mubr.bf16.mxu0 %v5438_v40  ;;  %5576 = vmatprep.mubr.bf16.mxu1 %v5438_v40  ;;  %v5475_v32 = vld [vmem:[#allocation2 + $0x120] sm:$0xff]  ;;  %v5477_v33 = vld [vmem:[#allocation2 + $0x130] sm:$0xff]  ;;  %v5480_v34 = vld [vmem:[#allocation2 + $0x148] sm:$0xff] }
 0x35f   :  { %5510 = vmatpush1.bf16.msra.mxu0 %v5451_v45  ;;  %5551 = vmatpush1.bf16.msra.mxu1 %v5453_v46  ;;  %v5482_v35 = vld [vmem:[#allocation2 + $0x158] sm:$0xff]  ;;  %v5479_v36 = vld [vmem:[#allocation2 + $0x140] sm:$0xff]  ;;  %v5481_v37 = vld [vmem:[#allocation2 + $0x150] sm:$0xff] }
 0x360   :  { %5511 = vmatprep.subr.bf16.mxu0 %v5456_v47  ;;  %5552 = vmatprep.subr.bf16.mxu1 %v5458_v48  ;;  %v5484_v38 = vld [vmem:[#allocation2 + $0x168] sm:$0xff]  ;;  %v5486_v39 = vld [vmem:[#allocation2 + $0x178] sm:$0xff]  ;;  %v5483_v40 = vld [vmem:[#allocation2 + $0x160] sm:$0xff] }
 0x361   :  { %v5485_v41 = vld [vmem:[#allocation2 + $0x170] sm:$0xff]  ;;  %v5488_v42 = vld [vmem:[#allocation2 + $0x188] sm:$0xff]  ;;  %v5490_v43 = vld [vmem:[#allocation2 + $0x198] sm:$0xff] }
 0x362   :  { %v5487_v44 = vld [vmem:[#allocation2 + $0x180] sm:$0xff]  ;;  %v5489_v45 = vld [vmem:[#allocation2 + $0x190] sm:$0xff]  ;;  %v5492_v46 = vld [vmem:[#allocation2 + $0x1a8] sm:$0xff] }
 0x363   :  { %5512 = vmatpush1.bf16.msra.mxu0 %v5455_v49  ;;  %5553 = vmatpush1.bf16.msra.mxu1 %v5457_v50  ;;  %v5494_v47 = vld [vmem:[#allocation2 + $0x1b8] sm:$0xff]  ;;  %v5491_v48 = vld [vmem:[#allocation2 + $0x1a0] sm:$0xff]  ;;  %v5493_v49 = vld [vmem:[#allocation2 + $0x1b0] sm:$0xff] }
 0x364   :  { %5513 = vmatprep.subr.bf16.mxu0 %v5460_v51  ;;  %5554 = vmatprep.subr.bf16.mxu1 %v5462_v52  ;;  %v5496_v50 = vld [vmem:[#allocation2 + $0x1c8] sm:$0xff]  ;;  %v5498_v51 = vld [vmem:[#allocation2 + $0x1d8] sm:$0xff]  ;;  %v5495_v52 = vld [vmem:[#allocation2 + $0x1c0] sm:$0xff] }
 0x365   :  { %v5599_v24 = vld [vmem:[%s13686_s17 + $0x70] sm:$0xff]  ;;  %v5632_v23 = vld [vmem:[%s13686_s17 + $0x178] sm:$0xff] }
 0x367   :  { %5514 = vmatpush1.bf16.msra.mxu0 %v5459_v53  ;;  %5555 = vmatpush1.bf16.msra.mxu1 %v5461_v54  ;;  %v5497_v53 = vld [vmem:[#allocation2 + $0x1d0] sm:$0xff]  ;;  %v5500_v54 = vld [vmem:[#allocation2 + $0x1e8] sm:$0xff] }
 0x368   :  { %5515 = vmatprep.subr.bf16.mxu0 %v5464_v55  ;;  %5556 = vmatprep.subr.bf16.mxu1 %v5466_v56  ;;  %v5502_v55 = vld [vmem:[#allocation2 + $0x1f8] sm:$0xff]  ;;  %v5601_v56 = vld [vmem:[%s13686_s17 + $0x80] sm:$0xff] }
 0x36b   :  { %5516 = vmatpush1.bf16.msra.mxu0 %v5463_v57  ;;  %5557 = vmatpush1.bf16.msra.mxu1 %v5465_v58  ;;  %v5602_v57 = vld [vmem:[%s13686_s17 + $0x88] sm:$0xff]  ;;  %v5633_v58 = vld [vmem:[%s13686_s17 + $0x180] sm:$0xff] }
 0x36c   :  { %5517 = vmatprep.subr.bf16.mxu0 %v5468_v59  ;;  %5558 = vmatprep.subr.bf16.mxu1 %v5470_v60  ;;  %v5634_v59 = vld [vmem:[%s13686_s17 + $0x188] sm:$0xff]  ;;  %v5499_v60 = vld [vmem:[#allocation2 + $0x1e0] sm:$0xff] }
 0x36f   :  { %5518 = vmatpush1.bf16.msra.mxu0 %v5467_v61  ;;  %5559 = vmatpush1.bf16.msra.mxu1 %v5469_v62  ;;  %v5501_v61 = vld [vmem:[#allocation2 + $0x1f0] sm:$0xff]  ;;  %v5585_v62 = vld [vmem:[%s13686_s17] sm:$0xff] }
 0x370   :  { %5519 = vmatprep.subr.bf16.mxu0 %v5472_v63  ;;  %5560 = vmatprep.subr.bf16.mxu1 %v5474_v0  ;;  %v5586_v63 = vld [vmem:[%s13686_s17 + $0x8] sm:$0xff]  ;;  %v15173_v0 = vpack.c.bf16 %v5602_v57, %v5601_v56  ;;  %v5608_v56 = vld [vmem:[%s13686_s17 + $0xb8] sm:$0xff]  ;;  %v5639_v57 = vld [vmem:[%s13686_s17 + $0x1b0] sm:$0xff] }
 0x373   :  { %5520 = vmatpush1.bf16.msra.mxu0 %v5471_v26  ;;  %5561 = vmatpush1.bf16.msra.mxu1 %v5473_v28  ;;  %v15175_v26 = vpack.c.bf16 %v5634_v59, %v5633_v58  ;;  %v5617_v28 = vld [vmem:[%s13686_s17 + $0x100] sm:$0xff]  ;;  %v5640_v58 = vld [vmem:[%s13686_s17 + $0x1b8] sm:$0xff] }
 0x374   :  { %5521 = vmatprep.subr.bf16.mxu0 %v5476_v29  ;;  %5562 = vmatprep.subr.bf16.mxu1 %v5478_v30  ;;  %v5618_v29 = vld [vmem:[%s13686_s17 + $0x108] sm:$0xff]  ;;  %v5603_v30 = vld [vmem:[%s13686_s17 + $0x90] sm:$0xff] }
 0x377   :  { %5522 = vmatpush1.bf16.msra.mxu0 %v5475_v32  ;;  %5563 = vmatpush1.bf16.msra.mxu1 %v5477_v33  ;;  %v5604_v32 = vld [vmem:[%s13686_s17 + $0x98] sm:$0xff]  ;;  %v5635_v33 = vld [vmem:[%s13686_s17 + $0x190] sm:$0xff] }
 0x378   :  { %5523 = vmatprep.subr.bf16.mxu0 %v5480_v34  ;;  %5564 = vmatprep.subr.bf16.mxu1 %v5482_v35  ;;  %v5636_v34 = vld [vmem:[%s13686_s17 + $0x198] sm:$0xff]  ;;  %v5437_v35 = vpack.c.bf16 %v15163_v31, %v15163_v31  ;;  %v5619_v31 = vld [vmem:[%s13686_s17 + $0x110] sm:$0xff] }
 0x37b   :  { %5524 = vmatpush1.bf16.msra.mxu0 %v5479_v36  ;;  %5565 = vmatpush1.bf16.msra.mxu1 %v5481_v37  ;;  %v15185_v36 = vpack.c.bf16 %v5586_v63, %v5585_v62  ;;  %v15187_v37 = vpack.c.bf16 %v5618_v29, %v5617_v28  ;;  %v5592_v62 = vld [vmem:[%s13686_s17 + $0x38] sm:$0xff]  ;;  %v15235_v28 = vpack.c.bf16 %v5640_v58, %v5639_v57  ;;  %v5623_v29 = vld [vmem:[%s13686_s17 + $0x130] sm:$0xff] }
 0x37c   :  { %5525 = vmatprep.subr.bf16.mxu0 %v5484_v38  ;;  %5566 = vmatprep.subr.bf16.mxu1 %v5486_v39  ;;  %v5587_v38 = vld [vmem:[%s13686_s17 + $0x10] sm:$0xff]  ;;  %v5588_v39 = vld [vmem:[%s13686_s17 + $0x18] sm:$0xff] }
 0x37d   :  { %v5595_v57 = vld [vmem:[%s13686_s17 + $0x50] sm:$0xff]  ;;  %v5596_v58 = vld [vmem:[%s13686_s17 + $0x58] sm:$0xff] }
 0x37f   :  { %5526 = vmatpush1.bf16.msra.mxu0 %v5483_v40  ;;  %5567 = vmatpush1.bf16.msra.mxu1 %v5485_v41  ;;  %v15193_v40 = vpack.c.bf16 %v5604_v32, %v5603_v30  ;;  %v15195_v41 = vpack.c.bf16 %v5636_v34, %v5635_v33  ;;  %v5624_v30 = vld [vmem:[%s13686_s17 + $0x138] sm:$0xff]  ;;  %v5609_v32 = vld [vmem:[%s13686_s17 + $0xc0] sm:$0xff]  ;;  %v5610_v33 = vld [vmem:[%s13686_s17 + $0xc8] sm:$0xff] }
 0x380   :  { %5527 = vmatprep.subr.bf16.mxu0 %v5488_v42  ;;  %5568 = vmatprep.subr.bf16.mxu1 %v5490_v43  ;;  %v5620_v42 = vld [vmem:[%s13686_s17 + $0x118] sm:$0xff]  ;;  %v5605_v43 = vld [vmem:[%s13686_s17 + $0xa0] sm:$0xff] }
 0x381   :  { %v5641_v34 = vld [vmem:[%s13686_s17 + $0x1c0] sm:$0xff] }
 0x383   :  { %5528 = vmatpush1.bf16.msra.mxu0 %v5487_v44  ;;  %5569 = vmatpush1.bf16.msra.mxu1 %v5489_v45  ;;  %v5606_v44 = vld [vmem:[%s13686_s17 + $0xa8] sm:$0xff]  ;;  %v5637_v45 = vld [vmem:[%s13686_s17 + $0x1a0] sm:$0xff] }
 0x384   :  { %5529 = vmatprep.subr.bf16.mxu0 %v5492_v46  ;;  %5570 = vmatprep.subr.bf16.mxu1 %v5494_v47  ;;  %v5638_v46 = vld [vmem:[%s13686_s17 + $0x1a8] sm:$0xff]  ;;  %v15205_v47 = vpack.c.bf16 %v5588_v39, %v5587_v38  ;;  %v15247_v39 = vpack.c.bf16 %v5624_v30, %v5623_v29  ;;  %v5627_v29 = vld [vmem:[%s13686_s17 + $0x150] sm:$0xff]  ;;  %v5628_v30 = vld [vmem:[%s13686_s17 + $0x158] sm:$0xff] }
 0x387   :  { %5530 = vmatpush1.bf16.msra.mxu0 %v5491_v48  ;;  %5571 = vmatpush1.bf16.msra.mxu1 %v5493_v49  ;;  %v15207_v48 = vpack.c.bf16 %v5620_v42, %v5619_v31  ;;  %v5589_v49 = vld [vmem:[%s13686_s17 + $0x20] sm:$0xff]  ;;  %v5594_v42 = vld [vmem:[%s13686_s17 + $0x48] sm:$0xff] }
 0x388   :  { %5531 = vmatprep.subr.bf16.mxu0 %v5496_v50  ;;  %5572 = vmatprep.subr.bf16.mxu1 %v5498_v51  ;;  %v5590_v50 = vld [vmem:[%s13686_s17 + $0x28] sm:$0xff]  ;;  %v15213_v51 = vpack.c.bf16 %v5606_v44, %v5605_v43  ;;  %v5593_v31 = vld [vmem:[%s13686_s17 + $0x40] sm:$0xff]  ;;  %v15253_v43 = vpack.c.bf16 %v5610_v33, %v5609_v32 }
 0x389   :  { %v15225_v59 = vpack.c.bf16 %v5590_v50, %v5589_v49  ;;  %v5611_v49 = vld [vmem:[%s13686_s17 + $0xd0] sm:$0xff]  ;;  %v5612_v50 = vld [vmem:[%s13686_s17 + $0xd8] sm:$0xff]  ;;  %v5613_v32 = vld [vmem:[%s13686_s17 + $0xe0] sm:$0xff] }
 0x38a   :  { %v5614_v33 = vld [vmem:[%s13686_s17 + $0xe8] sm:$0xff] }
 0x38b   :  { %5532 = vmatpush1.bf16.msra.mxu0 %v5495_v52  ;;  %5573 = vmatpush1.bf16.msra.mxu1 %v5497_v53  ;;  %v15215_v52 = vpack.c.bf16 %v5638_v46, %v5637_v45  ;;  %v5621_v53 = vld [vmem:[%s13686_s17 + $0x120] sm:$0xff]  ;;  %v5626_v46 = vld [vmem:[%s13686_s17 + $0x148] sm:$0xff] }
 0x38c   :  { %5533 = vmatprep.subr.bf16.mxu0 %v5500_v54  ;;  %5574 = vmatprep.subr.bf16.mxu1 %v5502_v55  ;;  %v5622_v54 = vld [vmem:[%s13686_s17 + $0x128] sm:$0xff]  ;;  %v5607_v55 = vld [vmem:[%s13686_s17 + $0xb0] sm:$0xff]  ;;  %v5625_v45 = vld [vmem:[%s13686_s17 + $0x140] sm:$0xff] }
 0x38d   :  { %v15233_v63 = vpack.c.bf16 %v5608_v56, %v5607_v55  ;;  %v15265_v55 = vpack.c.bf16 %v5594_v42, %v5593_v31  ;;  %v15267_v56 = vpack.c.bf16 %v5626_v46, %v5625_v45  ;;  %v15285_v31 = vpack.c.bf16 %v5596_v58, %v5595_v57  ;;  %v5597_v45 = vld [vmem:[%s13686_s17 + $0x60] sm:$0xff]  ;;  %v5598_v46 = vld [vmem:[%s13686_s17 + $0x68] sm:$0xff]  ;;  %v5615_v57 = vld [vmem:[%s13686_s17 + $0xf0] sm:$0xff] }
 0x38e   :  { %v15287_v42 = vpack.c.bf16 %v5628_v30, %v5627_v29  ;;  %v5616_v58 = vld [vmem:[%s13686_s17 + $0xf8] sm:$0xff]  ;;  %v5647_v29 = vld [vmem:[%s13686_s17 + $0x1f0] sm:$0xff]  ;;  %v12737_v27 = vpack.c.bf16 %v5598_v46, %v5597_v45 }
 0x38f   :  { %5534 = vmatpush1.bf16.msra.mxu0 %v5499_v60  ;;  %5575 = vmatpush1.bf16.msra.mxu1 %v5501_v61  ;;  %v15227_v60 = vpack.c.bf16 %v5622_v54, %v5621_v53  ;;  %v5591_v61 = vld [vmem:[%s13686_s17 + $0x30] sm:$0xff]  ;;  %v5644_v54 = vld [vmem:[%s13686_s17 + $0x1d8] sm:$0xff] }
 0x390   :  { %12712 = vmatprep.subr.bf16.mxu0 %v15173_v0  ;;  %12744 = vmatprep.subr.bf16.mxu1 %v15175_v26  ;;  %v15245_v38 = vpack.c.bf16 %v5592_v62, %v5591_v61  ;;  %v5643_v53 = vld [vmem:[%s13686_s17 + $0x1d0] sm:$0xff]  ;;  %v15273_v61 = vpack.c.bf16 %v5612_v50, %v5611_v49  ;;  %v15293_v49 = vpack.c.bf16 %v5614_v33, %v5613_v32  ;;  %v5648_v30 = vld [vmem:[%s13686_s17 + $0x1f8] sm:$0xff] }
 0x391   :  { %v15275_v62 = vpack.c.bf16 %v5644_v54, %v5643_v53  ;;  %v5629_v53 = vld [vmem:[%s13686_s17 + $0x160] sm:$0xff]  ;;  %v5630_v54 = vld [vmem:[%s13686_s17 + $0x168] sm:$0xff]  ;;  %v12739_v32 = vpack.c.bf16 %v5616_v58, %v5615_v57  ;;  %v12771_v33 = vpack.c.bf16 %v5648_v30, %v5647_v29 }
 0x392   :  { %5536 = vmatmul.mubr.bf16.vlgmr.msra.gmra.mrb[0].mxu0 %v5437_v35  ;;  %5577 = vmatmul.mubr.bf16.vlgmr.msra.gmra.mrb[0].mxu1 %v5437_v35  ;;  %v5642_v35 = vld [vmem:[%s13686_s17 + $0x1c8] sm:$0xff]  ;;  %v12769_v25 = vpack.c.bf16 %v5630_v54, %v5629_v53 }
 0x393   :  { %12714 = vmatpush3.bf16.msra.mxu0 %v15185_v36  ;;  %12746 = vmatpush3.bf16.msra.mxu1 %v15187_v37  ;;  %v15255_v44 = vpack.c.bf16 %v5642_v35, %v5641_v34  ;;  %v5645_v34 = vld [vmem:[%s13686_s17 + $0x1e0] sm:$0xff]  ;;  %v5646_v35 = vld [vmem:[%s13686_s17 + $0x1e8] sm:$0xff] }
 0x394   :  { %12716 = vmatprep.subr.bf16.mxu0 %v15193_v40  ;;  %12748 = vmatprep.subr.bf16.mxu1 %v15195_v41  ;;  %v15295_v50 = vpack.c.bf16 %v5646_v35, %v5645_v34  ;;  %v5600_v34 = vld [vmem:[%s13686_s17 + $0x78] sm:$0xff]  ;;  %v5631_v35 = vld [vmem:[%s13686_s17 + $0x170] sm:$0xff] }
 0x395   :  { %v12741_v22 = vpack.c.bf16 %v5600_v34, %v5599_v24  ;;  %v12773_v21 = vpack.c.bf16 %v5632_v23, %v5631_v35 }
 0x397   :  { %12718 = vmatpush3.bf16.msra.mxu0 %v15205_v47  ;;  %12750 = vmatpush3.bf16.msra.mxu1 %v15207_v48 }
 0x398   :  { %12720 = vmatprep.subr.bf16.mxu0 %v15213_v51  ;;  %12752 = vmatprep.subr.bf16.mxu1 %v15215_v52 }
 0x39b   :  { %12722 = vmatpush3.bf16.msra.mxu0 %v15225_v59  ;;  %12754 = vmatpush3.bf16.msra.mxu1 %v15227_v60 }
 0x39c   :  { %12724 = vmatprep.subr.bf16.mxu0 %v15233_v63  ;;  %12756 = vmatprep.subr.bf16.mxu1 %v15235_v28 }
 0x39f   :  { %12726 = vmatpush3.bf16.msra.mxu0 %v15245_v38  ;;  %12758 = vmatpush3.bf16.msra.mxu1 %v15247_v39 }
 0x3a0   :  { %12728 = vmatprep.subr.bf16.mxu0 %v15253_v43  ;;  %12760 = vmatprep.subr.bf16.mxu1 %v15255_v44 }
 0x3a3   :  { %12730 = vmatpush3.bf16.msra.mxu0 %v15265_v55  ;;  %12762 = vmatpush3.bf16.msra.mxu1 %v15267_v56 }
 0x3a4   :  { %12732 = vmatprep.subr.bf16.mxu0 %v15273_v61  ;;  %12764 = vmatprep.subr.bf16.mxu1 %v15275_v62 }
 0x3a7   :  { %12734 = vmatpush3.bf16.msra.mxu0 %v15285_v31  ;;  %12766 = vmatpush3.bf16.msra.mxu1 %v15287_v42 }
 0x3a8   :  { %12736 = vmatprep.subr.bf16.mxu0 %v15293_v49  ;;  %12768 = vmatprep.subr.bf16.mxu1 %v15295_v50 }
 0x3ab   :  { %12738 = vmatpush3.bf16.msra.mxu0 %v12737_v27  ;;  %12770 = vmatpush3.bf16.msra.mxu1 %v12769_v25 }
 0x3ac   :  { %12740 = vmatprep.subr.bf16.mxu0 %v12739_v32  ;;  %12772 = vmatprep.subr.bf16.mxu1 %v12771_v33 }
 0x3af   :  { %12742 = vmatpush3.bf16.msra.mxu0 %v12741_v22  ;;  %12774 = vmatpush3.bf16.msra.mxu1 %v12773_v21 }
 0x3b0   :  { %12776 = vmatprep.subr.bf16.mxu0 %v15173_v0  ;;  %12808 = vmatprep.subr.bf16.mxu1 %v15175_v26 }
 0x465   :  { %v15313_v45 = vpop.f32.mrb[0].mxu0  ;;  %v15315_v46 = vpop.f32.mrb[0].mxu1 }
 0x466   :  { %v15317_v53 = vpop.f32.mrb[1].mxu0  ;;  %v15319_v54 = vpop.f32.mrb[1].mxu1 }
 0x467   :  { %v5790_v24 = vmul.f32 %v15317_v53, %v15317_v53  ;;  %v5792_v23 = vmul.f32 %v15319_v54, %v15319_v54  ;;  %v5541_v57 = vpop.f32.mrb[2].mxu0  ;;  %v5582_v58 = vpop.f32.mrb[2].mxu1  ;;  %5713 = vmatprep.mubr.f32.mxu0 %v15317_v53  ;;  %5783 = vmatprep.mubr.f32.mxu1 %v15319_v54 }
 0x468   :  { %v5542_v0 = vpop.f32.mrb[3].mxu0  ;;  %v5583_v26 = vpop.f32.mrb[3].mxu1  ;;  %5714 = vmatmul.mubr.f32.vlgmr.msra.gmra.mrb[4].mxu0 %v15313_v45  ;;  %5784 = vmatmul.mubr.f32.vlgmr.msra.gmra.mrb[4].mxu1 %v15315_v46 }
 0x469   :  { %12778 = vmatpush3.bf16.msra.mxu0 %v15185_v36  ;;  %12810 = vmatpush3.bf16.msra.mxu1 %v15187_v37  ;;  %v5789_v36 = vmul.f32 %v15313_v45, %v15313_v45  ;;  %v5791_v37 = vmul.f32 %v15315_v46, %v15315_v46 }
 0x46a   :  { %5857 = vmatprep.mubr.f32.mxu0 %v5790_v24  ;;  %5927 = vmatprep.mubr.f32.mxu1 %v5792_v23 }
 0x46b   :  { %12780 = vmatprep.subr.bf16.mxu0 %v15193_v40  ;;  %12812 = vmatprep.subr.bf16.mxu1 %v15195_v41  ;;  %v5961_v40 = vld [vmem:[%s13691_s21 + $0x8] sm:$0xff]  ;;  %v5963_v41 = vld [vmem:[%s13691_s21 + $0x18] sm:$0xff] }
 0x46d   :  { %12782 = vmatpush3.bf16.msra.mxu0 %v15205_v47  ;;  %12814 = vmatpush3.bf16.msra.mxu1 %v15207_v48  ;;  %v5960_v47 = vld [vmem:[%s13691_s21] sm:$0xff]  ;;  %v5962_v48 = vld [vmem:[%s13691_s21 + $0x10] sm:$0xff] }
 0x46e   :  { %12784 = vmatprep.subr.bf16.mxu0 %v15213_v51  ;;  %12816 = vmatprep.subr.bf16.mxu1 %v15215_v52 }
 0x471   :  { %12786 = vmatpush3.bf16.msra.mxu0 %v15225_v59  ;;  %12818 = vmatpush3.bf16.msra.mxu1 %v15227_v60 }
 0x472   :  { %12788 = vmatprep.subr.bf16.mxu0 %v15233_v63  ;;  %12820 = vmatprep.subr.bf16.mxu1 %v15235_v28 }
 0x475   :  { %12790 = vmatpush3.bf16.msra.mxu0 %v15245_v38  ;;  %12822 = vmatpush3.bf16.msra.mxu1 %v15247_v39 }
 0x476   :  { %12792 = vmatprep.subr.bf16.mxu0 %v15253_v43  ;;  %12824 = vmatprep.subr.bf16.mxu1 %v15255_v44 }
 0x479   :  { %12794 = vmatpush3.bf16.msra.mxu0 %v15265_v55  ;;  %12826 = vmatpush3.bf16.msra.mxu1 %v15267_v56 }
 0x47a   :  { %12796 = vmatprep.subr.bf16.mxu0 %v15273_v61  ;;  %12828 = vmatprep.subr.bf16.mxu1 %v15275_v62 }
 0x47d   :  { %12798 = vmatpush3.bf16.msra.mxu0 %v15285_v31  ;;  %12830 = vmatpush3.bf16.msra.mxu1 %v15287_v42 }
 0x47e   :  { %12800 = vmatprep.subr.bf16.mxu0 %v15293_v49  ;;  %12832 = vmatprep.subr.bf16.mxu1 %v15295_v50 }
 0x481   :  { %12802 = vmatpush3.bf16.msra.mxu0 %v12737_v27  ;;  %12834 = vmatpush3.bf16.msra.mxu1 %v12769_v25  ;;  %v16568_v25 = vmov 0.0  }
 0x482   :  { %12804 = vmatprep.subr.bf16.mxu0 %v12739_v32  ;;  %12836 = vmatprep.subr.bf16.mxu1 %v12771_v33 }
 0x485   :  { %12806 = vmatpush3.bf16.msra.mxu0 %v12741_v22  ;;  %12838 = vmatpush3.bf16.msra.mxu1 %v12773_v21 }
 0x486   :  { %5968 = vmatprep.subr.mxu0 %v5961_v40  ;;  %6039 = vmatprep.subr.mxu1 %v5963_v41 }
 0x488   :  { %5858 = vmatmul.mubr.f32.vlgmr.msra.gmra.mrb[6].mxu0 %v5789_v36  ;;  %5928 = vmatmul.mubr.f32.vlgmr.msra.gmra.mrb[6].mxu1 %v5791_v37  ;;  %v5953_v37 = vld [vmem:[%s13696_s25] sm:$0x1] }
 0x489   :  { %5969 = vmatpush1.msra.mxu0 %v5960_v47  ;;  %6040 = vmatpush1.msra.mxu1 %v5962_v48 }
 0x48a   :  { %6032 = vmatprep.mubr.f32.mxu0 %v16568_v25  ;;  %6103 = vmatprep.mubr.f32.mxu1 %v16568_v25 }
 0x48b   :  { %6133 = vmatprep.subr.mxu0 %v5961_v40  ;;  %6204 = vmatprep.subr.mxu1 %v5963_v41 }
 0x53b   :  { %v11814_v21 = vpop.f32.mrb[4].mxu0  ;;  %v11849_v22 = vpop.f32.mrb[4].mxu1 }
 0x53c   :  { %v11815_v27 = vpop.f32.mrb[5].mxu0  ;;  %v11850_v51 = vpop.f32.mrb[5].mxu1 }
 0x53d   :  { %v11816_v52 = vadd.f32 %v11815_v27, %v11814_v21  ;;  %v11851_v59 = vadd.f32 %v11850_v51, %v11849_v22  ;;  %v5957_v21 = vld [vmem:[%s13701_s29] sm:$0x1]  ;;  %v15374_v51 = vsub.s32 0, %v15157_v1 }
 0x53f   :  { %v5786_v60 = vadd.f32 %v11851_v59, %v11816_v52  ;;  %16605 = vst [vmem:[#allocation52_spill] sm:$0xff] %v15374_v51 }
 0x541   :  { %v5934_v63 = vsel %vm5933_vm0, %v5786_v60, 0.0 }
 0x542   :  { %v5935_v28 = vrot.slane %v5934_v63, 4 }
 0x544   :  { %v5936_v38 = vadd.f32 %v5935_v28, %v5934_v63 }
 0x546   :  { %v5937_v39 = vrot.slane %v5936_v38, 2 }
 0x548   :  { %v5938_v31 = vadd.f32 %v5937_v39, %v5936_v38 }
 0x54a   :  { %v5939_v50 = vrot.slane %v5938_v31, 1 }
 0x54c   :  { %v5940_v32 = vadd.f32 %v5939_v50, %v5938_v31 }
 0x54e   :  { %v5941_v35 = vmul.f32 0.0078125, %v5940_v32 }
 0x550   :  { %v5950_v57 = vmul.f32 %v5941_v35, %v5941_v35 }
 0x55b   :  { %v11884_v43 = vpop.f32.mrb[6].mxu0  ;;  %v11919_v44 = vpop.f32.mrb[6].mxu1 }
 0x55c   :  { %v11885_v55 = vpop.f32.mrb[7].mxu0  ;;  %v11920_v56 = vpop.f32.mrb[7].mxu1 }
 0x55d   :  { %v11886_v61 = vadd.f32 %v11885_v55, %v11884_v43  ;;  %v11921_v62 = vadd.f32 %v11920_v56, %v11919_v44 }
 0x55f   :  { %v5930_v42 = vadd.f32 %v11921_v62, %v11886_v61 }
 0x561   :  { %v5942_v49 = vsel %vm5933_vm0, %v5930_v42, 0.0 }
 0x562   :  { %v5943_v29 = vrot.slane %v5942_v49, 4 }
 0x564   :  { %v5944_v30 = vadd.f32 %v5943_v29, %v5942_v49 }
 0x566   :  { %v5945_v33 = vrot.slane %v5944_v30, 2 }
 0x568   :  { %v5946_v34 = vadd.f32 %v5945_v33, %v5944_v30 }
 0x56a   :  { %v5947_v24 = vrot.slane %v5946_v34, 1 }
 0x56c   :  { %v5948_v23 = vadd.f32 %v5947_v24, %v5946_v34 }
 0x56e   :  { %v5949_v58 = vmul.f32 0.0078125, %v5948_v23 }
 0x570   :  { %v5951_v0 = vsub.f32 %v5949_v58, %v5950_v57 }
 0x572   :  { %v5952_v26 = vmax.f32 %v5951_v0, 0.0 }
 0x574   :  { %v5954_v36 = vadd.f32 1e-05, %v5952_v26 }
 0x576   :  { %13584 = vrsqrt.f32 %v5954_v36 }
 0x580   :  { %v13585_v40 = vpop.eup %13584 }
 0x581   :  { %v5956_v41 = vmul.f32 %v13585_v40, %v5953_v37 }
 0x583   :  { %11737 = vmatmul.mubr.msk.f32.vlgmr.msra.gmra.mrb[8].mxu0 %vm5964_vm1, %v5956_v41  ;;  %11738 = vmatmul.mubr.msk.f32.vlgmr.msra.gmra.mrb[8].mxu1 %vm5964_vm1, %v5956_v41  ;;  %v5958_v22 = vmul.f32 %v5956_v41, %v5941_v35 }
 0x584   :  { %6134 = vmatpush1.msra.mxu0 %v5960_v47  ;;  %6205 = vmatpush1.msra.mxu1 %v5962_v48 }
 0x585   :  { %6197 = vmatprep.mubr.f32.mxu0 %v16568_v25  ;;  %6268 = vmatprep.mubr.f32.mxu1 %v16568_v25  ;;  %v5959_v27 = vsub.f32 %v5957_v21, %v5958_v22 }
 0x587   :  { %11739 = vmatmul.mubr.msk.f32.vlgmr.msra.gmra.mrb[10].mxu0 %vm5964_vm1, %v5959_v27  ;;  %11740 = vmatmul.mubr.msk.f32.vlgmr.msra.gmra.mrb[10].mxu1 %vm5964_vm1, %v5959_v27 }
 0x656   :  { %v6034_v52 = vpop.f32.mrb[8].mxu0  ;;  %v6105_v59 = vpop.f32.mrb[8].mxu1 }
 0x657   :  { %v6113_v60 = vrot.slane %v6034_v52, %v15374_v51  ;;  %v6121_v63 = vrot.slane %v6105_v59, %v15374_v51  ;;  %v6036_v47 = vpop.f32.mrb[9].mxu0  ;;  %v6107_v48 = vpop.f32.mrb[9].mxu1 }
 0x658   :  { %v6117_v28 = vrot.slane %v6036_v47, %v15374_v51  ;;  %v6125_v38 = vrot.slane %v6107_v48, %v15374_v51 }
 0x659   :  { %v6126_v39 = vmul.f32 %v6113_v60, %v15313_v45  ;;  %v6128_v43 = vmul.f32 %v6121_v63, %v15315_v46 }
 0x65a   :  { %v6127_v44 = vmul.f32 %v6117_v28, %v15317_v53  ;;  %v6129_v1 = vmul.f32 %v6125_v38, %v15319_v54  ;;  %v6199_v55 = vpop.f32.mrb[10].mxu0  ;;  %v6270_v56 = vpop.f32.mrb[10].mxu1 }
 0x65b   :  { %v6278_v61 = vrot.slane %v6199_v55, %v15374_v51  ;;  %v6286_v62 = vrot.slane %v6270_v56, %v15374_v51  ;;  %v6201_v31 = vpop.f32.mrb[11].mxu0  ;;  %v6272_v42 = vpop.f32.mrb[11].mxu1 }
 0x65c   :  { %v6282_v49 = vrot.slane %v6201_v31, %v15374_v51  ;;  %v6290_v50 = vrot.slane %v6272_v42, %v15374_v51 }
 0x65d   :  { %v6291_v29 = vadd.f32 %v6278_v61, %v6126_v39  ;;  %v6293_v45 = vadd.f32 %v6286_v62, %v6128_v43 }
 0x65e   :  { %v6292_v30 = vadd.f32 %v6282_v49, %v6127_v44  ;;  %v6294_v46 = vadd.f32 %v6290_v50, %v6129_v1 }
 0x65f   :  { %vm6295_vm2 = vcmp.gt.f32.partialorder %v6291_v29, 0.0  ;;  %v6299_v53 = vmul.f32 0.01, %v6291_v29  ;;  %vm6297_vm3 = vcmp.gt.f32.partialorder %v6293_v45, 0.0  ;;  %v6301_v54 = vmul.f32 0.01, %v6293_v45 }
 0x660   :  { %vm6296_vm4 = vcmp.gt.f32.partialorder %v6292_v30, 0.0  ;;  %v6300_v32 = vmul.f32 0.01, %v6292_v30  ;;  %vm6298_vm5 = vcmp.gt.f32.partialorder %v6294_v46, 0.0  ;;  %v6302_v33 = vmul.f32 0.01, %v6294_v46 }
 0x661   :  { %v15388_v34 = vsel %vm6295_vm2, %v6291_v29, %v6299_v53  ;;  %v15390_v35 = vsel %vm6297_vm3, %v6293_v45, %v6301_v54 }
 0x662   :  { %v6304_v24 = vsel %vm6296_vm4, %v6292_v30, %v6300_v32  ;;  %v15392_v23 = vsel %vm6298_vm5, %v6294_v46, %v6302_v33 }
 0x663   :  { %13604 = dma.done.wait [#allocation10 + $0x1], 8192 }
 0x664   :  { %13605 = vsyncadd [#allocation10 + $0x1], 4294959104  ;;  %v6312_v57 = vpack.c.bf16 %v6304_v24, %v6304_v24  ;;  %v6316_v58 = vld [vmem:[#allocation3 + $0x8] sm:$0xff]  ;;  %v6315_v0 = vld [vmem:[#allocation3] sm:$0xff]  ;;  %vm6635_vm6 = vcmask 123904   ;;  %vm6666_vm7 = vcmask 130048  }
 0x665   :  { %v6318_v26 = vld [vmem:[#allocation3 + $0x18] sm:$0xff]  ;;  %6379 = vmatprep.subr.bf16.mxu0 %v6316_v58  ;;  %v6317_v36 = vld [vmem:[#allocation3 + $0x10] sm:$0xff]  ;;  %v6320_v37 = vld [vmem:[#allocation3 + $0x28] sm:$0xff] }
 0x666   :  { %6411 = vmatprep.mubr.bf16.mxu0 %v6312_v57  ;;  %6380 = vmatpush1.bf16.msra.mxu0 %v6315_v0  ;;  %v6319_v40 = vld [vmem:[#allocation3 + $0x20] sm:$0xff]  ;;  %v6322_v41 = vld [vmem:[#allocation3 + $0x38] sm:$0xff]  ;;  %v6321_v21 = vld [vmem:[#allocation3 + $0x30] sm:$0xff] }
 0x667   :  { %6381 = vmatprep.subr.bf16.mxu0 %v6318_v26  ;;  %v6324_v22 = vld [vmem:[#allocation3 + $0x48] sm:$0xff]  ;;  %v6323_v27 = vld [vmem:[#allocation3 + $0x40] sm:$0xff]  ;;  %v6326_v52 = vld [vmem:[#allocation3 + $0x58] sm:$0xff] }
 0x668   :  { %v6325_v59 = vld [vmem:[#allocation3 + $0x50] sm:$0xff]  ;;  %v6328_v60 = vld [vmem:[#allocation3 + $0x68] sm:$0xff]  ;;  %v6327_v63 = vld [vmem:[#allocation3 + $0x60] sm:$0xff] }
 0x669   :  { %v6477_v47 = vld [vmem:[%s13711_s8 + $0x80] sm:$0xff]  ;;  %v6478_v48 = vld [vmem:[%s13711_s8 + $0x88] sm:$0xff]  ;;  %v6479_v43 = vld [vmem:[%s13711_s8 + $0x90] sm:$0xff] }
 0x66a   :  { %6382 = vmatpush1.bf16.msra.mxu0 %v6317_v36  ;;  %v15396_v28 = vpack.c.bf16 %v6478_v48, %v6477_v47  ;;  %v6461_v38 = vld [vmem:[%s13711_s8] sm:$0xff]  ;;  %v6462_v39 = vld [vmem:[%s13711_s8 + $0x8] sm:$0xff]  ;;  %v6480_v1 = vld [vmem:[%s13711_s8 + $0x98] sm:$0xff] }
 0x66b   :  { %6383 = vmatprep.subr.bf16.mxu0 %v6320_v37  ;;  %v15401_v44 = vpack.c.bf16 %v6462_v39, %v6461_v38  ;;  %v6463_v55 = vld [vmem:[%s13711_s8 + $0x10] sm:$0xff]  ;;  %v6464_v56 = vld [vmem:[%s13711_s8 + $0x18] sm:$0xff]  ;;  %v15407_v62 = vpack.c.bf16 %v6480_v1, %v6479_v43  ;;  %v6481_v31 = vld [vmem:[%s13711_s8 + $0xa0] sm:$0xff] }
 0x66c   :  { %v6330_v61 = vld [vmem:[#allocation3 + $0x78] sm:$0xff]  ;;  %12840 = vmatprep.subr.bf16.mxu1 %v15396_v28  ;;  %v6482_v42 = vld [vmem:[%s13711_s8 + $0xa8] sm:$0xff]  ;;  %v15412_v49 = vpack.c.bf16 %v6464_v56, %v6463_v55  ;;  %v6465_v29 = vld [vmem:[%s13711_s8 + $0x20] sm:$0xff] }
 0x66d   :  { %12842 = vmatpush3.bf16.msra.mxu1 %v15401_v44  ;;  %v15415_v50 = vpack.c.bf16 %v6482_v42, %v6481_v31  ;;  %v6466_v45 = vld [vmem:[%s13711_s8 + $0x28] sm:$0xff]  ;;  %v6329_v30 = vld [vmem:[#allocation3 + $0x70] sm:$0xff]  ;;  %v6484_v53 = vld [vmem:[%s13711_s8 + $0xb8] sm:$0xff] }
 0x66e   :  { %6384 = vmatpush1.bf16.msra.mxu0 %v6319_v40  ;;  %12844 = vmatprep.subr.bf16.mxu1 %v15407_v62  ;;  %v6483_v46 = vld [vmem:[%s13711_s8 + $0xb0] sm:$0xff]  ;;  %v6332_v54 = vld [vmem:[#allocation3 + $0x88] sm:$0xff]  ;;  %v15422_v32 = vpack.c.bf16 %v6466_v45, %v6465_v29  ;;  %v6468_v57 = vld [vmem:[%s13711_s8 + $0x38] sm:$0xff] }
 0x66f   :  { %6385 = vmatprep.subr.bf16.mxu0 %v6322_v41  ;;  %v15425_v33 = vpack.c.bf16 %v6484_v53, %v6483_v46  ;;  %v6467_v24 = vld [vmem:[%s13711_s8 + $0x30] sm:$0xff]  ;;  %v6331_v58 = vld [vmem:[#allocation3 + $0x80] sm:$0xff]  ;;  %v6486_v26 = vld [vmem:[%s13711_s8 + $0xc8] sm:$0xff] }
 0x670   :  { %v6485_v0 = vld [vmem:[%s13711_s8 + $0xc0] sm:$0xff]  ;;  %v6334_v36 = vld [vmem:[#allocation3 + $0x98] sm:$0xff]  ;;  %v15432_v37 = vpack.c.bf16 %v6468_v57, %v6467_v24  ;;  %v6471_v47 = vld [vmem:[%s13711_s8 + $0x50] sm:$0xff] }
 0x671   :  { %12846 = vmatpush3.bf16.msra.mxu1 %v15412_v49  ;;  %v15435_v40 = vpack.c.bf16 %v6486_v26, %v6485_v0  ;;  %v6469_v41 = vld [vmem:[%s13711_s8 + $0x40] sm:$0xff]  ;;  %v6472_v48 = vld [vmem:[%s13711_s8 + $0x58] sm:$0xff]  ;;  %v6490_v43 = vld [vmem:[%s13711_s8 + $0xe8] sm:$0xff] }
 0x672   :  { %6386 = vmatpush1.bf16.msra.mxu0 %v6321_v21  ;;  %12848 = vmatprep.subr.bf16.mxu1 %v15415_v50  ;;  %v6470_v21 = vld [vmem:[%s13711_s8 + $0x48] sm:$0xff]  ;;  %v6335_v38 = vld [vmem:[#allocation3 + $0xa0] sm:$0xff]  ;;  %v6338_v1 = vld [vmem:[#allocation3 + $0xb8] sm:$0xff]  ;;  %v15452_v55 = vpack.c.bf16 %v6472_v48, %v6471_v47 }
 0x673   :  { %6387 = vmatprep.subr.bf16.mxu0 %v6324_v22  ;;  %v6333_v22 = vld [vmem:[#allocation3 + $0x90] sm:$0xff]  ;;  %v6489_v39 = vld [vmem:[%s13711_s8 + $0xe0] sm:$0xff]  ;;  %v6474_v31 = vld [vmem:[%s13711_s8 + $0x68] sm:$0xff] }
 0x674   :  { %v15455_v56 = vpack.c.bf16 %v6490_v43, %v6489_v39  ;;  %v6337_v42 = vld [vmem:[#allocation3 + $0xb0] sm:$0xff]  ;;  %v6492_v45 = vld [vmem:[%s13711_s8 + $0xf8] sm:$0xff]  ;;  %v6339_v57 = vld [vmem:[#allocation3 + $0xc0] sm:$0xff] }
 0x675   :  { %12850 = vmatpush3.bf16.msra.mxu1 %v15422_v32  ;;  %v6491_v29 = vld [vmem:[%s13711_s8 + $0xf0] sm:$0xff]  ;;  %v6476_v24 = vld [vmem:[%s13711_s8 + $0x78] sm:$0xff]  ;;  %v6347_v47 = vld [vmem:[#allocation3 + $0x100] sm:$0xff] }
 0x676   :  { %6388 = vmatpush1.bf16.msra.mxu0 %v6323_v27  ;;  %12852 = vmatprep.subr.bf16.mxu1 %v15425_v33  ;;  %v6487_v27 = vld [vmem:[%s13711_s8 + $0xd0] sm:$0xff]  ;;  %v15465_v53 = vpack.c.bf16 %v6492_v45, %v6491_v29  ;;  %v6350_v48 = vld [vmem:[#allocation3 + $0x118] sm:$0xff]  ;;  %v6351_v39 = vld [vmem:[#allocation3 + $0x120] sm:$0xff] }
 0x677   :  { %6389 = vmatprep.subr.bf16.mxu0 %v6326_v52  ;;  %v6488_v52 = vld [vmem:[%s13711_s8 + $0xd8] sm:$0xff]  ;;  %v6341_v26 = vld [vmem:[#allocation3 + $0xd0] sm:$0xff]  ;;  %v6359_v29 = vld [vmem:[#allocation3 + $0x160] sm:$0xff] }
 0x678   :  { %v6354_v43 = vld [vmem:[#allocation3 + $0x138] sm:$0xff] }
 0x679   :  { %12854 = vmatpush3.bf16.msra.mxu1 %v15432_v37  ;;  %v6362_v45 = vld [vmem:[#allocation3 + $0x178] sm:$0xff] }
 0x67a   :  { %6390 = vmatpush1.bf16.msra.mxu0 %v6325_v59  ;;  %v6336_v59 = vld [vmem:[#allocation3 + $0xa8] sm:$0xff]  ;;  %12856 = vmatprep.subr.bf16.mxu1 %v15435_v40 }
 0x67b   :  { %6391 = vmatprep.subr.bf16.mxu0 %v6328_v60  ;;  %v15442_v60 = vpack.c.bf16 %v6470_v21, %v6469_v41  ;;  %v6343_v41 = vld [vmem:[#allocation3 + $0xe0] sm:$0xff]  ;;  %v6346_v21 = vld [vmem:[#allocation3 + $0xf8] sm:$0xff] }
 0x67d   :  { %12858 = vmatpush3.bf16.msra.mxu1 %v15442_v60 }
 0x67e   :  { %6392 = vmatpush1.bf16.msra.mxu0 %v6327_v63  ;;  %v15445_v63 = vpack.c.bf16 %v6488_v52, %v6487_v27  ;;  %v6348_v27 = vld [vmem:[#allocation3 + $0x108] sm:$0xff]  ;;  %v6311_v52 = vpack.c.bf16 %v15388_v34, %v15388_v34  ;;  %v6353_v34 = vld [vmem:[#allocation3 + $0x130] sm:$0xff] }
 0x67f   :  { %6393 = vmatprep.subr.bf16.mxu0 %v6330_v61  ;;  %v6473_v61 = vld [vmem:[%s13711_s8 + $0x60] sm:$0xff] }
 0x680   :  { %12860 = vmatprep.subr.bf16.mxu1 %v15445_v63  ;;  %v15462_v46 = vpack.c.bf16 %v6474_v31, %v6473_v61  ;;  %v6358_v61 = vld [vmem:[#allocation3 + $0x158] sm:$0xff]  ;;  %v6357_v31 = vld [vmem:[#allocation3 + $0x150] sm:$0xff] }
 0x681   :  { %12862 = vmatpush3.bf16.msra.mxu1 %v15452_v55 }
 0x682   :  { %6394 = vmatpush1.bf16.msra.mxu0 %v6329_v30  ;;  %v6340_v30 = vld [vmem:[#allocation3 + $0xc8] sm:$0xff]  ;;  %12864 = vmatprep.subr.bf16.mxu1 %v15455_v56 }
 0x683   :  { %6395 = vmatprep.subr.bf16.mxu0 %v6332_v54  ;;  %v6475_v54 = vld [vmem:[%s13711_s8 + $0x70] sm:$0xff] }
 0x684   :  { %v15470_v0 = vpack.c.bf16 %v6476_v24, %v6475_v54  ;;  %v6364_v54 = vld [vmem:[#allocation3 + $0x188] sm:$0xff]  ;;  %v6363_v24 = vld [vmem:[#allocation3 + $0x180] sm:$0xff] }
 0x685   :  { %12866 = vmatpush3.bf16.msra.mxu1 %v15462_v46 }
 0x686   :  { %6396 = vmatpush1.bf16.msra.mxu0 %v6331_v58  ;;  %v6342_v58 = vld [vmem:[#allocation3 + $0xd8] sm:$0xff]  ;;  %12868 = vmatprep.subr.bf16.mxu1 %v15465_v53 }
 0x687   :  { %6397 = vmatprep.subr.bf16.mxu0 %v6334_v36  ;;  %v6344_v36 = vld [vmem:[#allocation3 + $0xe8] sm:$0xff] }
 0x689   :  { %12870 = vmatpush3.bf16.msra.mxu1 %v15470_v0 }
 0x68a   :  { %6398 = vmatpush1.bf16.msra.mxu0 %v6333_v22  ;;  %12872 = vmatprep.subr.bf16.mxu1 %v15396_v28  ;;  %v6345_v22 = vld [vmem:[#allocation3 + $0xf0] sm:$0xff] }
 0x68b   :  { %6399 = vmatprep.subr.bf16.mxu0 %v6336_v59  ;;  %v6314_v59 = vpack.c.bf16 %v15392_v23, %v15392_v23  ;;  %v6349_v28 = vld [vmem:[#allocation3 + $0x110] sm:$0xff]  ;;  %v6355_v23 = vld [vmem:[#allocation3 + $0x140] sm:$0xff] }
 0x68e   :  { %6400 = vmatpush1.bf16.msra.mxu0 %v6335_v38  ;;  %v6352_v38 = vld [vmem:[#allocation3 + $0x128] sm:$0xff] }
 0x68f   :  { %6401 = vmatprep.subr.bf16.mxu0 %v6338_v1  ;;  %v6356_v1 = vld [vmem:[#allocation3 + $0x148] sm:$0xff] }
 0x692   :  { %6402 = vmatpush1.bf16.msra.mxu0 %v6337_v42  ;;  %v6360_v42 = vld [vmem:[#allocation3 + $0x168] sm:$0xff] }
 0x693   :  { %6403 = vmatprep.subr.bf16.mxu0 %v6340_v30  ;;  %v6361_v30 = vld [vmem:[#allocation3 + $0x170] sm:$0xff] }
 0x696   :  { %6404 = vmatpush1.bf16.msra.mxu0 %v6339_v57  ;;  %v6366_v57 = vld [vmem:[#allocation3 + $0x198] sm:$0xff] }
 0x697   :  { %6405 = vmatprep.subr.bf16.mxu0 %v6342_v58  ;;  %v6365_v58 = vld [vmem:[#allocation3 + $0x190] sm:$0xff] }
 0x69a   :  { %6406 = vmatpush1.bf16.msra.mxu0 %v6341_v26  ;;  %v6368_v26 = vld [vmem:[#allocation3 + $0x1a8] sm:$0xff] }
 0x69b   :  { %6407 = vmatprep.subr.bf16.mxu0 %v6344_v36  ;;  %v6367_v36 = vld [vmem:[#allocation3 + $0x1a0] sm:$0xff] }
 0x69e   :  { %6408 = vmatpush1.bf16.msra.mxu0 %v6343_v41  ;;  %v6370_v41 = vld [vmem:[#allocation3 + $0x1b8] sm:$0xff] }
 0x69f   :  { %6409 = vmatprep.subr.bf16.mxu0 %v6346_v21  ;;  %v6369_v21 = vld [vmem:[#allocation3 + $0x1b0] sm:$0xff] }
 0x6a2   :  { %6410 = vmatpush1.bf16.msra.mxu0 %v6345_v22  ;;  %v6372_v22 = vld [vmem:[#allocation3 + $0x1c8] sm:$0xff] }
 0x6a3   :  { %6420 = vmatprep.subr.bf16.mxu0 %v6348_v27  ;;  %v6371_v27 = vld [vmem:[#allocation3 + $0x1c0] sm:$0xff] }
 0x6a5   :  { %6412 = vmatmul.mubr.bf16.vlgmr.msra.gmra.mrb[12].mxu0 %v6311_v52  ;;  %v6374_v52 = vld [vmem:[#allocation3 + $0x1d8] sm:$0xff] }
 0x6a6   :  { %6421 = vmatpush1.bf16.msra.mxu0 %v6347_v47  ;;  %6452 = vmatprep.mubr.bf16.mxu0 %v6314_v59  ;;  %v6373_v59 = vld [vmem:[#allocation3 + $0x1d0] sm:$0xff]  ;;  %v6376_v47 = vld [vmem:[#allocation3 + $0x1e8] sm:$0xff] }
 0x6a7   :  { %6422 = vmatprep.subr.bf16.mxu0 %v6350_v48  ;;  %v6375_v48 = vld [vmem:[#allocation3 + $0x1e0] sm:$0xff] }
 0x6aa   :  { %6423 = vmatpush1.bf16.msra.mxu0 %v6349_v28  ;;  %v6378_v28 = vld [vmem:[#allocation3 + $0x1f8] sm:$0xff] }
 0x6ab   :  { %6424 = vmatprep.subr.bf16.mxu0 %v6352_v38  ;;  %v6377_v38 = vld [vmem:[#allocation3 + $0x1f0] sm:$0xff] }
 0x6ae   :  { %6425 = vmatpush1.bf16.msra.mxu0 %v6351_v39  ;;  %v6313_v39 = vpack.c.bf16 %v15390_v35, %v15390_v35 }
 0x6af   :  { %6426 = vmatprep.subr.bf16.mxu0 %v6354_v43 }
 0x6b2   :  { %6427 = vmatpush1.bf16.msra.mxu0 %v6353_v34 }
 0x6b3   :  { %6428 = vmatprep.subr.bf16.mxu0 %v6356_v1 }
 0x6b6   :  { %6429 = vmatpush1.bf16.msra.mxu0 %v6355_v23 }
 0x6b7   :  { %6430 = vmatprep.subr.bf16.mxu0 %v6358_v61 }
 0x6ba   :  { %6431 = vmatpush1.bf16.msra.mxu0 %v6357_v31 }
 0x6bb   :  { %6432 = vmatprep.subr.bf16.mxu0 %v6360_v42 }
 0x6be   :  { %6433 = vmatpush1.bf16.msra.mxu0 %v6359_v29 }
 0x6bf   :  { %6434 = vmatprep.subr.bf16.mxu0 %v6362_v45 }
 0x6c2   :  { %6435 = vmatpush1.bf16.msra.mxu0 %v6361_v30 }
 0x6c3   :  { %6436 = vmatprep.subr.bf16.mxu0 %v6364_v54 }
 0x6c6   :  { %6437 = vmatpush1.bf16.msra.mxu0 %v6363_v24 }
 0x6c7   :  { %6438 = vmatprep.subr.bf16.mxu0 %v6366_v57 }
 0x6ca   :  { %6439 = vmatpush1.bf16.msra.mxu0 %v6365_v58 }
 0x6cb   :  { %6440 = vmatprep.subr.bf16.mxu0 %v6368_v26 }
 0x6ce   :  { %6441 = vmatpush1.bf16.msra.mxu0 %v6367_v36 }
 0x6cf   :  { %6442 = vmatprep.subr.bf16.mxu0 %v6370_v41 }
 0x6d2   :  { %6443 = vmatpush1.bf16.msra.mxu0 %v6369_v21 }
 0x6d3   :  { %6444 = vmatprep.subr.bf16.mxu0 %v6372_v22 }
 0x6d6   :  { %6445 = vmatpush1.bf16.msra.mxu0 %v6371_v27 }
 0x6d7   :  { %6446 = vmatprep.subr.bf16.mxu0 %v6374_v52 }
 0x6da   :  { %6447 = vmatpush1.bf16.msra.mxu0 %v6373_v59 }
 0x6db   :  { %6448 = vmatprep.subr.bf16.mxu0 %v6376_v47  ;;  %v6655_v47 = vld [vmem:[%s13725_s19] sm:$0x1] }
 0x6de   :  { %6449 = vmatpush1.bf16.msra.mxu0 %v6375_v48 }
 0x6df   :  { %6450 = vmatprep.subr.bf16.mxu0 %v6378_v28 }
 0x6e2   :  { %6451 = vmatpush1.bf16.msra.mxu0 %v6377_v38  ;;  %v6659_v38 = vld [vmem:[%s13732_s24] sm:$0x1] }
 0x6e5   :  { %6453 = vmatmul.mubr.bf16.vlgmr.msra.gmra.mrb[12].mxu0 %v6313_v39 }
 0x7b8   :  { %v15481_v43 = vpop.f32.mrb[12].mxu0 }
 0x7b9   :  { %v15483_v34 = vpop.f32.mrb[13].mxu0  ;;  %v6563_v35 = vmul.f32 %v15481_v43, %v15481_v43 }
 0x7ba   :  { %v6564_v1 = vmul.f32 %v15483_v34, %v15483_v34  ;;  %v6458_v23 = vpop.f32.mrb[14].mxu0  ;;  %6557 = vmatprep.mubr.f32.mxu1 %v15483_v34 }
 0x7bb   :  { %v6459_v61 = vpop.f32.mrb[15].mxu0  ;;  %6558 = vmatmul.mubr.f32.vlgmr.msra.gmra.mrb[12].mxu1 %v15481_v43 }
 0x7bc   :  { %12874 = vmatpush3.bf16.msra.mxu1 %v15401_v44  ;;  %6629 = vmatprep.mubr.f32.mxu1 %v6564_v1  ;;  %v6663_v44 = vld [vmem:[%s13718_s14 + $0x8] sm:$0xff] }
 0x7bd   :  { %12876 = vmatprep.subr.bf16.mxu1 %v15407_v62  ;;  %v6665_v62 = vld [vmem:[%s13718_s14 + $0x18] sm:$0xff] }
 0x7c0   :  { %12878 = vmatpush3.bf16.msra.mxu1 %v15412_v49  ;;  %v6662_v49 = vld [vmem:[%s13718_s14] sm:$0xff] }
 0x7c1   :  { %12880 = vmatprep.subr.bf16.mxu1 %v15415_v50  ;;  %v12903_v50 = vpack.c.bf16 %v6665_v62, %v6663_v44 }
 0x7c4   :  { %12882 = vmatpush3.bf16.msra.mxu1 %v15422_v32  ;;  %v6664_v32 = vld [vmem:[%s13718_s14 + $0x10] sm:$0xff] }
 0x7c5   :  { %12884 = vmatprep.subr.bf16.mxu1 %v15425_v33  ;;  %v12905_v33 = vpack.c.bf16 %v6664_v32, %v6662_v49 }
 0x7c8   :  { %12886 = vmatpush3.bf16.msra.mxu1 %v15432_v37 }
 0x7c9   :  { %12888 = vmatprep.subr.bf16.mxu1 %v15435_v40 }
 0x7cc   :  { %12890 = vmatpush3.bf16.msra.mxu1 %v15442_v60 }
 0x7cd   :  { %12892 = vmatprep.subr.bf16.mxu1 %v15445_v63 }
 0x7d0   :  { %12894 = vmatpush3.bf16.msra.mxu1 %v15452_v55 }
 0x7d1   :  { %12896 = vmatprep.subr.bf16.mxu1 %v15455_v56 }
 0x7d4   :  { %12898 = vmatpush3.bf16.msra.mxu1 %v15462_v46 }
 0x7d5   :  { %12900 = vmatprep.subr.bf16.mxu1 %v15465_v53 }
 0x7d8   :  { %12902 = vmatpush3.bf16.msra.mxu1 %v15470_v0 }
 0x7d9   :  { %12904 = vmatprep.subr.bf16.mxu1 %v12903_v50 }
 0x7db   :  { %6630 = vmatmul.mubr.f32.vlgmr.msra.gmra.mrb[14].mxu1 %v6563_v35 }
 0x7dc   :  { %6734 = vmatprep.mubr.f32.mxu1 %v16568_v25  ;;  %12906 = vmatpush1.bf16.msra.mxu1 %v12905_v33 }
 0x7dd   :  { %12908 = vmatprep.subr.bf16.mxu1 %v12903_v50 }
 0x88e   :  { %v11954_v37 = vpop.f32.mrb[12].mxu1 }
 0x88f   :  { %v11955_v40 = vpop.f32.mrb[13].mxu1 }
 0x890   :  { %v11956_v60 = vadd.f32 %v11955_v40, %v11954_v37 }
 0x892   :  { %v6636_v63 = vsel %vm6635_vm6, %v11956_v60, 0.0 }
 0x893   :  { %v6637_v55 = vrot.slane %v6636_v63, 4 }
 0x895   :  { %v6638_v56 = vadd.f32 %v6637_v55, %v6636_v63 }
 0x897   :  { %v6639_v46 = vrot.slane %v6638_v56, 2 }
 0x899   :  { %v6640_v0 = vadd.f32 %v6639_v46, %v6638_v56 }
 0x89b   :  { %v6641_v45 = vrot.slane %v6640_v0, 1 }
 0x89d   :  { %v6642_v24 = vadd.f32 %v6641_v45, %v6640_v0 }
 0x89f   :  { %v6643_v26 = vmul.f32 0.03125, %v6642_v24 }
 0x8a1   :  { %v6652_v21 = vmul.f32 %v6643_v26, %v6643_v26 }
 0x8ae   :  { %v11989_v53 = vpop.f32.mrb[14].mxu1 }
 0x8af   :  { %v11990_v31 = vpop.f32.mrb[15].mxu1 }
 0x8b0   :  { %v11991_v42 = vadd.f32 %v11990_v31, %v11989_v53 }
 0x8b2   :  { %v6644_v29 = vsel %vm6635_vm6, %v11991_v42, 0.0 }
 0x8b3   :  { %v6645_v30 = vrot.slane %v6644_v29, 4 }
 0x8b5   :  { %v6646_v54 = vadd.f32 %v6645_v30, %v6644_v29 }
 0x8b7   :  { %v6647_v57 = vrot.slane %v6646_v54, 2 }
 0x8b9   :  { %v6648_v58 = vadd.f32 %v6647_v57, %v6646_v54 }
 0x8bb   :  { %v6649_v36 = vrot.slane %v6648_v58, 1 }
 0x8bd   :  { %v6650_v41 = vadd.f32 %v6649_v36, %v6648_v58 }
 0x8bf   :  { %v6651_v22 = vmul.f32 0.03125, %v6650_v41 }
 0x8c1   :  { %v6653_v27 = vsub.f32 %v6651_v22, %v6652_v21 }
 0x8c3   :  { %v6654_v52 = vmax.f32 %v6653_v27, 0.0 }
 0x8c5   :  { %v6656_v59 = vadd.f32 1e-05, %v6654_v52 }
 0x8c7   :  { %13586 = vrsqrt.f32 %v6656_v59 }
 0x8d1   :  { %v13587_v48 = vpop.eup %13586 }
 0x8d2   :  { %v6658_v28 = vmul.f32 %v13587_v48, %v6655_v47 }
 0x8d4   :  { %11741 = vmatmul.mubr.msk.f32.vlgmr.msra.gmra.mrb[16].mxu1 %vm6666_vm7, %v6658_v28  ;;  %v6660_v39 = vmul.f32 %v6658_v28, %v6643_v26 }
 0x8d5   :  { %12910 = vmatpush1.bf16.msra.mxu1 %v12905_v33  ;;  %6818 = vmatprep.mubr.f32.mxu1 %v16568_v25 }
 0x8d6   :  { %v6661_v1 = vsub.f32 %v6659_v38, %v6660_v39  ;;  %11992 = vmatprep.subr.bf16.mxu1 %v14156_v10 }
 0x8d8   :  { %11742 = vmatmul.mubr.msk.f32.vlgmr.msra.gmra.mrb[18].mxu1 %vm6666_vm7, %v6661_v1 }
 0x9a7   :  { %v6736_v23 = vpop.f32.mrb[16].mxu1 }
 0x9a8   :  { %v6744_v61 = vrot.slane %v6736_v23, %v15374_v51  ;;  %v6738_v35 = vpop.f32.mrb[17].mxu1 }
 0x9a9   :  { %v6748_v44 = vrot.slane %v6738_v35, %v15374_v51 }
 0x9aa   :  { %v6749_v62 = vmul.f32 %v6744_v61, %v15481_v43 }
 0x9ab   :  { %v6750_v49 = vmul.f32 %v6748_v44, %v15483_v34  ;;  %v6820_v50 = vpop.f32.mrb[18].mxu1 }
 0x9ac   :  { %v6828_v32 = vrot.slane %v6820_v50, %v15374_v51  ;;  %v6822_v37 = vpop.f32.mrb[19].mxu1 }
 0x9ad   :  { %v6832_v33 = vrot.slane %v6822_v37, %v15374_v51 }
 0x9ae   :  { %v6833_v40 = vadd.f32 %v6828_v32, %v6749_v62 }
 0x9af   :  { %v6834_v60 = vadd.f32 %v6832_v33, %v6750_v49 }
 0x9b0   :  { %vm6835_vm8 = vcmp.gt.f32.partialorder %v6833_v40, 0.0  ;;  %v6837_v63 = vmul.f32 0.01, %v6833_v40 }
 0x9b1   :  { %vm6836_vm9 = vcmp.gt.f32.partialorder %v6834_v60, 0.0  ;;  %v6838_v55 = vmul.f32 0.01, %v6834_v60 }
 0x9b2   :  { %v6839_v56 = vsel %vm6835_vm8, %v6833_v40, %v6837_v63 }
 0x9b3   :  { %v6840_v46 = vsel %vm6836_vm9, %v6834_v60, %v6838_v55 }
 0x9b4   :  { %v6845_v53 = vpack.c.bf16 %v6840_v46, %v6840_v46 }
 0x9b5   :  { %13606 = dma.done.wait [#allocation10 + $0x2], 2048 }
 0x9b6   :  { %13607 = vsyncadd [#allocation10 + $0x2], 4294965248  ;;  %11993 = vmatpush3.bf16.msra.mxu1 %v14132_v2  ;;  %v16570_v43 = vmov 0.0|0.0   ;;  %6894 = vmatprep.mubr.bf16.mxu1 %v6845_v53  ;;  %v6902_v10 = vld [vmem:[%s13746_s6] sm:$0xff]  ;;  %v6903_v34 = vld [vmem:[%s13746_s6 + $0x8] sm:$0xff]  ;;  %vm13661_vm10 = vmmov 0  }
 0x9b7   :  { %12935 = vmatprep.subr.bf16.mxu0 %v16570_v43  ;;  %11994 = vmatprep.subr.bf16.mxu1 %v14159_v11  ;;  %v12912_v0 = vpack.c.bf16 %v6903_v34, %v6902_v10  ;;  %v6904_v2 = vld [vmem:[%s13746_s6 + $0x10] sm:$0xff]  ;;  %v6905_v31 = vld [vmem:[%s13746_s6 + $0x18] sm:$0xff]  ;;  %v6911_v29 = vld [vmem:[%s13746_s6 + $0x48] sm:$0xff]  ;;  %vm7059_vm11 = vcmask 254976   ;;  %s16606_s0 = sld [smem:[#allocation29_spill]]  ;;  %vm7090_vm12 = vcmask 261120  }
 0x9b8   :  { %v12915_v11 = vpack.c.bf16 %v6905_v31, %v6904_v2  ;;  %v6909_v42 = vld [vmem:[%s13746_s6 + $0x38] sm:$0xff]  ;;  %v6912_v45 = vld [vmem:[%s13746_s6 + $0x50] sm:$0xff]  ;;  %v6914_v54 = vld [vmem:[%s13746_s6 + $0x60] sm:$0xff]  ;;  %12510 = vmatprep.mubr.msk.f32.mxu0 %vm13661_vm10, %v16568_v25 }
 0x9b9   :  { %12937 = vmatpush3.bf16.msra.mxu0 %v12912_v0  ;;  %v6915_v24 = vld [vmem:[%s13746_s6 + $0x68] sm:$0xff]  ;;  %v7086_v22 = vld [vmem:[%s13753_s12] sm:$0xff]  ;;  %v7088_v52 = vld [vmem:[%s13753_s12 + $0x10] sm:$0xff] }
 0x9ba   :  { %11995 = vmatpush3.bf16.msra.mxu1 %v14135_v3  ;;  %12938 = vmatprep.subr.bf16.mxu0 %v16570_v43  ;;  %v6906_v3 = vld [vmem:[%s13746_s6 + $0x20] sm:$0xff]  ;;  %v7087_v27 = vld [vmem:[%s13753_s12 + $0x8] sm:$0xff]  ;;  %v7089_v47 = vld [vmem:[%s13753_s12 + $0x18] sm:$0xff] }
 0x9bb   :  { %11996 = vmatprep.subr.bf16.mxu1 %v14162_v12  ;;  %v6907_v12 = vld [vmem:[%s13746_s6 + $0x28] sm:$0xff]  ;;  %v12960_v59 = vpack.c.bf16 %v7087_v27, %v7086_v22  ;;  %v12963_v48 = vpack.c.bf16 %v7089_v47, %v7088_v52  ;;  %v7079_v2 = vld [vmem:[%s13760_s20] sm:$0x1] }
 0x9bd   :  { %12940 = vmatpush3.bf16.msra.mxu0 %v12915_v11 }
 0x9be   :  { %11997 = vmatpush3.bf16.msra.mxu1 %v14138_v4  ;;  %12941 = vmatprep.subr.bf16.mxu0 %v16570_v43  ;;  %v12918_v4 = vpack.c.bf16 %v6907_v12, %v6906_v3  ;;  %v7083_v12 = vld [vmem:[%s16606_s0] sm:$0x1] }
 0x9bf   :  { %11998 = vmatprep.subr.bf16.mxu1 %v14165_v13  ;;  %v6908_v13 = vld [vmem:[%s13746_s6 + $0x30] sm:$0xff] }
 0x9c1   :  { %12943 = vmatpush3.bf16.msra.mxu0 %v12918_v4 }
 0x9c2   :  { %11999 = vmatpush3.bf16.msra.mxu1 %v14141_v5  ;;  %12944 = vmatprep.subr.bf16.mxu0 %v16570_v43  ;;  %v12921_v5 = vpack.c.bf16 %v6909_v42, %v6908_v13 }
 0x9c3   :  { %12000 = vmatprep.subr.bf16.mxu1 %v14168_v14  ;;  %v6910_v14 = vld [vmem:[%s13746_s6 + $0x40] sm:$0xff] }
 0x9c5   :  { %12946 = vmatpush3.bf16.msra.mxu0 %v12921_v5 }
 0x9c6   :  { %12001 = vmatpush3.bf16.msra.mxu1 %v14144_v6  ;;  %12947 = vmatprep.subr.bf16.mxu0 %v16570_v43  ;;  %v12924_v6 = vpack.c.bf16 %v6911_v29, %v6910_v14 }
 0x9c7   :  { %12002 = vmatprep.subr.bf16.mxu1 %v14171_v15  ;;  %v6913_v15 = vld [vmem:[%s13746_s6 + $0x58] sm:$0xff] }
 0x9c8   :  { %v12927_v30 = vpack.c.bf16 %v6913_v15, %v6912_v45 }
 0x9c9   :  { %12949 = vmatpush3.bf16.msra.mxu0 %v12924_v6 }
 0x9ca   :  { %12003 = vmatpush3.bf16.msra.mxu1 %v14147_v7  ;;  %12950 = vmatprep.subr.bf16.mxu0 %v16570_v43  ;;  %v6844_v7 = vpack.c.bf16 %v6839_v56, %v6839_v56 }
 0x9cb   :  { %12004 = vmatprep.subr.bf16.mxu1 %v14174_v16  ;;  %v6917_v16 = vld [vmem:[%s13746_s6 + $0x78] sm:$0xff] }
 0x9cd   :  { %12952 = vmatpush3.bf16.msra.mxu0 %v12927_v30 }
 0x9ce   :  { %12005 = vmatpush3.bf16.msra.mxu1 %v14150_v8  ;;  %12953 = vmatprep.subr.bf16.mxu0 %v16570_v43  ;;  %v12930_v8 = vpack.c.bf16 %v6915_v24, %v6914_v54 }
 0x9cf   :  { %12006 = vmatprep.subr.bf16.mxu1 %v14177_v17 }
 0x9d1   :  { %12955 = vmatpush3.bf16.msra.mxu0 %v12930_v8 }
 0x9d2   :  { %12007 = vmatpush3.bf16.msra.mxu1 %v14153_v9  ;;  %12956 = vmatprep.subr.bf16.mxu0 %v16570_v43  ;;  %v6916_v9 = vld [vmem:[%s13746_s6 + $0x70] sm:$0xff] }
 0x9d3   :  { %12911 = vmatprep.subr.bf16.mxu1 %v16570_v43  ;;  %v12933_v17 = vpack.c.bf16 %v6917_v16, %v6916_v9 }
 0x9d5   :  { %6895 = vmatmul.mubr.bf16.vlgmr.msra.gmra.mrb[20].mxu1 %v6844_v7  ;;  %12958 = vmatpush3.bf16.msra.mxu0 %v12933_v17 }
 0x9d6   :  { %12913 = vmatpush3.bf16.msra.mxu1 %v12912_v0  ;;  %12475 = vmatprep.mubr.msk.f32.mxu1 %vm13661_vm10, %v16568_v25 }
 0x9d7   :  { %12914 = vmatprep.subr.bf16.mxu1 %v16570_v43 }
 0x9da   :  { %12916 = vmatpush3.bf16.msra.mxu1 %v12915_v11 }
 0x9db   :  { %12917 = vmatprep.subr.bf16.mxu1 %v16570_v43 }
 0x9de   :  { %12919 = vmatpush3.bf16.msra.mxu1 %v12918_v4 }
 0x9df   :  { %12920 = vmatprep.subr.bf16.mxu1 %v16570_v43 }
 0x9e2   :  { %12922 = vmatpush3.bf16.msra.mxu1 %v12921_v5 }
 0x9e3   :  { %12923 = vmatprep.subr.bf16.mxu1 %v16570_v43 }
 0x9e6   :  { %12925 = vmatpush3.bf16.msra.mxu1 %v12924_v6 }
 0x9e7   :  { %12926 = vmatprep.subr.bf16.mxu1 %v16570_v43 }
 0x9ea   :  { %12928 = vmatpush3.bf16.msra.mxu1 %v12927_v30 }
 0x9eb   :  { %12929 = vmatprep.subr.bf16.mxu1 %v16570_v43 }
 0x9ee   :  { %12931 = vmatpush3.bf16.msra.mxu1 %v12930_v8 }
 0x9ef   :  { %12932 = vmatprep.subr.bf16.mxu1 %v16570_v43 }
 0x9f2   :  { %12934 = vmatpush3.bf16.msra.mxu1 %v12933_v17 }
 0x9f3   :  { %12959 = vmatprep.subr.bf16.mxu1 %v16570_v43 }
 0xaa8   :  { %v12008_v57 = vpop.f32.mrb[20].mxu1 }
 0xaa9   :  { %v12009_v58 = vpop.f32.mrb[21].mxu1 }
 0xaaa   :  { %v12010_v26 = vadd.f32 %v12009_v58, %v12008_v57  ;;  %v12011_v36 = vpop.f32.mrb[22].mxu1 }
 0xaab   :  { %v12012_v41 = vpop.f32.mrb[23].mxu1 }
 0xaac   :  { %12476 = vmatmul.mubr.f32.vlgmr.msra.gmra.mrb[24].mxu1 %v12010_v26  ;;  %v6988_v21 = vmul.f32 %v12010_v26, %v12010_v26 }
 0xaad   :  { %12521 = vmatprep.mubr.msk.f32.mxu1 %vm13661_vm10, %v16568_v25  ;;  %12961 = vmatpush3.bf16.msra.mxu1 %v12960_v59 }
 0xaae   :  { %12511 = vmatmul.mubr.f32.vlgmr.msra.gmra.mrb[16].mxu0 %v6988_v21  ;;  %12962 = vmatprep.subr.bf16.mxu1 %v16570_v43 }
 0xab1   :  { %12964 = vmatpush3.bf16.msra.mxu1 %v12963_v48 }
 0xab2   :  { %12965 = vmatprep.subr.bf16.mxu1 %v16570_v43 }
 0xb7f   :  { %v6984_v28 = vpop.f32.mrb[24].mxu1 }
 0xb80   :  { %v7060_v38 = vsel %vm7059_vm11, %v6984_v28, 0.0  ;;  %v12477_v39 = vpop.f32.mrb[25].mxu1 }
 0xb81   :  { %v7061_v1 = vrot.slane %v7060_v38, 4  ;;  %v7055_v23 = vpop.f32.mrb[16].mxu0 }
 0xb82   :  { %v7068_v61 = vsel %vm7059_vm11, %v7055_v23, 0.0  ;;  %v12512_v35 = vpop.f32.mrb[17].mxu0 }
 0xb83   :  { %v7062_v44 = vadd.f32 %v7061_v1, %v7060_v38  ;;  %v7069_v62 = vrot.slane %v7068_v61, 4 }
 0xb85   :  { %v7063_v49 = vrot.slane %v7062_v44, 2  ;;  %v7070_v50 = vadd.f32 %v7069_v62, %v7068_v61 }
 0xb87   :  { %v7064_v32 = vadd.f32 %v7063_v49, %v7062_v44  ;;  %v7071_v37 = vrot.slane %v7070_v50, 2 }
 0xb89   :  { %v7065_v33 = vrot.slane %v7064_v32, 1  ;;  %v7072_v40 = vadd.f32 %v7071_v37, %v7070_v50 }
 0xb8b   :  { %v7066_v60 = vadd.f32 %v7065_v33, %v7064_v32  ;;  %v7073_v63 = vrot.slane %v7072_v40, 1 }
 0xb8d   :  { %v7067_v55 = vmul.f32 0.125, %v7066_v60  ;;  %v7074_v56 = vadd.f32 %v7073_v63, %v7072_v40 }
 0xb8f   :  { %v7076_v46 = vmul.f32 %v7067_v55, %v7067_v55  ;;  %v7075_v53 = vmul.f32 0.125, %v7074_v56 }
 0xb91   :  { %v7077_v10 = vsub.f32 %v7075_v53, %v7076_v46 }
 0xb93   :  { %v7078_v34 = vmax.f32 %v7077_v10, 0.0 }
 0xb95   :  { %v7080_v0 = vadd.f32 1e-05, %v7078_v34 }
 0xb97   :  { %13588 = vrsqrt.f32 %v7080_v0 }
 0xba1   :  { %v13589_v31 = vpop.eup %13588 }
 0xba2   :  { %v7082_v11 = vmul.f32 %v13589_v31, %v7079_v2 }
 0xba4   :  { %12522 = vmatmul.mubr.msk.f32.vlgmr.msra.gmra.mrb[26].mxu1 %vm7090_vm12, %v7082_v11  ;;  %v7084_v3 = vmul.f32 %v7082_v11, %v7067_v55 }
 0xba5   :  { %12967 = vmatpush3.bf16.msra.mxu1 %v12960_v59  ;;  %12532 = vmatprep.mubr.msk.f32.mxu1 %vm13661_vm10, %v16568_v25 }
 0xba6   :  { %12968 = vmatprep.subr.bf16.mxu1 %v16570_v43  ;;  %v7085_v4 = vsub.f32 %v7083_v12, %v7084_v3 }
 0xba9   :  { %12970 = vmatpush3.bf16.msra.mxu1 %v12963_v48 }
 0xbaa   :  { %12535 = vmatprep.subr.bf16.mxu1 %v16568_v25 }
 0xbac   :  { %12533 = vmatmul.mubr.msk.f32.vlgmr.msra.gmra.mrb[28].mxu1 %vm7090_vm12, %v7085_v4 }
 0xbad   :  { %12551 = vmatprep.mubr.msk.bf16.mxu1 %vm13661_vm10, %v16568_v25 }
 0xc77   :  { %v7160_v13 = vpop.f32.mrb[26].mxu1 }
 0xc78   :  { %v12523_v42 = vpop.f32.mrb[27].mxu1  ;;  %v7167_v5 = vrot.slane %v7160_v13, %v15374_v51 }
 0xc7a   :  { %v7168_v29 = vmul.f32 %v12010_v26, %v7167_v5 }
 0xc7f   :  { %v7238_v14 = vpop.f32.mrb[28].mxu1 }
 0xc80   :  { %v7245_v6 = vrot.slane %v7238_v14, %v15374_v51  ;;  %v12534_v45 = vpop.f32.mrb[29].mxu1 }
 0xc82   :  { %v7246_v15 = vadd.f32 %v7245_v6, %v7168_v29 }
 0xc84   :  { %vm7247_vm13 = vcmp.gt.f32.partialorder %v7246_v15, 0.0  ;;  %v7248_v7 = vmul.f32 0.01, %v7246_v15 }
 0xc86   :  { %v7249_v30 = vsel %vm7247_vm13, %v7246_v15, %v7248_v7 }
 0xc87   :  { %13608 = dma.done.wait [#allocation10 + $0x3], 1024 }
 0xc88   :  { %13609 = vsyncadd [#allocation10 + $0x3], 4294966272  ;;  %s16607_s5 = sld [smem:[#allocation30_spill]]  ;;  %12536 = vmatpush3.bf16.msra.mxu1 %v14180_v18  ;;  %12971 = vmatprep.subr.bf16.mxu0 %v16570_v43  ;;  %v16609_v41 = vld [vmem:[#allocation47_spill] sm:$0xff]  ;;  %v16610_v21 = vld [vmem:[#allocation48_spill] sm:$0xff]  ;;  %v7254_v27 = vpack.c.bf16 %v7249_v30, %v7249_v30  ;;  %vm7311_vm14 = vcmask 523264  }
 0xc89   :  { %12537 = vmatprep.subr.bf16.mxu1 %v16568_v25  ;;  %12571 = vmatprep.mubr.msk.f32.mxu0 %vm13661_vm10, %v16568_v25  ;;  %v16611_v22 = vld [vmem:[#allocation49_spill] sm:$0xff]  ;;  %v16612_v52 = vld [vmem:[#allocation50_spill] sm:$0xff]  ;;  %s16613_s9 = sld [smem:[#allocation31_spill]]  ;;  %vm7459_vm15 = vcmask 517120   ;;  %s16614_s13 = sld [smem:[#allocation32_spill]] }
 0xc8a   :  { %s16615_s17 = sld [smem:[#allocation33_spill]] }
 0xc8c   :  { %12538 = vmatpush3.bf16.msra.mxu1 %v14183_v19  ;;  %v16608_v19 = vld [vmem:[#allocation46_spill] sm:$0xff] }
 0xc8d   :  { %12539 = vmatprep.subr.bf16.mxu1 %v16568_v25 }
 0xc8e   :  { %v7303_v54 = vld [vmem:[%s16607_s5] sm:$0xff]  ;;  %v7304_v24 = vld [vmem:[%s16607_s5 + $0x8] sm:$0xff]  ;;  %v7305_v8 = vld [vmem:[%s16607_s5 + $0x10] sm:$0xff] }
 0xc8f   :  { %v12972_v9 = vpack.c.bf16 %v7304_v24, %v7303_v54  ;;  %v7306_v18 = vld [vmem:[%s16607_s5 + $0x18] sm:$0xff]  ;;  %v7307_v17 = vld [vmem:[%s16607_s5 + $0x20] sm:$0xff]  ;;  %v7308_v57 = vld [vmem:[%s16607_s5 + $0x28] sm:$0xff] }
 0xc90   :  { %12540 = vmatpush3.bf16.msra.mxu1 %v14186_v20  ;;  %v12975_v16 = vpack.c.bf16 %v7306_v18, %v7305_v8  ;;  %v12978_v58 = vpack.c.bf16 %v7308_v57, %v7307_v17  ;;  %v7309_v26 = vld [vmem:[%s16607_s5 + $0x30] sm:$0xff]  ;;  %v7310_v36 = vld [vmem:[%s16607_s5 + $0x38] sm:$0xff]  ;;  %v7486_v39 = vld [vmem:[%s16613_s9] sm:$0xff] }
 0xc91   :  { %12541 = vmatprep.subr.bf16.mxu1 %v16568_v25  ;;  %12973 = vmatpush3.bf16.msra.mxu0 %v12972_v9  ;;  %v12981_v20 = vpack.c.bf16 %v7310_v36, %v7309_v26  ;;  %v7487_v1 = vld [vmem:[%s16613_s9 + $0x8] sm:$0xff]  ;;  %v7488_v61 = vld [vmem:[%s16613_s9 + $0x10] sm:$0xff]  ;;  %v7489_v35 = vld [vmem:[%s16613_s9 + $0x18] sm:$0xff] }
 0xc92   :  { %12974 = vmatprep.subr.bf16.mxu0 %v16570_v43  ;;  %v12996_v23 = vpack.c.bf16 %v7487_v1, %v7486_v39  ;;  %v12999_v44 = vpack.c.bf16 %v7489_v35, %v7488_v61  ;;  %v7490_v62 = vld [vmem:[%s16613_s9 + $0x20] sm:$0xff]  ;;  %v7491_v49 = vld [vmem:[%s16613_s9 + $0x28] sm:$0xff]  ;;  %v7492_v32 = vld [vmem:[%s16613_s9 + $0x30] sm:$0xff] }
 0xc93   :  { %v13002_v50 = vpack.c.bf16 %v7491_v49, %v7490_v62  ;;  %v7493_v37 = vld [vmem:[%s16613_s9 + $0x38] sm:$0xff]  ;;  %v7479_v7 = vld [vmem:[%s16614_s13] sm:$0x1] }
 0xc94   :  { %12542 = vmatpush3.bf16.msra.mxu1 %v16608_v19  ;;  %v13005_v33 = vpack.c.bf16 %v7493_v37, %v7492_v32  ;;  %v7483_v24 = vld [vmem:[%s16615_s17] sm:$0x1] }
 0xc95   :  { %12543 = vmatprep.subr.bf16.mxu1 %v16568_v25  ;;  %12976 = vmatpush3.bf16.msra.mxu0 %v12975_v16 }
 0xc96   :  { %12977 = vmatprep.subr.bf16.mxu0 %v16570_v43 }
 0xc98   :  { %12544 = vmatpush3.bf16.msra.mxu1 %v16609_v41 }
 0xc99   :  { %12545 = vmatprep.subr.bf16.mxu1 %v16568_v25  ;;  %12979 = vmatpush3.bf16.msra.mxu0 %v12978_v58 }
 0xc9a   :  { %12980 = vmatprep.subr.bf16.mxu0 %v16570_v43 }
 0xc9c   :  { %12546 = vmatpush3.bf16.msra.mxu1 %v16610_v21 }
 0xc9d   :  { %12547 = vmatprep.subr.bf16.mxu1 %v16568_v25  ;;  %12982 = vmatpush3.bf16.msra.mxu0 %v12981_v20 }
 0xc9e   :  { %12983 = vmatprep.subr.bf16.mxu0 %v16570_v43 }
 0xca0   :  { %12548 = vmatpush3.bf16.msra.mxu1 %v16611_v22 }
 0xca1   :  { %12549 = vmatprep.subr.bf16.mxu1 %v16568_v25 }
 0xca4   :  { %12550 = vmatpush3.bf16.msra.mxu1 %v16612_v52 }
 0xca5   :  { %12995 = vmatprep.subr.bf16.mxu1 %v16570_v43 }
 0xca7   :  { %12552 = vmatmul.mubr.bf16.vlgmr.msra.gmra.mrb[32].mxu1 %v7254_v27 }
 0xca8   :  { %12609 = vmatprep.mubr.msk.f32.mxu1 %vm13661_vm10, %v16568_v25  ;;  %12997 = vmatpush3.bf16.msra.mxu1 %v12996_v23 }
 0xca9   :  { %12998 = vmatprep.subr.bf16.mxu1 %v16570_v43 }
 0xcac   :  { %13000 = vmatpush3.bf16.msra.mxu1 %v12999_v44 }
 0xcad   :  { %13001 = vmatprep.subr.bf16.mxu1 %v16570_v43 }
 0xcb0   :  { %13003 = vmatpush3.bf16.msra.mxu1 %v13002_v50 }
 0xcb1   :  { %13004 = vmatprep.subr.bf16.mxu1 %v16570_v43 }
 0xcb4   :  { %13006 = vmatpush3.bf16.msra.mxu1 %v13005_v33 }
 0xd7a   :  { %v15632_v59 = vpop.f32.mrb[32].mxu1 }
 0xd7b   :  { %v12553_v47 = vpop.f32.mrb[33].mxu1  ;;  %12572 = vmatmul.mubr.msk.f32.vlgmr.msra.gmra.mrb[18].mxu0 %vm7311_vm14, %v15632_v59  ;;  %v7385_v38 = vmul.f32 %v15632_v59, %v15632_v59 }
 0xd7c   :  { %12985 = vmatpush3.bf16.msra.mxu0 %v12972_v9  ;;  %v7300_v48 = vpop.f32.mrb[34].mxu1  ;;  %12590 = vmatprep.mubr.msk.f32.mxu0 %vm13661_vm10, %v16568_v25 }
 0xd7d   :  { %v12554_v28 = vpop.f32.mrb[35].mxu1  ;;  %12986 = vmatprep.subr.bf16.mxu0 %v16570_v43 }
 0xd80   :  { %12988 = vmatpush3.bf16.msra.mxu0 %v12975_v16 }
 0xd81   :  { %12989 = vmatprep.subr.bf16.mxu0 %v16570_v43 }
 0xd84   :  { %12991 = vmatpush3.bf16.msra.mxu0 %v12978_v58 }
 0xd85   :  { %12992 = vmatprep.subr.bf16.mxu0 %v16570_v43 }
 0xd88   :  { %12994 = vmatpush3.bf16.msra.mxu0 %v12981_v20 }
 0xd89   :  { %13007 = vmatprep.subr.bf16.mxu0 %v16570_v43 }
 0xd8b   :  { %12591 = vmatmul.mubr.msk.f32.vlgmr.msra.gmra.mrb[20].mxu0 %vm7311_vm14, %v7385_v38 }
 0xd8c   :  { %12628 = vmatprep.mubr.msk.f32.mxu0 %vm13661_vm10, %v16568_v25  ;;  %13009 = vmatpush3.bf16.msra.mxu0 %v12996_v23 }
 0xd8d   :  { %13010 = vmatprep.subr.bf16.mxu0 %v16570_v43 }
 0xd90   :  { %13012 = vmatpush3.bf16.msra.mxu0 %v12999_v44 }
 0xd91   :  { %13013 = vmatprep.subr.bf16.mxu0 %v16570_v43 }
 0xd94   :  { %13015 = vmatpush3.bf16.msra.mxu0 %v13002_v50 }
 0xd95   :  { %13016 = vmatprep.subr.bf16.mxu0 %v16570_v43 }
 0xd98   :  { %13018 = vmatpush3.bf16.msra.mxu0 %v13005_v33 }
 0xe4e   :  { %v7381_v40 = vpop.f32.mrb[18].mxu0 }
 0xe4f   :  { %v7460_v60 = vsel %vm7459_vm15, %v7381_v40, 0.0  ;;  %v12573_v63 = vpop.f32.mrb[19].mxu0 }
 0xe50   :  { %v7461_v55 = vrot.slane %v7460_v60, 4 }
 0xe52   :  { %v7462_v56 = vadd.f32 %v7461_v55, %v7460_v60 }
 0xe54   :  { %v7463_v46 = vrot.slane %v7462_v56, 2 }
 0xe56   :  { %v7464_v53 = vadd.f32 %v7463_v46, %v7462_v56 }
 0xe58   :  { %v7465_v2 = vrot.slane %v7464_v53, 1 }
 0xe5a   :  { %v7466_v3 = vadd.f32 %v7465_v2, %v7464_v53 }
 0xe5c   :  { %v7467_v13 = vmul.f32 0.5, %v7466_v3 }
 0xe5e   :  { %v7455_v10 = vpop.f32.mrb[20].mxu0  ;;  %v7476_v14 = vmul.f32 %v7467_v13, %v7467_v13 }
 0xe5f   :  { %v7468_v34 = vsel %vm7459_vm15, %v7455_v10, 0.0  ;;  %v12592_v0 = vpop.f32.mrb[21].mxu0 }
 0xe60   :  { %v7469_v31 = vrot.slane %v7468_v34, 4 }
 0xe62   :  { %v7470_v11 = vadd.f32 %v7469_v31, %v7468_v34 }
 0xe64   :  { %v7471_v12 = vrot.slane %v7470_v11, 2 }
 0xe66   :  { %v7472_v4 = vadd.f32 %v7471_v12, %v7470_v11 }
 0xe68   :  { %v7473_v42 = vrot.slane %v7472_v4, 1 }
 0xe6a   :  { %v7474_v5 = vadd.f32 %v7473_v42, %v7472_v4 }
 0xe6c   :  { %v7475_v29 = vmul.f32 0.5, %v7474_v5 }
 0xe6e   :  { %v7477_v6 = vsub.f32 %v7475_v29, %v7476_v14 }
 0xe70   :  { %v7478_v45 = vmax.f32 %v7477_v6, 0.0 }
 0xe72   :  { %v7480_v15 = vadd.f32 1e-05, %v7478_v45 }
 0xe74   :  { %13590 = vrsqrt.f32 %v7480_v15 }
 0xe7e   :  { %v13591_v30 = vpop.eup %13590 }
 0xe7f   :  { %v7482_v54 = vmul.f32 %v13591_v30, %v7479_v7 }
 0xe81   :  { %12610 = vmatmul.mubr.msk.f32.vlgmr.msra.gmra.mrb[30].mxu1 %vm7311_vm14, %v7482_v54  ;;  %v7484_v8 = vmul.f32 %v7482_v54, %v7467_v13 }
 0xe83   :  { %v7485_v9 = vsub.f32 %v7483_v24, %v7484_v8 }
 0xe85   :  { %12629 = vmatmul.mubr.msk.f32.vlgmr.msra.gmra.mrb[22].mxu0 %vm7311_vm14, %v7485_v9 }
 0xf54   :  { %v7563_v18 = vpop.f32.mrb[30].mxu1 }
 0xf55   :  { %v7570_v16 = vrot.slane %v7563_v18, %v15374_v51  ;;  %v12611_v17 = vpop.f32.mrb[31].mxu1 }
 0xf57   :  { %v7571_v57 = vmul.f32 %v7570_v16, %v15632_v59 }
 0xf58   :  { %v7641_v19 = vpop.f32.mrb[22].mxu0 }
 0xf59   :  { %v7648_v58 = vrot.slane %v7641_v19, %v15374_v51  ;;  %v12630_v26 = vpop.f32.mrb[23].mxu0 }
 0xf5b   :  { %v7649_v36 = vadd.f32 %v7648_v58, %v7571_v57 }
 0xf5d   :  { %vm7650_vm2 = vcmp.gt.f32.partialorder %v7649_v36, 0.0  ;;  %v7651_v41 = vmul.f32 0.01, %v7649_v36 }
 0xf5f   :  { %v7652_v20 = vsel %vm7650_vm2, %v7649_v36, %v7651_v41 }
 0xf60   :  { %13610 = dma.done.wait [#allocation10 + $0x4], 1024 }
 0xf61   :  { %13611 = vsyncadd [#allocation10 + $0x4], 4294966272  ;;  %s16616_s21 = sld [smem:[#allocation34_spill]]  ;;  %13019 = vmatprep.subr.bf16.mxu0 %v16570_v43  ;;  %v16566_v21 = vmov 0   ;;  %v7659_v22 = vld [vmem:[#allocation6 + $0x8] sm:$0xff]  ;;  %v7658_v27 = vld [vmem:[#allocation6] sm:$0xff]  ;;  %v7657_v33 = vpack.c.bf16 %v7652_v20, %v7652_v20 }
 0xf62   :  { %7701 = vmatprep.mubr.bf16.mxu1 %v16566_v21  ;;  %v7661_v52 = vld [vmem:[#allocation6 + $0x18] sm:$0xff]  ;;  %7669 = vmatprep.subr.bf16.mxu1 %v7659_v22  ;;  %v7660_v59 = vld [vmem:[#allocation6 + $0x10] sm:$0xff]  ;;  %v7663_v39 = vld [vmem:[#allocation6 + $0x28] sm:$0xff]  ;;  %s16617_s25 = sld [smem:[#allocation35_spill]]  ;;  %s16618_s29 = sld [smem:[#allocation36_spill]] }
 0xf63   :  { %7670 = vmatpush1.bf16.msra.mxu1 %v7658_v27  ;;  %v7662_v61 = vld [vmem:[#allocation6 + $0x20] sm:$0xff]  ;;  %v7665_v62 = vld [vmem:[#allocation6 + $0x38] sm:$0xff]  ;;  %v7664_v50 = vld [vmem:[#allocation6 + $0x30] sm:$0xff]  ;;  %s16619_s3 = sld [smem:[#allocation37_spill]] }
 0xf64   :  { %7671 = vmatprep.subr.bf16.mxu1 %v7661_v52 }
 0xf67   :  { %v7710_v47 = vld [vmem:[%s16616_s21] sm:$0xff]  ;;  %v7711_v48 = vld [vmem:[%s16616_s21 + $0x8] sm:$0xff]  ;;  %v7712_v28 = vld [vmem:[%s16616_s21 + $0x10] sm:$0xff]  ;;  %7672 = vmatpush1.bf16.msra.mxu1 %v7660_v59 }
 0xf68   :  { %v7713_v38 = vld [vmem:[%s16616_s21 + $0x18] sm:$0xff]  ;;  %v13020_v1 = vpack.c.bf16 %v7711_v48, %v7710_v47  ;;  %7673 = vmatprep.subr.bf16.mxu1 %v7663_v39  ;;  %v7714_v35 = vld [vmem:[%s16616_s21 + $0x20] sm:$0xff]  ;;  %v7715_v44 = vld [vmem:[%s16616_s21 + $0x28] sm:$0xff] }
 0xf69   :  { %v13023_v23 = vpack.c.bf16 %v7713_v38, %v7712_v28  ;;  %v13026_v49 = vpack.c.bf16 %v7715_v44, %v7714_v35  ;;  %v7716_v32 = vld [vmem:[%s16616_s21 + $0x30] sm:$0xff]  ;;  %v7717_v37 = vld [vmem:[%s16616_s21 + $0x38] sm:$0xff]  ;;  %v7718_v60 = vld [vmem:[%s16616_s21 + $0x40] sm:$0xff] }
 0xf6a   :  { %13021 = vmatpush1.bf16.msra.mxu0 %v13020_v1  ;;  %v13029_v40 = vpack.c.bf16 %v7717_v37, %v7716_v32  ;;  %v7719_v63 = vld [vmem:[%s16616_s21 + $0x48] sm:$0xff]  ;;  %v7720_v56 = vld [vmem:[%s16616_s21 + $0x50] sm:$0xff]  ;;  %v7721_v46 = vld [vmem:[%s16616_s21 + $0x58] sm:$0xff] }
 0xf6b   :  { %13022 = vmatprep.subr.bf16.mxu0 %v16570_v43  ;;  %7674 = vmatpush1.bf16.msra.mxu1 %v7662_v61  ;;  %v13032_v55 = vpack.c.bf16 %v7719_v63, %v7718_v60  ;;  %v13035_v53 = vpack.c.bf16 %v7721_v46, %v7720_v56  ;;  %v7722_v10 = vld [vmem:[%s16616_s21 + $0x60] sm:$0xff]  ;;  %v7723_v34 = vld [vmem:[%s16616_s21 + $0x68] sm:$0xff]  ;;  %v7724_v2 = vld [vmem:[%s16616_s21 + $0x70] sm:$0xff] }
 0xf6c   :  { %7675 = vmatprep.subr.bf16.mxu1 %v7665_v62  ;;  %v13038_v0 = vpack.c.bf16 %v7723_v34, %v7722_v10  ;;  %v7725_v31 = vld [vmem:[%s16616_s21 + $0x78] sm:$0xff]  ;;  %v7726_v3 = vld [vmem:[%s16616_s21 + $0x80] sm:$0xff]  ;;  %v7727_v12 = vld [vmem:[%s16616_s21 + $0x88] sm:$0xff] }
 0xf6d   :  { %v13041_v11 = vpack.c.bf16 %v7725_v31, %v7724_v2  ;;  %v13044_v4 = vpack.c.bf16 %v7727_v12, %v7726_v3  ;;  %v7728_v13 = vld [vmem:[%s16616_s21 + $0x90] sm:$0xff]  ;;  %v7729_v42 = vld [vmem:[%s16616_s21 + $0x98] sm:$0xff]  ;;  %v7730_v14 = vld [vmem:[%s16616_s21 + $0xa0] sm:$0xff] }
 0xf6e   :  { %13024 = vmatpush1.bf16.msra.mxu0 %v13023_v23  ;;  %v13047_v5 = vpack.c.bf16 %v7729_v42, %v7728_v13  ;;  %v7731_v29 = vld [vmem:[%s16616_s21 + $0xa8] sm:$0xff]  ;;  %v7732_v45 = vld [vmem:[%s16616_s21 + $0xb0] sm:$0xff]  ;;  %v7733_v15 = vld [vmem:[%s16616_s21 + $0xb8] sm:$0xff] }
 0xf6f   :  { %13025 = vmatprep.subr.bf16.mxu0 %v16570_v43  ;;  %7676 = vmatpush1.bf16.msra.mxu1 %v7664_v50  ;;  %v13050_v6 = vpack.c.bf16 %v7731_v29, %v7730_v14  ;;  %v13053_v7 = vpack.c.bf16 %v7733_v15, %v7732_v45  ;;  %v7909_v16 = vld [vmem:[%s16617_s25 + $0x8] sm:$0xff]  ;;  %v7911_v17 = vld [vmem:[%s16617_s25 + $0x18] sm:$0xff]  ;;  %v7908_v57 = vld [vmem:[%s16617_s25] sm:$0xff] }
 0xf70   :  { %13055 = vmatprep.subr.bf16.mxu1 %v16570_v43  ;;  %v13091_v19 = vpack.c.bf16 %v7911_v17, %v7909_v16  ;;  %v7910_v58 = vld [vmem:[%s16617_s25 + $0x10] sm:$0xff]  ;;  %v7913_v26 = vld [vmem:[%s16617_s25 + $0x28] sm:$0xff]  ;;  %v7915_v36 = vld [vmem:[%s16617_s25 + $0x38] sm:$0xff] }
 0xf71   :  { %v13093_v41 = vpack.c.bf16 %v7910_v58, %v7908_v57  ;;  %v13095_v20 = vpack.c.bf16 %v7915_v36, %v7913_v26  ;;  %v7912_v22 = vld [vmem:[%s16617_s25 + $0x20] sm:$0xff]  ;;  %v7914_v27 = vld [vmem:[%s16617_s25 + $0x30] sm:$0xff] }
 0xf72   :  { %13027 = vmatpush1.bf16.msra.mxu0 %v13026_v49  ;;  %11749 = vmatmul.mubr.msk.bf16.vlgmr.msra.gmra.mrb[36].mxu1 %vm7311_vm14, %v7657_v33  ;;  %v13097_v52 = vpack.c.bf16 %v7914_v27, %v7912_v22  ;;  %v7901_v10 = vld [vmem:[%s16618_s29] sm:$0x1] }
 0xf73   :  { %13028 = vmatprep.subr.bf16.mxu0 %v16570_v43  ;;  %13057 = vmatpush1.bf16.msra.mxu1 %v13020_v1  ;;  %v7905_v31 = vld [vmem:[%s16619_s3] sm:$0x1] }
 0xf74   :  { %13058 = vmatprep.subr.bf16.mxu1 %v16570_v43 }
 0xf76   :  { %13030 = vmatpush1.bf16.msra.mxu0 %v13029_v40 }
 0xf77   :  { %13031 = vmatprep.subr.bf16.mxu0 %v16570_v43  ;;  %13060 = vmatpush1.bf16.msra.mxu1 %v13023_v23 }
 0xf78   :  { %13061 = vmatprep.subr.bf16.mxu1 %v16570_v43 }
 0xf7a   :  { %13033 = vmatpush1.bf16.msra.mxu0 %v13032_v55 }
 0xf7b   :  { %13034 = vmatprep.subr.bf16.mxu0 %v16570_v43  ;;  %13063 = vmatpush1.bf16.msra.mxu1 %v13026_v49 }
 0xf7c   :  { %13064 = vmatprep.subr.bf16.mxu1 %v16570_v43 }
 0xf7e   :  { %13036 = vmatpush1.bf16.msra.mxu0 %v13035_v53 }
 0xf7f   :  { %13037 = vmatprep.subr.bf16.mxu0 %v16570_v43  ;;  %13066 = vmatpush1.bf16.msra.mxu1 %v13029_v40 }
 0xf80   :  { %13067 = vmatprep.subr.bf16.mxu1 %v16570_v43 }
 0xf82   :  { %13039 = vmatpush1.bf16.msra.mxu0 %v13038_v0 }
 0xf83   :  { %13040 = vmatprep.subr.bf16.mxu0 %v16570_v43  ;;  %13069 = vmatpush1.bf16.msra.mxu1 %v13032_v55 }
 0xf84   :  { %13070 = vmatprep.subr.bf16.mxu1 %v16570_v43 }
 0xf86   :  { %13042 = vmatpush1.bf16.msra.mxu0 %v13041_v11 }
 0xf87   :  { %13043 = vmatprep.subr.bf16.mxu0 %v16570_v43  ;;  %13072 = vmatpush1.bf16.msra.mxu1 %v13035_v53 }
 0xf88   :  { %13073 = vmatprep.subr.bf16.mxu1 %v16570_v43 }
 0xf8a   :  { %13045 = vmatpush1.bf16.msra.mxu0 %v13044_v4 }
 0xf8b   :  { %13046 = vmatprep.subr.bf16.mxu0 %v16570_v43  ;;  %13075 = vmatpush1.bf16.msra.mxu1 %v13038_v0 }
 0xf8c   :  { %13076 = vmatprep.subr.bf16.mxu1 %v16570_v43 }
 0xf8e   :  { %13048 = vmatpush1.bf16.msra.mxu0 %v13047_v5 }
 0xf8f   :  { %13049 = vmatprep.subr.bf16.mxu0 %v16570_v43  ;;  %13078 = vmatpush1.bf16.msra.mxu1 %v13041_v11 }
 0xf90   :  { %13079 = vmatprep.subr.bf16.mxu1 %v16570_v43 }
 0xf92   :  { %13051 = vmatpush1.bf16.msra.mxu0 %v13050_v6 }
 0xf93   :  { %13052 = vmatprep.subr.bf16.mxu0 %v16570_v43  ;;  %13081 = vmatpush1.bf16.msra.mxu1 %v13044_v4 }
 0xf94   :  { %13082 = vmatprep.subr.bf16.mxu1 %v16570_v43 }
 0xf96   :  { %13054 = vmatpush1.bf16.msra.mxu0 %v13053_v7 }
 0xf97   :  { %13084 = vmatpush1.bf16.msra.mxu1 %v13047_v5  ;;  %13092 = vmatprep.subr.bf16.mxu0 %v13091_v19 }
 0xf98   :  { %13085 = vmatprep.subr.bf16.mxu1 %v16570_v43 }
 0xf9b   :  { %13087 = vmatpush1.bf16.msra.mxu1 %v13050_v6 }
 0xf9c   :  { %13088 = vmatprep.subr.bf16.mxu1 %v16570_v43 }
 0xf9f   :  { %13090 = vmatpush1.bf16.msra.mxu1 %v13053_v7 }
0x1045   :  { %v15720_v30 = vpop.f32.mrb[36].mxu1 }
0x1046   :  { %v15722_v54 = vpop.f32.mrb[37].mxu1  ;;  %v7807_v9 = vmul.f32 %v15720_v30, %v15720_v30 }
0x1047   :  { %v7808_v24 = vmul.f32 %v15722_v54, %v15722_v54  ;;  %v7707_v8 = vpop.f32.mrb[38].mxu1  ;;  %11750 = vmatprep.mubr.msk.f32.mxu0 %vm7311_vm14, %v15722_v54 }
0x1048   :  { %v7708_v18 = vpop.f32.mrb[39].mxu1  ;;  %7802 = vmatmul.mubr.f32.vlgmr.msra.gmra.mrb[24].mxu0 %v15720_v30 }
0x1049   :  { %11751 = vmatprep.mubr.msk.f32.mxu1 %vm7311_vm14, %v7808_v24  ;;  %7983 = vmatprep.mubr.f32.mxu0 %v16568_v25 }
0x104a   :  { %7877 = vmatmul.mubr.f32.vlgmr.msra.gmra.mrb[40].mxu1 %v7807_v9  ;;  %13094 = vmatpush1.bf16.msra.mxu0 %v13093_v41 }
0x104b   :  { %13096 = vmatprep.subr.bf16.mxu0 %v13095_v20 }
0x104e   :  { %13098 = vmatpush1.bf16.msra.mxu0 %v13097_v52 }
0x104f   :  { %13100 = vmatprep.subr.bf16.mxu0 %v13091_v19 }
0x111b   :  { %v7803_v59 = vpop.f32.mrb[24].mxu0 }
0x111c   :  { %v7882_v47 = vsel %vm7059_vm11, %v7803_v59, 0.0  ;;  %v7805_v48 = vpop.f32.mrb[25].mxu0 }
0x111d   :  { %v7883_v28 = vrot.slane %v7882_v47, 4  ;;  %v7878_v38 = vpop.f32.mrb[40].mxu1 }
0x111e   :  { %v7890_v39 = vsel %vm7059_vm11, %v7878_v38, 0.0  ;;  %v7880_v1 = vpop.f32.mrb[41].mxu1 }
0x111f   :  { %v7884_v23 = vadd.f32 %v7883_v28, %v7882_v47  ;;  %v7891_v61 = vrot.slane %v7890_v39, 4 }
0x1121   :  { %v7885_v35 = vrot.slane %v7884_v23, 2  ;;  %v7892_v44 = vadd.f32 %v7891_v61, %v7890_v39 }
0x1123   :  { %v7886_v62 = vadd.f32 %v7885_v35, %v7884_v23  ;;  %v7893_v49 = vrot.slane %v7892_v44, 2 }
0x1125   :  { %v7887_v50 = vrot.slane %v7886_v62, 1  ;;  %v7894_v32 = vadd.f32 %v7893_v49, %v7892_v44 }
0x1127   :  { %v7888_v37 = vadd.f32 %v7887_v50, %v7886_v62  ;;  %v7895_v33 = vrot.slane %v7894_v32, 1 }
0x1129   :  { %v7889_v40 = vmul.f32 0.083333336, %v7888_v37  ;;  %v7896_v60 = vadd.f32 %v7895_v33, %v7894_v32 }
0x112b   :  { %v7898_v63 = vmul.f32 %v7889_v40, %v7889_v40  ;;  %v7897_v55 = vmul.f32 0.083333336, %v7896_v60 }
0x112d   :  { %v7899_v56 = vsub.f32 %v7897_v55, %v7898_v63 }
0x112f   :  { %v7900_v46 = vmax.f32 %v7899_v56, 0.0 }
0x1131   :  { %v7902_v53 = vadd.f32 1e-05, %v7900_v46 }
0x1133   :  { %13592 = vrsqrt.f32 %v7902_v53 }
0x113d   :  { %v13593_v34 = vpop.eup %13592 }
0x113e   :  { %v7904_v0 = vmul.f32 %v13593_v34, %v7901_v10 }
0x1140   :  { %11752 = vmatmul.mubr.msk.f32.vlgmr.msra.gmra.mrb[26].mxu0 %vm7090_vm12, %v7904_v0  ;;  %v7906_v2 = vmul.f32 %v7904_v0, %v7889_v40 }
0x1141   :  { %13102 = vmatpush1.bf16.msra.mxu0 %v13093_v41  ;;  %8067 = vmatprep.mubr.f32.mxu0 %v16568_v25 }
0x1142   :  { %13104 = vmatprep.subr.bf16.mxu0 %v13095_v20  ;;  %v7907_v11 = vsub.f32 %v7905_v31, %v7906_v2 }
0x1145   :  { %13106 = vmatpush1.bf16.msra.mxu0 %v13097_v52 }
0x1148   :  { %11753 = vmatmul.mubr.msk.f32.vlgmr.msra.gmra.mrb[28].mxu0 %vm7090_vm12, %v7907_v11 }
0x1213   :  { %v7985_v3 = vpop.f32.mrb[26].mxu0 }
0x1214   :  { %v7993_v12 = vrot.slane %v7985_v3, %v15374_v51  ;;  %v7987_v4 = vpop.f32.mrb[27].mxu0 }
0x1215   :  { %v7997_v13 = vrot.slane %v7987_v4, %v15374_v51 }
0x1216   :  { %v7998_v42 = vmul.f32 %v7993_v12, %v15720_v30 }
0x1217   :  { %v7999_v5 = vmul.f32 %v7997_v13, %v15722_v54 }
0x121b   :  { %v8069_v14 = vpop.f32.mrb[28].mxu0 }
0x121c   :  { %v8077_v29 = vrot.slane %v8069_v14, %v15374_v51  ;;  %v8071_v6 = vpop.f32.mrb[29].mxu0 }
0x121d   :  { %v8081_v45 = vrot.slane %v8071_v6, %v15374_v51 }
0x121e   :  { %v8082_v15 = vadd.f32 %v8077_v29, %v7998_v42 }
0x121f   :  { %v8083_v7 = vadd.f32 %v8081_v45, %v7999_v5 }
0x1220   :  { %vm8084_vm3 = vcmp.gt.f32.partialorder %v8082_v15, 0.0  ;;  %v8086_v24 = vmul.f32 0.01, %v8082_v15 }
0x1221   :  { %vm8085_vm4 = vcmp.gt.f32.partialorder %v8083_v7, 0.0  ;;  %v8087_v8 = vmul.f32 0.01, %v8083_v7 }
0x1222   :  { %v15754_v9 = vsel %vm8084_vm3, %v8082_v15, %v8086_v24 }
0x1223   :  { %v8089_v18 = vsel %vm8085_vm4, %v8083_v7, %v8087_v8 }
0x1224   :  { %13612 = dma.done.wait [#allocation10 + $0x5], 6144 }
0x1225   :  { %13613 = vsyncadd [#allocation10 + $0x5], 4294961152  ;;  %v8095_v30 = vpack.c.bf16 %v8089_v18, %v8089_v18  ;;  %v8097_v54 = vld [vmem:[#allocation7 + $0x8] sm:$0xff]  ;;  %v8099_v16 = vld [vmem:[#allocation7 + $0x18] sm:$0xff]  ;;  %s16620_s8 = sld [smem:[#allocation38_spill]]  ;;  %v8094_v18 = vpack.c.bf16 %v15754_v9, %v15754_v9  ;;  %s16621_s14 = sld [smem:[#allocation39_spill]] }
0x1226   :  { %v8096_v17 = vld [vmem:[#allocation7] sm:$0xff]  ;;  %8147 = vmatprep.subr.bf16.mxu1 %v8097_v54  ;;  %8188 = vmatprep.subr.bf16.mxu0 %v8099_v16  ;;  %v8098_v57 = vld [vmem:[#allocation7 + $0x10] sm:$0xff]  ;;  %v8101_v19 = vld [vmem:[#allocation7 + $0x28] sm:$0xff]  ;;  %s16622_s19 = sld [smem:[#allocation40_spill]]  ;;  %s16623_s24 = sld [smem:[#allocation41_spill]] }
0x1227   :  { %11754 = vmatprep.mubr.msk.bf16.mxu1 %vm7311_vm14, %v8095_v30  ;;  %11755 = vmatprep.mubr.msk.bf16.mxu0 %vm7311_vm14, %v8095_v30  ;;  %v8103_v58 = vld [vmem:[#allocation7 + $0x38] sm:$0xff]  ;;  %v8100_v26 = vld [vmem:[#allocation7 + $0x20] sm:$0xff]  ;;  %v8102_v36 = vld [vmem:[#allocation7 + $0x30] sm:$0xff] }
0x1228   :  { %8148 = vmatpush1.bf16.msra.mxu1 %v8096_v17  ;;  %8189 = vmatpush1.bf16.msra.mxu0 %v8098_v57  ;;  %v8105_v41 = vld [vmem:[#allocation7 + $0x48] sm:$0xff]  ;;  %v8107_v20 = vld [vmem:[#allocation7 + $0x58] sm:$0xff]  ;;  %v8104_v22 = vld [vmem:[#allocation7 + $0x40] sm:$0xff] }
0x1229   :  { %8149 = vmatprep.subr.bf16.mxu1 %v8101_v19  ;;  %8190 = vmatprep.subr.bf16.mxu0 %v8103_v58  ;;  %v8106_v27 = vld [vmem:[#allocation7 + $0x50] sm:$0xff]  ;;  %v8109_v52 = vld [vmem:[#allocation7 + $0x68] sm:$0xff]  ;;  %v8111_v59 = vld [vmem:[#allocation7 + $0x78] sm:$0xff] }
0x122a   :  { %v8108_v47 = vld [vmem:[#allocation7 + $0x60] sm:$0xff]  ;;  %v8110_v48 = vld [vmem:[#allocation7 + $0x70] sm:$0xff]  ;;  %v8113_v28 = vld [vmem:[#allocation7 + $0x88] sm:$0xff] }
0x122b   :  { %v8115_v38 = vld [vmem:[#allocation7 + $0x98] sm:$0xff]  ;;  %v8112_v39 = vld [vmem:[#allocation7 + $0x80] sm:$0xff]  ;;  %v8114_v1 = vld [vmem:[#allocation7 + $0x90] sm:$0xff] }
0x122c   :  { %8150 = vmatpush1.bf16.msra.mxu1 %v8100_v26  ;;  %8191 = vmatpush1.bf16.msra.mxu0 %v8102_v36  ;;  %v8117_v23 = vld [vmem:[#allocation7 + $0xa8] sm:$0xff]  ;;  %v8119_v61 = vld [vmem:[#allocation7 + $0xb8] sm:$0xff]  ;;  %v8116_v35 = vld [vmem:[#allocation7 + $0xa0] sm:$0xff] }
0x122d   :  { %8151 = vmatprep.subr.bf16.mxu1 %v8105_v41  ;;  %8192 = vmatprep.subr.bf16.mxu0 %v8107_v20  ;;  %v8118_v44 = vld [vmem:[#allocation7 + $0xb0] sm:$0xff]  ;;  %v8121_v62 = vld [vmem:[#allocation7 + $0xc8] sm:$0xff]  ;;  %v8123_v49 = vld [vmem:[#allocation7 + $0xd8] sm:$0xff] }
0x122e   :  { %v8120_v50 = vld [vmem:[#allocation7 + $0xc0] sm:$0xff]  ;;  %v8122_v32 = vld [vmem:[#allocation7 + $0xd0] sm:$0xff]  ;;  %v8125_v37 = vld [vmem:[#allocation7 + $0xe8] sm:$0xff] }
0x122f   :  { %v8127_v33 = vld [vmem:[#allocation7 + $0xf8] sm:$0xff]  ;;  %v8124_v40 = vld [vmem:[#allocation7 + $0xe0] sm:$0xff]  ;;  %v8126_v60 = vld [vmem:[#allocation7 + $0xf0] sm:$0xff] }
0x1230   :  { %8152 = vmatpush1.bf16.msra.mxu1 %v8104_v22  ;;  %8193 = vmatpush1.bf16.msra.mxu0 %v8106_v27  ;;  %v8129_v63 = vld [vmem:[#allocation7 + $0x108] sm:$0xff]  ;;  %v8131_v55 = vld [vmem:[#allocation7 + $0x118] sm:$0xff]  ;;  %v8128_v56 = vld [vmem:[#allocation7 + $0x100] sm:$0xff] }
0x1231   :  { %8153 = vmatprep.subr.bf16.mxu1 %v8109_v52  ;;  %8194 = vmatprep.subr.bf16.mxu0 %v8111_v59  ;;  %v8130_v46 = vld [vmem:[#allocation7 + $0x110] sm:$0xff]  ;;  %v8133_v53 = vld [vmem:[#allocation7 + $0x128] sm:$0xff]  ;;  %v8135_v10 = vld [vmem:[#allocation7 + $0x138] sm:$0xff] }
0x1232   :  { %v8132_v34 = vld [vmem:[#allocation7 + $0x120] sm:$0xff]  ;;  %v8134_v0 = vld [vmem:[#allocation7 + $0x130] sm:$0xff]  ;;  %v8137_v2 = vld [vmem:[#allocation7 + $0x148] sm:$0xff] }
0x1233   :  { %v8139_v31 = vld [vmem:[#allocation7 + $0x158] sm:$0xff]  ;;  %v8136_v11 = vld [vmem:[#allocation7 + $0x140] sm:$0xff]  ;;  %v8138_v3 = vld [vmem:[#allocation7 + $0x150] sm:$0xff] }
0x1234   :  { %8154 = vmatpush1.bf16.msra.mxu1 %v8108_v47  ;;  %8195 = vmatpush1.bf16.msra.mxu0 %v8110_v48  ;;  %v8141_v12 = vld [vmem:[#allocation7 + $0x168] sm:$0xff]  ;;  %v8143_v4 = vld [vmem:[#allocation7 + $0x178] sm:$0xff]  ;;  %v8245_v13 = vld [vmem:[%s16620_s8 + $0x80] sm:$0xff] }
0x1235   :  { %8155 = vmatprep.subr.bf16.mxu1 %v8113_v28  ;;  %8196 = vmatprep.subr.bf16.mxu0 %v8115_v38  ;;  %v8246_v42 = vld [vmem:[%s16620_s8 + $0x88] sm:$0xff]  ;;  %v8140_v5 = vld [vmem:[#allocation7 + $0x160] sm:$0xff]  ;;  %v8142_v14 = vld [vmem:[#allocation7 + $0x170] sm:$0xff] }
0x1236   :  { %v8261_v29 = vld [vmem:[%s16620_s8 + $0x100] sm:$0xff]  ;;  %v8262_v6 = vld [vmem:[%s16620_s8 + $0x108] sm:$0xff]  ;;  %v15762_v45 = vpack.c.bf16 %v8246_v42, %v8245_v13  ;;  %v8247_v24 = vld [vmem:[%s16620_s8 + $0x90] sm:$0xff] }
0x1237   :  { %v8229_v15 = vld [vmem:[%s16620_s8] sm:$0xff]  ;;  %v8230_v7 = vld [vmem:[%s16620_s8 + $0x8] sm:$0xff]  ;;  %v8248_v8 = vld [vmem:[%s16620_s8 + $0x98] sm:$0xff]  ;;  %v15770_v30 = vpack.c.bf16 %v8262_v6, %v8261_v29 }
0x1238   :  { %8156 = vmatpush1.bf16.msra.mxu1 %v8112_v39  ;;  %8197 = vmatpush1.bf16.msra.mxu0 %v8114_v1  ;;  %v8263_v54 = vld [vmem:[%s16620_s8 + $0x110] sm:$0xff]  ;;  %v15773_v16 = vpack.c.bf16 %v8230_v7, %v8229_v15  ;;  %v8264_v17 = vld [vmem:[%s16620_s8 + $0x118] sm:$0xff]  ;;  %v15778_v57 = vpack.c.bf16 %v8248_v8, %v8247_v24  ;;  %v8249_v58 = vld [vmem:[%s16620_s8 + $0xa0] sm:$0xff] }
0x1239   :  { %8157 = vmatprep.subr.bf16.mxu1 %v8117_v23  ;;  %8198 = vmatprep.subr.bf16.mxu0 %v8119_v61  ;;  %v8231_v19 = vld [vmem:[%s16620_s8 + $0x10] sm:$0xff]  ;;  %v8232_v9 = vld [vmem:[%s16620_s8 + $0x18] sm:$0xff]  ;;  %v8250_v26 = vld [vmem:[%s16620_s8 + $0xa8] sm:$0xff]  ;;  %v15785_v36 = vpack.c.bf16 %v8264_v17, %v8263_v54 }
0x123a   :  { %v8265_v41 = vld [vmem:[%s16620_s8 + $0x120] sm:$0xff]  ;;  %v15789_v20 = vpack.c.bf16 %v8232_v9, %v8231_v19  ;;  %v8266_v22 = vld [vmem:[%s16620_s8 + $0x128] sm:$0xff]  ;;  %v15794_v27 = vpack.c.bf16 %v8250_v26, %v8249_v58  ;;  %v8251_v47 = vld [vmem:[%s16620_s8 + $0xb0] sm:$0xff] }
0x123b   :  { %v8233_v52 = vld [vmem:[%s16620_s8 + $0x20] sm:$0xff]  ;;  %v8234_v59 = vld [vmem:[%s16620_s8 + $0x28] sm:$0xff]  ;;  %v8252_v48 = vld [vmem:[%s16620_s8 + $0xb8] sm:$0xff]  ;;  %v15801_v28 = vpack.c.bf16 %v8266_v22, %v8265_v41 }
0x123c   :  { %8158 = vmatpush1.bf16.msra.mxu1 %v8116_v35  ;;  %8199 = vmatpush1.bf16.msra.mxu0 %v8118_v44  ;;  %v8267_v38 = vld [vmem:[%s16620_s8 + $0x130] sm:$0xff]  ;;  %v15805_v39 = vpack.c.bf16 %v8234_v59, %v8233_v52  ;;  %v8268_v1 = vld [vmem:[%s16620_s8 + $0x138] sm:$0xff]  ;;  %v15810_v23 = vpack.c.bf16 %v8252_v48, %v8251_v47  ;;  %v8253_v44 = vld [vmem:[%s16620_s8 + $0xc0] sm:$0xff] }
0x123d   :  { %8159 = vmatprep.subr.bf16.mxu1 %v8121_v62  ;;  %8200 = vmatprep.subr.bf16.mxu0 %v8123_v49  ;;  %v8235_v61 = vld [vmem:[%s16620_s8 + $0x30] sm:$0xff]  ;;  %v8236_v35 = vld [vmem:[%s16620_s8 + $0x38] sm:$0xff]  ;;  %v8254_v62 = vld [vmem:[%s16620_s8 + $0xc8] sm:$0xff]  ;;  %v15817_v49 = vpack.c.bf16 %v8268_v1, %v8267_v38 }
0x123e   :  { %v8274_v13 = vld [vmem:[%s16620_s8 + $0x168] sm:$0xff]  ;;  %v8259_v29 = vld [vmem:[%s16620_s8 + $0xf0] sm:$0xff]  ;;  %v8260_v6 = vld [vmem:[%s16620_s8 + $0xf8] sm:$0xff] }
0x123f   :  { %v8275_v7 = vld [vmem:[%s16620_s8 + $0x170] sm:$0xff]  ;;  %v8276_v8 = vld [vmem:[%s16620_s8 + $0x178] sm:$0xff]  ;;  %v8277_v58 = vld [vmem:[%s16620_s8 + $0x180] sm:$0xff] }
0x1240   :  { %8160 = vmatpush1.bf16.msra.mxu1 %v8120_v50  ;;  %8201 = vmatpush1.bf16.msra.mxu0 %v8122_v32  ;;  %v8269_v50 = vld [vmem:[%s16620_s8 + $0x140] sm:$0xff]  ;;  %v15821_v32 = vpack.c.bf16 %v8236_v35, %v8235_v61  ;;  %v8243_v54 = vld [vmem:[%s16620_s8 + $0x70] sm:$0xff]  ;;  %v8244_v17 = vld [vmem:[%s16620_s8 + $0x78] sm:$0xff]  ;;  %v15879_v19 = vpack.c.bf16 %v8276_v8, %v8275_v7 }
0x1241   :  { %8161 = vmatprep.subr.bf16.mxu1 %v8125_v37  ;;  %8202 = vmatprep.subr.bf16.mxu0 %v8127_v33  ;;  %v8270_v37 = vld [vmem:[%s16620_s8 + $0x148] sm:$0xff]  ;;  %v15826_v33 = vpack.c.bf16 %v8254_v62, %v8253_v44  ;;  %v15882_v9 = vpack.c.bf16 %v8244_v17, %v8243_v54  ;;  %v8279_v22 = vld [vmem:[%s16620_s8 + $0x190] sm:$0xff]  ;;  %v8280_v52 = vld [vmem:[%s16620_s8 + $0x198] sm:$0xff] }
0x1242   :  { %v8278_v26 = vld [vmem:[%s16620_s8 + $0x188] sm:$0xff]  ;;  %v15897_v59 = vpack.c.bf16 %v8280_v52, %v8279_v22  ;;  %v8281_v47 = vld [vmem:[%s16620_s8 + $0x1a0] sm:$0xff]  ;;  %v8283_v1 = vld [vmem:[%s16620_s8 + $0x1b0] sm:$0xff] }
0x1243   :  { %v15889_v41 = vpack.c.bf16 %v8278_v26, %v8277_v58  ;;  %v8282_v48 = vld [vmem:[%s16620_s8 + $0x1a8] sm:$0xff]  ;;  %v8284_v61 = vld [vmem:[%s16620_s8 + $0x1b8] sm:$0xff] }
0x1244   :  { %8162 = vmatpush1.bf16.msra.mxu1 %v8124_v40  ;;  %8203 = vmatpush1.bf16.msra.mxu0 %v8126_v60  ;;  %v8237_v40 = vld [vmem:[%s16620_s8 + $0x40] sm:$0xff]  ;;  %v8238_v60 = vld [vmem:[%s16620_s8 + $0x48] sm:$0xff]  ;;  %v13170_v38 = vpack.c.bf16 %v8282_v48, %v8281_v47  ;;  %v13173_v35 = vpack.c.bf16 %v8284_v61, %v8283_v1  ;;  %v8607_v47 = vld [vmem:[%s16621_s14 + $0x30] sm:$0xff] }
0x1245   :  { %8163 = vmatprep.subr.bf16.mxu1 %v8129_v63  ;;  %8204 = vmatprep.subr.bf16.mxu0 %v8131_v55  ;;  %v8255_v63 = vld [vmem:[%s16620_s8 + $0xd0] sm:$0xff]  ;;  %v8256_v55 = vld [vmem:[%s16620_s8 + $0xd8] sm:$0xff]  ;;  %v8594_v48 = vld [vmem:[%s16622_s19] sm:$0x1] }
0x1248   :  { %8164 = vmatpush1.bf16.msra.mxu1 %v8128_v56  ;;  %8205 = vmatpush1.bf16.msra.mxu0 %v8130_v46  ;;  %v15833_v56 = vpack.c.bf16 %v8270_v37, %v8269_v50  ;;  %v8271_v46 = vld [vmem:[%s16620_s8 + $0x150] sm:$0xff] }
0x1249   :  { %8165 = vmatprep.subr.bf16.mxu1 %v8133_v53  ;;  %8206 = vmatprep.subr.bf16.mxu0 %v8135_v10  ;;  %v15837_v53 = vpack.c.bf16 %v8238_v60, %v8237_v40  ;;  %v8272_v10 = vld [vmem:[%s16620_s8 + $0x158] sm:$0xff] }
0x124c   :  { %8166 = vmatpush1.bf16.msra.mxu1 %v8132_v34  ;;  %8207 = vmatpush1.bf16.msra.mxu0 %v8134_v0  ;;  %v15842_v34 = vpack.c.bf16 %v8256_v55, %v8255_v63  ;;  %v8239_v0 = vld [vmem:[%s16620_s8 + $0x50] sm:$0xff] }
0x124d   :  { %8167 = vmatprep.subr.bf16.mxu1 %v8137_v2  ;;  %8208 = vmatprep.subr.bf16.mxu0 %v8139_v31  ;;  %v8240_v2 = vld [vmem:[%s16620_s8 + $0x58] sm:$0xff]  ;;  %v8257_v31 = vld [vmem:[%s16620_s8 + $0xe0] sm:$0xff] }
0x1250   :  { %8168 = vmatpush1.bf16.msra.mxu1 %v8136_v11  ;;  %8209 = vmatpush1.bf16.msra.mxu0 %v8138_v3  ;;  %v8258_v11 = vld [vmem:[%s16620_s8 + $0xe8] sm:$0xff]  ;;  %v15849_v3 = vpack.c.bf16 %v8272_v10, %v8271_v46 }
0x1251   :  { %8169 = vmatprep.subr.bf16.mxu1 %v8141_v12  ;;  %8210 = vmatprep.subr.bf16.mxu0 %v8143_v4  ;;  %v8273_v12 = vld [vmem:[%s16620_s8 + $0x160] sm:$0xff]  ;;  %v15853_v4 = vpack.c.bf16 %v8240_v2, %v8239_v0  ;;  %v15858_v42 = vpack.c.bf16 %v8258_v11, %v8257_v31 }
0x1252   :  { %v15865_v15 = vpack.c.bf16 %v8274_v13, %v8273_v12 }
0x1254   :  { %8170 = vmatpush1.bf16.msra.mxu1 %v8140_v5  ;;  %8211 = vmatpush1.bf16.msra.mxu0 %v8142_v14  ;;  %v8241_v5 = vld [vmem:[%s16620_s8 + $0x60] sm:$0xff]  ;;  %v8242_v14 = vld [vmem:[%s16620_s8 + $0x68] sm:$0xff] }
0x1255   :  { %13139 = vmatprep.subr.bf16.mxu0 %v16570_v43  ;;  %13108 = vmatprep.subr.bf16.mxu1 %v15762_v45  ;;  %v15869_v24 = vpack.c.bf16 %v8242_v14, %v8241_v5 }
0x1257   :  { %8180 = vmatmul.mubr.bf16.vlgmr.msra.gmra.mrb[44].mxu1 %v8094_v18  ;;  %8221 = vmatmul.mubr.bf16.vlgmr.msra.gmra.mrb[32].mxu0 %v8094_v18  ;;  %v15874_v18 = vpack.c.bf16 %v8260_v6, %v8259_v29 }
0x1258   :  { %13141 = vmatpush1.bf16.msra.mxu0 %v15770_v30  ;;  %13110 = vmatpush3.bf16.msra.mxu1 %v15773_v16 }
0x1259   :  { %13142 = vmatprep.subr.bf16.mxu0 %v16570_v43  ;;  %13112 = vmatprep.subr.bf16.mxu1 %v15778_v57 }
0x125c   :  { %13144 = vmatpush1.bf16.msra.mxu0 %v15785_v36  ;;  %13114 = vmatpush3.bf16.msra.mxu1 %v15789_v20 }
0x125d   :  { %13145 = vmatprep.subr.bf16.mxu0 %v16570_v43  ;;  %13116 = vmatprep.subr.bf16.mxu1 %v15794_v27 }
0x1260   :  { %13147 = vmatpush1.bf16.msra.mxu0 %v15801_v28  ;;  %13118 = vmatpush3.bf16.msra.mxu1 %v15805_v39 }
0x1261   :  { %13148 = vmatprep.subr.bf16.mxu0 %v16570_v43  ;;  %13120 = vmatprep.subr.bf16.mxu1 %v15810_v23 }
0x1264   :  { %13150 = vmatpush1.bf16.msra.mxu0 %v15817_v49  ;;  %13122 = vmatpush3.bf16.msra.mxu1 %v15821_v32 }
0x1265   :  { %13151 = vmatprep.subr.bf16.mxu0 %v16570_v43  ;;  %13124 = vmatprep.subr.bf16.mxu1 %v15826_v33 }
0x1268   :  { %13153 = vmatpush1.bf16.msra.mxu0 %v15833_v56  ;;  %13126 = vmatpush3.bf16.msra.mxu1 %v15837_v53 }
0x1269   :  { %13154 = vmatprep.subr.bf16.mxu0 %v16570_v43  ;;  %13128 = vmatprep.subr.bf16.mxu1 %v15842_v34 }
0x126c   :  { %13156 = vmatpush1.bf16.msra.mxu0 %v15849_v3  ;;  %13130 = vmatpush3.bf16.msra.mxu1 %v15853_v4 }
0x126d   :  { %13157 = vmatprep.subr.bf16.mxu0 %v16570_v43  ;;  %13132 = vmatprep.subr.bf16.mxu1 %v15858_v42 }
0x1270   :  { %13159 = vmatpush1.bf16.msra.mxu0 %v15865_v15  ;;  %13134 = vmatpush3.bf16.msra.mxu1 %v15869_v24 }
0x1271   :  { %13160 = vmatprep.subr.bf16.mxu0 %v16570_v43  ;;  %13136 = vmatprep.subr.bf16.mxu1 %v15874_v18 }
0x1274   :  { %13162 = vmatpush1.bf16.msra.mxu0 %v15879_v19  ;;  %13138 = vmatpush3.bf16.msra.mxu1 %v15882_v9 }
0x1275   :  { %13163 = vmatprep.subr.bf16.mxu0 %v16570_v43  ;;  %13176 = vmatprep.subr.bf16.mxu1 %v15762_v45 }
0x1278   :  { %13165 = vmatpush1.bf16.msra.mxu0 %v15889_v41 }
0x1279   :  { %13166 = vmatprep.subr.bf16.mxu0 %v16570_v43 }
0x127c   :  { %13168 = vmatpush1.bf16.msra.mxu0 %v15897_v59 }
0x127d   :  { %13169 = vmatprep.subr.bf16.mxu0 %v16570_v43 }
0x1280   :  { %13171 = vmatpush1.bf16.msra.mxu0 %v13170_v38 }
0x1281   :  { %13172 = vmatprep.subr.bf16.mxu0 %v16570_v43 }
0x1284   :  { %13174 = vmatpush1.bf16.msra.mxu0 %v13173_v35 }
0x1285   :  { %13207 = vmatprep.subr.bf16.mxu0 %v16570_v43 }
0x132a   :  { %v15908_v45 = vpop.f32.mrb[44].mxu1  ;;  %v15910_v44 = vpop.f32.mrb[32].mxu0 }
0x132b   :  { %v15912_v62 = vpop.f32.mrb[45].mxu1  ;;  %v15914_v50 = vpop.f32.mrb[33].mxu0 }
0x132c   :  { %v8429_v37 = vmul.f32 %v15912_v62, %v15912_v62  ;;  %v8431_v40 = vmul.f32 %v15914_v50, %v15914_v50  ;;  %v8226_v60 = vpop.f32.mrb[34].mxu0  ;;  %8352 = vmatprep.mubr.f32.mxu1 %v15912_v62  ;;  %11756 = vmatprep.mubr.msk.f32.mxu0 %vm7311_vm14, %v15914_v50  ;;  %v8185_v63 = vpop.f32.mrb[46].mxu1 }
0x132d   :  { %v8227_v55 = vpop.f32.mrb[35].mxu0  ;;  %8353 = vmatmul.mubr.f32.vlgmr.msra.gmra.mrb[42].mxu1 %v15908_v45  ;;  %8423 = vmatmul.mubr.f32.vlgmr.msra.gmra.mrb[30].mxu0 %v15910_v44  ;;  %v8186_v46 = vpop.f32.mrb[47].mxu1 }
0x132e   :  { %13178 = vmatpush3.bf16.msra.mxu1 %v15773_v16  ;;  %13209 = vmatpush1.bf16.msra.mxu0 %v15770_v30  ;;  %v8428_v30 = vmul.f32 %v15908_v45, %v15908_v45  ;;  %v8430_v16 = vmul.f32 %v15910_v44, %v15910_v44 }
0x132f   :  { %11757 = vmatprep.mubr.msk.f32.mxu0 %vm7311_vm14, %v8431_v40  ;;  %13180 = vmatprep.subr.bf16.mxu1 %v15778_v57  ;;  %v8602_v57 = vld [vmem:[%s16621_s14 + $0x8] sm:$0xff] }
0x1330   :  { %13210 = vmatprep.subr.bf16.mxu0 %v16570_v43  ;;  %8499 = vmatprep.mubr.f32.mxu1 %v8429_v37  ;;  %v8598_v37 = vld [vmem:[%s16623_s24] sm:$0x1] }
0x1332   :  { %13182 = vmatpush3.bf16.msra.mxu1 %v15789_v20  ;;  %13212 = vmatpush1.bf16.msra.mxu0 %v15785_v36  ;;  %v8606_v36 = vld [vmem:[%s16621_s14 + $0x28] sm:$0xff]  ;;  %v8601_v20 = vld [vmem:[%s16621_s14] sm:$0xff] }
0x1333   :  { %13184 = vmatprep.subr.bf16.mxu1 %v15794_v27  ;;  %13213 = vmatprep.subr.bf16.mxu0 %v16570_v43  ;;  %v13243_v27 = vpack.c.bf16 %v8606_v36, %v8602_v57 }
0x1336   :  { %13186 = vmatpush3.bf16.msra.mxu1 %v15805_v39  ;;  %13215 = vmatpush1.bf16.msra.mxu0 %v15801_v28  ;;  %v8605_v28 = vld [vmem:[%s16621_s14 + $0x20] sm:$0xff]  ;;  %v8604_v39 = vld [vmem:[%s16621_s14 + $0x18] sm:$0xff] }
0x1337   :  { %13188 = vmatprep.subr.bf16.mxu1 %v15810_v23  ;;  %13216 = vmatprep.subr.bf16.mxu0 %v16570_v43  ;;  %v8608_v23 = vld [vmem:[%s16621_s14 + $0x38] sm:$0xff] }
0x133a   :  { %13190 = vmatpush3.bf16.msra.mxu1 %v15821_v32  ;;  %13218 = vmatpush1.bf16.msra.mxu0 %v15817_v49  ;;  %v13245_v49 = vpack.c.bf16 %v8605_v28, %v8601_v20  ;;  %v13247_v32 = vpack.c.bf16 %v8608_v23, %v8604_v39 }
0x133b   :  { %13192 = vmatprep.subr.bf16.mxu1 %v15826_v33  ;;  %13219 = vmatprep.subr.bf16.mxu0 %v16570_v43 }
0x133e   :  { %13194 = vmatpush3.bf16.msra.mxu1 %v15837_v53  ;;  %13221 = vmatpush1.bf16.msra.mxu0 %v15833_v56 }
0x133f   :  { %13196 = vmatprep.subr.bf16.mxu1 %v15842_v34  ;;  %13222 = vmatprep.subr.bf16.mxu0 %v16570_v43 }
0x1342   :  { %13198 = vmatpush3.bf16.msra.mxu1 %v15853_v4  ;;  %13224 = vmatpush1.bf16.msra.mxu0 %v15849_v3 }
0x1343   :  { %13200 = vmatprep.subr.bf16.mxu1 %v15858_v42  ;;  %13225 = vmatprep.subr.bf16.mxu0 %v16570_v43 }
0x1346   :  { %13202 = vmatpush3.bf16.msra.mxu1 %v15869_v24  ;;  %13227 = vmatpush1.bf16.msra.mxu0 %v15865_v15 }
0x1347   :  { %13204 = vmatprep.subr.bf16.mxu1 %v15874_v18  ;;  %13228 = vmatprep.subr.bf16.mxu0 %v16570_v43 }
0x134a   :  { %13206 = vmatpush3.bf16.msra.mxu1 %v15882_v9  ;;  %13230 = vmatpush1.bf16.msra.mxu0 %v15879_v19 }
0x134b   :  { %13231 = vmatprep.subr.bf16.mxu0 %v16570_v43  ;;  %13244 = vmatprep.subr.bf16.mxu1 %v13243_v27 }
0x134d   :  { %8500 = vmatmul.mubr.f32.vlgmr.msra.gmra.mrb[48].mxu1 %v8428_v30 }
0x134e   :  { %13233 = vmatpush1.bf16.msra.mxu0 %v15889_v41  ;;  %8676 = vmatprep.mubr.f32.mxu1 %v16568_v25 }
0x134f   :  { %13234 = vmatprep.subr.bf16.mxu0 %v16570_v43  ;;  %13246 = vmatpush1.bf16.msra.mxu1 %v13245_v49 }
0x1350   :  { %13248 = vmatprep.subr.bf16.mxu1 %v13247_v32 }
0x1352   :  { %13236 = vmatpush1.bf16.msra.mxu0 %v15897_v59  ;;  %v8603_v59 = vld [vmem:[%s16621_s14 + $0x10] sm:$0xff] }
0x1353   :  { %13237 = vmatprep.subr.bf16.mxu0 %v16570_v43  ;;  %v13249_v1 = vpack.c.bf16 %v8607_v47, %v8603_v59 }
0x1356   :  { %13239 = vmatpush1.bf16.msra.mxu0 %v13170_v38 }
0x1357   :  { %13240 = vmatprep.subr.bf16.mxu0 %v16570_v43 }
0x135a   :  { %13242 = vmatpush1.bf16.msra.mxu0 %v13173_v35 }
0x135d   :  { %8570 = vmatmul.mubr.f32.vlgmr.msra.gmra.mrb[36].mxu0 %v8430_v16 }
0x1400   :  { %v12135_v33 = vpop.f32.mrb[42].mxu1  ;;  %v8424_v56 = vpop.f32.mrb[30].mxu0 }
0x1401   :  { %v12136_v53 = vpop.f32.mrb[43].mxu1  ;;  %v8426_v10 = vpop.f32.mrb[31].mxu0 }
0x1402   :  { %v12137_v34 = vadd.f32 %v12136_v53, %v12135_v33 }
0x1404   :  { %v8425_v0 = vadd.f32 %v12137_v34, %v8424_v56 }
0x1406   :  { %v8575_v31 = vsel %vm6635_vm6, %v8425_v0, 0.0 }
0x1407   :  { %v8576_v12 = vrot.slane %v8575_v31, 4 }
0x1409   :  { %v8577_v4 = vadd.f32 %v8576_v12, %v8575_v31 }
0x140b   :  { %v8578_v13 = vrot.slane %v8577_v4, 2 }
0x140d   :  { %v8579_v42 = vadd.f32 %v8578_v13, %v8577_v4 }
0x140f   :  { %v8580_v15 = vrot.slane %v8579_v42, 1 }
0x1411   :  { %v8581_v8 = vadd.f32 %v8580_v15, %v8579_v42 }
0x1413   :  { %v8582_v17 = vmul.f32 0.017857144, %v8581_v8 }
0x1415   :  { %v8591_v26 = vmul.f32 %v8582_v17, %v8582_v17 }
0x1420   :  { %v12170_v2 = vpop.f32.mrb[48].mxu1 }
0x1421   :  { %v12171_v11 = vpop.f32.mrb[49].mxu1 }
0x1422   :  { %v12172_v3 = vadd.f32 %v12171_v11, %v12170_v2 }
0x1430   :  { %v8571_v5 = vpop.f32.mrb[36].mxu0 }
0x1431   :  { %v8572_v14 = vadd.f32 %v12172_v3, %v8571_v5  ;;  %v8573_v29 = vpop.f32.mrb[37].mxu0 }
0x1433   :  { %v8583_v6 = vsel %vm6635_vm6, %v8572_v14, 0.0 }
0x1434   :  { %v8584_v7 = vrot.slane %v8583_v6, 4 }
0x1436   :  { %v8585_v24 = vadd.f32 %v8584_v7, %v8583_v6 }
0x1438   :  { %v8586_v18 = vrot.slane %v8585_v24, 2 }
0x143a   :  { %v8587_v54 = vadd.f32 %v8586_v18, %v8585_v24 }
0x143c   :  { %v8588_v19 = vrot.slane %v8587_v54, 1 }
0x143e   :  { %v8589_v9 = vadd.f32 %v8588_v19, %v8587_v54 }
0x1440   :  { %v8590_v58 = vmul.f32 0.017857144, %v8589_v9 }
0x1442   :  { %v8592_v41 = vsub.f32 %v8590_v58, %v8591_v26 }
0x1444   :  { %v8593_v22 = vmax.f32 %v8592_v41, 0.0 }
0x1446   :  { %v8595_v52 = vadd.f32 1e-05, %v8593_v22 }
0x1448   :  { %13594 = vrsqrt.f32 %v8595_v52 }
0x1452   :  { %v13595_v38 = vpop.eup %13594 }
0x1453   :  { %v8597_v61 = vmul.f32 %v13595_v38, %v8594_v48 }
0x1455   :  { %11758 = vmatmul.mubr.msk.f32.vlgmr.msra.gmra.mrb[50].mxu1 %vm6666_vm7, %v8597_v61  ;;  %v8599_v35 = vmul.f32 %v8597_v61, %v8582_v17 }
0x1456   :  { %13250 = vmatpush1.bf16.msra.mxu1 %v13249_v1  ;;  %8747 = vmatprep.mubr.f32.mxu1 %v16568_v25 }
0x1457   :  { %13252 = vmatprep.subr.bf16.mxu1 %v13243_v27  ;;  %v8600_v40 = vsub.f32 %v8598_v37, %v8599_v35 }
0x1459   :  { %11759 = vmatmul.mubr.msk.f32.vlgmr.msra.gmra.mrb[52].mxu1 %vm6666_vm7, %v8597_v61 }
0x145a   :  { %13254 = vmatpush1.bf16.msra.mxu1 %v13245_v49  ;;  %8841 = vmatprep.mubr.f32.mxu1 %v16568_v25 }
0x145b   :  { %13256 = vmatprep.subr.bf16.mxu1 %v13247_v32 }
0x145d   :  { %11760 = vmatmul.mubr.msk.f32.vlgmr.msra.gmra.mrb[54].mxu1 %vm6666_vm7, %v8600_v40 }
0x145e   :  { %13258 = vmatpush1.bf16.msra.mxu1 %v13249_v1  ;;  %8912 = vmatprep.mubr.f32.mxu1 %v16568_v25 }
0x1461   :  { %11761 = vmatmul.mubr.msk.f32.vlgmr.msra.gmra.mrb[56].mxu1 %vm6666_vm7, %v8600_v40 }
0x1528   :  { %v8678_v60 = vpop.f32.mrb[50].mxu1 }
0x1529   :  { %v8757_v63 = vrot.slane %v8678_v60, %v15374_v51  ;;  %v8680_v55 = vpop.f32.mrb[51].mxu1 }
0x152a   :  { %v8761_v46 = vrot.slane %v8680_v55, %v15374_v51 }
0x152b   :  { %v8770_v30 = vmul.f32 %v8757_v63, %v15908_v45 }
0x152c   :  { %v8771_v16 = vmul.f32 %v8761_v46, %v15912_v62  ;;  %v8749_v57 = vpop.f32.mrb[52].mxu1 }
0x152d   :  { %v8765_v36 = vrot.slane %v8749_v57, %v15374_v51  ;;  %v8751_v20 = vpop.f32.mrb[53].mxu1 }
0x152e   :  { %v8769_v27 = vrot.slane %v8751_v20, %v15374_v51 }
0x152f   :  { %v8772_v28 = vmul.f32 %v8765_v36, %v15910_v44 }
0x1530   :  { %v8773_v39 = vmul.f32 %v8769_v27, %v15914_v50  ;;  %v8843_v23 = vpop.f32.mrb[54].mxu1 }
0x1531   :  { %v8922_v49 = vrot.slane %v8843_v23, %v15374_v51  ;;  %v8845_v32 = vpop.f32.mrb[55].mxu1 }
0x1532   :  { %v8926_v33 = vrot.slane %v8845_v32, %v15374_v51 }
0x1533   :  { %v8935_v56 = vadd.f32 %v8922_v49, %v8770_v30 }
0x1534   :  { %v8936_v45 = vadd.f32 %v8926_v33, %v8771_v16  ;;  %v8914_v53 = vpop.f32.mrb[56].mxu1 }
0x1535   :  { %vm8939_vm5 = vcmp.gt.f32.partialorder %v8935_v56, 0.0  ;;  %v8943_v62 = vmul.f32 0.01, %v8935_v56  ;;  %v8930_v10 = vrot.slane %v8914_v53, %v15374_v51  ;;  %v8916_v34 = vpop.f32.mrb[57].mxu1 }
0x1536   :  { %vm8940_vm6 = vcmp.gt.f32.partialorder %v8936_v45, 0.0  ;;  %v8944_v0 = vmul.f32 0.01, %v8936_v45  ;;  %v8934_v44 = vrot.slane %v8916_v34, %v15374_v51 }
0x1537   :  { %v15998_v2 = vsel %vm8939_vm5, %v8935_v56, %v8943_v62  ;;  %v8937_v50 = vadd.f32 %v8930_v10, %v8772_v28 }
0x1538   :  { %v8948_v31 = vsel %vm8940_vm6, %v8936_v45, %v8944_v0  ;;  %v8938_v11 = vadd.f32 %v8934_v44, %v8773_v39 }
0x1539   :  { %vm8941_vm7 = vcmp.gt.f32.partialorder %v8937_v50, 0.0  ;;  %v8945_v3 = vmul.f32 0.01, %v8937_v50 }
0x153a   :  { %vm8942_vm8 = vcmp.gt.f32.partialorder %v8938_v11, 0.0  ;;  %v8946_v12 = vmul.f32 0.01, %v8938_v11 }
0x153b   :  { %v16000_v4 = vsel %vm8941_vm7, %v8937_v50, %v8945_v3 }
0x153c   :  { %v16002_v13 = vsel %vm8942_vm8, %v8938_v11, %v8946_v12 }
0x153d   :  { %13614 = dma.done.wait [#allocation10 + $0x6], 25088 }
0x153e   :  { %13615 = vsyncadd [#allocation10 + $0x6], 4294942208  ;;  %v16004_v42 = vpack.c.bf16 %v8948_v31, %v8948_v31  ;;  %v8960_v5 = vld [vmem:[#allocation8 + $0x8] sm:$0xff]  ;;  %v8962_v14 = vld [vmem:[#allocation8 + $0x18] sm:$0xff]  ;;  %s16624_s30 = sld [smem:[#allocation42_spill]]  ;;  %v16631_v51 = vmov 0.0|0.0  }
0x153f   :  { %v8959_v29 = vld [vmem:[#allocation8] sm:$0xff]  ;;  %9158 = vmatprep.subr.bf16.mxu1 %v8960_v5  ;;  %9240 = vmatprep.subr.bf16.mxu0 %v8962_v14  ;;  %v8961_v6 = vld [vmem:[#allocation8 + $0x10] sm:$0xff]  ;;  %v8966_v24 = vld [vmem:[#allocation8 + $0x38] sm:$0xff]  ;;  %s16641_s6 = sld [smem:[#allocation43_spill]]  ;;  %s16644_s12 = sld [smem:[#allocation44_spill]] }
0x1540   :  { %9190 = vmatprep.mubr.bf16.mxu1 %v16004_v42  ;;  %9272 = vmatprep.mubr.bf16.mxu0 %v16004_v42  ;;  %v8967_v15 = vld [vmem:[#allocation8 + $0x40] sm:$0xff]  ;;  %v8969_v7 = vld [vmem:[#allocation8 + $0x50] sm:$0xff]  ;;  %v8968_v8 = vld [vmem:[#allocation8 + $0x48] sm:$0xff]  ;;  %s16645_s20 = sld [smem:[#allocation45_spill]] }
0x1541   :  { %9159 = vmatpush1.bf16.msra.mxu1 %v8959_v29  ;;  %9241 = vmatpush1.bf16.msra.mxu0 %v8961_v6  ;;  %v8974_v18 = vld [vmem:[#allocation8 + $0x78] sm:$0xff]  ;;  %v8976_v54 = vld [vmem:[#allocation8 + $0x88] sm:$0xff]  ;;  %v8973_v17 = vld [vmem:[#allocation8 + $0x70] sm:$0xff] }
0x1542   :  { %9160 = vmatprep.subr.bf16.mxu1 %v8967_v15  ;;  %9242 = vmatprep.subr.bf16.mxu0 %v8969_v7  ;;  %v8975_v19 = vld [vmem:[#allocation8 + $0x80] sm:$0xff]  ;;  %v8981_v9 = vld [vmem:[#allocation8 + $0xb0] sm:$0xff]  ;;  %v8980_v26 = vld [vmem:[#allocation8 + $0xa8] sm:$0xff] }
0x1543   :  { %v8983_v58 = vld [vmem:[#allocation8 + $0xc0] sm:$0xff]  ;;  %v8982_v41 = vld [vmem:[#allocation8 + $0xb8] sm:$0xff]  ;;  %v8988_v22 = vld [vmem:[#allocation8 + $0xe8] sm:$0xff] }
0x1544   :  { %v8990_v52 = vld [vmem:[#allocation8 + $0xf8] sm:$0xff]  ;;  %v8987_v59 = vld [vmem:[#allocation8 + $0xe0] sm:$0xff]  ;;  %v8989_v47 = vld [vmem:[#allocation8 + $0xf0] sm:$0xff] }
0x1545   :  { %9161 = vmatpush1.bf16.msra.mxu1 %v8966_v24  ;;  %9243 = vmatpush1.bf16.msra.mxu0 %v8968_v8  ;;  %v8995_v48 = vld [vmem:[#allocation8 + $0x120] sm:$0xff]  ;;  %v8997_v38 = vld [vmem:[#allocation8 + $0x130] sm:$0xff]  ;;  %v8994_v1 = vld [vmem:[#allocation8 + $0x118] sm:$0xff] }
0x1546   :  { %9162 = vmatprep.subr.bf16.mxu1 %v8974_v18  ;;  %9244 = vmatprep.subr.bf16.mxu0 %v8976_v54  ;;  %v8996_v61 = vld [vmem:[#allocation8 + $0x128] sm:$0xff]  ;;  %v9002_v35 = vld [vmem:[#allocation8 + $0x158] sm:$0xff]  ;;  %v9001_v40 = vld [vmem:[#allocation8 + $0x150] sm:$0xff] }
0x1547   :  { %v9004_v37 = vld [vmem:[#allocation8 + $0x168] sm:$0xff]  ;;  %v9003_v60 = vld [vmem:[#allocation8 + $0x160] sm:$0xff]  ;;  %v9009_v63 = vld [vmem:[#allocation8 + $0x190] sm:$0xff] }
0x1548   :  { %v9011_v55 = vld [vmem:[#allocation8 + $0x1a0] sm:$0xff]  ;;  %v9008_v46 = vld [vmem:[#allocation8 + $0x188] sm:$0xff]  ;;  %v9010_v30 = vld [vmem:[#allocation8 + $0x198] sm:$0xff] }
0x1549   :  { %9163 = vmatpush1.bf16.msra.mxu1 %v8973_v17  ;;  %9245 = vmatpush1.bf16.msra.mxu0 %v8975_v19  ;;  %v9016_v16 = vld [vmem:[#allocation8 + $0x1c8] sm:$0xff]  ;;  %v9018_v57 = vld [vmem:[#allocation8 + $0x1d8] sm:$0xff]  ;;  %v9015_v36 = vld [vmem:[#allocation8 + $0x1c0] sm:$0xff]  ;;  %v16010_v17 = vpack.c.bf16 %v15998_v2, %v15998_v2 }
0x154a   :  { %9164 = vmatprep.subr.bf16.mxu1 %v8981_v9  ;;  %9246 = vmatprep.subr.bf16.mxu0 %v8983_v58  ;;  %v9017_v20 = vld [vmem:[#allocation8 + $0x1d0] sm:$0xff]  ;;  %v9023_v27 = vld [vmem:[#allocation8 + $0x200] sm:$0xff]  ;;  %v9022_v39 = vld [vmem:[#allocation8 + $0x1f8] sm:$0xff] }
0x154b   :  { %v9025_v28 = vld [vmem:[#allocation8 + $0x210] sm:$0xff]  ;;  %v9024_v23 = vld [vmem:[#allocation8 + $0x208] sm:$0xff]  ;;  %v9030_v49 = vld [vmem:[#allocation8 + $0x238] sm:$0xff] }
0x154c   :  { %v9032_v32 = vld [vmem:[#allocation8 + $0x248] sm:$0xff]  ;;  %v9029_v33 = vld [vmem:[#allocation8 + $0x230] sm:$0xff]  ;;  %v9031_v56 = vld [vmem:[#allocation8 + $0x240] sm:$0xff] }
0x154d   :  { %9165 = vmatpush1.bf16.msra.mxu1 %v8980_v26  ;;  %9247 = vmatpush1.bf16.msra.mxu0 %v8982_v41  ;;  %v9037_v45 = vld [vmem:[#allocation8 + $0x270] sm:$0xff]  ;;  %v9039_v53 = vld [vmem:[#allocation8 + $0x280] sm:$0xff]  ;;  %v9036_v62 = vld [vmem:[#allocation8 + $0x268] sm:$0xff]  ;;  %v16014_v41 = vpack.c.bf16 %v16002_v13, %v16002_v13 }
0x154e   :  { %9166 = vmatprep.subr.bf16.mxu1 %v8988_v22  ;;  %9248 = vmatprep.subr.bf16.mxu0 %v8990_v52  ;;  %v9038_v10 = vld [vmem:[#allocation8 + $0x278] sm:$0xff]  ;;  %v9044_v34 = vld [vmem:[#allocation8 + $0x2a8] sm:$0xff]  ;;  %v9043_v44 = vld [vmem:[#allocation8 + $0x2a0] sm:$0xff] }
0x154f   :  { %v9046_v0 = vld [vmem:[#allocation8 + $0x2b8] sm:$0xff]  ;;  %v9045_v50 = vld [vmem:[#allocation8 + $0x2b0] sm:$0xff]  ;;  %v9051_v31 = vld [vmem:[#allocation8 + $0x2e0] sm:$0xff] }
0x1550   :  { %v9053_v11 = vld [vmem:[#allocation8 + $0x2f0] sm:$0xff]  ;;  %v9050_v3 = vld [vmem:[#allocation8 + $0x2d8] sm:$0xff]  ;;  %v9052_v12 = vld [vmem:[#allocation8 + $0x2e8] sm:$0xff] }
0x1551   :  { %9167 = vmatpush1.bf16.msra.mxu1 %v8987_v59  ;;  %9249 = vmatpush1.bf16.msra.mxu0 %v8989_v47  ;;  %v9058_v5 = vld [vmem:[#allocation8 + $0x318] sm:$0xff]  ;;  %v9060_v14 = vld [vmem:[#allocation8 + $0x328] sm:$0xff]  ;;  %v9057_v29 = vld [vmem:[#allocation8 + $0x310] sm:$0xff] }
0x1552   :  { %9168 = vmatprep.subr.bf16.mxu1 %v8995_v48  ;;  %9250 = vmatprep.subr.bf16.mxu0 %v8997_v38  ;;  %v9059_v6 = vld [vmem:[#allocation8 + $0x320] sm:$0xff]  ;;  %v9065_v15 = vld [vmem:[#allocation8 + $0x350] sm:$0xff]  ;;  %v9064_v24 = vld [vmem:[#allocation8 + $0x348] sm:$0xff] }
0x1553   :  { %v9067_v7 = vld [vmem:[#allocation8 + $0x360] sm:$0xff]  ;;  %v9066_v8 = vld [vmem:[#allocation8 + $0x358] sm:$0xff]  ;;  %v9072_v18 = vld [vmem:[#allocation8 + $0x388] sm:$0xff] }
0x1554   :  { %v9074_v54 = vld [vmem:[#allocation8 + $0x398] sm:$0xff]  ;;  %v9071_v19 = vld [vmem:[#allocation8 + $0x380] sm:$0xff]  ;;  %v9073_v9 = vld [vmem:[#allocation8 + $0x390] sm:$0xff] }
0x1555   :  { %9169 = vmatpush1.bf16.msra.mxu1 %v8994_v1  ;;  %9251 = vmatpush1.bf16.msra.mxu0 %v8996_v61  ;;  %v9079_v58 = vld [vmem:[#allocation8 + $0x3c0] sm:$0xff]  ;;  %v9081_v26 = vld [vmem:[#allocation8 + $0x3d0] sm:$0xff]  ;;  %v9078_v2 = vld [vmem:[#allocation8 + $0x3b8] sm:$0xff] }
0x1556   :  { %9170 = vmatprep.subr.bf16.mxu1 %v9002_v35  ;;  %9252 = vmatprep.subr.bf16.mxu0 %v9004_v37  ;;  %v9080_v22 = vld [vmem:[#allocation8 + $0x3c8] sm:$0xff]  ;;  %v9086_v52 = vld [vmem:[#allocation8 + $0x3f8] sm:$0xff]  ;;  %v9085_v13 = vld [vmem:[#allocation8 + $0x3f0] sm:$0xff] }
0x1557   :  { %v9088_v59 = vld [vmem:[#allocation8 + $0x408] sm:$0xff]  ;;  %v9087_v47 = vld [vmem:[#allocation8 + $0x400] sm:$0xff]  ;;  %v9093_v48 = vld [vmem:[#allocation8 + $0x430] sm:$0xff] }
0x1558   :  { %v9095_v38 = vld [vmem:[#allocation8 + $0x440] sm:$0xff]  ;;  %v9092_v1 = vld [vmem:[#allocation8 + $0x428] sm:$0xff]  ;;  %v9094_v61 = vld [vmem:[#allocation8 + $0x438] sm:$0xff] }
0x1559   :  { %9171 = vmatpush1.bf16.msra.mxu1 %v9001_v40  ;;  %9253 = vmatpush1.bf16.msra.mxu0 %v9003_v60  ;;  %v9100_v35 = vld [vmem:[#allocation8 + $0x468] sm:$0xff]  ;;  %v9102_v37 = vld [vmem:[#allocation8 + $0x478] sm:$0xff]  ;;  %v9099_v40 = vld [vmem:[#allocation8 + $0x460] sm:$0xff] }
0x155a   :  { %9172 = vmatprep.subr.bf16.mxu1 %v9009_v63  ;;  %9254 = vmatprep.subr.bf16.mxu0 %v9011_v55  ;;  %v9101_v60 = vld [vmem:[#allocation8 + $0x470] sm:$0xff]  ;;  %v9107_v63 = vld [vmem:[#allocation8 + $0x4a0] sm:$0xff] }
0x155b   :  { %v9109_v55 = vld [vmem:[#allocation8 + $0x4b0] sm:$0xff] }
0x155d   :  { %9173 = vmatpush1.bf16.msra.mxu1 %v9008_v46  ;;  %9255 = vmatpush1.bf16.msra.mxu0 %v9010_v30  ;;  %v9106_v46 = vld [vmem:[#allocation8 + $0x498] sm:$0xff]  ;;  %v9108_v30 = vld [vmem:[#allocation8 + $0x4a8] sm:$0xff] }
0x155e   :  { %9174 = vmatprep.subr.bf16.mxu1 %v9016_v16  ;;  %9256 = vmatprep.subr.bf16.mxu0 %v9018_v57  ;;  %v9114_v16 = vld [vmem:[#allocation8 + $0x4d8] sm:$0xff]  ;;  %v9116_v57 = vld [vmem:[#allocation8 + $0x4e8] sm:$0xff] }
0x1561   :  { %9175 = vmatpush1.bf16.msra.mxu1 %v9015_v36  ;;  %9257 = vmatpush1.bf16.msra.mxu0 %v9017_v20  ;;  %v9113_v36 = vld [vmem:[#allocation8 + $0x4d0] sm:$0xff]  ;;  %v9115_v20 = vld [vmem:[#allocation8 + $0x4e0] sm:$0xff] }
0x1562   :  { %9176 = vmatprep.subr.bf16.mxu1 %v9023_v27  ;;  %9258 = vmatprep.subr.bf16.mxu0 %v9025_v28  ;;  %v9121_v27 = vld [vmem:[#allocation8 + $0x510] sm:$0xff]  ;;  %v9123_v28 = vld [vmem:[#allocation8 + $0x520] sm:$0xff] }
0x1565   :  { %9177 = vmatpush1.bf16.msra.mxu1 %v9022_v39  ;;  %9259 = vmatpush1.bf16.msra.mxu0 %v9024_v23  ;;  %v9120_v39 = vld [vmem:[#allocation8 + $0x508] sm:$0xff]  ;;  %v9122_v23 = vld [vmem:[#allocation8 + $0x518] sm:$0xff] }
0x1566   :  { %9178 = vmatprep.subr.bf16.mxu1 %v9030_v49  ;;  %9260 = vmatprep.subr.bf16.mxu0 %v9032_v32  ;;  %v9128_v49 = vld [vmem:[#allocation8 + $0x548] sm:$0xff]  ;;  %v9130_v32 = vld [vmem:[#allocation8 + $0x558] sm:$0xff] }
0x1569   :  { %9179 = vmatpush1.bf16.msra.mxu1 %v9029_v33  ;;  %9261 = vmatpush1.bf16.msra.mxu0 %v9031_v56  ;;  %v9127_v33 = vld [vmem:[#allocation8 + $0x540] sm:$0xff]  ;;  %v9129_v56 = vld [vmem:[#allocation8 + $0x550] sm:$0xff] }
0x156a   :  { %9180 = vmatprep.subr.bf16.mxu1 %v9037_v45  ;;  %9262 = vmatprep.subr.bf16.mxu0 %v9039_v53  ;;  %v9135_v45 = vld [vmem:[#allocation8 + $0x580] sm:$0xff]  ;;  %v9137_v53 = vld [vmem:[#allocation8 + $0x590] sm:$0xff] }
0x156d   :  { %9181 = vmatpush1.bf16.msra.mxu1 %v9036_v62  ;;  %9263 = vmatpush1.bf16.msra.mxu0 %v9038_v10  ;;  %v9134_v62 = vld [vmem:[#allocation8 + $0x578] sm:$0xff]  ;;  %v9136_v10 = vld [vmem:[#allocation8 + $0x588] sm:$0xff] }
0x156e   :  { %9182 = vmatprep.subr.bf16.mxu1 %v9044_v34  ;;  %9264 = vmatprep.subr.bf16.mxu0 %v9046_v0  ;;  %v9142_v34 = vld [vmem:[#allocation8 + $0x5b8] sm:$0xff]  ;;  %v9144_v0 = vld [vmem:[#allocation8 + $0x5c8] sm:$0xff] }
0x1571   :  { %9183 = vmatpush1.bf16.msra.mxu1 %v9043_v44  ;;  %9265 = vmatpush1.bf16.msra.mxu0 %v9045_v50  ;;  %v9141_v44 = vld [vmem:[#allocation8 + $0x5b0] sm:$0xff]  ;;  %v9143_v50 = vld [vmem:[#allocation8 + $0x5c0] sm:$0xff] }
0x1572   :  { %9184 = vmatprep.subr.bf16.mxu1 %v9051_v31  ;;  %9266 = vmatprep.subr.bf16.mxu0 %v9053_v11  ;;  %v9149_v31 = vld [vmem:[#allocation8 + $0x5f0] sm:$0xff]  ;;  %v9151_v11 = vld [vmem:[#allocation8 + $0x600] sm:$0xff] }
0x1575   :  { %9185 = vmatpush1.bf16.msra.mxu1 %v9050_v3  ;;  %9267 = vmatpush1.bf16.msra.mxu0 %v9052_v12  ;;  %v9148_v3 = vld [vmem:[#allocation8 + $0x5e8] sm:$0xff]  ;;  %v9150_v12 = vld [vmem:[#allocation8 + $0x5f8] sm:$0xff] }
0x1576   :  { %9186 = vmatprep.subr.bf16.mxu1 %v9058_v5  ;;  %9268 = vmatprep.subr.bf16.mxu0 %v9060_v14  ;;  %v8964_v5 = vld [vmem:[#allocation8 + $0x28] sm:$0xff]  ;;  %v9021_v14 = vld [vmem:[#allocation8 + $0x1f0] sm:$0xff] }
0x1579   :  { %9187 = vmatpush1.bf16.msra.mxu1 %v9057_v29  ;;  %9269 = vmatpush1.bf16.msra.mxu0 %v9059_v6  ;;  %v16024_v29 = vpack.c.bf16 %v16000_v4, %v16000_v4  ;;  %v8963_v6 = vld [vmem:[#allocation8 + $0x20] sm:$0xff]  ;;  %v8978_v4 = vld [vmem:[#allocation8 + $0x98] sm:$0xff] }
0x157a   :  { %9188 = vmatprep.subr.bf16.mxu1 %v9065_v15  ;;  %9270 = vmatprep.subr.bf16.mxu0 %v9067_v7  ;;  %v8965_v15 = vld [vmem:[#allocation8 + $0x30] sm:$0xff]  ;;  %v8971_v7 = vld [vmem:[#allocation8 + $0x60] sm:$0xff] }
0x157d   :  { %9189 = vmatpush1.bf16.msra.mxu1 %v9064_v24  ;;  %9271 = vmatpush1.bf16.msra.mxu0 %v9066_v8  ;;  %v9028_v24 = vld [vmem:[#allocation8 + $0x228] sm:$0xff]  ;;  %v8970_v8 = vld [vmem:[#allocation8 + $0x58] sm:$0xff] }
0x157e   :  { %9199 = vmatprep.subr.bf16.mxu1 %v9072_v18  ;;  %9281 = vmatprep.subr.bf16.mxu0 %v9074_v54  ;;  %v8972_v18 = vld [vmem:[#allocation8 + $0x68] sm:$0xff]  ;;  %v9035_v54 = vld [vmem:[#allocation8 + $0x260] sm:$0xff] }
0x1580   :  { %9191 = vmatmul.mubr.bf16.vlgmr.msra.gmra.mrb[60].mxu1 %v16010_v17  ;;  %9273 = vmatmul.mubr.bf16.vlgmr.msra.gmra.mrb[40].mxu0 %v16010_v17 }
0x1581   :  { %9200 = vmatpush1.bf16.msra.mxu1 %v9071_v19  ;;  %9282 = vmatpush1.bf16.msra.mxu0 %v9073_v9  ;;  %v8977_v19 = vld [vmem:[#allocation8 + $0x90] sm:$0xff]  ;;  %v8979_v9 = vld [vmem:[#allocation8 + $0xa0] sm:$0xff] }
0x1582   :  { %9201 = vmatprep.subr.bf16.mxu1 %v9079_v58  ;;  %9283 = vmatprep.subr.bf16.mxu0 %v9081_v26  ;;  %v8985_v58 = vld [vmem:[#allocation8 + $0xd0] sm:$0xff]  ;;  %v9042_v26 = vld [vmem:[#allocation8 + $0x298] sm:$0xff] }
0x1583   :  { %11762 = vmatprep.mubr.msk.bf16.mxu1 %vm7311_vm14, %v16014_v41  ;;  %11763 = vmatprep.mubr.msk.bf16.mxu0 %vm7311_vm14, %v16014_v41 }
0x1585   :  { %9202 = vmatpush1.bf16.msra.mxu1 %v9078_v2  ;;  %9284 = vmatpush1.bf16.msra.mxu0 %v9080_v22  ;;  %v8984_v2 = vld [vmem:[#allocation8 + $0xc8] sm:$0xff]  ;;  %v8986_v22 = vld [vmem:[#allocation8 + $0xd8] sm:$0xff] }
0x1586   :  { %9203 = vmatprep.subr.bf16.mxu1 %v9086_v52  ;;  %9285 = vmatprep.subr.bf16.mxu0 %v9088_v59  ;;  %v8992_v52 = vld [vmem:[#allocation8 + $0x108] sm:$0xff]  ;;  %v9049_v59 = vld [vmem:[#allocation8 + $0x2d0] sm:$0xff] }
0x1589   :  { %9204 = vmatpush1.bf16.msra.mxu1 %v9085_v13  ;;  %9286 = vmatpush1.bf16.msra.mxu0 %v9087_v47  ;;  %v8993_v13 = vld [vmem:[#allocation8 + $0x110] sm:$0xff]  ;;  %v8999_v47 = vld [vmem:[#allocation8 + $0x140] sm:$0xff] }
0x158a   :  { %9205 = vmatprep.subr.bf16.mxu1 %v9093_v48  ;;  %9287 = vmatprep.subr.bf16.mxu0 %v9095_v38  ;;  %v9056_v48 = vld [vmem:[#allocation8 + $0x308] sm:$0xff]  ;;  %v8998_v38 = vld [vmem:[#allocation8 + $0x138] sm:$0xff] }
0x158d   :  { %9206 = vmatpush1.bf16.msra.mxu1 %v9092_v1  ;;  %9288 = vmatpush1.bf16.msra.mxu0 %v9094_v61  ;;  %v9000_v1 = vld [vmem:[#allocation8 + $0x148] sm:$0xff]  ;;  %v9006_v61 = vld [vmem:[#allocation8 + $0x178] sm:$0xff] }
0x158e   :  { %9207 = vmatprep.subr.bf16.mxu1 %v9100_v35  ;;  %9289 = vmatprep.subr.bf16.mxu0 %v9102_v37  ;;  %v9063_v35 = vld [vmem:[#allocation8 + $0x340] sm:$0xff]  ;;  %v9005_v37 = vld [vmem:[#allocation8 + $0x170] sm:$0xff] }
0x1591   :  { %9208 = vmatpush1.bf16.msra.mxu1 %v9099_v40  ;;  %9290 = vmatpush1.bf16.msra.mxu0 %v9101_v60  ;;  %v9007_v40 = vld [vmem:[#allocation8 + $0x180] sm:$0xff]  ;;  %v9013_v60 = vld [vmem:[#allocation8 + $0x1b0] sm:$0xff] }
0x1592   :  { %9209 = vmatprep.subr.bf16.mxu1 %v9107_v63  ;;  %9291 = vmatprep.subr.bf16.mxu0 %v9109_v55  ;;  %v9070_v63 = vld [vmem:[#allocation8 + $0x378] sm:$0xff]  ;;  %v9012_v55 = vld [vmem:[#allocation8 + $0x1a8] sm:$0xff] }
0x1595   :  { %9210 = vmatpush1.bf16.msra.mxu1 %v9106_v46  ;;  %9292 = vmatpush1.bf16.msra.mxu0 %v9108_v30  ;;  %v9014_v46 = vld [vmem:[#allocation8 + $0x1b8] sm:$0xff]  ;;  %v9020_v30 = vld [vmem:[#allocation8 + $0x1e8] sm:$0xff] }
0x1596   :  { %9211 = vmatprep.subr.bf16.mxu1 %v9114_v16  ;;  %9293 = vmatprep.subr.bf16.mxu0 %v9116_v57  ;;  %v9019_v16 = vld [vmem:[#allocation8 + $0x1e0] sm:$0xff]  ;;  %v9077_v57 = vld [vmem:[#allocation8 + $0x3b0] sm:$0xff] }
0x1599   :  { %9212 = vmatpush1.bf16.msra.mxu1 %v9113_v36  ;;  %9294 = vmatpush1.bf16.msra.mxu0 %v9115_v20  ;;  %v9027_v36 = vld [vmem:[#allocation8 + $0x220] sm:$0xff]  ;;  %v9026_v20 = vld [vmem:[#allocation8 + $0x218] sm:$0xff] }
0x159a   :  { %9213 = vmatprep.subr.bf16.mxu1 %v9121_v27  ;;  %9295 = vmatprep.subr.bf16.mxu0 %v9123_v28  ;;  %v9084_v27 = vld [vmem:[#allocation8 + $0x3e8] sm:$0xff]  ;;  %v9034_v28 = vld [vmem:[#allocation8 + $0x258] sm:$0xff] }
0x159d   :  { %9214 = vmatpush1.bf16.msra.mxu1 %v9120_v39  ;;  %9296 = vmatpush1.bf16.msra.mxu0 %v9122_v23  ;;  %v9033_v39 = vld [vmem:[#allocation8 + $0x250] sm:$0xff]  ;;  %v9091_v23 = vld [vmem:[#allocation8 + $0x420] sm:$0xff] }
0x159e   :  { %9215 = vmatprep.subr.bf16.mxu1 %v9128_v49  ;;  %9297 = vmatprep.subr.bf16.mxu0 %v9130_v32  ;;  %v9041_v49 = vld [vmem:[#allocation8 + $0x290] sm:$0xff]  ;;  %v9040_v32 = vld [vmem:[#allocation8 + $0x288] sm:$0xff] }
0x15a1   :  { %9216 = vmatpush1.bf16.msra.mxu1 %v9127_v33  ;;  %9298 = vmatpush1.bf16.msra.mxu0 %v9129_v56  ;;  %v9098_v33 = vld [vmem:[#allocation8 + $0x458] sm:$0xff]  ;;  %v9048_v56 = vld [vmem:[#allocation8 + $0x2c8] sm:$0xff] }
0x15a2   :  { %9217 = vmatprep.subr.bf16.mxu1 %v9135_v45  ;;  %9299 = vmatprep.subr.bf16.mxu0 %v9137_v53  ;;  %v9047_v45 = vld [vmem:[#allocation8 + $0x2c0] sm:$0xff]  ;;  %v9105_v53 = vld [vmem:[#allocation8 + $0x490] sm:$0xff] }
0x15a5   :  { %9218 = vmatpush1.bf16.msra.mxu1 %v9134_v62  ;;  %9300 = vmatpush1.bf16.msra.mxu0 %v9136_v10  ;;  %v9055_v62 = vld [vmem:[#allocation8 + $0x300] sm:$0xff]  ;;  %v9054_v10 = vld [vmem:[#allocation8 + $0x2f8] sm:$0xff] }
0x15a6   :  { %9219 = vmatprep.subr.bf16.mxu1 %v9142_v34  ;;  %9301 = vmatprep.subr.bf16.mxu0 %v9144_v0  ;;  %v9112_v34 = vld [vmem:[#allocation8 + $0x4c8] sm:$0xff]  ;;  %v9062_v0 = vld [vmem:[#allocation8 + $0x338] sm:$0xff] }
0x15a9   :  { %9220 = vmatpush1.bf16.msra.mxu1 %v9141_v44  ;;  %9302 = vmatpush1.bf16.msra.mxu0 %v9143_v50  ;;  %v9061_v44 = vld [vmem:[#allocation8 + $0x330] sm:$0xff]  ;;  %v9119_v50 = vld [vmem:[#allocation8 + $0x500] sm:$0xff] }
0x15aa   :  { %9221 = vmatprep.subr.bf16.mxu1 %v9149_v31  ;;  %9303 = vmatprep.subr.bf16.mxu0 %v9151_v11  ;;  %v9069_v31 = vld [vmem:[#allocation8 + $0x370] sm:$0xff]  ;;  %v9068_v11 = vld [vmem:[#allocation8 + $0x368] sm:$0xff] }
0x15ad   :  { %9222 = vmatpush1.bf16.msra.mxu1 %v9148_v3  ;;  %9304 = vmatpush1.bf16.msra.mxu0 %v9150_v12  ;;  %v9126_v3 = vld [vmem:[#allocation8 + $0x538] sm:$0xff]  ;;  %v9076_v12 = vld [vmem:[#allocation8 + $0x3a8] sm:$0xff] }
0x15ae   :  { %9322 = vmatprep.subr.bf16.mxu1 %v8964_v5  ;;  %12173 = vmatprep.subr.bf16.mxu0 %v9021_v14  ;;  %v9075_v5 = vld [vmem:[#allocation8 + $0x3a0] sm:$0xff]  ;;  %v9133_v14 = vld [vmem:[#allocation8 + $0x570] sm:$0xff] }
0x15b0   :  { %9232 = vmatmul.mubr.bf16.vlgmr.msra.gmra.mrb[60].mxu1 %v16024_v29  ;;  %9314 = vmatmul.mubr.bf16.vlgmr.msra.gmra.mrb[40].mxu0 %v16024_v29 }
0x15b1   :  { %9323 = vmatpush1.bf16.msra.mxu1 %v8963_v6  ;;  %12174 = vmatpush3.bf16.msra.mxu0 %v8965_v15  ;;  %v9083_v6 = vld [vmem:[#allocation8 + $0x3e0] sm:$0xff]  ;;  %v9082_v15 = vld [vmem:[#allocation8 + $0x3d8] sm:$0xff] }
0x15b2   :  { %9324 = vmatprep.subr.bf16.mxu1 %v8971_v7  ;;  %12175 = vmatprep.subr.bf16.mxu0 %v9028_v24  ;;  %v9140_v7 = vld [vmem:[#allocation8 + $0x5a8] sm:$0xff]  ;;  %v9090_v24 = vld [vmem:[#allocation8 + $0x418] sm:$0xff] }
0x15b3   :  { %9436 = vmatprep.mubr.bf16.mxu0 %v16004_v42  ;;  %9354 = vmatprep.mubr.bf16.mxu1 %v16004_v42  ;;  %v8991_v42 = vld [vmem:[#allocation8 + $0x100] sm:$0xff] }
0x15b5   :  { %9325 = vmatpush1.bf16.msra.mxu1 %v8970_v8  ;;  %12176 = vmatpush3.bf16.msra.mxu0 %v8972_v18  ;;  %v9147_v8 = vld [vmem:[#allocation8 + $0x5e0] sm:$0xff]  ;;  %v9097_v18 = vld [vmem:[#allocation8 + $0x450] sm:$0xff] }
0x15b6   :  { %9326 = vmatprep.subr.bf16.mxu1 %v8978_v4  ;;  %12177 = vmatprep.subr.bf16.mxu0 %v9035_v54  ;;  %v9500_v4 = vld [vmem:[%s16624_s30 + $0x80] sm:$0xff]  ;;  %v9501_v54 = vld [vmem:[%s16624_s30 + $0x88] sm:$0xff] }
0x15b9   :  { %9327 = vmatpush1.bf16.msra.mxu1 %v8977_v19  ;;  %12178 = vmatpush3.bf16.msra.mxu0 %v8979_v9  ;;  %v9096_v19 = vld [vmem:[#allocation8 + $0x448] sm:$0xff]  ;;  %v16050_v9 = vpack.c.bf16 %v9501_v54, %v9500_v4  ;;  %v9145_v4 = vld [vmem:[#allocation8 + $0x5d0] sm:$0xff] }
0x15ba   :  { %9328 = vmatprep.subr.bf16.mxu1 %v8985_v58  ;;  %12179 = vmatprep.subr.bf16.mxu0 %v9042_v26  ;;  %v9484_v58 = vld [vmem:[%s16624_s30] sm:$0xff]  ;;  %v9485_v26 = vld [vmem:[%s16624_s30 + $0x8] sm:$0xff] }
0x15bd   :  { %9329 = vmatpush1.bf16.msra.mxu1 %v8984_v2  ;;  %12180 = vmatpush3.bf16.msra.mxu0 %v8986_v22  ;;  %v9104_v2 = vld [vmem:[#allocation8 + $0x488] sm:$0xff]  ;;  %v9502_v22 = vld [vmem:[%s16624_s30 + $0x90] sm:$0xff] }
0x15be   :  { %9330 = vmatprep.subr.bf16.mxu1 %v8992_v52  ;;  %12181 = vmatprep.subr.bf16.mxu0 %v9049_v59  ;;  %v9503_v52 = vld [vmem:[%s16624_s30 + $0x98] sm:$0xff]  ;;  %v16056_v59 = vpack.c.bf16 %v9485_v26, %v9484_v58  ;;  %v9153_v58 = vld [vmem:[#allocation8 + $0x610] sm:$0xff]  ;;  %v9532_v26 = vld [vmem:[%s16624_s30 + $0x180] sm:$0xff] }
0x15c1   :  { %9331 = vmatpush1.bf16.msra.mxu1 %v8991_v42  ;;  %12182 = vmatpush3.bf16.msra.mxu0 %v8993_v13  ;;  %v9103_v42 = vld [vmem:[#allocation8 + $0x480] sm:$0xff]  ;;  %v16059_v13 = vpack.c.bf16 %v9503_v52, %v9502_v22  ;;  %v9152_v52 = vld [vmem:[#allocation8 + $0x608] sm:$0xff] }
0x15c2   :  { %9332 = vmatprep.subr.bf16.mxu1 %v8999_v47  ;;  %12183 = vmatprep.subr.bf16.mxu0 %v9056_v48  ;;  %v9486_v47 = vld [vmem:[%s16624_s30 + $0x10] sm:$0xff]  ;;  %v9487_v48 = vld [vmem:[%s16624_s30 + $0x18] sm:$0xff] }
0x15c5   :  { %9333 = vmatpush1.bf16.msra.mxu1 %v8998_v38  ;;  %12184 = vmatpush3.bf16.msra.mxu0 %v9000_v1  ;;  %v9111_v38 = vld [vmem:[#allocation8 + $0x4c0] sm:$0xff] }
0x15c6   :  { %9334 = vmatprep.subr.bf16.mxu1 %v9006_v61  ;;  %12185 = vmatprep.subr.bf16.mxu0 %v9063_v35  ;;  %v9504_v1 = vld [vmem:[%s16624_s30 + $0xa0] sm:$0xff]  ;;  %v9505_v61 = vld [vmem:[%s16624_s30 + $0xa8] sm:$0xff]  ;;  %v16067_v35 = vpack.c.bf16 %v9487_v48, %v9486_v47 }
0x15c7   :  { %v9516_v47 = vld [vmem:[%s16624_s30 + $0x100] sm:$0xff]  ;;  %v9517_v48 = vld [vmem:[%s16624_s30 + $0x108] sm:$0xff] }
0x15c9   :  { %9335 = vmatpush1.bf16.msra.mxu1 %v9005_v37  ;;  %12186 = vmatpush3.bf16.msra.mxu0 %v9007_v40  ;;  %v9110_v37 = vld [vmem:[#allocation8 + $0x4b8] sm:$0xff]  ;;  %v16070_v40 = vpack.c.bf16 %v9505_v61, %v9504_v1  ;;  %v16136_v61 = vpack.c.bf16 %v9517_v48, %v9516_v47 }
0x15ca   :  { %9336 = vmatprep.subr.bf16.mxu1 %v9013_v60  ;;  %12187 = vmatprep.subr.bf16.mxu0 %v9070_v63  ;;  %v9488_v60 = vld [vmem:[%s16624_s30 + $0x20] sm:$0xff]  ;;  %v9489_v63 = vld [vmem:[%s16624_s30 + $0x28] sm:$0xff]  ;;  %v9535_v1 = vld [vmem:[%s16624_s30 + $0x198] sm:$0xff] }
0x15cb   :  { %v9531_v47 = vld [vmem:[%s16624_s30 + $0x178] sm:$0xff] }
0x15cd   :  { %9337 = vmatpush1.bf16.msra.mxu1 %v9012_v55  ;;  %12188 = vmatpush3.bf16.msra.mxu0 %v9014_v46  ;;  %v9118_v55 = vld [vmem:[#allocation8 + $0x4f8] sm:$0xff]  ;;  %v9506_v46 = vld [vmem:[%s16624_s30 + $0xb0] sm:$0xff] }
0x15ce   :  { %9338 = vmatprep.subr.bf16.mxu1 %v9020_v30  ;;  %9444 = vmatprep.subr.bf16.mxu0 %v16566_v21  ;;  %v9507_v30 = vld [vmem:[%s16624_s30 + $0xb8] sm:$0xff] }
0x15d0   :  { %9437 = vmatmul.mubr.bf16.vlgmr.msra.gmra.mrb[44].mxu0 %v16010_v17 }
0x15d1   :  { %9339 = vmatpush1.bf16.msra.mxu1 %v9019_v16  ;;  %9445 = vmatpush1.bf16.msra.mxu0 %v9077_v57  ;;  %v16077_v16 = vpack.c.bf16 %v9489_v63, %v9488_v60  ;;  %v9117_v57 = vld [vmem:[#allocation8 + $0x4f0] sm:$0xff]  ;;  %v9519_v63 = vld [vmem:[%s16624_s30 + $0x118] sm:$0xff] }
0x15d2   :  { %9340 = vmatprep.subr.bf16.mxu1 %v9027_v36  ;;  %9446 = vmatprep.subr.bf16.mxu0 %v16566_v21  ;;  %v16080_v36 = vpack.c.bf16 %v9507_v30, %v9506_v46  ;;  %v9518_v60 = vld [vmem:[%s16624_s30 + $0x110] sm:$0xff]  ;;  %v9537_v46 = vld [vmem:[%s16624_s30 + $0x1a8] sm:$0xff] }
0x15d3   :  { %11765 = vmatprep.mubr.msk.bf16.mxu0 %vm7311_vm14, %v16014_v41  ;;  %v16148_v30 = vpack.c.bf16 %v9519_v63, %v9518_v60  ;;  %v9580_v63 = vld [vmem:[%s16624_s30 + $0x300] sm:$0xff] }
0x15d5   :  { %9341 = vmatpush1.bf16.msra.mxu1 %v9026_v20  ;;  %9447 = vmatpush1.bf16.msra.mxu0 %v9084_v27  ;;  %v9490_v20 = vld [vmem:[%s16624_s30 + $0x30] sm:$0xff]  ;;  %v9491_v27 = vld [vmem:[%s16624_s30 + $0x38] sm:$0xff] }
0x15d6   :  { %9342 = vmatprep.subr.bf16.mxu1 %v9034_v28  ;;  %9448 = vmatprep.subr.bf16.mxu0 %v16566_v21  ;;  %v9125_v28 = vld [vmem:[#allocation8 + $0x530] sm:$0xff] }
0x15d9   :  { %9343 = vmatpush1.bf16.msra.mxu1 %v9033_v39  ;;  %9449 = vmatpush1.bf16.msra.mxu0 %v9091_v23  ;;  %v9508_v39 = vld [vmem:[%s16624_s30 + $0xc0] sm:$0xff]  ;;  %v9509_v23 = vld [vmem:[%s16624_s30 + $0xc8] sm:$0xff] }
0x15da   :  { %9344 = vmatprep.subr.bf16.mxu1 %v9041_v49  ;;  %9450 = vmatprep.subr.bf16.mxu0 %v16566_v21  ;;  %v16087_v49 = vpack.c.bf16 %v9491_v27, %v9490_v20  ;;  %v9520_v20 = vld [vmem:[%s16624_s30 + $0x120] sm:$0xff]  ;;  %v9521_v27 = vld [vmem:[%s16624_s30 + $0x128] sm:$0xff] }
0x15dd   :  { %9345 = vmatpush1.bf16.msra.mxu1 %v9040_v32  ;;  %9451 = vmatpush1.bf16.msra.mxu0 %v9098_v33  ;;  %v9124_v32 = vld [vmem:[#allocation8 + $0x528] sm:$0xff]  ;;  %v16090_v33 = vpack.c.bf16 %v9509_v23, %v9508_v39  ;;  %v9539_v39 = vld [vmem:[%s16624_s30 + $0x1b8] sm:$0xff] }
0x15de   :  { %9346 = vmatprep.subr.bf16.mxu1 %v9048_v56  ;;  %9452 = vmatprep.subr.bf16.mxu0 %v16566_v21  ;;  %v9492_v56 = vld [vmem:[%s16624_s30 + $0x40] sm:$0xff] }
0x15e1   :  { %9347 = vmatpush1.bf16.msra.mxu1 %v9047_v45  ;;  %9453 = vmatpush1.bf16.msra.mxu0 %v9105_v53  ;;  %v9493_v45 = vld [vmem:[%s16624_s30 + $0x48] sm:$0xff] }
0x15e2   :  { %9348 = vmatprep.subr.bf16.mxu1 %v9055_v62  ;;  %9454 = vmatprep.subr.bf16.mxu0 %v16566_v21  ;;  %v9132_v53 = vld [vmem:[#allocation8 + $0x568] sm:$0xff]  ;;  %v9510_v62 = vld [vmem:[%s16624_s30 + $0xd0] sm:$0xff] }
0x15e5   :  { %9349 = vmatpush1.bf16.msra.mxu1 %v9054_v10  ;;  %9455 = vmatpush1.bf16.msra.mxu0 %v9112_v34  ;;  %v9511_v10 = vld [vmem:[%s16624_s30 + $0xd8] sm:$0xff]  ;;  %v16097_v34 = vpack.c.bf16 %v9493_v45, %v9492_v56  ;;  %v9540_v45 = vld [vmem:[%s16624_s30 + $0x1c0] sm:$0xff] }
0x15e6   :  { %9350 = vmatprep.subr.bf16.mxu1 %v9062_v0  ;;  %9456 = vmatprep.subr.bf16.mxu0 %v16566_v21  ;;  %v9131_v0 = vld [vmem:[#allocation8 + $0x560] sm:$0xff]  ;;  %v9523_v56 = vld [vmem:[%s16624_s30 + $0x138] sm:$0xff] }
0x15e9   :  { %9351 = vmatpush1.bf16.msra.mxu1 %v9061_v44  ;;  %9457 = vmatpush1.bf16.msra.mxu0 %v9119_v50  ;;  %v16100_v44 = vpack.c.bf16 %v9511_v10, %v9510_v62  ;;  %v9494_v50 = vld [vmem:[%s16624_s30 + $0x50] sm:$0xff] }
0x15ea   :  { %9352 = vmatprep.subr.bf16.mxu1 %v9069_v31  ;;  %9458 = vmatprep.subr.bf16.mxu0 %v16566_v21  ;;  %v9495_v31 = vld [vmem:[%s16624_s30 + $0x58] sm:$0xff] }
0x15ed   :  { %9353 = vmatpush1.bf16.msra.mxu1 %v9068_v11  ;;  %9459 = vmatpush1.bf16.msra.mxu0 %v9126_v3  ;;  %v9139_v11 = vld [vmem:[#allocation8 + $0x5a0] sm:$0xff] }
0x15ee   :  { %9363 = vmatprep.subr.bf16.mxu1 %v9076_v12  ;;  %9460 = vmatprep.subr.bf16.mxu0 %v16566_v21  ;;  %v9512_v3 = vld [vmem:[%s16624_s30 + $0xe0] sm:$0xff]  ;;  %v9513_v12 = vld [vmem:[%s16624_s30 + $0xe8] sm:$0xff] }
0x15f0   :  { %9355 = vmatmul.mubr.bf16.vlgmr.msra.gmra.mrb[64].mxu1 %v16010_v17  ;;  %v9089_v17 = vld [vmem:[#allocation8 + $0x410] sm:$0xff] }
0x15f1   :  { %9364 = vmatpush1.bf16.msra.mxu1 %v9075_v5  ;;  %9461 = vmatpush1.bf16.msra.mxu0 %v9133_v14  ;;  %v16107_v5 = vpack.c.bf16 %v9495_v31, %v9494_v50  ;;  %v9138_v14 = vld [vmem:[#allocation8 + $0x598] sm:$0xff]  ;;  %v9525_v50 = vld [vmem:[%s16624_s30 + $0x148] sm:$0xff]  ;;  %v9542_v31 = vld [vmem:[%s16624_s30 + $0x1d0] sm:$0xff] }
0x15f2   :  { %9365 = vmatprep.subr.bf16.mxu1 %v9083_v6  ;;  %9462 = vmatprep.subr.bf16.mxu0 %v16566_v21  ;;  %v16110_v6 = vpack.c.bf16 %v9513_v12, %v9512_v3 }
0x15f3   :  { %11764 = vmatprep.mubr.msk.bf16.mxu1 %vm7311_vm14, %v16014_v41  ;;  %v9154_v41 = vld [vmem:[#allocation8 + $0x618] sm:$0xff] }
0x15f5   :  { %9366 = vmatpush1.bf16.msra.mxu1 %v9082_v15  ;;  %9463 = vmatpush1.bf16.msra.mxu0 %v9140_v7  ;;  %v9496_v15 = vld [vmem:[%s16624_s30 + $0x60] sm:$0xff]  ;;  %v9497_v7 = vld [vmem:[%s16624_s30 + $0x68] sm:$0xff] }
0x15f6   :  { %9367 = vmatprep.subr.bf16.mxu1 %v9090_v24  ;;  %9464 = vmatprep.subr.bf16.mxu0 %v16566_v21  ;;  %v9146_v24 = vld [vmem:[#allocation8 + $0x5d8] sm:$0xff] }
0x15f9   :  { %9368 = vmatpush1.bf16.msra.mxu1 %v9089_v17  ;;  %9465 = vmatpush1.bf16.msra.mxu0 %v9147_v8  ;;  %v9514_v17 = vld [vmem:[%s16624_s30 + $0xf0] sm:$0xff]  ;;  %v9515_v8 = vld [vmem:[%s16624_s30 + $0xf8] sm:$0xff] }
0x15fa   :  { %9369 = vmatprep.subr.bf16.mxu1 %v9097_v18  ;;  %9466 = vmatprep.subr.bf16.mxu0 %v16566_v21  ;;  %v16117_v18 = vpack.c.bf16 %v9497_v7, %v9496_v15  ;;  %v16120_v54 = vpack.c.bf16 %v9515_v8, %v9514_v17  ;;  %v9527_v15 = vld [vmem:[%s16624_s30 + $0x158] sm:$0xff]  ;;  %v9544_v7 = vld [vmem:[%s16624_s30 + $0x1e0] sm:$0xff]  ;;  %v9558_v21 = vld [vmem:[%s16624_s30 + $0x250] sm:$0xff] }
0x15fd   :  { %9370 = vmatpush1.bf16.msra.mxu1 %v9096_v19  ;;  %9467 = vmatpush1.bf16.msra.mxu0 %v9154_v41  ;;  %v9498_v19 = vld [vmem:[%s16624_s30 + $0x70] sm:$0xff]  ;;  %v9499_v41 = vld [vmem:[%s16624_s30 + $0x78] sm:$0xff] }
0x15fe   :  { %9371 = vmatprep.subr.bf16.mxu1 %v9104_v2  ;;  %13260 = vmatprep.subr.bf16.mxu0 %v16050_v9  ;;  %v9533_v2 = vld [vmem:[%s16624_s30 + $0x188] sm:$0xff]  ;;  %v16127_v22 = vpack.c.bf16 %v9499_v41, %v9498_v19  ;;  %v9546_v41 = vld [vmem:[%s16624_s30 + $0x1f0] sm:$0xff] }
0x15ff   :  { %v9529_v19 = vld [vmem:[%s16624_s30 + $0x168] sm:$0xff] }
0x1600   :  { %9477 = vmatmul.mubr.bf16.vlgmr.msra.gmra.mrb[48].mxu0 %v16024_v29 }
0x1601   :  { %9372 = vmatpush1.bf16.msra.mxu1 %v9103_v42  ;;  %13262 = vmatpush3.bf16.msra.mxu0 %v16056_v59  ;;  %v16129_v42 = vpack.c.bf16 %v9533_v2, %v9532_v26 }
0x1602   :  { %9373 = vmatprep.subr.bf16.mxu1 %v9111_v38  ;;  %13264 = vmatprep.subr.bf16.mxu0 %v16059_v13  ;;  %v9534_v38 = vld [vmem:[%s16624_s30 + $0x190] sm:$0xff] }
0x1605   :  { %9374 = vmatpush1.bf16.msra.mxu1 %v9110_v37  ;;  %13266 = vmatpush3.bf16.msra.mxu0 %v16067_v35  ;;  %v16140_v37 = vpack.c.bf16 %v9535_v1, %v9534_v38  ;;  %v9564_v38 = vld [vmem:[%s16624_s30 + $0x280] sm:$0xff]  ;;  %v9565_v1 = vld [vmem:[%s16624_s30 + $0x288] sm:$0xff] }
0x1606   :  { %9375 = vmatprep.subr.bf16.mxu1 %v9118_v55  ;;  %13268 = vmatprep.subr.bf16.mxu0 %v16070_v40  ;;  %v9536_v55 = vld [vmem:[%s16624_s30 + $0x1a0] sm:$0xff]  ;;  %v16213_v60 = vpack.c.bf16 %v9565_v1, %v9564_v38  ;;  %v9585_v38 = vld [vmem:[%s16624_s30 + $0x328] sm:$0xff] }
0x1609   :  { %9376 = vmatpush1.bf16.msra.mxu1 %v9117_v57  ;;  %13270 = vmatpush3.bf16.msra.mxu0 %v16077_v16  ;;  %v16151_v57 = vpack.c.bf16 %v9537_v46, %v9536_v55  ;;  %v9581_v55 = vld [vmem:[%s16624_s30 + $0x308] sm:$0xff]  ;;  %v9548_v46 = vld [vmem:[%s16624_s30 + $0x200] sm:$0xff] }
0x160a   :  { %9377 = vmatprep.subr.bf16.mxu1 %v9125_v28  ;;  %13272 = vmatprep.subr.bf16.mxu0 %v16080_v36  ;;  %v9538_v28 = vld [vmem:[%s16624_s30 + $0x1b0] sm:$0xff] }
0x160b   :  { %v16161_v23 = vpack.c.bf16 %v9539_v39, %v9538_v28  ;;  %v9567_v28 = vld [vmem:[%s16624_s30 + $0x298] sm:$0xff] }
0x160d   :  { %9378 = vmatpush1.bf16.msra.mxu1 %v9124_v32  ;;  %13274 = vmatpush3.bf16.msra.mxu0 %v16087_v49  ;;  %v9522_v32 = vld [vmem:[%s16624_s30 + $0x130] sm:$0xff] }
0x160e   :  { %9379 = vmatprep.subr.bf16.mxu1 %v9132_v53  ;;  %13276 = vmatprep.subr.bf16.mxu0 %v16090_v33  ;;  %v9541_v53 = vld [vmem:[%s16624_s30 + $0x1c8] sm:$0xff]  ;;  %v16168_v62 = vpack.c.bf16 %v9523_v56, %v9522_v32  ;;  %v16226_v56 = vpack.c.bf16 %v9581_v55, %v9580_v63  ;;  %v9552_v55 = vld [vmem:[%s16624_s30 + $0x220] sm:$0xff] }
0x160f   :  { %v16171_v10 = vpack.c.bf16 %v9541_v53, %v9540_v45 }
0x1611   :  { %9380 = vmatpush1.bf16.msra.mxu1 %v9131_v0  ;;  %13278 = vmatpush3.bf16.msra.mxu0 %v16097_v34  ;;  %v9524_v0 = vld [vmem:[%s16624_s30 + $0x140] sm:$0xff] }
0x1612   :  { %9381 = vmatprep.subr.bf16.mxu1 %v9139_v11  ;;  %13280 = vmatprep.subr.bf16.mxu0 %v16100_v44  ;;  %v9543_v11 = vld [vmem:[%s16624_s30 + $0x1d8] sm:$0xff]  ;;  %v16178_v3 = vpack.c.bf16 %v9525_v50, %v9524_v0  ;;  %v9582_v0 = vld [vmem:[%s16624_s30 + $0x310] sm:$0xff] }
0x1613   :  { %v16181_v12 = vpack.c.bf16 %v9543_v11, %v9542_v31  ;;  %v9583_v50 = vld [vmem:[%s16624_s30 + $0x318] sm:$0xff] }
0x1615   :  { %9382 = vmatpush1.bf16.msra.mxu1 %v9138_v14  ;;  %13282 = vmatpush3.bf16.msra.mxu0 %v16107_v5  ;;  %v9526_v14 = vld [vmem:[%s16624_s30 + $0x150] sm:$0xff] }
0x1616   :  { %9383 = vmatprep.subr.bf16.mxu1 %v9146_v24  ;;  %13284 = vmatprep.subr.bf16.mxu0 %v16110_v6  ;;  %v9545_v24 = vld [vmem:[%s16624_s30 + $0x1e8] sm:$0xff]  ;;  %v16188_v17 = vpack.c.bf16 %v9527_v15, %v9526_v14 }
0x1617   :  { %v16191_v8 = vpack.c.bf16 %v9545_v24, %v9544_v7  ;;  %v9550_v7 = vld [vmem:[%s16624_s30 + $0x210] sm:$0xff]  ;;  %v9551_v24 = vld [vmem:[%s16624_s30 + $0x218] sm:$0xff] }
0x1618   :  { %v16255_v1 = vpack.c.bf16 %v9551_v24, %v9550_v7  ;;  %v9554_v7 = vld [vmem:[%s16624_s30 + $0x230] sm:$0xff]  ;;  %v9555_v24 = vld [vmem:[%s16624_s30 + $0x238] sm:$0xff] }
0x1619   :  { %9384 = vmatpush1.bf16.msra.mxu1 %v9145_v4  ;;  %13286 = vmatpush3.bf16.msra.mxu0 %v16117_v18  ;;  %v9528_v4 = vld [vmem:[%s16624_s30 + $0x160] sm:$0xff] }
0x161a   :  { %9385 = vmatprep.subr.bf16.mxu1 %v9153_v58  ;;  %13288 = vmatprep.subr.bf16.mxu0 %v16120_v54  ;;  %v9547_v58 = vld [vmem:[%s16624_s30 + $0x1f8] sm:$0xff]  ;;  %v16198_v26 = vpack.c.bf16 %v9529_v19, %v9528_v4 }
0x161b   :  { %v16201_v2 = vpack.c.bf16 %v9547_v58, %v9546_v41  ;;  %v9568_v41 = vld [vmem:[%s16624_s30 + $0x2a0] sm:$0xff]  ;;  %v9569_v58 = vld [vmem:[%s16624_s30 + $0x2a8] sm:$0xff] }
0x161c   :  { %v16258_v63 = vpack.c.bf16 %v9569_v58, %v9568_v41  ;;  %v9588_v58 = vld [vmem:[%s16624_s30 + $0x340] sm:$0xff] }
0x161d   :  { %9386 = vmatpush1.bf16.msra.mxu1 %v9152_v52  ;;  %13290 = vmatpush3.bf16.msra.mxu0 %v16127_v22  ;;  %v9530_v52 = vld [vmem:[%s16624_s30 + $0x170] sm:$0xff] }
0x161e   :  { %13292 = vmatprep.subr.bf16.mxu1 %v16129_v42  ;;  %v16206_v48 = vpack.c.bf16 %v9531_v47, %v9530_v52  ;;  %13324 = vmatprep.subr.bf16.mxu0 %v16213_v60  ;;  %v16247_v52 = vpack.c.bf16 %v9583_v50, %v9582_v0  ;;  %v9584_v47 = vld [vmem:[%s16624_s30 + $0x320] sm:$0xff]  ;;  %v9586_v0 = vld [vmem:[%s16624_s30 + $0x330] sm:$0xff]  ;;  %v9587_v50 = vld [vmem:[%s16624_s30 + $0x338] sm:$0xff] }
0x161f   :  { %v16281_v41 = vpack.c.bf16 %v9587_v50, %v9586_v0  ;;  %v9575_v0 = vld [vmem:[%s16624_s30 + $0x2d8] sm:$0xff] }
0x1620   :  { %9396 = vmatmul.mubr.bf16.vlgmr.msra.gmra.mrb[64].mxu1 %v16024_v29  ;;  %v16158_v29 = vpack.c.bf16 %v9521_v27, %v9520_v20  ;;  %v9549_v20 = vld [vmem:[%s16624_s30 + $0x208] sm:$0xff]  ;;  %v9566_v27 = vld [vmem:[%s16624_s30 + $0x290] sm:$0xff] }
0x1621   :  { %13294 = vmatpush3.bf16.msra.mxu1 %v16136_v61  ;;  %v16234_v31 = vpack.c.bf16 %v9549_v20, %v9548_v46  ;;  %v16238_v15 = vpack.c.bf16 %v9567_v28, %v9566_v27  ;;  %v9553_v46 = vld [vmem:[%s16624_s30 + $0x228] sm:$0xff]  ;;  %v9570_v20 = vld [vmem:[%s16624_s30 + $0x2b0] sm:$0xff]  ;;  %v9571_v27 = vld [vmem:[%s16624_s30 + $0x2b8] sm:$0xff]  ;;  %v16265_v28 = vpack.c.bf16 %v9585_v38, %v9584_v47  ;;  %v16287_v38 = vpack.c.bf16 %v9555_v24, %v9554_v7 }
0x1622   :  { %13296 = vmatprep.subr.bf16.mxu1 %v16140_v37  ;;  %v9589_v47 = vld [vmem:[%s16624_s30 + $0x348] sm:$0xff]  ;;  %v9590_v7 = vld [vmem:[%s16624_s30 + $0x350] sm:$0xff]  ;;  %v9591_v24 = vld [vmem:[%s16624_s30 + $0x358] sm:$0xff] }
0x1623   :  { %16627 = vst [vmem:[#allocation48_spill] sm:$0xff] %v16287_v38  ;;  %v16297_v50 = vpack.c.bf16 %v9589_v47, %v9588_v58  ;;  %v9559_v58 = vld [vmem:[%s16624_s30 + $0x258] sm:$0xff]  ;;  %v9576_v47 = vld [vmem:[%s16624_s30 + $0x2e0] sm:$0xff] }
0x1625   :  { %13298 = vmatpush3.bf16.msra.mxu1 %v16148_v30 }
0x1626   :  { %13300 = vmatprep.subr.bf16.mxu1 %v16151_v57 }
0x1629   :  { %13302 = vmatpush3.bf16.msra.mxu1 %v16158_v29 }
0x162a   :  { %13304 = vmatprep.subr.bf16.mxu1 %v16161_v23 }
0x162d   :  { %13306 = vmatpush3.bf16.msra.mxu1 %v16168_v62 }
0x162e   :  { %13308 = vmatprep.subr.bf16.mxu1 %v16171_v10 }
0x1631   :  { %13310 = vmatpush3.bf16.msra.mxu1 %v16178_v3 }
0x1632   :  { %13312 = vmatprep.subr.bf16.mxu1 %v16181_v12 }
0x1635   :  { %13314 = vmatpush3.bf16.msra.mxu1 %v16188_v17 }
0x1636   :  { %13316 = vmatprep.subr.bf16.mxu1 %v16191_v8 }
0x1639   :  { %13318 = vmatpush3.bf16.msra.mxu1 %v16198_v26 }
0x163a   :  { %13320 = vmatprep.subr.bf16.mxu1 %v16201_v2 }
0x163d   :  { %13322 = vmatpush3.bf16.msra.mxu1 %v16206_v48 }
0x163e   :  { %13355 = vmatprep.subr.bf16.mxu1 %v16570_v43 }
0x1683   :  { %v16222_v39 = vpop.f32.mrb[60].mxu1  ;;  %v16224_v32 = vpop.f32.mrb[40].mxu0 }
0x1684   :  { %v16228_v45 = vpop.f32.mrb[61].mxu1  ;;  %v16230_v53 = vpop.f32.mrb[41].mxu0 }
0x1685   :  { %v9237_v11 = vpop.f32.mrb[62].mxu1  ;;  %v9319_v14 = vpop.f32.mrb[42].mxu0  ;;  %9660 = vmatprep.mubr.f32.mxu0 %v16228_v45  ;;  %9730 = vmatprep.mubr.f32.mxu1 %v16230_v53 }
0x1686   :  { %v9238_v4 = vpop.f32.mrb[63].mxu1  ;;  %v9320_v19 = vpop.f32.mrb[43].mxu0  ;;  %9661 = vmatmul.mubr.f32.vlgmr.msra.gmra.mrb[38].mxu0 %v16222_v39  ;;  %9731 = vmatmul.mubr.f32.vlgmr.msra.gmra.mrb[58].mxu1 %v16224_v32  ;;  %v16271_v11 = vpack.c.bf16 %v9553_v46, %v9552_v55  ;;  %v16274_v14 = vpack.c.bf16 %v9571_v27, %v9570_v20  ;;  %v9556_v46 = vld [vmem:[%s16624_s30 + $0x240] sm:$0xff]  ;;  %v9557_v20 = vld [vmem:[%s16624_s30 + $0x248] sm:$0xff]  ;;  %v9574_v27 = vld [vmem:[%s16624_s30 + $0x2d0] sm:$0xff] }
0x1687   :  { %13357 = vmatpush3.bf16.msra.mxu1 %v16226_v56  ;;  %12663 = vmatprep.mubr.msk.f32.mxu1 %vm13661_vm10, %v16568_v25  ;;  %v9572_v4 = vld [vmem:[%s16624_s30 + $0x2c0] sm:$0xff]  ;;  %v9573_v19 = vld [vmem:[%s16624_s30 + $0x2c8] sm:$0xff] }
0x1688   :  { %13358 = vmatprep.subr.bf16.mxu1 %v16570_v43  ;;  %13326 = vmatpush3.bf16.msra.mxu0 %v16234_v31  ;;  %16625 = vst [vmem:[#allocation46_spill] sm:$0xff] %v16271_v11  ;;  %16626 = vst [vmem:[#allocation47_spill] sm:$0xff] %v16274_v14  ;;  %v16290_v55 = vpack.c.bf16 %v9573_v19, %v9572_v4  ;;  %v16303_v4 = vpack.c.bf16 %v9557_v20, %v9556_v46  ;;  %v9577_v25 = vld [vmem:[%s16624_s30 + $0x2e8] sm:$0xff]  ;;  %v9592_v46 = vld [vmem:[%s16624_s30 + $0x360] sm:$0xff] }
0x1689   :  { %13328 = vmatprep.subr.bf16.mxu0 %v16238_v15  ;;  %v16306_v19 = vpack.c.bf16 %v9575_v0, %v9574_v27  ;;  %v9593_v20 = vld [vmem:[%s16624_s30 + $0x368] sm:$0xff]  ;;  %v16319_v27 = vpack.c.bf16 %v9559_v58, %v9558_v21  ;;  %v16322_v0 = vpack.c.bf16 %v9577_v25, %v9576_v47  ;;  %v9562_v58 = vld [vmem:[%s16624_s30 + $0x270] sm:$0xff]  ;;  %v9563_v47 = vld [vmem:[%s16624_s30 + $0x278] sm:$0xff] }
0x168a   :  { %16628 = vst [vmem:[#allocation49_spill] sm:$0xff] %v16290_v55  ;;  %16629 = vst [vmem:[#allocation50_spill] sm:$0xff] %v16303_v4 }
0x168b   :  { %13360 = vmatpush3.bf16.msra.mxu1 %v16247_v52  ;;  %16630 = vst [vmem:[#allocation53_spill] sm:$0xff] %v16306_v19 }
0x168c   :  { %13361 = vmatprep.subr.bf16.mxu1 %v16570_v43  ;;  %13330 = vmatpush3.bf16.msra.mxu0 %v16255_v1 }
0x168d   :  { %13332 = vmatprep.subr.bf16.mxu0 %v16258_v63 }
0x168f   :  { %13363 = vmatpush3.bf16.msra.mxu1 %v16265_v28 }
0x1690   :  { %13364 = vmatprep.subr.bf16.mxu1 %v16570_v43  ;;  %13334 = vmatpush3.bf16.msra.mxu0 %v16271_v11  ;;  %v9594_v11 = vld [vmem:[%s16624_s30 + $0x370] sm:$0xff] }
0x1691   :  { %13336 = vmatprep.subr.bf16.mxu0 %v16274_v14  ;;  %v9578_v14 = vld [vmem:[%s16624_s30 + $0x2f0] sm:$0xff] }
0x1693   :  { %13366 = vmatpush3.bf16.msra.mxu1 %v16281_v41 }
0x1694   :  { %13367 = vmatprep.subr.bf16.mxu1 %v16570_v43  ;;  %13338 = vmatpush3.bf16.msra.mxu0 %v16287_v38  ;;  %v16313_v43 = vpack.c.bf16 %v9591_v24, %v9590_v7  ;;  %v9561_v38 = vld [vmem:[%s16624_s30 + $0x268] sm:$0xff]  ;;  %v9579_v7 = vld [vmem:[%s16624_s30 + $0x2f8] sm:$0xff]  ;;  %v16329_v24 = vpack.c.bf16 %v9593_v20, %v9592_v46  ;;  %v16347_v46 = vpack.c.bf16 %v9563_v47, %v9562_v58 }
0x1695   :  { %13340 = vmatprep.subr.bf16.mxu0 %v16290_v55  ;;  %v9560_v55 = vld [vmem:[%s16624_s30 + $0x260] sm:$0xff]  ;;  %v16338_v25 = vpack.c.bf16 %v9579_v7, %v9578_v14  ;;  %v9879_v47 = vmul.f32 %v16230_v53, %v16230_v53 }
0x1696   :  { %v16335_v21 = vpack.c.bf16 %v9561_v38, %v9560_v55 }
0x1697   :  { %13369 = vmatpush3.bf16.msra.mxu1 %v16297_v50  ;;  %16633 = vst [vmem:[#allocation55_spill] sm:$0xff] %v16338_v25 }
0x1698   :  { %13370 = vmatprep.subr.bf16.mxu1 %v16631_v51  ;;  %13342 = vmatpush3.bf16.msra.mxu0 %v16303_v4  ;;  %v9595_v4 = vld [vmem:[%s16624_s30 + $0x378] sm:$0xff]  ;;  %16632 = vst [vmem:[#allocation54_spill] sm:$0xff] %v16335_v21 }
0x1699   :  { %13344 = vmatprep.subr.bf16.mxu0 %v16306_v19  ;;  %v16343_v19 = vpack.c.bf16 %v9595_v4, %v9594_v11 }
0x169b   :  { %13372 = vmatpush3.bf16.msra.mxu1 %v16313_v43 }
0x169c   :  { %13373 = vmatprep.subr.bf16.mxu1 %v16631_v51  ;;  %13346 = vmatpush3.bf16.msra.mxu0 %v16319_v27 }
0x169d   :  { %13348 = vmatprep.subr.bf16.mxu0 %v16322_v0 }
0x169f   :  { %13375 = vmatpush3.bf16.msra.mxu1 %v16329_v24 }
0x16a0   :  { %13376 = vmatprep.subr.bf16.mxu1 %v16631_v51  ;;  %13350 = vmatpush3.bf16.msra.mxu0 %v16335_v21 }
0x16a1   :  { %13352 = vmatprep.subr.bf16.mxu0 %v16338_v25 }
0x16a3   :  { %v12189_v38 = vpop.f32.mrb[44].mxu0  ;;  %13378 = vmatpush3.bf16.msra.mxu1 %v16343_v19 }
0x16a4   :  { %v12190_v55 = vpop.f32.mrb[45].mxu0  ;;  %13412 = vmatprep.subr.bf16.mxu1 %v16129_v42  ;;  %13354 = vmatpush3.bf16.msra.mxu0 %v16347_v46  ;;  %v9878_v42 = vmul.f32 %v16224_v32, %v16224_v32 }
0x16a5   :  { %v12191_v14 = vadd.f32 %v12190_v55, %v12189_v38  ;;  %v12192_v20 = vpop.f32.mrb[46].mxu0  ;;  %13380 = vmatprep.subr.bf16.mxu0 %v16050_v9 }
0x16a6   :  { %v12193_v11 = vpop.f32.mrb[47].mxu0 }
0x16d3   :  { %v9478_v4 = vpop.f32.mrb[48].mxu0 }
0x16d4   :  { %v16354_v7 = vadd.f32 %v12191_v14, %v9478_v4  ;;  %v9480_v58 = vpop.f32.mrb[49].mxu0 }
0x16d5   :  { %v9481_v25 = vpop.f32.mrb[50].mxu0 }
0x16d6   :  { %12664 = vmatmul.mubr.f32.vlgmr.msra.gmra.mrb[68].mxu1 %v16354_v7  ;;  %v9482_v21 = vpop.f32.mrb[51].mxu0 }
0x16d7   :  { %13414 = vmatpush3.bf16.msra.mxu1 %v16136_v61  ;;  %10017 = vmatprep.mubr.f32.mxu1 %v9879_v47 }
0x16d8   :  { %13416 = vmatprep.subr.bf16.mxu1 %v16140_v37 }
0x16db   :  { %13418 = vmatpush3.bf16.msra.mxu1 %v16148_v30  ;;  %v9877_v30 = vmul.f32 %v16228_v45, %v16228_v45 }
0x16dc   :  { %13420 = vmatprep.subr.bf16.mxu1 %v16151_v57 }
0x16df   :  { %13422 = vmatpush3.bf16.msra.mxu1 %v16158_v29  ;;  %v16634_v29 = vmov 0.0  }
0x16e0   :  { %13424 = vmatprep.subr.bf16.mxu1 %v16161_v23 }
0x16e3   :  { %13426 = vmatpush3.bf16.msra.mxu1 %v16168_v62 }
0x16e4   :  { %13428 = vmatprep.subr.bf16.mxu1 %v16171_v10  ;;  %v16446_v10 = vld [vmem:[%s16641_s6 + $0x8] sm:$0xff] }
0x16e7   :  { %13430 = vmatpush3.bf16.msra.mxu1 %v16178_v3  ;;  %v16449_v3 = vld [vmem:[%s16641_s6] sm:$0xff] }
0x16e8   :  { %13432 = vmatprep.subr.bf16.mxu1 %v16181_v12  ;;  %v10192_v12 = vld [vmem:[%s16641_s6 + $0x18] sm:$0xff] }
0x16eb   :  { %13434 = vmatpush3.bf16.msra.mxu1 %v16188_v17  ;;  %v16454_v17 = vld [vmem:[%s16641_s6 + $0x30] sm:$0xff] }
0x16ec   :  { %13436 = vmatprep.subr.bf16.mxu1 %v16191_v8 }
0x16ef   :  { %13438 = vmatpush3.bf16.msra.mxu1 %v16198_v26 }
0x16f0   :  { %13440 = vmatprep.subr.bf16.mxu1 %v16201_v2 }
0x16f3   :  { %13442 = vmatpush3.bf16.msra.mxu1 %v16206_v48  ;;  %v16374_v9 = vpop.f32.mrb[64].mxu1 }
0x16f4   :  { %v16378_v61 = vpop.f32.mrb[65].mxu1  ;;  %13475 = vmatprep.subr.bf16.mxu1 %v16631_v51 }
0x16f5   :  { %v9401_v37 = vpop.f32.mrb[66].mxu1  ;;  %9800 = vmatprep.mubr.f32.mxu0 %v16378_v61 }
0x16f6   :  { %10018 = vmatmul.mubr.f32.vlgmr.msra.gmra.mrb[70].mxu1 %v9878_v42  ;;  %v9402_v57 = vpop.f32.mrb[67].mxu1  ;;  %9801 = vmatmul.mubr.f32.vlgmr.msra.gmra.mrb[52].mxu0 %v16374_v9 }
0x16f7   :  { %13382 = vmatpush3.bf16.msra.mxu0 %v16056_v59  ;;  %13477 = vmatpush3.bf16.msra.mxu1 %v16226_v56  ;;  %v9876_v59 = vmul.f32 %v16222_v39, %v16222_v39 }
0x16f8   :  { %9947 = vmatprep.mubr.f32.mxu0 %v9877_v30  ;;  %13384 = vmatprep.subr.bf16.mxu0 %v16059_v13  ;;  %v9881_v13 = vmul.f32 %v16378_v61, %v16378_v61 }
0x16f9   :  { %13478 = vmatprep.subr.bf16.mxu1 %v16631_v51  ;;  %12698 = vmatprep.mubr.msk.f32.mxu1 %vm13661_vm10, %v16634_v29 }
0x16fb   :  { %13386 = vmatpush3.bf16.msra.mxu0 %v16067_v35  ;;  %13480 = vmatpush3.bf16.msra.mxu1 %v16247_v52  ;;  %v16636_v35 = vld [vmem:[#allocation47_spill] sm:$0xff] }
0x16fc   :  { %13388 = vmatprep.subr.bf16.mxu0 %v16070_v40  ;;  %13481 = vmatprep.subr.bf16.mxu1 %v16631_v51  ;;  %v16637_v40 = vld [vmem:[#allocation48_spill] sm:$0xff] }
0x16ff   :  { %13390 = vmatpush3.bf16.msra.mxu0 %v16077_v16  ;;  %13483 = vmatpush3.bf16.msra.mxu1 %v16265_v28  ;;  %v16638_v16 = vld [vmem:[#allocation49_spill] sm:$0xff] }
0x1700   :  { %13392 = vmatprep.subr.bf16.mxu0 %v16080_v36  ;;  %13484 = vmatprep.subr.bf16.mxu1 %v16631_v51  ;;  %v16639_v36 = vld [vmem:[#allocation50_spill] sm:$0xff] }
0x1703   :  { %13394 = vmatpush3.bf16.msra.mxu0 %v16087_v49  ;;  %13486 = vmatpush3.bf16.msra.mxu1 %v16281_v41  ;;  %v16640_v49 = vld [vmem:[#allocation53_spill] sm:$0xff] }
0x1704   :  { %13396 = vmatprep.subr.bf16.mxu0 %v16090_v33  ;;  %13487 = vmatprep.subr.bf16.mxu1 %v16631_v51  ;;  %v16642_v33 = vld [vmem:[#allocation54_spill] sm:$0xff] }
0x1707   :  { %13398 = vmatpush3.bf16.msra.mxu0 %v16097_v34  ;;  %13489 = vmatpush3.bf16.msra.mxu1 %v16297_v50  ;;  %v16643_v34 = vld [vmem:[#allocation55_spill] sm:$0xff] }
0x1708   :  { %13400 = vmatprep.subr.bf16.mxu0 %v16100_v44  ;;  %13490 = vmatprep.subr.bf16.mxu1 %v16631_v51  ;;  %v9880_v44 = vmul.f32 %v16374_v9, %v16374_v9 }
0x170b   :  { %13402 = vmatpush3.bf16.msra.mxu0 %v16107_v5  ;;  %13492 = vmatpush3.bf16.msra.mxu1 %v16313_v43  ;;  %v9882_v43 = vmul.f32 %v16354_v7, %v16354_v7 }
0x170c   :  { %13404 = vmatprep.subr.bf16.mxu0 %v16110_v6  ;;  %13493 = vmatprep.subr.bf16.mxu1 %v16631_v51 }
0x170f   :  { %13406 = vmatpush3.bf16.msra.mxu0 %v16117_v18  ;;  %13495 = vmatpush3.bf16.msra.mxu1 %v16329_v24 }
0x1710   :  { %13408 = vmatprep.subr.bf16.mxu0 %v16120_v54  ;;  %13496 = vmatprep.subr.bf16.mxu1 %v16631_v51  ;;  %v16635_v51 = vld [vmem:[#allocation46_spill] sm:$0xff] }
0x1713   :  { %13410 = vmatpush3.bf16.msra.mxu0 %v16127_v22  ;;  %13498 = vmatpush3.bf16.msra.mxu1 %v16343_v19 }
0x1714   :  { %13444 = vmatprep.subr.bf16.mxu0 %v16213_v60  ;;  %12701 = vmatprep.subr.mxu1 %v16634_v29 }
0x1716   :  { %9948 = vmatmul.mubr.f32.vlgmr.msra.gmra.mrb[54].mxu0 %v9876_v59  ;;  %12699 = vmatmul.mubr.f32.vlgmr.msra.gmra.mrb[72].mxu1 %v9882_v43 }
0x1717   :  { %13446 = vmatpush3.bf16.msra.mxu0 %v16234_v31  ;;  %10087 = vmatprep.mubr.f32.mxu0 %v9881_v13 }
0x1718   :  { %13448 = vmatprep.subr.bf16.mxu0 %v16238_v15  ;;  %12703 = vmatprep.mubr.msk.f32.mxu1 %vm13661_vm10, %v16634_v29 }
0x1719   :  { %12702 = vmatpush3.msra.mxu1 %v16454_v17 }
0x171a   :  { %10591 = vmatprep.subr.mxu1 %v10192_v12 }
0x171b   :  { %13450 = vmatpush3.bf16.msra.mxu0 %v16255_v1 }
0x171c   :  { %13452 = vmatprep.subr.bf16.mxu0 %v16258_v63 }
0x171f   :  { %13454 = vmatpush3.bf16.msra.mxu0 %v16635_v51 }
0x1720   :  { %13456 = vmatprep.subr.bf16.mxu0 %v16636_v35 }
0x1723   :  { %13458 = vmatpush3.bf16.msra.mxu0 %v16637_v40 }
0x1724   :  { %13460 = vmatprep.subr.bf16.mxu0 %v16638_v16 }
0x1727   :  { %13462 = vmatpush3.bf16.msra.mxu0 %v16639_v36 }
0x1728   :  { %13464 = vmatprep.subr.bf16.mxu0 %v16640_v49  ;;  %v10182_v49 = vld [vmem:[%s16644_s12] sm:$0x1] }
0x172b   :  { %13466 = vmatpush3.bf16.msra.mxu0 %v16319_v27 }
0x172c   :  { %13468 = vmatprep.subr.bf16.mxu0 %v16322_v0 }
0x172f   :  { %13470 = vmatpush3.bf16.msra.mxu0 %v16642_v33 }
0x1730   :  { %13472 = vmatprep.subr.bf16.mxu0 %v16643_v34 }
0x1733   :  { %13474 = vmatpush3.bf16.msra.mxu0 %v16347_v46 }
0x1734   :  { %10199 = vmatprep.subr.mxu0 %v16446_v10 }
0x1736   :  { %10088 = vmatmul.mubr.f32.vlgmr.msra.gmra.mrb[56].mxu0 %v9880_v44  ;;  %v10191_v44 = vld [vmem:[%s16641_s6 + $0x10] sm:$0xff] }
0x1737   :  { %10263 = vmatprep.mubr.f32.mxu0 %v16634_v29  ;;  %10200 = vmatpush1.msra.mxu0 %v16449_v3 }
0x1738   :  { %10270 = vmatprep.subr.mxu0 %v10192_v12 }
0x1759   :  { %v12227_v5 = vpop.f32.mrb[38].mxu0  ;;  %v12262_v6 = vpop.f32.mrb[58].mxu1 }
0x175a   :  { %v12228_v18 = vpop.f32.mrb[39].mxu0  ;;  %v12263_v54 = vpop.f32.mrb[59].mxu1 }
0x175b   :  { %v12229_v22 = vadd.f32 %v12228_v18, %v12227_v5  ;;  %v12264_v23 = vadd.f32 %v12263_v54, %v12262_v6  ;;  %v10194_v5 = vld [vmem:[%s16641_s6 + $0x28] sm:$0xff]  ;;  %v10186_v6 = vld [vmem:[%s16645_s20] sm:$0x1] }
0x175c   :  { %v10193_v54 = vld [vmem:[%s16641_s6 + $0x20] sm:$0xff] }
0x175d   :  { %v9733_v62 = vadd.f32 %v12264_v23, %v12229_v22 }
0x17a9   :  { %v9872_v8 = vpop.f32.mrb[68].mxu1 }
0x17aa   :  { %v12665_v26 = vpop.f32.mrb[69].mxu1 }
0x17c9   :  { %v12384_v2 = vpop.f32.mrb[70].mxu1  ;;  %v12297_v48 = vpop.f32.mrb[52].mxu0 }
0x17ca   :  { %v12385_v60 = vpop.f32.mrb[71].mxu1  ;;  %v12298_v56 = vpop.f32.mrb[53].mxu0 }
0x17cb   :  { %v12386_v31 = vadd.f32 %v12385_v60, %v12384_v2  ;;  %v12299_v15 = vadd.f32 %v12298_v56, %v12297_v48 }
0x17cd   :  { %v9803_v52 = vadd.f32 %v12299_v15, %v9733_v62 }
0x17cf   :  { %v9873_v1 = vadd.f32 %v9872_v8, %v9803_v52 }
0x17d1   :  { %v10163_v0 = vsel %vm5933_vm0, %v9873_v1, 0.0 }
0x17d2   :  { %v10164_v24 = vrot.slane %v10163_v0, 4 }
0x17d4   :  { %v10165_v21 = vadd.f32 %v10164_v24, %v10163_v0 }
0x17d6   :  { %v10166_v46 = vrot.slane %v10165_v21, 2 }
0x17d8   :  { %v10167_v20 = vadd.f32 %v10166_v46, %v10165_v21 }
0x17da   :  { %v10168_v58 = vrot.slane %v10167_v20, 1 }
0x17dc   :  { %v10169_v37 = vadd.f32 %v10168_v58, %v10167_v20 }
0x17de   :  { %v10170_v59 = vmul.f32 0.004464286, %v10169_v37 }
0x17e0   :  { %v10179_v51 = vmul.f32 %v10170_v59, %v10170_v59 }
0x17e9   :  { %v12349_v63 = vpop.f32.mrb[54].mxu0  ;;  %v10159_v28 = vpop.f32.mrb[72].mxu1 }
0x17ea   :  { %v12350_v41 = vpop.f32.mrb[55].mxu0  ;;  %v12700_v50 = vpop.f32.mrb[73].mxu1 }
0x17eb   :  { %v12351_v19 = vadd.f32 %v12350_v41, %v12349_v63 }
0x17ed   :  { %v10020_v27 = vadd.f32 %v12386_v31, %v12351_v19 }
0x1809   :  { %v12419_v25 = vpop.f32.mrb[56].mxu0 }
0x180a   :  { %v12420_v38 = vpop.f32.mrb[57].mxu0 }
0x180b   :  { %v12421_v55 = vadd.f32 %v12420_v38, %v12419_v25 }
0x180d   :  { %v10090_v14 = vadd.f32 %v12421_v55, %v10020_v27 }
0x180f   :  { %v10160_v11 = vadd.f32 %v10159_v28, %v10090_v14 }
0x1811   :  { %v10171_v4 = vsel %vm5933_vm0, %v10160_v11, 0.0 }
0x1812   :  { %v10172_v47 = vrot.slane %v10171_v4, 4 }
0x1814   :  { %v10173_v42 = vadd.f32 %v10172_v47, %v10171_v4 }
0x1816   :  { %v10174_v30 = vrot.slane %v10173_v42, 2 }
0x1818   :  { %v10175_v57 = vadd.f32 %v10174_v30, %v10173_v42 }
0x181a   :  { %v10176_v43 = vrot.slane %v10175_v57, 1 }
0x181c   :  { %v10177_v13 = vadd.f32 %v10176_v43, %v10175_v57 }
0x181e   :  { %v10178_v35 = vmul.f32 0.004464286, %v10177_v13 }
0x1820   :  { %v10180_v40 = vsub.f32 %v10178_v35, %v10179_v51 }
0x1822   :  { %v10181_v16 = vmax.f32 %v10180_v40, 0.0 }
0x1824   :  { %v10183_v36 = vadd.f32 1e-05, %v10181_v16 }
0x1826   :  { %13596 = vrsqrt.f32 %v10183_v36 }
0x1830   :  { %v13597_v33 = vpop.eup %13596 }
0x1831   :  { %v10185_v34 = vmul.f32 %v13597_v33, %v10182_v49 }
0x1833   :  { %11766 = vmatmul.mubr.msk.f32.vlgmr.msra.gmra.mrb[58].mxu0 %vm5964_vm1, %v10185_v34  ;;  %12704 = vmatmul.mubr.msk.f32.vlgmr.msra.gmra.mrb[74].mxu1 %vm5964_vm1, %v10185_v34  ;;  %v10187_v18 = vmul.f32 %v10185_v34, %v10170_v59 }
0x1834   :  { %10271 = vmatpush1.msra.mxu0 %v10191_v44  ;;  %10334 = vmatprep.mubr.f32.mxu0 %v16634_v29 }
0x1835   :  { %10341 = vmatprep.subr.mxu0 %v10194_v5  ;;  %10592 = vmatpush1.msra.mxu1 %v10191_v44  ;;  %v10188_v22 = vsub.f32 %v10186_v6, %v10187_v18 }
0x1836   :  { %10655 = vmatprep.mubr.f32.mxu1 %v16634_v29  ;;  %12706 = vmatprep.subr.mxu1 %v16634_v29 }
0x1837   :  { %11767 = vmatmul.mubr.msk.f32.vlgmr.msra.gmra.mrb[60].mxu0 %vm5964_vm1, %v10185_v34  ;;  %11771 = vmatmul.mubr.msk.f32.vlgmr.msra.gmra.mrb[76].mxu1 %vm5964_vm1, %v10188_v22 }
0x1838   :  { %10342 = vmatpush1.msra.mxu0 %v10193_v54  ;;  %10405 = vmatprep.mubr.f32.mxu0 %v16634_v29 }
0x1839   :  { %10520 = vmatprep.subr.mxu0 %v16446_v10  ;;  %12707 = vmatpush3.msra.mxu1 %v16454_v17  ;;  %v16646_v10 = vld [vmem:[#allocation52_spill] sm:$0xff] }
0x183a   :  { %12708 = vmatprep.mubr.msk.f32.mxu1 %vm13661_vm10, %v16634_v29 }
0x183b   :  { %11768 = vmatmul.mubr.msk.f32.vlgmr.msra.gmra.mrb[62].mxu0 %vm5964_vm1, %v10185_v34  ;;  %12709 = vmatmul.mubr.msk.f32.vlgmr.msra.gmra.mrb[78].mxu1 %vm5964_vm1, %v10188_v22 }
0x183c   :  { %10521 = vmatpush1.msra.mxu0 %v16449_v3  ;;  %10584 = vmatprep.mubr.f32.mxu0 %v16634_v29 }
0x183d   :  { %10662 = vmatprep.subr.mxu0 %v10194_v5 }
0x183f   :  { %11770 = vmatmul.mubr.msk.f32.vlgmr.msra.gmra.mrb[64].mxu0 %vm5964_vm1, %v10188_v22 }
0x1840   :  { %10663 = vmatpush1.msra.mxu0 %v10193_v54  ;;  %10726 = vmatprep.mubr.f32.mxu0 %v16634_v29 }
0x1843   :  { %11772 = vmatmul.mubr.msk.f32.vlgmr.msra.gmra.mrb[66].mxu0 %vm5964_vm1, %v10188_v22 }
0x1906   :  { %v10265_v23 = vpop.f32.mrb[58].mxu0  ;;  %v10478_v62 = vpop.f32.mrb[74].mxu1 }
0x1907   :  { %v10485_v12 = vrot.slane %v10265_v23, %v16646_v10  ;;  %v10267_v17 = vpop.f32.mrb[59].mxu0  ;;  %v12705_v8 = vpop.f32.mrb[75].mxu1  ;;  %v10509_v56 = vrot.slane %v10478_v62, %v16646_v10 }
0x1908   :  { %v10489_v26 = vrot.slane %v10267_v17, %v16646_v10 }
0x1909   :  { %v10510_v3 = vmul.f32 %v10485_v12, %v16222_v39  ;;  %v10516_v50 = vmul.f32 %v10509_v56, %v16354_v7 }
0x190a   :  { %v10511_v2 = vmul.f32 %v10489_v26, %v16228_v45  ;;  %v10336_v48 = vpop.f32.mrb[60].mxu0  ;;  %v10657_v60 = vpop.f32.mrb[76].mxu1 }
0x190b   :  { %v10493_v29 = vrot.slane %v10336_v48, %v16646_v10  ;;  %v10338_v31 = vpop.f32.mrb[61].mxu0  ;;  %v10659_v15 = vpop.f32.mrb[77].mxu1  ;;  %v10814_v63 = vrot.slane %v10657_v60, %v16646_v10 }
0x190c   :  { %v10497_v52 = vrot.slane %v10338_v31, %v16646_v10  ;;  %v10818_v39 = vrot.slane %v10659_v15, %v16646_v10 }
0x190d   :  { %v10512_v1 = vmul.f32 %v10493_v29, %v16224_v32 }
0x190e   :  { %v10513_v28 = vmul.f32 %v10497_v52, %v16230_v53  ;;  %v10407_v41 = vpop.f32.mrb[62].mxu0  ;;  %v10799_v45 = vpop.f32.mrb[78].mxu1 }
0x190f   :  { %v10833_v19 = vadd.f32 %v10814_v63, %v10512_v1  ;;  %v10501_v27 = vrot.slane %v10407_v41, %v16646_v10  ;;  %v10830_v0 = vrot.slane %v10799_v45, %v16646_v10  ;;  %v10409_v24 = vpop.f32.mrb[63].mxu0  ;;  %v12710_v21 = vpop.f32.mrb[79].mxu1 }
0x1910   :  { %v10834_v25 = vadd.f32 %v10818_v39, %v10513_v28  ;;  %v10505_v32 = vrot.slane %v10409_v24, %v16646_v10 }
0x1911   :  { %vm10840_vm0 = vcmp.gt.f32.partialorder %v10833_v19, 0.0  ;;  %v10847_v46 = vmul.f32 0.01, %v10833_v19  ;;  %v10514_v53 = vmul.f32 %v10501_v27, %v16374_v9  ;;  %v10837_v38 = vadd.f32 %v10830_v0, %v10516_v50 }
0x1912   :  { %vm10841_vm1 = vcmp.gt.f32.partialorder %v10834_v25, 0.0  ;;  %v10848_v55 = vmul.f32 0.01, %v10834_v25  ;;  %v10515_v14 = vmul.f32 %v10505_v32, %v16378_v61  ;;  %v10586_v7 = vpop.f32.mrb[64].mxu0 }
0x1913   :  { %v16501_v20 = vsel %vm10840_vm0, %v10833_v19, %v10847_v46  ;;  %vm10844_vm9 = vcmp.gt.f32.partialorder %v10837_v38, 0.0  ;;  %v10851_v11 = vmul.f32 0.01, %v10837_v38  ;;  %v10806_v4 = vrot.slane %v10586_v7, %v16646_v10  ;;  %v10588_v58 = vpop.f32.mrb[65].mxu0 }
0x1914   :  { %v16504_v47 = vsel %vm10841_vm1, %v10834_v25, %v10848_v55  ;;  %v10810_v42 = vrot.slane %v10588_v58, %v16646_v10 }
0x1915   :  { %v16507_v37 = vsel %vm10844_vm9, %v10837_v38, %v10851_v11  ;;  %v10831_v9 = vadd.f32 %v10806_v4, %v10510_v3 }
0x1916   :  { %v10832_v30 = vadd.f32 %v10810_v42, %v10511_v2  ;;  %v10728_v57 = vpop.f32.mrb[66].mxu0 }
0x1917   :  { %vm10838_vm10 = vcmp.gt.f32.partialorder %v10831_v9, 0.0  ;;  %v10845_v59 = vmul.f32 0.01, %v10831_v9  ;;  %v10822_v61 = vrot.slane %v10728_v57, %v16646_v10  ;;  %v10730_v43 = vpop.f32.mrb[67].mxu0 }
0x1918   :  { %vm10839_vm11 = vcmp.gt.f32.partialorder %v10832_v30, 0.0  ;;  %v10846_v13 = vmul.f32 0.01, %v10832_v30  ;;  %v10826_v51 = vrot.slane %v10730_v43, %v16646_v10 }
0x1919   :  { %v16511_v35 = vsel %vm10838_vm10, %v10831_v9, %v10845_v59  ;;  %v10835_v40 = vadd.f32 %v10822_v61, %v10514_v53 }
0x191a   :  { %v10853_v16 = vsel %vm10839_vm11, %v10832_v30, %v10846_v13  ;;  %v10836_v36 = vadd.f32 %v10826_v51, %v10515_v14 }
0x191b   :  { %vm10842_vm12 = vcmp.gt.f32.partialorder %v10835_v40, 0.0  ;;  %v10849_v49 = vmul.f32 0.01, %v10835_v40 }
0x191c   :  { %vm10843_vm13 = vcmp.gt.f32.partialorder %v10836_v36, 0.0  ;;  %v10850_v33 = vmul.f32 0.01, %v10836_v36 }
0x191d   :  { %v16513_v34 = vsel %vm10842_vm12, %v10835_v40, %v10849_v49 }
0x191e   :  { %v16515_v44 = vsel %vm10843_vm13, %v10836_v36, %v10850_v33 }
0x191f   :  { %13616 = dma.done.wait [#allocation10 + $0x7], 28672 }
0x1920   :  { %13617 = vsyncadd [#allocation10 + $0x7], 4294938624  ;;  %v10864_v5 = vpack.c.bf16 %v10853_v16, %v10853_v16  ;;  %v16647_v6 = vmov 0   ;;  %v10871_v18 = vld [vmem:[#allocation9 + $0x8] sm:$0xff]  ;;  %v10873_v54 = vld [vmem:[#allocation9 + $0x18] sm:$0xff]  ;;  %vm11422_vm14 = vcmask 1041408  }
0x1921   :  { %13598 = vset.pattern.permute.xlu1 %v16647_v6  ;;  %13599 = vset.pattern.permute.xlu0 %v16647_v6  ;;  %v10870_v22 = vld [vmem:[#allocation9] sm:$0xff]  ;;  %v10872_v23 = vld [vmem:[#allocation9 + $0x10] sm:$0xff]  ;;  %v10875_v62 = vld [vmem:[#allocation9 + $0x28] sm:$0xff]  ;;  %vm11533_vm7 = vcmask 1045508   ;;  %vm11535_vm0 = vcmask 523270  }
0x1922   :  { %11126 = vmatprep.mubr.bf16.mxu0 %v10864_v5  ;;  %11290 = vmatprep.mubr.bf16.mxu1 %v10864_v5  ;;  %v10877_v12 = vld [vmem:[#allocation9 + $0x38] sm:$0xff]  ;;  %v10874_v17 = vld [vmem:[#allocation9 + $0x20] sm:$0xff]  ;;  %v10876_v8 = vld [vmem:[#allocation9 + $0x30] sm:$0xff] }
0x1923   :  { %11094 = vmatprep.subr.bf16.mxu0 %v10871_v18  ;;  %11258 = vmatprep.subr.bf16.mxu1 %v10873_v54  ;;  %v10879_v26 = vld [vmem:[#allocation9 + $0x48] sm:$0xff]  ;;  %v10881_v3 = vld [vmem:[#allocation9 + $0x58] sm:$0xff]  ;;  %v10878_v2 = vld [vmem:[#allocation9 + $0x40] sm:$0xff] }
0x1924   :  { %11095 = vmatpush1.bf16.msra.mxu0 %v10870_v22  ;;  %11259 = vmatpush1.bf16.msra.mxu1 %v10872_v23  ;;  %v10880_v48 = vld [vmem:[#allocation9 + $0x50] sm:$0xff]  ;;  %v10883_v60 = vld [vmem:[#allocation9 + $0x68] sm:$0xff]  ;;  %v10885_v56 = vld [vmem:[#allocation9 + $0x78] sm:$0xff] }
0x1925   :  { %11096 = vmatprep.subr.bf16.mxu0 %v10875_v62  ;;  %11260 = vmatprep.subr.bf16.mxu1 %v10877_v12  ;;  %v10882_v29 = vld [vmem:[#allocation9 + $0x60] sm:$0xff]  ;;  %v10884_v31 = vld [vmem:[#allocation9 + $0x70] sm:$0xff]  ;;  %v10887_v15 = vld [vmem:[#allocation9 + $0x88] sm:$0xff] }
0x1926   :  { %v10889_v52 = vld [vmem:[#allocation9 + $0x98] sm:$0xff]  ;;  %v10886_v1 = vld [vmem:[#allocation9 + $0x80] sm:$0xff]  ;;  %v10888_v63 = vld [vmem:[#allocation9 + $0x90] sm:$0xff] }
0x1927   :  { %v10891_v28 = vld [vmem:[#allocation9 + $0xa8] sm:$0xff]  ;;  %v10893_v39 = vld [vmem:[#allocation9 + $0xb8] sm:$0xff]  ;;  %v10890_v41 = vld [vmem:[#allocation9 + $0xa0] sm:$0xff] }
0x1928   :  { %11097 = vmatpush1.bf16.msra.mxu0 %v10874_v17  ;;  %11261 = vmatpush1.bf16.msra.mxu1 %v10876_v8  ;;  %v10892_v45 = vld [vmem:[#allocation9 + $0xb0] sm:$0xff]  ;;  %v10895_v50 = vld [vmem:[#allocation9 + $0xc8] sm:$0xff]  ;;  %v10897_v19 = vld [vmem:[#allocation9 + $0xd8] sm:$0xff] }
0x1929   :  { %11098 = vmatprep.subr.bf16.mxu0 %v10879_v26  ;;  %11262 = vmatprep.subr.bf16.mxu1 %v10881_v3  ;;  %v10894_v27 = vld [vmem:[#allocation9 + $0xc0] sm:$0xff]  ;;  %v10896_v0 = vld [vmem:[#allocation9 + $0xd0] sm:$0xff]  ;;  %v10899_v24 = vld [vmem:[#allocation9 + $0xe8] sm:$0xff] }
0x192a   :  { %v10901_v21 = vld [vmem:[#allocation9 + $0xf8] sm:$0xff]  ;;  %v10898_v25 = vld [vmem:[#allocation9 + $0xe0] sm:$0xff]  ;;  %v10900_v32 = vld [vmem:[#allocation9 + $0xf0] sm:$0xff] }
0x192b   :  { %v10903_v46 = vld [vmem:[#allocation9 + $0x108] sm:$0xff]  ;;  %v10905_v53 = vld [vmem:[#allocation9 + $0x118] sm:$0xff]  ;;  %v10902_v38 = vld [vmem:[#allocation9 + $0x100] sm:$0xff] }
0x192c   :  { %11099 = vmatpush1.bf16.msra.mxu0 %v10878_v2  ;;  %11263 = vmatpush1.bf16.msra.mxu1 %v10880_v48  ;;  %v10904_v55 = vld [vmem:[#allocation9 + $0x110] sm:$0xff]  ;;  %v10907_v14 = vld [vmem:[#allocation9 + $0x128] sm:$0xff]  ;;  %v10909_v7 = vld [vmem:[#allocation9 + $0x138] sm:$0xff]  ;;  %v10863_v2 = vpack.c.bf16 %v16511_v35, %v16511_v35 }
0x192d   :  { %11100 = vmatprep.subr.bf16.mxu0 %v10883_v60  ;;  %11264 = vmatprep.subr.bf16.mxu1 %v10885_v56  ;;  %v10906_v11 = vld [vmem:[#allocation9 + $0x120] sm:$0xff]  ;;  %v10908_v4 = vld [vmem:[#allocation9 + $0x130] sm:$0xff]  ;;  %v10911_v58 = vld [vmem:[#allocation9 + $0x148] sm:$0xff] }
0x192e   :  { %v10913_v42 = vld [vmem:[#allocation9 + $0x158] sm:$0xff]  ;;  %v10910_v9 = vld [vmem:[#allocation9 + $0x140] sm:$0xff]  ;;  %v10912_v30 = vld [vmem:[#allocation9 + $0x150] sm:$0xff] }
0x192f   :  { %v10915_v57 = vld [vmem:[#allocation9 + $0x168] sm:$0xff]  ;;  %v10917_v59 = vld [vmem:[#allocation9 + $0x178] sm:$0xff]  ;;  %v10914_v61 = vld [vmem:[#allocation9 + $0x160] sm:$0xff] }
0x1930   :  { %11101 = vmatpush1.bf16.msra.mxu0 %v10882_v29  ;;  %11265 = vmatpush1.bf16.msra.mxu1 %v10884_v31  ;;  %v10916_v43 = vld [vmem:[#allocation9 + $0x170] sm:$0xff]  ;;  %v10919_v13 = vld [vmem:[#allocation9 + $0x188] sm:$0xff]  ;;  %v10921_v51 = vld [vmem:[#allocation9 + $0x198] sm:$0xff]  ;;  %v10866_v31 = vpack.c.bf16 %v16504_v47, %v16504_v47 }
0x1931   :  { %11102 = vmatprep.subr.bf16.mxu0 %v10887_v15  ;;  %11266 = vmatprep.subr.bf16.mxu1 %v10889_v52  ;;  %v10918_v40 = vld [vmem:[#allocation9 + $0x180] sm:$0xff]  ;;  %v10920_v16 = vld [vmem:[#allocation9 + $0x190] sm:$0xff]  ;;  %v10923_v36 = vld [vmem:[#allocation9 + $0x1a8] sm:$0xff] }
0x1932   :  { %v10925_v49 = vld [vmem:[#allocation9 + $0x1b8] sm:$0xff]  ;;  %v10922_v33 = vld [vmem:[#allocation9 + $0x1a0] sm:$0xff]  ;;  %v10924_v5 = vld [vmem:[#allocation9 + $0x1b0] sm:$0xff] }
0x1933   :  { %v10927_v18 = vld [vmem:[#allocation9 + $0x1c8] sm:$0xff]  ;;  %v10929_v54 = vld [vmem:[#allocation9 + $0x1d8] sm:$0xff]  ;;  %v10926_v22 = vld [vmem:[#allocation9 + $0x1c0] sm:$0xff] }
0x1934   :  { %11103 = vmatpush1.bf16.msra.mxu0 %v10886_v1  ;;  %11267 = vmatpush1.bf16.msra.mxu1 %v10888_v63  ;;  %v10928_v23 = vld [vmem:[#allocation9 + $0x1d0] sm:$0xff]  ;;  %v10931_v62 = vld [vmem:[#allocation9 + $0x1e8] sm:$0xff]  ;;  %v10933_v12 = vld [vmem:[#allocation9 + $0x1f8] sm:$0xff] }
0x1935   :  { %11104 = vmatprep.subr.bf16.mxu0 %v10891_v28  ;;  %11268 = vmatprep.subr.bf16.mxu1 %v10893_v39  ;;  %v10930_v17 = vld [vmem:[#allocation9 + $0x1e0] sm:$0xff]  ;;  %v10932_v8 = vld [vmem:[#allocation9 + $0x1f0] sm:$0xff]  ;;  %v10935_v26 = vld [vmem:[#allocation9 + $0x208] sm:$0xff] }
0x1936   :  { %v10937_v3 = vld [vmem:[#allocation9 + $0x218] sm:$0xff]  ;;  %v10934_v48 = vld [vmem:[#allocation9 + $0x200] sm:$0xff]  ;;  %v10936_v60 = vld [vmem:[#allocation9 + $0x210] sm:$0xff] }
0x1937   :  { %v10939_v56 = vld [vmem:[#allocation9 + $0x228] sm:$0xff]  ;;  %v10941_v29 = vld [vmem:[#allocation9 + $0x238] sm:$0xff]  ;;  %v10938_v15 = vld [vmem:[#allocation9 + $0x220] sm:$0xff] }
0x1938   :  { %11105 = vmatpush1.bf16.msra.mxu0 %v10890_v41  ;;  %11269 = vmatpush1.bf16.msra.mxu1 %v10892_v45  ;;  %v10940_v52 = vld [vmem:[#allocation9 + $0x230] sm:$0xff]  ;;  %v10943_v35 = vld [vmem:[#allocation9 + $0x248] sm:$0xff]  ;;  %v10945_v1 = vld [vmem:[#allocation9 + $0x258] sm:$0xff] }
0x1939   :  { %11106 = vmatprep.subr.bf16.mxu0 %v10895_v50  ;;  %11270 = vmatprep.subr.bf16.mxu1 %v10897_v19  ;;  %v10942_v63 = vld [vmem:[#allocation9 + $0x240] sm:$0xff]  ;;  %v10944_v28 = vld [vmem:[#allocation9 + $0x250] sm:$0xff]  ;;  %v10947_v39 = vld [vmem:[#allocation9 + $0x268] sm:$0xff] }
0x193a   :  { %v10949_v47 = vld [vmem:[#allocation9 + $0x278] sm:$0xff]  ;;  %v10946_v41 = vld [vmem:[#allocation9 + $0x260] sm:$0xff]  ;;  %v10948_v45 = vld [vmem:[#allocation9 + $0x270] sm:$0xff] }
0x193b   :  { %v10951_v50 = vld [vmem:[#allocation9 + $0x288] sm:$0xff]  ;;  %v10953_v19 = vld [vmem:[#allocation9 + $0x298] sm:$0xff] }
0x193c   :  { %11107 = vmatpush1.bf16.msra.mxu0 %v10894_v27  ;;  %11271 = vmatpush1.bf16.msra.mxu1 %v10896_v0  ;;  %v10950_v27 = vld [vmem:[#allocation9 + $0x280] sm:$0xff]  ;;  %v10952_v0 = vld [vmem:[#allocation9 + $0x290] sm:$0xff] }
0x193d   :  { %11108 = vmatprep.subr.bf16.mxu0 %v10899_v24  ;;  %11272 = vmatprep.subr.bf16.mxu1 %v10901_v21  ;;  %v10955_v24 = vld [vmem:[#allocation9 + $0x2a8] sm:$0xff]  ;;  %v10957_v21 = vld [vmem:[#allocation9 + $0x2b8] sm:$0xff] }
0x1940   :  { %11109 = vmatpush1.bf16.msra.mxu0 %v10898_v25  ;;  %11273 = vmatpush1.bf16.msra.mxu1 %v10900_v32  ;;  %v10954_v25 = vld [vmem:[#allocation9 + $0x2a0] sm:$0xff]  ;;  %v10956_v32 = vld [vmem:[#allocation9 + $0x2b0] sm:$0xff] }
0x1941   :  { %11110 = vmatprep.subr.bf16.mxu0 %v10903_v46  ;;  %11274 = vmatprep.subr.bf16.mxu1 %v10905_v53  ;;  %v10959_v46 = vld [vmem:[#allocation9 + $0x2c8] sm:$0xff]  ;;  %v10961_v53 = vld [vmem:[#allocation9 + $0x2d8] sm:$0xff] }
0x1944   :  { %11111 = vmatpush1.bf16.msra.mxu0 %v10902_v38  ;;  %11275 = vmatpush1.bf16.msra.mxu1 %v10904_v55  ;;  %v10958_v38 = vld [vmem:[#allocation9 + $0x2c0] sm:$0xff]  ;;  %v10960_v55 = vld [vmem:[#allocation9 + $0x2d0] sm:$0xff] }
0x1945   :  { %11112 = vmatprep.subr.bf16.mxu0 %v10907_v14  ;;  %11276 = vmatprep.subr.bf16.mxu1 %v10909_v7  ;;  %v10963_v14 = vld [vmem:[#allocation9 + $0x2e8] sm:$0xff]  ;;  %v10965_v7 = vld [vmem:[#allocation9 + $0x2f8] sm:$0xff] }
0x1948   :  { %11113 = vmatpush1.bf16.msra.mxu0 %v10906_v11  ;;  %11277 = vmatpush1.bf16.msra.mxu1 %v10908_v4  ;;  %v10962_v11 = vld [vmem:[#allocation9 + $0x2e0] sm:$0xff]  ;;  %v10964_v4 = vld [vmem:[#allocation9 + $0x2f0] sm:$0xff] }
0x1949   :  { %11114 = vmatprep.subr.bf16.mxu0 %v10911_v58  ;;  %11278 = vmatprep.subr.bf16.mxu1 %v10913_v42  ;;  %v10967_v58 = vld [vmem:[#allocation9 + $0x308] sm:$0xff]  ;;  %v10969_v42 = vld [vmem:[#allocation9 + $0x318] sm:$0xff] }
0x194c   :  { %11115 = vmatpush1.bf16.msra.mxu0 %v10910_v9  ;;  %11279 = vmatpush1.bf16.msra.mxu1 %v10912_v30  ;;  %v10966_v9 = vld [vmem:[#allocation9 + $0x300] sm:$0xff]  ;;  %v10968_v30 = vld [vmem:[#allocation9 + $0x310] sm:$0xff] }
0x194d   :  { %11116 = vmatprep.subr.bf16.mxu0 %v10915_v57  ;;  %11280 = vmatprep.subr.bf16.mxu1 %v10917_v59  ;;  %v10971_v57 = vld [vmem:[#allocation9 + $0x328] sm:$0xff]  ;;  %v10973_v59 = vld [vmem:[#allocation9 + $0x338] sm:$0xff] }
0x1950   :  { %11117 = vmatpush1.bf16.msra.mxu0 %v10914_v61  ;;  %11281 = vmatpush1.bf16.msra.mxu1 %v10916_v43  ;;  %v10970_v61 = vld [vmem:[#allocation9 + $0x320] sm:$0xff]  ;;  %v10972_v43 = vld [vmem:[#allocation9 + $0x330] sm:$0xff] }
0x1951   :  { %11118 = vmatprep.subr.bf16.mxu0 %v10919_v13  ;;  %11282 = vmatprep.subr.bf16.mxu1 %v10921_v51  ;;  %v10975_v13 = vld [vmem:[#allocation9 + $0x348] sm:$0xff]  ;;  %v10977_v51 = vld [vmem:[#allocation9 + $0x358] sm:$0xff] }
0x1954   :  { %11119 = vmatpush1.bf16.msra.mxu0 %v10918_v40  ;;  %11283 = vmatpush1.bf16.msra.mxu1 %v10920_v16  ;;  %v10974_v40 = vld [vmem:[#allocation9 + $0x340] sm:$0xff]  ;;  %v10976_v16 = vld [vmem:[#allocation9 + $0x350] sm:$0xff] }
0x1955   :  { %11120 = vmatprep.subr.bf16.mxu0 %v10923_v36  ;;  %11284 = vmatprep.subr.bf16.mxu1 %v10925_v49  ;;  %v10979_v36 = vld [vmem:[#allocation9 + $0x368] sm:$0xff]  ;;  %v10981_v49 = vld [vmem:[#allocation9 + $0x378] sm:$0xff] }
0x1958   :  { %11121 = vmatpush1.bf16.msra.mxu0 %v10922_v33  ;;  %11285 = vmatpush1.bf16.msra.mxu1 %v10924_v5  ;;  %v10978_v33 = vld [vmem:[#allocation9 + $0x360] sm:$0xff]  ;;  %v10980_v5 = vld [vmem:[#allocation9 + $0x370] sm:$0xff] }
0x1959   :  { %11122 = vmatprep.subr.bf16.mxu0 %v10927_v18  ;;  %11286 = vmatprep.subr.bf16.mxu1 %v10929_v54  ;;  %v10983_v18 = vld [vmem:[#allocation9 + $0x388] sm:$0xff]  ;;  %v10985_v54 = vld [vmem:[#allocation9 + $0x398] sm:$0xff] }
0x195c   :  { %11123 = vmatpush1.bf16.msra.mxu0 %v10926_v22  ;;  %11287 = vmatpush1.bf16.msra.mxu1 %v10928_v23  ;;  %v10982_v22 = vld [vmem:[#allocation9 + $0x380] sm:$0xff]  ;;  %v10984_v23 = vld [vmem:[#allocation9 + $0x390] sm:$0xff] }
0x195d   :  { %11124 = vmatprep.subr.bf16.mxu0 %v10931_v62  ;;  %11288 = vmatprep.subr.bf16.mxu1 %v10933_v12  ;;  %v10987_v62 = vld [vmem:[#allocation9 + $0x3a8] sm:$0xff]  ;;  %v10989_v12 = vld [vmem:[#allocation9 + $0x3b8] sm:$0xff] }
0x1960   :  { %11125 = vmatpush1.bf16.msra.mxu0 %v10930_v17  ;;  %11289 = vmatpush1.bf16.msra.mxu1 %v10932_v8  ;;  %v10986_v17 = vld [vmem:[#allocation9 + $0x3a0] sm:$0xff]  ;;  %v10988_v8 = vld [vmem:[#allocation9 + $0x3b0] sm:$0xff] }
0x1961   :  { %11135 = vmatprep.subr.bf16.mxu0 %v10935_v26  ;;  %11299 = vmatprep.subr.bf16.mxu1 %v10937_v3  ;;  %v10991_v26 = vld [vmem:[#allocation9 + $0x3c8] sm:$0xff]  ;;  %v10993_v3 = vld [vmem:[#allocation9 + $0x3d8] sm:$0xff] }
0x1963   :  { %11127 = vmatmul.mubr.bf16.vlgmr.msra.gmra.mrb[68].mxu0 %v10863_v2  ;;  %11291 = vmatmul.mubr.bf16.vlgmr.msra.gmra.mrb[80].mxu1 %v10863_v2  ;;  %v10990_v2 = vld [vmem:[#allocation9 + $0x3c0] sm:$0xff] }
0x1964   :  { %11136 = vmatpush1.bf16.msra.mxu0 %v10934_v48  ;;  %11300 = vmatpush1.bf16.msra.mxu1 %v10936_v60  ;;  %v10992_v48 = vld [vmem:[#allocation9 + $0x3d0] sm:$0xff]  ;;  %v10995_v60 = vld [vmem:[#allocation9 + $0x3e8] sm:$0xff] }
0x1965   :  { %11137 = vmatprep.subr.bf16.mxu0 %v10939_v56  ;;  %11301 = vmatprep.subr.bf16.mxu1 %v10941_v29  ;;  %v10997_v56 = vld [vmem:[#allocation9 + $0x3f8] sm:$0xff]  ;;  %v10994_v29 = vld [vmem:[#allocation9 + $0x3e0] sm:$0xff] }
0x1966   :  { %11167 = vmatprep.mubr.bf16.mxu0 %v10866_v31  ;;  %11331 = vmatprep.mubr.bf16.mxu1 %v10866_v31  ;;  %v10996_v31 = vld [vmem:[#allocation9 + $0x3f0] sm:$0xff] }
0x1968   :  { %11138 = vmatpush1.bf16.msra.mxu0 %v10938_v15  ;;  %11302 = vmatpush1.bf16.msra.mxu1 %v10940_v52  ;;  %v10999_v15 = vld [vmem:[#allocation9 + $0x408] sm:$0xff]  ;;  %v11001_v52 = vld [vmem:[#allocation9 + $0x418] sm:$0xff] }
0x1969   :  { %11139 = vmatprep.subr.bf16.mxu0 %v10943_v35  ;;  %11303 = vmatprep.subr.bf16.mxu1 %v10945_v1  ;;  %v10865_v35 = vpack.c.bf16 %v16501_v20, %v16501_v20  ;;  %v10998_v1 = vld [vmem:[#allocation9 + $0x400] sm:$0xff]  ;;  %v11007_v20 = vld [vmem:[#allocation9 + $0x448] sm:$0xff] }
0x196c   :  { %11140 = vmatpush1.bf16.msra.mxu0 %v10942_v63  ;;  %11304 = vmatpush1.bf16.msra.mxu1 %v10944_v28  ;;  %v11000_v63 = vld [vmem:[#allocation9 + $0x410] sm:$0xff]  ;;  %v11003_v28 = vld [vmem:[#allocation9 + $0x428] sm:$0xff] }
0x196d   :  { %11141 = vmatprep.subr.bf16.mxu0 %v10947_v39  ;;  %11305 = vmatprep.subr.bf16.mxu1 %v10949_v47  ;;  %v11005_v39 = vld [vmem:[#allocation9 + $0x438] sm:$0xff]  ;;  %v10868_v47 = vpack.c.bf16 %v16515_v44, %v16515_v44 }
0x196e   :  { %v11013_v44 = vld [vmem:[#allocation9 + $0x478] sm:$0xff] }
0x1970   :  { %11142 = vmatpush1.bf16.msra.mxu0 %v10946_v41  ;;  %11306 = vmatpush1.bf16.msra.mxu1 %v10948_v45  ;;  %v11002_v41 = vld [vmem:[#allocation9 + $0x420] sm:$0xff]  ;;  %v11004_v45 = vld [vmem:[#allocation9 + $0x430] sm:$0xff] }
0x1971   :  { %11143 = vmatprep.subr.bf16.mxu0 %v10951_v50  ;;  %11307 = vmatprep.subr.bf16.mxu1 %v10953_v19  ;;  %v11009_v50 = vld [vmem:[#allocation9 + $0x458] sm:$0xff]  ;;  %v11006_v19 = vld [vmem:[#allocation9 + $0x440] sm:$0xff] }
0x1974   :  { %11144 = vmatpush1.bf16.msra.mxu0 %v10950_v27  ;;  %11308 = vmatpush1.bf16.msra.mxu1 %v10952_v0  ;;  %v11008_v27 = vld [vmem:[#allocation9 + $0x450] sm:$0xff]  ;;  %v11011_v0 = vld [vmem:[#allocation9 + $0x468] sm:$0xff] }
0x1975   :  { %11145 = vmatprep.subr.bf16.mxu0 %v10955_v24  ;;  %11309 = vmatprep.subr.bf16.mxu1 %v10957_v21  ;;  %v11010_v24 = vld [vmem:[#allocation9 + $0x460] sm:$0xff]  ;;  %v11012_v21 = vld [vmem:[#allocation9 + $0x470] sm:$0xff] }
0x1978   :  { %11146 = vmatpush1.bf16.msra.mxu0 %v10954_v25  ;;  %11310 = vmatpush1.bf16.msra.mxu1 %v10956_v32  ;;  %v11015_v25 = vld [vmem:[#allocation9 + $0x488] sm:$0xff]  ;;  %v11017_v32 = vld [vmem:[#allocation9 + $0x498] sm:$0xff] }
0x1979   :  { %11147 = vmatprep.subr.bf16.mxu0 %v10959_v46  ;;  %11311 = vmatprep.subr.bf16.mxu1 %v10961_v53  ;;  %v11014_v46 = vld [vmem:[#allocation9 + $0x480] sm:$0xff]  ;;  %v11016_v53 = vld [vmem:[#allocation9 + $0x490] sm:$0xff] }
0x197c   :  { %11148 = vmatpush1.bf16.msra.mxu0 %v10958_v38  ;;  %11312 = vmatpush1.bf16.msra.mxu1 %v10960_v55  ;;  %v11019_v38 = vld [vmem:[#allocation9 + $0x4a8] sm:$0xff]  ;;  %v11021_v55 = vld [vmem:[#allocation9 + $0x4b8] sm:$0xff] }
0x197d   :  { %11149 = vmatprep.subr.bf16.mxu0 %v10963_v14  ;;  %11313 = vmatprep.subr.bf16.mxu1 %v10965_v7  ;;  %v11018_v14 = vld [vmem:[#allocation9 + $0x4a0] sm:$0xff]  ;;  %v11020_v7 = vld [vmem:[#allocation9 + $0x4b0] sm:$0xff] }
0x1980   :  { %11150 = vmatpush1.bf16.msra.mxu0 %v10962_v11  ;;  %11314 = vmatpush1.bf16.msra.mxu1 %v10964_v4  ;;  %v11023_v11 = vld [vmem:[#allocation9 + $0x4c8] sm:$0xff]  ;;  %v11025_v4 = vld [vmem:[#allocation9 + $0x4d8] sm:$0xff] }
0x1981   :  { %11151 = vmatprep.subr.bf16.mxu0 %v10967_v58  ;;  %11315 = vmatprep.subr.bf16.mxu1 %v10969_v42  ;;  %v11022_v58 = vld [vmem:[#allocation9 + $0x4c0] sm:$0xff]  ;;  %v11024_v42 = vld [vmem:[#allocation9 + $0x4d0] sm:$0xff] }
0x1984   :  { %11152 = vmatpush1.bf16.msra.mxu0 %v10966_v9  ;;  %11316 = vmatpush1.bf16.msra.mxu1 %v10968_v30  ;;  %v11027_v9 = vld [vmem:[#allocation9 + $0x4e8] sm:$0xff]  ;;  %v11029_v30 = vld [vmem:[#allocation9 + $0x4f8] sm:$0xff] }
0x1985   :  { %11153 = vmatprep.subr.bf16.mxu0 %v10971_v57  ;;  %11317 = vmatprep.subr.bf16.mxu1 %v10973_v59  ;;  %v11026_v57 = vld [vmem:[#allocation9 + $0x4e0] sm:$0xff]  ;;  %v11028_v59 = vld [vmem:[#allocation9 + $0x4f0] sm:$0xff] }
0x1988   :  { %11154 = vmatpush1.bf16.msra.mxu0 %v10970_v61  ;;  %11318 = vmatpush1.bf16.msra.mxu1 %v10972_v43  ;;  %v11031_v61 = vld [vmem:[#allocation9 + $0x508] sm:$0xff]  ;;  %v11033_v43 = vld [vmem:[#allocation9 + $0x518] sm:$0xff] }
0x1989   :  { %11155 = vmatprep.subr.bf16.mxu0 %v10975_v13  ;;  %11319 = vmatprep.subr.bf16.mxu1 %v10977_v51  ;;  %v11030_v13 = vld [vmem:[#allocation9 + $0x500] sm:$0xff]  ;;  %v11032_v51 = vld [vmem:[#allocation9 + $0x510] sm:$0xff] }
0x198c   :  { %11156 = vmatpush1.bf16.msra.mxu0 %v10974_v40  ;;  %11320 = vmatpush1.bf16.msra.mxu1 %v10976_v16  ;;  %v11035_v40 = vld [vmem:[#allocation9 + $0x528] sm:$0xff]  ;;  %v11037_v16 = vld [vmem:[#allocation9 + $0x538] sm:$0xff] }
0x198d   :  { %11157 = vmatprep.subr.bf16.mxu0 %v10979_v36  ;;  %11321 = vmatprep.subr.bf16.mxu1 %v10981_v49  ;;  %v11034_v36 = vld [vmem:[#allocation9 + $0x520] sm:$0xff]  ;;  %v11036_v49 = vld [vmem:[#allocation9 + $0x530] sm:$0xff] }
0x1990   :  { %11158 = vmatpush1.bf16.msra.mxu0 %v10978_v33  ;;  %11322 = vmatpush1.bf16.msra.mxu1 %v10980_v5  ;;  %v11039_v33 = vld [vmem:[#allocation9 + $0x548] sm:$0xff]  ;;  %v11041_v5 = vld [vmem:[#allocation9 + $0x558] sm:$0xff] }
0x1991   :  { %11159 = vmatprep.subr.bf16.mxu0 %v10983_v18  ;;  %11323 = vmatprep.subr.bf16.mxu1 %v10985_v54  ;;  %v11038_v18 = vld [vmem:[#allocation9 + $0x540] sm:$0xff]  ;;  %v11040_v54 = vld [vmem:[#allocation9 + $0x550] sm:$0xff] }
0x1994   :  { %11160 = vmatpush1.bf16.msra.mxu0 %v10982_v22  ;;  %11324 = vmatpush1.bf16.msra.mxu1 %v10984_v23  ;;  %v11043_v22 = vld [vmem:[#allocation9 + $0x568] sm:$0xff]  ;;  %v11045_v23 = vld [vmem:[#allocation9 + $0x578] sm:$0xff] }
0x1995   :  { %11161 = vmatprep.subr.bf16.mxu0 %v10987_v62  ;;  %11325 = vmatprep.subr.bf16.mxu1 %v10989_v12  ;;  %v11042_v62 = vld [vmem:[#allocation9 + $0x560] sm:$0xff]  ;;  %v11044_v12 = vld [vmem:[#allocation9 + $0x570] sm:$0xff] }
0x1998   :  { %11162 = vmatpush1.bf16.msra.mxu0 %v10986_v17  ;;  %11326 = vmatpush1.bf16.msra.mxu1 %v10988_v8  ;;  %v11047_v17 = vld [vmem:[#allocation9 + $0x588] sm:$0xff]  ;;  %v11049_v8 = vld [vmem:[#allocation9 + $0x598] sm:$0xff] }
0x1999   :  { %11163 = vmatprep.subr.bf16.mxu0 %v10991_v26  ;;  %11327 = vmatprep.subr.bf16.mxu1 %v10993_v3  ;;  %v11046_v26 = vld [vmem:[#allocation9 + $0x580] sm:$0xff]  ;;  %v11048_v3 = vld [vmem:[#allocation9 + $0x590] sm:$0xff] }
0x199c   :  { %11164 = vmatpush1.bf16.msra.mxu0 %v10990_v2  ;;  %11328 = vmatpush1.bf16.msra.mxu1 %v10992_v48  ;;  %v11051_v2 = vld [vmem:[#allocation9 + $0x5a8] sm:$0xff]  ;;  %v11053_v48 = vld [vmem:[#allocation9 + $0x5b8] sm:$0xff] }
0x199d   :  { %11165 = vmatprep.subr.bf16.mxu0 %v10995_v60  ;;  %11329 = vmatprep.subr.bf16.mxu1 %v10997_v56  ;;  %v11050_v60 = vld [vmem:[#allocation9 + $0x5a0] sm:$0xff]  ;;  %v11052_v56 = vld [vmem:[#allocation9 + $0x5b0] sm:$0xff] }
0x19a0   :  { %11166 = vmatpush1.bf16.msra.mxu0 %v10994_v29  ;;  %11330 = vmatpush1.bf16.msra.mxu1 %v10996_v31  ;;  %v11055_v29 = vld [vmem:[#allocation9 + $0x5c8] sm:$0xff]  ;;  %v11057_v31 = vld [vmem:[#allocation9 + $0x5d8] sm:$0xff] }
0x19a1   :  { %11176 = vmatprep.subr.bf16.mxu0 %v10999_v15  ;;  %11340 = vmatprep.subr.bf16.mxu1 %v11001_v52  ;;  %v11054_v15 = vld [vmem:[#allocation9 + $0x5c0] sm:$0xff]  ;;  %v11056_v52 = vld [vmem:[#allocation9 + $0x5d0] sm:$0xff] }
0x19a3   :  { %11168 = vmatmul.mubr.bf16.vlgmr.msra.gmra.mrb[68].mxu0 %v10865_v35  ;;  %11332 = vmatmul.mubr.bf16.vlgmr.msra.gmra.mrb[80].mxu1 %v10865_v35  ;;  %v11059_v35 = vld [vmem:[#allocation9 + $0x5e8] sm:$0xff] }
0x19a4   :  { %11177 = vmatpush1.bf16.msra.mxu0 %v10998_v1  ;;  %11341 = vmatpush1.bf16.msra.mxu1 %v11000_v63  ;;  %v11061_v1 = vld [vmem:[#allocation9 + $0x5f8] sm:$0xff]  ;;  %v11058_v63 = vld [vmem:[#allocation9 + $0x5e0] sm:$0xff] }
0x19a5   :  { %11178 = vmatprep.subr.bf16.mxu0 %v11003_v28  ;;  %11342 = vmatprep.subr.bf16.mxu1 %v11005_v39  ;;  %v11060_v28 = vld [vmem:[#allocation9 + $0x5f0] sm:$0xff]  ;;  %v11063_v39 = vld [vmem:[#allocation9 + $0x608] sm:$0xff] }
0x19a6   :  { %11208 = vmatprep.mubr.bf16.mxu0 %v10868_v47  ;;  %11372 = vmatprep.mubr.bf16.mxu1 %v10868_v47  ;;  %v11065_v47 = vld [vmem:[#allocation9 + $0x618] sm:$0xff] }
0x19a8   :  { %11179 = vmatpush1.bf16.msra.mxu0 %v11002_v41  ;;  %11343 = vmatpush1.bf16.msra.mxu1 %v11004_v45  ;;  %v10867_v41 = vpack.c.bf16 %v16513_v34, %v16513_v34  ;;  %v11062_v45 = vld [vmem:[#allocation9 + $0x600] sm:$0xff] }
0x19a9   :  { %11180 = vmatprep.subr.bf16.mxu0 %v11007_v20  ;;  %11344 = vmatprep.subr.bf16.mxu1 %v11009_v50  ;;  %v11064_v20 = vld [vmem:[#allocation9 + $0x610] sm:$0xff]  ;;  %v11067_v50 = vld [vmem:[#allocation9 + $0x628] sm:$0xff]  ;;  %v11070_v34 = vld [vmem:[#allocation9 + $0x640] sm:$0xff] }
0x19ac   :  { %11181 = vmatpush1.bf16.msra.mxu0 %v11006_v19  ;;  %11345 = vmatpush1.bf16.msra.mxu1 %v11008_v27  ;;  %v11069_v19 = vld [vmem:[#allocation9 + $0x638] sm:$0xff]  ;;  %v11066_v27 = vld [vmem:[#allocation9 + $0x620] sm:$0xff] }
0x19ad   :  { %11182 = vmatprep.subr.bf16.mxu0 %v11011_v0  ;;  %11346 = vmatprep.subr.bf16.mxu1 %v11013_v44  ;;  %v11068_v0 = vld [vmem:[#allocation9 + $0x630] sm:$0xff]  ;;  %v11071_v44 = vld [vmem:[#allocation9 + $0x648] sm:$0xff] }
0x19b0   :  { %11183 = vmatpush1.bf16.msra.mxu0 %v11010_v24  ;;  %11347 = vmatpush1.bf16.msra.mxu1 %v11012_v21  ;;  %v11073_v24 = vld [vmem:[#allocation9 + $0x658] sm:$0xff]  ;;  %v11072_v21 = vld [vmem:[#allocation9 + $0x650] sm:$0xff] }
0x19b1   :  { %11184 = vmatprep.subr.bf16.mxu0 %v11015_v25  ;;  %11348 = vmatprep.subr.bf16.mxu1 %v11017_v32  ;;  %v11075_v25 = vld [vmem:[#allocation9 + $0x668] sm:$0xff]  ;;  %v11077_v32 = vld [vmem:[#allocation9 + $0x678] sm:$0xff] }
0x19b4   :  { %11185 = vmatpush1.bf16.msra.mxu0 %v11014_v46  ;;  %11349 = vmatpush1.bf16.msra.mxu1 %v11016_v53  ;;  %v11074_v46 = vld [vmem:[#allocation9 + $0x660] sm:$0xff]  ;;  %v11076_v53 = vld [vmem:[#allocation9 + $0x670] sm:$0xff] }
0x19b5   :  { %11186 = vmatprep.subr.bf16.mxu0 %v11019_v38  ;;  %11350 = vmatprep.subr.bf16.mxu1 %v11021_v55  ;;  %v11079_v38 = vld [vmem:[#allocation9 + $0x688] sm:$0xff]  ;;  %v11081_v55 = vld [vmem:[#allocation9 + $0x698] sm:$0xff] }
0x19b8   :  { %11187 = vmatpush1.bf16.msra.mxu0 %v11018_v14  ;;  %11351 = vmatpush1.bf16.msra.mxu1 %v11020_v7  ;;  %v11080_v14 = vld [vmem:[#allocation9 + $0x690] sm:$0xff]  ;;  %v11083_v7 = vld [vmem:[#allocation9 + $0x6a8] sm:$0xff] }
0x19b9   :  { %11188 = vmatprep.subr.bf16.mxu0 %v11023_v11  ;;  %11352 = vmatprep.subr.bf16.mxu1 %v11025_v4  ;;  %v11085_v11 = vld [vmem:[#allocation9 + $0x6b8] sm:$0xff]  ;;  %v11082_v4 = vld [vmem:[#allocation9 + $0x6a0] sm:$0xff] }
0x19bc   :  { %11189 = vmatpush1.bf16.msra.mxu0 %v11022_v58  ;;  %11353 = vmatpush1.bf16.msra.mxu1 %v11024_v42  ;;  %v11084_v58 = vld [vmem:[#allocation9 + $0x6b0] sm:$0xff]  ;;  %v11087_v42 = vld [vmem:[#allocation9 + $0x6c8] sm:$0xff] }
0x19bd   :  { %11190 = vmatprep.subr.bf16.mxu0 %v11027_v9  ;;  %11354 = vmatprep.subr.bf16.mxu1 %v11029_v30  ;;  %v11089_v9 = vld [vmem:[#allocation9 + $0x6d8] sm:$0xff]  ;;  %v11086_v30 = vld [vmem:[#allocation9 + $0x6c0] sm:$0xff] }
0x19c0   :  { %11191 = vmatpush1.bf16.msra.mxu0 %v11026_v57  ;;  %11355 = vmatpush1.bf16.msra.mxu1 %v11028_v59  ;;  %v11088_v57 = vld [vmem:[#allocation9 + $0x6d0] sm:$0xff]  ;;  %v11091_v59 = vld [vmem:[#allocation9 + $0x6e8] sm:$0xff] }
0x19c1   :  { %11192 = vmatprep.subr.bf16.mxu0 %v11031_v61  ;;  %11356 = vmatprep.subr.bf16.mxu1 %v11033_v43  ;;  %v11093_v61 = vld [vmem:[#allocation9 + $0x6f8] sm:$0xff]  ;;  %v11090_v43 = vld [vmem:[#allocation9 + $0x6e0] sm:$0xff] }
0x19c4   :  { %11193 = vmatpush1.bf16.msra.mxu0 %v11030_v13  ;;  %11357 = vmatpush1.bf16.msra.mxu1 %v11032_v51  ;;  %v11092_v13 = vld [vmem:[#allocation9 + $0x6f0] sm:$0xff]  ;;  %v10869_v51 = vpack.c.bf16 %v16507_v37, %v16507_v37 }
0x19c5   :  { %11194 = vmatprep.subr.bf16.mxu0 %v11035_v40  ;;  %11358 = vmatprep.subr.bf16.mxu1 %v11037_v16 }
0x19c8   :  { %11195 = vmatpush1.bf16.msra.mxu0 %v11034_v36  ;;  %11359 = vmatpush1.bf16.msra.mxu1 %v11036_v49 }
0x19c9   :  { %11196 = vmatprep.subr.bf16.mxu0 %v11039_v33  ;;  %11360 = vmatprep.subr.bf16.mxu1 %v11041_v5 }
0x19cc   :  { %11197 = vmatpush1.bf16.msra.mxu0 %v11038_v18  ;;  %11361 = vmatpush1.bf16.msra.mxu1 %v11040_v54 }
0x19cd   :  { %11198 = vmatprep.subr.bf16.mxu0 %v11043_v22  ;;  %11362 = vmatprep.subr.bf16.mxu1 %v11045_v23 }
0x19d0   :  { %11199 = vmatpush1.bf16.msra.mxu0 %v11042_v62  ;;  %11363 = vmatpush1.bf16.msra.mxu1 %v11044_v12 }
0x19d1   :  { %11200 = vmatprep.subr.bf16.mxu0 %v11047_v17  ;;  %11364 = vmatprep.subr.bf16.mxu1 %v11049_v8 }
0x19d4   :  { %11201 = vmatpush1.bf16.msra.mxu0 %v11046_v26  ;;  %11365 = vmatpush1.bf16.msra.mxu1 %v11048_v3 }
0x19d5   :  { %11202 = vmatprep.subr.bf16.mxu0 %v11051_v2  ;;  %11366 = vmatprep.subr.bf16.mxu1 %v11053_v48 }
0x19d8   :  { %11203 = vmatpush1.bf16.msra.mxu0 %v11050_v60  ;;  %11367 = vmatpush1.bf16.msra.mxu1 %v11052_v56 }
0x19d9   :  { %11204 = vmatprep.subr.bf16.mxu0 %v11055_v29  ;;  %11368 = vmatprep.subr.bf16.mxu1 %v11057_v31 }
0x19dc   :  { %11205 = vmatpush1.bf16.msra.mxu0 %v11054_v15  ;;  %11369 = vmatpush1.bf16.msra.mxu1 %v11056_v52 }
0x19dd   :  { %11206 = vmatprep.subr.bf16.mxu0 %v11059_v35  ;;  %11370 = vmatprep.subr.bf16.mxu1 %v11061_v1 }
0x19e0   :  { %11207 = vmatpush1.bf16.msra.mxu0 %v11058_v63  ;;  %11371 = vmatpush1.bf16.msra.mxu1 %v11060_v28 }
0x19e1   :  { %11217 = vmatprep.subr.bf16.mxu0 %v11063_v39  ;;  %11381 = vmatprep.subr.bf16.mxu1 %v11065_v47 }
0x19e3   :  { %11209 = vmatmul.mubr.bf16.vlgmr.msra.gmra.mrb[68].mxu0 %v10867_v41  ;;  %11373 = vmatmul.mubr.bf16.vlgmr.msra.gmra.mrb[80].mxu1 %v10867_v41 }
0x19e4   :  { %11218 = vmatpush1.bf16.msra.mxu0 %v11062_v45  ;;  %11382 = vmatpush1.bf16.msra.mxu1 %v11064_v20 }
0x19e5   :  { %11219 = vmatprep.subr.bf16.mxu0 %v11067_v50  ;;  %11383 = vmatprep.subr.bf16.mxu1 %v11069_v19 }
0x19e6   :  { %11249 = vmatprep.mubr.bf16.mxu0 %v16647_v6  ;;  %11413 = vmatprep.mubr.bf16.mxu1 %v16647_v6  ;;  %v11078_v6 = vld [vmem:[#allocation9 + $0x680] sm:$0xff] }
0x19e8   :  { %11220 = vmatpush1.bf16.msra.mxu0 %v11066_v27  ;;  %11384 = vmatpush1.bf16.msra.mxu1 %v11068_v0 }
0x19e9   :  { %11221 = vmatprep.subr.bf16.mxu0 %v11071_v44  ;;  %11385 = vmatprep.subr.bf16.mxu1 %v11073_v24 }
0x19ec   :  { %11222 = vmatpush1.bf16.msra.mxu0 %v11070_v34  ;;  %11386 = vmatpush1.bf16.msra.mxu1 %v11072_v21 }
0x19ed   :  { %11223 = vmatprep.subr.bf16.mxu0 %v11075_v25  ;;  %11387 = vmatprep.subr.bf16.mxu1 %v11077_v32 }
0x19f0   :  { %11224 = vmatpush1.bf16.msra.mxu0 %v11074_v46  ;;  %11388 = vmatpush1.bf16.msra.mxu1 %v11076_v53 }
0x19f1   :  { %11225 = vmatprep.subr.bf16.mxu0 %v11079_v38  ;;  %11389 = vmatprep.subr.bf16.mxu1 %v11081_v55 }
0x19f4   :  { %11226 = vmatpush1.bf16.msra.mxu0 %v11078_v6  ;;  %11390 = vmatpush1.bf16.msra.mxu1 %v11080_v14  ;;  %v11464_v6 = vld [vmem:[#allocation11] sm:$0x1] }
0x19f5   :  { %11227 = vmatprep.subr.bf16.mxu0 %v11083_v7  ;;  %11391 = vmatprep.subr.bf16.mxu1 %v11085_v11  ;;  %v11468_v11 = vld [vmem:[#allocation12] sm:$0x1] }
0x19f8   :  { %11228 = vmatpush1.bf16.msra.mxu0 %v11082_v4  ;;  %11392 = vmatpush1.bf16.msra.mxu1 %v11084_v58 }
0x19f9   :  { %11229 = vmatprep.subr.bf16.mxu0 %v11087_v42  ;;  %11393 = vmatprep.subr.bf16.mxu1 %v11089_v9 }
0x19fc   :  { %11230 = vmatpush1.bf16.msra.mxu0 %v11086_v30  ;;  %11394 = vmatpush1.bf16.msra.mxu1 %v11088_v57 }
0x19fd   :  { %11231 = vmatprep.subr.bf16.mxu0 %v11091_v59  ;;  %11395 = vmatprep.subr.bf16.mxu1 %v11093_v61 }
0x1a00   :  { %11232 = vmatpush1.bf16.msra.mxu0 %v11090_v43  ;;  %11396 = vmatpush1.bf16.msra.mxu1 %v11092_v13 }
0x1a03   :  { %11250 = vmatmul.mubr.bf16.vlgmr.msra.gmra.mrb[68].mxu0 %v10869_v51  ;;  %11414 = vmatmul.mubr.bf16.vlgmr.msra.gmra.mrb[80].mxu1 %v10869_v51 }
0x1ad6   :  { %v11251_v40 = vpop.f32.mrb[68].mxu0  ;;  %v16533_v16 = vpop.f32.mrb[80].mxu1 }
0x1ad7   :  { %v11423_v36 = vsel %vm11422_vm14, %v11251_v40, 0.0  ;;  %v11432_v49 = vmul.f32 %v11251_v40, %v11251_v40  ;;  %v11253_v33 = vpop.f32.mrb[69].mxu0  ;;  %v11417_v5 = vpop.f32.mrb[81].mxu1  ;;  %v11434_v18 = vmul.f32 %v16533_v16, %v16533_v16  ;;  %v11426_v3 = vsel %vm11422_vm14, %v16533_v16, 0.0 }
0x1ad8   :  { %v11424_v54 = vsel %vm11422_vm14, %v11253_v33, 0.0  ;;  %v11433_v22 = vmul.f32 %v11253_v33, %v11253_v33  ;;  %v11255_v37 = vpop.f32.mrb[70].mxu0  ;;  %v11419_v23 = vpop.f32.mrb[82].mxu1  ;;  %v11435_v2 = vmul.f32 %v11417_v5, %v11417_v5  ;;  %v11428_v56 = vsel %vm7459_vm15, %v11417_v5, 0.0 }
0x1ad9   :  { %v11436_v62 = vsel %vm11422_vm14, %v11432_v49, 0.0  ;;  %v11256_v12 = vpop.f32.mrb[71].mxu0  ;;  %v11420_v17 = vpop.f32.mrb[83].mxu1  ;;  %v11425_v8 = vadd.f32 %v11424_v54, %v11423_v36  ;;  %v11439_v29 = vsel %vm11422_vm14, %v11434_v18, 0.0 }
0x1ada   :  { %v11437_v26 = vsel %vm11422_vm14, %v11433_v22, 0.0  ;;  %v11441_v52 = vsel %vm7459_vm15, %v11435_v2, 0.0  ;;  %vm11531_vm15 = vcmask 1043458   ;;  %v16648_v12 = vld [vmem:[#allocation51_spill] sm:$0xff] }
0x1adb   :  { %v11427_v48 = vadd.f32 %v11426_v3, %v11425_v8  ;;  %v11438_v60 = vadd.f32 %v11437_v26, %v11436_v62  ;;  %vm11532_vm6 = vmor %vm11531_vm15, %vm11422_vm14 }
0x1adc   :  { %vm11534_vm8 = vmor %vm11533_vm7, %vm11532_vm6 }
0x1add   :  { %v11429_v31 = vadd.f32 %v11428_v56, %v11427_v48  ;;  %v11440_v15 = vadd.f32 %v11439_v29, %v11438_v60  ;;  %vm11536_vm1 = vmor %vm11535_vm0, %vm11534_vm8 }
0x1adf   :  { %11430 = vadd.xlane.f32.xlu0 %v11429_v31  ;;  %v11442_v35 = vadd.f32 %v11441_v52, %v11440_v15 }
0x1ae3   :  { %11443 = vadd.xlane.f32.xlu0 %v11442_v35 }
0x1b6c   :  { %v11431_v1 = vpop.xlane.xlu0 %11430 }
0x1b6d   :  { %v11445_v63 = vsel %vm11422_vm14, %v11431_v1, 0.0 }
0x1b6e   :  { %v11446_v28 = vrot.slane %v11445_v63, 4 }
0x1b70   :  { %v11447_v39 = vadd.f32 %v11446_v28, %v11445_v63  ;;  %v11444_v47 = vpop.xlane.xlu0 %11443 }
0x1b71   :  { %v11453_v41 = vsel %vm11422_vm14, %v11444_v47, 0.0 }
0x1b72   :  { %v11448_v45 = vrot.slane %v11447_v39, 2  ;;  %v11454_v20 = vrot.slane %v11453_v41, 4 }
0x1b74   :  { %v11449_v50 = vadd.f32 %v11448_v45, %v11447_v39  ;;  %v11455_v19 = vadd.f32 %v11454_v20, %v11453_v41 }
0x1b76   :  { %v11450_v27 = vrot.slane %v11449_v50, 1  ;;  %v11456_v0 = vrot.slane %v11455_v19, 2 }
0x1b78   :  { %v11451_v44 = vadd.f32 %v11450_v27, %v11449_v50  ;;  %v11457_v24 = vadd.f32 %v11456_v0, %v11455_v19 }
0x1b7a   :  { %v11452_v34 = vmul.f32 0.0011160715, %v11451_v44  ;;  %v11458_v21 = vrot.slane %v11457_v24, 1 }
0x1b7c   :  { %v11459_v25 = vadd.f32 %v11458_v21, %v11457_v24  ;;  %v11461_v32 = vmul.f32 %v11452_v34, %v11452_v34 }
0x1b7e   :  { %v11460_v46 = vmul.f32 0.0011160715, %v11459_v25 }
0x1b80   :  { %v11462_v53 = vsub.f32 %v11460_v46, %v11461_v32 }
0x1b82   :  { %v11463_v38 = vmax.f32 %v11462_v53, 0.0 }
0x1b84   :  { %v11465_v55 = vadd.f32 1e-05, %v11463_v38 }
0x1b86   :  { %13600 = vrsqrt.f32 %v11465_v55 }
0x1b90   :  { %v13601_v14 = vpop.eup %13600 }
0x1b91   :  { %v11467_v7 = vmul.f32 %v13601_v14, %v11464_v6 }
0x1b93   :  { %v11475_v4 = vrot.slane %v11467_v7, %v16646_v10  ;;  %v11469_v58 = vmul.f32 %v11467_v7, %v11452_v34 }
0x1b95   :  { %11477 = vperm.xlu1 %13598, %v11475_v4   ;;  %v11470_v42 = vsub.f32 %v11468_v11, %v11469_v58 }
0x1b97   :  { %v11488_v9 = vrot.slane %v11470_v42, %v16646_v10 }
0x1b99   :  { %11490 = vperm.xlu1 %13598, %v11488_v9  }
0x1c14   :  { %v11478_v30 = vpop.permute.xlu1 %11477 }
0x1c15   :  { %v11480_v57 = vmul.f32 %v11478_v30, %v11251_v40  ;;  %v11481_v59 = vmul.f32 %v11478_v30, %v11253_v33  ;;  %v11482_v61 = vmul.f32 %v11478_v30, %v16533_v16  ;;  %v11483_v43 = vmul.f32 %v11478_v30, %v11417_v5 }
0x1c18   :  { %v11491_v13 = vpop.permute.xlu1 %11490 }
0x1c19   :  { %v11493_v51 = vadd.f32 %v11491_v13, %v11480_v57  ;;  %v11494_v36 = vadd.f32 %v11491_v13, %v11481_v59  ;;  %v11495_v49 = vadd.f32 %v11491_v13, %v11482_v61  ;;  %v11496_v18 = vadd.f32 %v11491_v13, %v11483_v43 }
0x1c1b   :  { %vm11497_vm2 = vcmp.gt.f32.partialorder %v11493_v51, 0.0  ;;  %vm11498_vm3 = vcmp.gt.f32.partialorder %v11494_v36, 0.0  ;;  %vm11499_vm4 = vcmp.gt.f32.partialorder %v11495_v49, 0.0  ;;  %vm11500_vm5 = vcmp.gt.f32.partialorder %v11496_v18, 0.0 }
0x1c1c   :  { %v11501_v54 = vmul.f32 0.01, %v11493_v51  ;;  %v11502_v22 = vmul.f32 0.01, %v11494_v36  ;;  %v11503_v10 = vmul.f32 0.01, %v11495_v49 }
0x1c1d   :  { %v11504_v40 = vmul.f32 0.01, %v11496_v18 }
0x1c1e   :  { %v11505_v16 = vsel %vm11497_vm2, %v11493_v51, %v11501_v54  ;;  %v11506_v33 = vsel %vm11498_vm3, %v11494_v36, %v11502_v22  ;;  %v11507_v5 = vsel %vm11499_vm4, %v11495_v49, %v11503_v10 }
0x1c1f   :  { %v11508_v37 = vsel %vm11500_vm5, %v11496_v18, %v11504_v40  ;;  %v11513_v23 = vcombine.low %v11505_v16, %v11506_v33 }
0x1c20   :  { %v11514_v62 = vcombine.low %v11507_v5, %v11508_v37 }
0x1c21   :  { %v11521_v17 = vrot.slane %v11513_v23, %v16648_v12 }
0x1c22   :  { %v11528_v8 = vrot.slane %v11514_v62, %v16648_v12 }
0x1c24   :  { %v11529_v26 = vcombine.low %v11521_v17, %v11528_v8 }
0x1c26   :  { %11537 = vst.msk [vmem:[%s13928_s15] sm:$0xff] %vm11536_vm1, %v11529_v26 }
0x1c27   :  { %11542 = vsyncmov [#allocation10] }
0x1c2a   :  { %s11543_s27 = vpop.sfrf %11542 }
0x1c2b   :  { %p11774_p0 = scmp.ne.s32.totalorder %s11543_s27, 0 }
0x1c2d   :  { %11547 = shalt.err (%p11774_p0)  }
0x1c2e   :  { %11549 = vsyncmov [#allocation10 + $0x1] }
0x1c31   :  { %s11550_s4 = vpop.sfrf %11549 }
0x1c32   :  { %p11775_p1 = scmp.ne.s32.totalorder %s11550_s4, 0 }
0x1c34   :  { %11554 = shalt.err (%p11775_p1)  }
0x1c35   :  { %11556 = vsyncmov [#allocation10 + $0x2] }
0x1c38   :  { %s11557_s23 = vpop.sfrf %11556 }
0x1c39   :  { %p11776_p2 = scmp.ne.s32.totalorder %s11557_s23, 0 }
0x1c3b   :  { %11561 = shalt.err (%p11776_p2)  }
0x1c3c   :  { %11563 = vsyncmov [#allocation10 + $0x3] }
0x1c3f   :  { %s11564_s2 = vpop.sfrf %11563 }
0x1c40   :  { %p11777_p3 = scmp.ne.s32.totalorder %s11564_s2, 0 }
0x1c42   :  { %11568 = shalt.err (%p11777_p3)  }
0x1c43   :  { %11570 = vsyncmov [#allocation10 + $0x4] }
0x1c46   :  { %s11571_s16 = vpop.sfrf %11570 }
0x1c47   :  { %p11778_p4 = scmp.ne.s32.totalorder %s11571_s16, 0 }
0x1c49   :  { %11575 = shalt.err (%p11778_p4)  }
0x1c4a   :  { %11577 = vsyncmov [#allocation10 + $0x5] }
0x1c4d   :  { %s11578_s15 = vpop.sfrf %11577 }
0x1c4e   :  { %p11779_p5 = scmp.ne.s32.totalorder %s11578_s15, 0 }
0x1c50   :  { %11582 = shalt.err (%p11779_p5)  }
0x1c51   :  { %11584 = vsyncmov [#allocation10 + $0x6] }
0x1c54   :  { %s11585_s28 = vpop.sfrf %11584 }
0x1c55   :  { %p11780_p6 = scmp.ne.s32.totalorder %s11585_s28, 0 }
0x1c57   :  { %11589 = shalt.err (%p11780_p6)  }
0x1c58   :  { %11591 = vsyncmov [#allocation10 + $0x7] }
0x1c5b   :  { %s11592_s11 = vpop.sfrf %11591 }
0x1c5c   :  { %p11781_p7 = scmp.ne.s32.totalorder %s11592_s11, 0 }
0x1c5e   :  { %11596 = shalt.err (%p11781_p7)  }

</bundles_post_ra>
